<compile_context>
chip_gen: v6e
topology: v6e:2x2x1
jax: 0.10.0
libtpu: 0.0.40
codegen_flags: <defaults>
</compile_context>

<pallas_src>
import functools

import numpy as np
import jax
import jax.numpy as jnp
from jax.experimental import pallas as pl
from jax.experimental.pallas import tpu as pltpu

# Safe on v7x (64 MiB physical per TC); raises the 16/32 MiB scoped defaults on v5e/v6e.
_VMEM_LIMIT_BYTES = 48 * 1024 * 1024


def _choose_tile_rows(H, max_rows=32):
    """Largest multiple-of-8 divisor of H that is <= max_rows (and < H), else H."""
    best = None
    for th in range(8, min(H - 1, max_rows) + 1, 8):
        if H % th == 0:
            best = th
    return best if best is not None else H


def _pass1_kernel(H, W, WP, TH, C, approx_gelu,
                  xflat_ref, dww_ref, dwb_ref, ln_g_ref, ln_b_ref, w1_ref, b1_ref,
                  h_ref, ss_ref):
    """One (batch, row-tile) step: dwconv7x7 + LN + pwconv1 + GELU, plus this tile's
    contribution to the GRN per-channel sum of squares."""
    t = pl.program_id(1)
    NT = (TH + 6) * WP                                # padded slab extent for this tile
    start = pl.multiple_of(t * (TH * WP), 8)          # multiple of WP -> aligned slice

    xin = xflat_ref[pl.ds(start, NT), :].astype(jnp.float32)     # ((TH+6)*WP, C)
    dww = dww_ref[...].astype(jnp.float32)                       # (7, 7, C)

    # ---- depthwise 7x7 conv in the over-padded row layout -----------------------
    # First tap and the bias are folded into the accumulator init (no zero-fill).
    acc = xin[0:TH * WP] * dww[0, 0] + dwb_ref[...]
    for j in range(7):                       # column shift -> XLU roll (free slot)
        rolled = xin if j == 0 else pltpu.roll(xin, shift=NT - j, axis=0)
        for i in range(7):                   # row shift -> sublane-ALIGNED static slice
            if i == 0 and j == 0:
                continue
            acc = acc + rolled[i * WP:i * WP + TH * WP] * dww[i, j]
    # (wrap-around of the rolls lands only in the discarded over-padded columns)

    # ---- LayerNorm over channels (eps = 1e-6); pad columns carry junk, dropped later
    mean = jnp.mean(acc, axis=-1, keepdims=True)
    var = jnp.mean(jnp.square(acc - mean), axis=-1, keepdims=True)
    y = (acc - mean) * jax.lax.rsqrt(var + 1e-6)
    y = y * ln_g_ref[...] + ln_b_ref[...]

    # ---- pwconv1 (dim -> 4*dim): MXU, f32 accumulation ---------------------------
    h = jnp.dot(y.astype(w1_ref.dtype), w1_ref[...],
                preferred_element_type=jnp.float32) + b1_ref[...]

    # ---- GELU --------------------------------------------------------------------
    if approx_gelu:
        # tanh approximation -> EUP slot instead of the VALU erf polynomial
        c = np.float32(np.sqrt(2.0 / np.pi))
        h = 0.5 * h * (1.0 + jnp.tanh(c * (h + np.float32(0.044715) * h * h * h)))
    else:
        # exact erf GELU (matches torch.nn.GELU default)
        h = 0.5 * h * (1.0 + jax.lax.erf(h * np.float32(1.0 / np.sqrt(2.0))))

    # ---- zero the over-padded columns ONCE: correct GRN stats + clean stored h ----
    col = jax.lax.broadcasted_iota(jnp.int32, (TH * WP, 1), 0) % WP
    h = jnp.where(col < W, h, 0.0)

    h_ref[...] = h.astype(h_ref.dtype)

    # ---- GRN pass 1: accumulate per-channel sum of squares across row tiles -------
    @pl.when(t == 0)
    def _():
        ss_ref[...] = jnp.zeros_like(ss_ref)
    ss_ref[...] = ss_ref[...] + jnp.sum(h * h, axis=0, keepdims=True)


def _pass2_kernel(H, W, WP, TH, C,
                  h_ref, ss_ref, xflat_ref, grn_g_ref, grn_b_ref, w2_ref, b2_ref,
                  o_ref):
    """One (batch, row-tile) step: GRN scale + pwconv2 + residual, lane-dense store."""
    del H
    t = pl.program_id(1)

    # ---- GRN pass 2: global per-channel scale from the accumulated sum of squares -
    gx = jnp.sqrt(ss_ref[...])                                     # (1, 4C)
    nx = gx / (jnp.mean(gx, axis=-1, keepdims=True) + 1e-6)
    scale = 1.0 + grn_g_ref[...] * nx                              # h*(1+g*nx)+b : one FMA

    h = h_ref[...].astype(jnp.float32)                             # (TH*WP, 4C)
    h = h * scale + grn_b_ref[...]

    # ---- pwconv2 (4*dim -> dim): MXU -----------------------------------------------
    z = jnp.dot(h.astype(w2_ref.dtype), w2_ref[...],
                preferred_element_type=jnp.float32) + b2_ref[...]  # (TH*WP, C)

    # ---- residual: re-slice the (already resident) padded input for this tile ------
    start = pl.multiple_of((t * TH + 3) * WP, 8)
    xres = xflat_ref[pl.ds(start, TH * WP), :].astype(jnp.float32)
    # undo the 3-column left padding; wrap-around lands only in the discarded
    # over-padded columns (requires WP >= W + 6, asserted in the wrapper).
    xres = pltpu.roll(xres, shift=TH * WP - 3, axis=0)

    out = xres + z                                                 # drop_path==0 -> identity

    # ---- lane-dense store: drop pad columns, flatten to (TH, W*C) -------------------
    o_ref[...] = (out.reshape(TH, WP, C)[:, :W, :]
                     .reshape(TH, W * C).astype(o_ref.dtype))


def convnextv2_block_nhwc(x_nhwc, params, *, mxu_dtype=jnp.bfloat16, approx_gelu=True):
    """ConvNeXtV2 block on an NHWC activation. Returns NHWC."""
    B, H, W, C = x_nhwc.shape
    HP = H + 6
    WP = W + 6 + ((-(W + 6)) % 8)      # pad width to a multiple of 8 -> aligned row shifts
    TH = _choose_tile_rows(H)          # row-tile height (multiple of 8, or H itself)
    T = H // TH
    # Invariants the in-kernel roll/slice tricks rely on (boundary-column containment):
    assert WP % 8 == 0 and WP >= W + 6 and H % TH == 0 and (TH % 8 == 0 or TH == H)

    # Padded, flattened, (bf16 in the perf path) input: halves input DMA + VMEM.
    xflat = jnp.pad(x_nhwc, ((0, 0), (3, 3), (3, WP - W - 3), (0, 0)))
    xflat = xflat.reshape(B, HP * WP, C).astype(mxu_dtype)

    dww = params["dw_w"]                        # (7, 7, C)
    dwb = params["dw_b"].reshape(1, C)
    ln_g = params["ln_g"].reshape(1, C)
    ln_b = params["ln_b"].reshape(1, C)
    w1 = params["w1"].astype(mxu_dtype)         # (C, 4C)
    b1 = params["b1"].reshape(1, 4 * C)
    grn_g = params["grn_g"].reshape(1, 4 * C)
    grn_b = params["grn_b"].reshape(1, 4 * C)
    w2 = params["w2"].astype(mxu_dtype)         # (4C, C)
    b2 = params["b2"].reshape(1, C)

    # Constant index maps -> weights are fetched once and stay resident across the grid.
    const = lambda shape: pl.BlockSpec(shape, lambda b, t: (0,) * len(shape))

    # ---- pass 1: dwconv + LN + pwconv1 + GELU per (batch, row-tile); GRN sum-sq ----
    h, ss = pl.pallas_call(
        functools.partial(_pass1_kernel, H, W, WP, TH, C, approx_gelu),
        out_shape=(jax.ShapeDtypeStruct((B, H * WP, 4 * C), mxu_dtype),
                   jax.ShapeDtypeStruct((B, 1, 4 * C), jnp.float32)),
        grid_spec=pl.GridSpec(
            grid=(B, T),
            in_specs=[
                # whole padded image per batch, resident across the row-tile axis
                pl.BlockSpec((None, HP * WP, C), lambda b, t: (b, 0, 0)),
                const((7, 7, C)), const((1, C)), const((1, C)), const((1, C)),
                const((C, 4 * C)), const((1, 4 * C)),
            ],
            out_specs=(
                pl.BlockSpec((None, TH * WP, 4 * C), lambda b, t: (b, t, 0)),
                pl.BlockSpec((None, 1, 4 * C), lambda b, t: (b, 0, 0)),   # accumulated over t
            ),
        ),
        compiler_params=pltpu.CompilerParams(
            dimension_semantics=("parallel", "arbitrary"),
            vmem_limit_bytes=_VMEM_LIMIT_BYTES),
    )(xflat, dww, dwb, ln_g, ln_b, w1, b1)

    # ---- pass 2: GRN scale + pwconv2 + residual, lane-dense (H, W*C) output --------
    out = pl.pallas_call(
        functools.partial(_pass2_kernel, H, W, WP, TH, C),
        out_shape=jax.ShapeDtypeStruct((B, H, W * C), x_nhwc.dtype),
        grid_spec=pl.GridSpec(
            grid=(B, T),
            in_specs=[
                pl.BlockSpec((None, TH * WP, 4 * C), lambda b, t: (b, t, 0)),
                pl.BlockSpec((None, 1, 4 * C), lambda b, t: (b, 0, 0)),
                pl.BlockSpec((None, HP * WP, C), lambda b, t: (b, 0, 0)),
                const((1, 4 * C)), const((1, 4 * C)),
                const((4 * C, C)), const((1, C)),
            ],
            out_specs=pl.BlockSpec((None, TH, W * C), lambda b, t: (b, t, 0)),
        ),
        compiler_params=pltpu.CompilerParams(
            dimension_semantics=("parallel", "parallel"),
            vmem_limit_bytes=_VMEM_LIMIT_BYTES),
    )(h, ss, xflat, grn_g, grn_b, w2, b2)

    return out.reshape(B, H, W, C)


def convnextv2_block(x_nchw, params, *, mxu_dtype=jnp.bfloat16, approx_gelu=True):
    """Drop-in for the PyTorch Block: NCHW in, NCHW out.

    The NCHW<->NHWC transposes only exist to match the torch interface; in a full
    ConvNeXtV2 network keep activations NHWC and call convnextv2_block_nhwc directly.
    """
    x = jnp.transpose(x_nchw, (0, 2, 3, 1))
    y = convnextv2_block_nhwc(x, params, mxu_dtype=mxu_dtype, approx_gelu=approx_gelu)
    return jnp.transpose(y, (0, 3, 1, 2))


def reference_block(x_nchw, params):
    """Pure-JAX f32 reference mirroring the PyTorch forward (NCHW in/out)."""
    C = x_nchw.shape[1]
    w = jnp.transpose(params["dw_w"], (2, 0, 1))[:, None, :, :]   # (C, 1, 7, 7)
    y = jax.lax.conv_general_dilated(
        x_nchw, w, window_strides=(1, 1), padding=((3, 3), (3, 3)),
        feature_group_count=C, dimension_numbers=("NCHW", "OIHW", "NCHW"))
    y = y + params["dw_b"][None, :, None, None]
    y = jnp.transpose(y, (0, 2, 3, 1))                            # NHWC
    mean = jnp.mean(y, -1, keepdims=True)
    var = jnp.mean(jnp.square(y - mean), -1, keepdims=True)
    y = (y - mean) * jax.lax.rsqrt(var + 1e-6) * params["ln_g"] + params["ln_b"]
    h = y @ params["w1"] + params["b1"]
    h = 0.5 * h * (1.0 + jax.lax.erf(h / np.sqrt(2.0)))           # exact GELU
    gx = jnp.sqrt(jnp.sum(h * h, axis=(1, 2), keepdims=True))
    nx = gx / (jnp.mean(gx, -1, keepdims=True) + 1e-6)
    h = params["grn_g"] * (h * nx) + params["grn_b"] + h
    z = h @ params["w2"] + params["b2"]
    z = jnp.transpose(z, (0, 3, 1, 2))
    return x_nchw + z


def init_params(key, dim):
    ks = jax.random.split(key, 10)
    n = lambda k, s, sc: sc * jax.random.normal(k, s, jnp.float32)
    return {
        "dw_w": n(ks[0], (7, 7, dim), 0.1),          # torch: (dim, 1, 7, 7)
        "dw_b": n(ks[1], (dim,), 0.1),
        "ln_g": 1.0 + n(ks[2], (dim,), 0.01),
        "ln_b": n(ks[3], (dim,), 0.01),
        "w1": n(ks[4], (dim, 4 * dim), 0.1),         # torch Linear weight transposed
        "b1": n(ks[5], (4 * dim,), 0.1),
        "grn_g": n(ks[6], (4 * dim,), 0.1),          # torch init is zeros; nonzero to exercise path
        "grn_b": n(ks[7], (4 * dim,), 0.1),
        "w2": n(ks[8], (4 * dim, dim), 0.1),
        "b2": n(ks[9], (dim,), 0.1),
    }


if __name__ == "__main__":
    key = jax.random.PRNGKey(0)
    k_x, k_p = jax.random.split(key)
    B, dim, H, W = 2, 4, 16, 16          # 16 rows / 8-row tiles -> exercises halo + 2-pass GRN
    x = jax.random.normal(k_x, (B, dim, H, W), jnp.float32)
    params = init_params(k_p, dim)

    ref = jax.block_until_ready(reference_block(x, params))

    # Performance configuration: bf16 DMA/MXU operands + tanh (EUP) GELU -> loose tolerance.
    out = jax.block_until_ready(convnextv2_block(x, params))
    assert out.shape == (B, dim, H, W)
    np.testing.assert_allclose(np.asarray(out), np.asarray(ref), atol=5e-2, rtol=5e-2)

    # Exact configuration: f32 storage/operands + erf GELU.  Tolerance limited only by
    # MXU f32 matmul precision; validates the restructured conv / LN / two-pass GRN /
    # residual alignment tightly.
    out_f32 = jax.block_until_ready(
        convnextv2_block(x, params, mxu_dtype=jnp.float32, approx_gelu=False))
    np.testing.assert_allclose(np.asarray(out_f32), np.asarray(ref), atol=5e-3, rtol=5e-3)

    print("KERNEL_OK")
</pallas_src>

<mosaic_0001>
module attributes {stable_mosaic.version = 11 : i64} {
  func.func @_pass1_kernel(%arg0: i32, %arg1: i32, %arg2: memref<1x528x4xbf16, #tpu.memory_space<vmem>>, %arg3: memref<7x7x4xf32, #tpu.memory_space<vmem>>, %arg4: memref<1x4xf32, #tpu.memory_space<vmem>>, %arg5: memref<1x4xf32, #tpu.memory_space<vmem>>, %arg6: memref<1x4xf32, #tpu.memory_space<vmem>>, %arg7: memref<4x16xbf16, #tpu.memory_space<vmem>>, %arg8: memref<1x16xf32, #tpu.memory_space<vmem>>, %arg9: memref<1x192x16xbf16, #tpu.memory_space<vmem>>, %arg10: memref<1x1x16xf32, #tpu.memory_space<vmem>>) attributes {dimension_semantics = [#tpu.dimension_semantics<parallel>, #tpu.dimension_semantics<arbitrary>], iteration_bounds = array<i64: 2, 2>, scalar_prefetch = 0 : i64, scratch_operands = 0 : i64, tpu.core_type = #tpu.core_type<tc>, window_params = [{transform_indices = @transform_0, window_bounds = array<i64: 1, 528, 4>}, {pipeline_mode = #tpu.pipeline_mode<synchronous>, transform_indices = @transform_1, window_bounds = array<i64: 7, 7, 4>}, {pipeline_mode = #tpu.pipeline_mode<synchronous>, transform_indices = @transform_2, window_bounds = array<i64: 1, 4>}, {pipeline_mode = #tpu.pipeline_mode<synchronous>, transform_indices = @transform_3, window_bounds = array<i64: 1, 4>}, {pipeline_mode = #tpu.pipeline_mode<synchronous>, transform_indices = @transform_4, window_bounds = array<i64: 1, 4>}, {pipeline_mode = #tpu.pipeline_mode<synchronous>, transform_indices = @transform_5, window_bounds = array<i64: 4, 16>}, {pipeline_mode = #tpu.pipeline_mode<synchronous>, transform_indices = @transform_6, window_bounds = array<i64: 1, 16>}, {transform_indices = @transform_7, window_bounds = array<i64: 1, 192, 16>}, {transform_indices = @transform_8, window_bounds = array<i64: 1, 1, 16>}]} {
    %c192_i32 = arith.constant 192 : i32
    %0 = arith.muli %arg1, %c192_i32 : i32
    %1 = tpu.assume_multiple %0, 8 : i32
    %c0 = arith.constant 0 : index
    %2 = arith.index_cast %1 : i32 to index
    %c0_0 = arith.constant 0 : index
    %3 = vector.load %arg2[%c0, %2, %c0_0] : memref<1x528x4xbf16, #tpu.memory_space<vmem>>, vector<1x336x4xbf16>
    %4 = vector.shape_cast %3 : vector<1x336x4xbf16> to vector<336x4xbf16>
    %5 = arith.extf %4 : vector<336x4xbf16> to vector<336x4xf32>
    %c0_1 = arith.constant 0 : index
    %c0_2 = arith.constant 0 : index
    %c0_3 = arith.constant 0 : index
    %6 = vector.load %arg3[%c0_1, %c0_2, %c0_3] : memref<7x7x4xf32, #tpu.memory_space<vmem>>, vector<7x7x4xf32>
    %7 = vector.extract_strided_slice %5 {offsets = [0, 0], sizes = [192, 4], strides = [1, 1]} : vector<336x4xf32> to vector<192x4xf32>
    %8 = vector.extract_strided_slice %6 {offsets = [0, 0, 0], sizes = [1, 1, 4], strides = [1, 1, 1]} : vector<7x7x4xf32> to vector<1x1x4xf32>
    %9 = vector.shape_cast %8 : vector<1x1x4xf32> to vector<4xf32>
    %10 = vector.shape_cast %9 : vector<4xf32> to vector<1x4xf32>
    %11 = vector.broadcast %10 : vector<1x4xf32> to vector<192x4xf32>
    %12 = arith.mulf %7, %11 : vector<192x4xf32>
    %c0_4 = arith.constant 0 : index
    %c0_5 = arith.constant 0 : index
    %13 = vector.load %arg4[%c0_4, %c0_5] : memref<1x4xf32, #tpu.memory_space<vmem>>, vector<1x4xf32>
    %14 = vector.broadcast %13 : vector<1x4xf32> to vector<192x4xf32>
    %15 = arith.addf %12, %14 : vector<192x4xf32>
    %16 = vector.extract_strided_slice %5 {offsets = [24, 0], sizes = [192, 4], strides = [1, 1]} : vector<336x4xf32> to vector<192x4xf32>
    %17 = vector.extract_strided_slice %6 {offsets = [1, 0, 0], sizes = [1, 1, 4], strides = [1, 1, 1]} : vector<7x7x4xf32> to vector<1x1x4xf32>
    %18 = vector.shape_cast %17 : vector<1x1x4xf32> to vector<4xf32>
    %19 = vector.shape_cast %18 : vector<4xf32> to vector<1x4xf32>
    %20 = vector.broadcast %19 : vector<1x4xf32> to vector<192x4xf32>
    %21 = arith.mulf %16, %20 : vector<192x4xf32>
    %22 = arith.addf %15, %21 : vector<192x4xf32>
    %23 = vector.extract_strided_slice %5 {offsets = [48, 0], sizes = [192, 4], strides = [1, 1]} : vector<336x4xf32> to vector<192x4xf32>
    %24 = vector.extract_strided_slice %6 {offsets = [2, 0, 0], sizes = [1, 1, 4], strides = [1, 1, 1]} : vector<7x7x4xf32> to vector<1x1x4xf32>
    %25 = vector.shape_cast %24 : vector<1x1x4xf32> to vector<4xf32>
    %26 = vector.shape_cast %25 : vector<4xf32> to vector<1x4xf32>
    %27 = vector.broadcast %26 : vector<1x4xf32> to vector<192x4xf32>
    %28 = arith.mulf %23, %27 : vector<192x4xf32>
    %29 = arith.addf %22, %28 : vector<192x4xf32>
    %30 = vector.extract_strided_slice %5 {offsets = [72, 0], sizes = [192, 4], strides = [1, 1]} : vector<336x4xf32> to vector<192x4xf32>
    %31 = vector.extract_strided_slice %6 {offsets = [3, 0, 0], sizes = [1, 1, 4], strides = [1, 1, 1]} : vector<7x7x4xf32> to vector<1x1x4xf32>
    %32 = vector.shape_cast %31 : vector<1x1x4xf32> to vector<4xf32>
    %33 = vector.shape_cast %32 : vector<4xf32> to vector<1x4xf32>
    %34 = vector.broadcast %33 : vector<1x4xf32> to vector<192x4xf32>
    %35 = arith.mulf %30, %34 : vector<192x4xf32>
    %36 = arith.addf %29, %35 : vector<192x4xf32>
    %37 = vector.extract_strided_slice %5 {offsets = [96, 0], sizes = [192, 4], strides = [1, 1]} : vector<336x4xf32> to vector<192x4xf32>
    %38 = vector.extract_strided_slice %6 {offsets = [4, 0, 0], sizes = [1, 1, 4], strides = [1, 1, 1]} : vector<7x7x4xf32> to vector<1x1x4xf32>
    %39 = vector.shape_cast %38 : vector<1x1x4xf32> to vector<4xf32>
    %40 = vector.shape_cast %39 : vector<4xf32> to vector<1x4xf32>
    %41 = vector.broadcast %40 : vector<1x4xf32> to vector<192x4xf32>
    %42 = arith.mulf %37, %41 : vector<192x4xf32>
    %43 = arith.addf %36, %42 : vector<192x4xf32>
    %44 = vector.extract_strided_slice %5 {offsets = [120, 0], sizes = [192, 4], strides = [1, 1]} : vector<336x4xf32> to vector<192x4xf32>
    %45 = vector.extract_strided_slice %6 {offsets = [5, 0, 0], sizes = [1, 1, 4], strides = [1, 1, 1]} : vector<7x7x4xf32> to vector<1x1x4xf32>
    %46 = vector.shape_cast %45 : vector<1x1x4xf32> to vector<4xf32>
    %47 = vector.shape_cast %46 : vector<4xf32> to vector<1x4xf32>
    %48 = vector.broadcast %47 : vector<1x4xf32> to vector<192x4xf32>
    %49 = arith.mulf %44, %48 : vector<192x4xf32>
    %50 = arith.addf %43, %49 : vector<192x4xf32>
    %51 = vector.extract_strided_slice %5 {offsets = [144, 0], sizes = [192, 4], strides = [1, 1]} : vector<336x4xf32> to vector<192x4xf32>
    %52 = vector.extract_strided_slice %6 {offsets = [6, 0, 0], sizes = [1, 1, 4], strides = [1, 1, 1]} : vector<7x7x4xf32> to vector<1x1x4xf32>
    %53 = vector.shape_cast %52 : vector<1x1x4xf32> to vector<4xf32>
    %54 = vector.shape_cast %53 : vector<4xf32> to vector<1x4xf32>
    %55 = vector.broadcast %54 : vector<1x4xf32> to vector<192x4xf32>
    %56 = arith.mulf %51, %55 : vector<192x4xf32>
    %57 = arith.addf %50, %56 : vector<192x4xf32>
    %c335_i32 = arith.constant 335 : i32
    %58 = tpu.dynamic_rotate %5 by %c335_i32 dim 0 : vector<336x4xf32>, i32 -> vector<336x4xf32>
    %59 = vector.extract_strided_slice %58 {offsets = [0, 0], sizes = [192, 4], strides = [1, 1]} : vector<336x4xf32> to vector<192x4xf32>
    %60 = vector.extract_strided_slice %6 {offsets = [0, 1, 0], sizes = [1, 1, 4], strides = [1, 1, 1]} : vector<7x7x4xf32> to vector<1x1x4xf32>
    %61 = vector.shape_cast %60 : vector<1x1x4xf32> to vector<4xf32>
    %62 = vector.shape_cast %61 : vector<4xf32> to vector<1x4xf32>
    %63 = vector.broadcast %62 : vector<1x4xf32> to vector<192x4xf32>
    %64 = arith.mulf %59, %63 : vector<192x4xf32>
    %65 = arith.addf %57, %64 : vector<192x4xf32>
    %66 = vector.extract_strided_slice %58 {offsets = [24, 0], sizes = [192, 4], strides = [1, 1]} : vector<336x4xf32> to vector<192x4xf32>
    %67 = vector.extract_strided_slice %6 {offsets = [1, 1, 0], sizes = [1, 1, 4], strides = [1, 1, 1]} : vector<7x7x4xf32> to vector<1x1x4xf32>
    %68 = vector.shape_cast %67 : vector<1x1x4xf32> to vector<4xf32>
    %69 = vector.shape_cast %68 : vector<4xf32> to vector<1x4xf32>
    %70 = vector.broadcast %69 : vector<1x4xf32> to vector<192x4xf32>
    %71 = arith.mulf %66, %70 : vector<192x4xf32>
    %72 = arith.addf %65, %71 : vector<192x4xf32>
    %73 = vector.extract_strided_slice %58 {offsets = [48, 0], sizes = [192, 4], strides = [1, 1]} : vector<336x4xf32> to vector<192x4xf32>
    %74 = vector.extract_strided_slice %6 {offsets = [2, 1, 0], sizes = [1, 1, 4], strides = [1, 1, 1]} : vector<7x7x4xf32> to vector<1x1x4xf32>
    %75 = vector.shape_cast %74 : vector<1x1x4xf32> to vector<4xf32>
    %76 = vector.shape_cast %75 : vector<4xf32> to vector<1x4xf32>
    %77 = vector.broadcast %76 : vector<1x4xf32> to vector<192x4xf32>
    %78 = arith.mulf %73, %77 : vector<192x4xf32>
    %79 = arith.addf %72, %78 : vector<192x4xf32>
    %80 = vector.extract_strided_slice %58 {offsets = [72, 0], sizes = [192, 4], strides = [1, 1]} : vector<336x4xf32> to vector<192x4xf32>
    %81 = vector.extract_strided_slice %6 {offsets = [3, 1, 0], sizes = [1, 1, 4], strides = [1, 1, 1]} : vector<7x7x4xf32> to vector<1x1x4xf32>
    %82 = vector.shape_cast %81 : vector<1x1x4xf32> to vector<4xf32>
    %83 = vector.shape_cast %82 : vector<4xf32> to vector<1x4xf32>
    %84 = vector.broadcast %83 : vector<1x4xf32> to vector<192x4xf32>
    %85 = arith.mulf %80, %84 : vector<192x4xf32>
    %86 = arith.addf %79, %85 : vector<192x4xf32>
    %87 = vector.extract_strided_slice %58 {offsets = [96, 0], sizes = [192, 4], strides = [1, 1]} : vector<336x4xf32> to vector<192x4xf32>
    %88 = vector.extract_strided_slice %6 {offsets = [4, 1, 0], sizes = [1, 1, 4], strides = [1, 1, 1]} : vector<7x7x4xf32> to vector<1x1x4xf32>
    %89 = vector.shape_cast %88 : vector<1x1x4xf32> to vector<4xf32>
    %90 = vector.shape_cast %89 : vector<4xf32> to vector<1x4xf32>
    %91 = vector.broadcast %90 : vector<1x4xf32> to vector<192x4xf32>
    %92 = arith.mulf %87, %91 : vector<192x4xf32>
    %93 = arith.addf %86, %92 : vector<192x4xf32>
    %94 = vector.extract_strided_slice %58 {offsets = [120, 0], sizes = [192, 4], strides = [1, 1]} : vector<336x4xf32> to vector<192x4xf32>
    %95 = vector.extract_strided_slice %6 {offsets = [5, 1, 0], sizes = [1, 1, 4], strides = [1, 1, 1]} : vector<7x7x4xf32> to vector<1x1x4xf32>
    %96 = vector.shape_cast %95 : vector<1x1x4xf32> to vector<4xf32>
    %97 = vector.shape_cast %96 : vector<4xf32> to vector<1x4xf32>
    %98 = vector.broadcast %97 : vector<1x4xf32> to vector<192x4xf32>
    %99 = arith.mulf %94, %98 : vector<192x4xf32>
    %100 = arith.addf %93, %99 : vector<192x4xf32>
    %101 = vector.extract_strided_slice %58 {offsets = [144, 0], sizes = [192, 4], strides = [1, 1]} : vector<336x4xf32> to vector<192x4xf32>
    %102 = vector.extract_strided_slice %6 {offsets = [6, 1, 0], sizes = [1, 1, 4], strides = [1, 1, 1]} : vector<7x7x4xf32> to vector<1x1x4xf32>
    %103 = vector.shape_cast %102 : vector<1x1x4xf32> to vector<4xf32>
    %104 = vector.shape_cast %103 : vector<4xf32> to vector<1x4xf32>
    %105 = vector.broadcast %104 : vector<1x4xf32> to vector<192x4xf32>
    %106 = arith.mulf %101, %105 : vector<192x4xf32>
    %107 = arith.addf %100, %106 : vector<192x4xf32>
    %c334_i32 = arith.constant 334 : i32
    %108 = tpu.dynamic_rotate %5 by %c334_i32 dim 0 : vector<336x4xf32>, i32 -> vector<336x4xf32>
    %109 = vector.extract_strided_slice %108 {offsets = [0, 0], sizes = [192, 4], strides = [1, 1]} : vector<336x4xf32> to vector<192x4xf32>
    %110 = vector.extract_strided_slice %6 {offsets = [0, 2, 0], sizes = [1, 1, 4], strides = [1, 1, 1]} : vector<7x7x4xf32> to vector<1x1x4xf32>
    %111 = vector.shape_cast %110 : vector<1x1x4xf32> to vector<4xf32>
    %112 = vector.shape_cast %111 : vector<4xf32> to vector<1x4xf32>
    %113 = vector.broadcast %112 : vector<1x4xf32> to vector<192x4xf32>
    %114 = arith.mulf %109, %113 : vector<192x4xf32>
    %115 = arith.addf %107, %114 : vector<192x4xf32>
    %116 = vector.extract_strided_slice %108 {offsets = [24, 0], sizes = [192, 4], strides = [1, 1]} : vector<336x4xf32> to vector<192x4xf32>
    %117 = vector.extract_strided_slice %6 {offsets = [1, 2, 0], sizes = [1, 1, 4], strides = [1, 1, 1]} : vector<7x7x4xf32> to vector<1x1x4xf32>
    %118 = vector.shape_cast %117 : vector<1x1x4xf32> to vector<4xf32>
    %119 = vector.shape_cast %118 : vector<4xf32> to vector<1x4xf32>
    %120 = vector.broadcast %119 : vector<1x4xf32> to vector<192x4xf32>
    %121 = arith.mulf %116, %120 : vector<192x4xf32>
    %122 = arith.addf %115, %121 : vector<192x4xf32>
    %123 = vector.extract_strided_slice %108 {offsets = [48, 0], sizes = [192, 4], strides = [1, 1]} : vector<336x4xf32> to vector<192x4xf32>
    %124 = vector.extract_strided_slice %6 {offsets = [2, 2, 0], sizes = [1, 1, 4], strides = [1, 1, 1]} : vector<7x7x4xf32> to vector<1x1x4xf32>
    %125 = vector.shape_cast %124 : vector<1x1x4xf32> to vector<4xf32>
    %126 = vector.shape_cast %125 : vector<4xf32> to vector<1x4xf32>
    %127 = vector.broadcast %126 : vector<1x4xf32> to vector<192x4xf32>
    %128 = arith.mulf %123, %127 : vector<192x4xf32>
    %129 = arith.addf %122, %128 : vector<192x4xf32>
    %130 = vector.extract_strided_slice %108 {offsets = [72, 0], sizes = [192, 4], strides = [1, 1]} : vector<336x4xf32> to vector<192x4xf32>
    %131 = vector.extract_strided_slice %6 {offsets = [3, 2, 0], sizes = [1, 1, 4], strides = [1, 1, 1]} : vector<7x7x4xf32> to vector<1x1x4xf32>
    %132 = vector.shape_cast %131 : vector<1x1x4xf32> to vector<4xf32>
    %133 = vector.shape_cast %132 : vector<4xf32> to vector<1x4xf32>
    %134 = vector.broadcast %133 : vector<1x4xf32> to vector<192x4xf32>
    %135 = arith.mulf %130, %134 : vector<192x4xf32>
    %136 = arith.addf %129, %135 : vector<192x4xf32>
    %137 = vector.extract_strided_slice %108 {offsets = [96, 0], sizes = [192, 4], strides = [1, 1]} : vector<336x4xf32> to vector<192x4xf32>
    %138 = vector.extract_strided_slice %6 {offsets = [4, 2, 0], sizes = [1, 1, 4], strides = [1, 1, 1]} : vector<7x7x4xf32> to vector<1x1x4xf32>
    %139 = vector.shape_cast %138 : vector<1x1x4xf32> to vector<4xf32>
    %140 = vector.shape_cast %139 : vector<4xf32> to vector<1x4xf32>
    %141 = vector.broadcast %140 : vector<1x4xf32> to vector<192x4xf32>
    %142 = arith.mulf %137, %141 : vector<192x4xf32>
    %143 = arith.addf %136, %142 : vector<192x4xf32>
    %144 = vector.extract_strided_slice %108 {offsets = [120, 0], sizes = [192, 4], strides = [1, 1]} : vector<336x4xf32> to vector<192x4xf32>
    %145 = vector.extract_strided_slice %6 {offsets = [5, 2, 0], sizes = [1, 1, 4], strides = [1, 1, 1]} : vector<7x7x4xf32> to vector<1x1x4xf32>
    %146 = vector.shape_cast %145 : vector<1x1x4xf32> to vector<4xf32>
    %147 = vector.shape_cast %146 : vector<4xf32> to vector<1x4xf32>
    %148 = vector.broadcast %147 : vector<1x4xf32> to vector<192x4xf32>
    %149 = arith.mulf %144, %148 : vector<192x4xf32>
    %150 = arith.addf %143, %149 : vector<192x4xf32>
    %151 = vector.extract_strided_slice %108 {offsets = [144, 0], sizes = [192, 4], strides = [1, 1]} : vector<336x4xf32> to vector<192x4xf32>
    %152 = vector.extract_strided_slice %6 {offsets = [6, 2, 0], sizes = [1, 1, 4], strides = [1, 1, 1]} : vector<7x7x4xf32> to vector<1x1x4xf32>
    %153 = vector.shape_cast %152 : vector<1x1x4xf32> to vector<4xf32>
    %154 = vector.shape_cast %153 : vector<4xf32> to vector<1x4xf32>
    %155 = vector.broadcast %154 : vector<1x4xf32> to vector<192x4xf32>
    %156 = arith.mulf %151, %155 : vector<192x4xf32>
    %157 = arith.addf %150, %156 : vector<192x4xf32>
    %c333_i32 = arith.constant 333 : i32
    %158 = tpu.dynamic_rotate %5 by %c333_i32 dim 0 : vector<336x4xf32>, i32 -> vector<336x4xf32>
    %159 = vector.extract_strided_slice %158 {offsets = [0, 0], sizes = [192, 4], strides = [1, 1]} : vector<336x4xf32> to vector<192x4xf32>
    %160 = vector.extract_strided_slice %6 {offsets = [0, 3, 0], sizes = [1, 1, 4], strides = [1, 1, 1]} : vector<7x7x4xf32> to vector<1x1x4xf32>
    %161 = vector.shape_cast %160 : vector<1x1x4xf32> to vector<4xf32>
    %162 = vector.shape_cast %161 : vector<4xf32> to vector<1x4xf32>
    %163 = vector.broadcast %162 : vector<1x4xf32> to vector<192x4xf32>
    %164 = arith.mulf %159, %163 : vector<192x4xf32>
    %165 = arith.addf %157, %164 : vector<192x4xf32>
    %166 = vector.extract_strided_slice %158 {offsets = [24, 0], sizes = [192, 4], strides = [1, 1]} : vector<336x4xf32> to vector<192x4xf32>
    %167 = vector.extract_strided_slice %6 {offsets = [1, 3, 0], sizes = [1, 1, 4], strides = [1, 1, 1]} : vector<7x7x4xf32> to vector<1x1x4xf32>
    %168 = vector.shape_cast %167 : vector<1x1x4xf32> to vector<4xf32>
    %169 = vector.shape_cast %168 : vector<4xf32> to vector<1x4xf32>
    %170 = vector.broadcast %169 : vector<1x4xf32> to vector<192x4xf32>
    %171 = arith.mulf %166, %170 : vector<192x4xf32>
    %172 = arith.addf %165, %171 : vector<192x4xf32>
    %173 = vector.extract_strided_slice %158 {offsets = [48, 0], sizes = [192, 4], strides = [1, 1]} : vector<336x4xf32> to vector<192x4xf32>
    %174 = vector.extract_strided_slice %6 {offsets = [2, 3, 0], sizes = [1, 1, 4], strides = [1, 1, 1]} : vector<7x7x4xf32> to vector<1x1x4xf32>
    %175 = vector.shape_cast %174 : vector<1x1x4xf32> to vector<4xf32>
    %176 = vector.shape_cast %175 : vector<4xf32> to vector<1x4xf32>
    %177 = vector.broadcast %176 : vector<1x4xf32> to vector<192x4xf32>
    %178 = arith.mulf %173, %177 : vector<192x4xf32>
    %179 = arith.addf %172, %178 : vector<192x4xf32>
    %180 = vector.extract_strided_slice %158 {offsets = [72, 0], sizes = [192, 4], strides = [1, 1]} : vector<336x4xf32> to vector<192x4xf32>
    %181 = vector.extract_strided_slice %6 {offsets = [3, 3, 0], sizes = [1, 1, 4], strides = [1, 1, 1]} : vector<7x7x4xf32> to vector<1x1x4xf32>
    %182 = vector.shape_cast %181 : vector<1x1x4xf32> to vector<4xf32>
    %183 = vector.shape_cast %182 : vector<4xf32> to vector<1x4xf32>
    %184 = vector.broadcast %183 : vector<1x4xf32> to vector<192x4xf32>
    %185 = arith.mulf %180, %184 : vector<192x4xf32>
    %186 = arith.addf %179, %185 : vector<192x4xf32>
    %187 = vector.extract_strided_slice %158 {offsets = [96, 0], sizes = [192, 4], strides = [1, 1]} : vector<336x4xf32> to vector<192x4xf32>
    %188 = vector.extract_strided_slice %6 {offsets = [4, 3, 0], sizes = [1, 1, 4], strides = [1, 1, 1]} : vector<7x7x4xf32> to vector<1x1x4xf32>
    %189 = vector.shape_cast %188 : vector<1x1x4xf32> to vector<4xf32>
    %190 = vector.shape_cast %189 : vector<4xf32> to vector<1x4xf32>
    %191 = vector.broadcast %190 : vector<1x4xf32> to vector<192x4xf32>
    %192 = arith.mulf %187, %191 : vector<192x4xf32>
    %193 = arith.addf %186, %192 : vector<192x4xf32>
    %194 = vector.extract_strided_slice %158 {offsets = [120, 0], sizes = [192, 4], strides = [1, 1]} : vector<336x4xf32> to vector<192x4xf32>
    %195 = vector.extract_strided_slice %6 {offsets = [5, 3, 0], sizes = [1, 1, 4], strides = [1, 1, 1]} : vector<7x7x4xf32> to vector<1x1x4xf32>
    %196 = vector.shape_cast %195 : vector<1x1x4xf32> to vector<4xf32>
    %197 = vector.shape_cast %196 : vector<4xf32> to vector<1x4xf32>
    %198 = vector.broadcast %197 : vector<1x4xf32> to vector<192x4xf32>
    %199 = arith.mulf %194, %198 : vector<192x4xf32>
    %200 = arith.addf %193, %199 : vector<192x4xf32>
    %201 = vector.extract_strided_slice %158 {offsets = [144, 0], sizes = [192, 4], strides = [1, 1]} : vector<336x4xf32> to vector<192x4xf32>
    %202 = vector.extract_strided_slice %6 {offsets = [6, 3, 0], sizes = [1, 1, 4], strides = [1, 1, 1]} : vector<7x7x4xf32> to vector<1x1x4xf32>
    %203 = vector.shape_cast %202 : vector<1x1x4xf32> to vector<4xf32>
    %204 = vector.shape_cast %203 : vector<4xf32> to vector<1x4xf32>
    %205 = vector.broadcast %204 : vector<1x4xf32> to vector<192x4xf32>
    %206 = arith.mulf %201, %205 : vector<192x4xf32>
    %207 = arith.addf %200, %206 : vector<192x4xf32>
    %c332_i32 = arith.constant 332 : i32
    %208 = tpu.dynamic_rotate %5 by %c332_i32 dim 0 : vector<336x4xf32>, i32 -> vector<336x4xf32>
    %209 = vector.extract_strided_slice %208 {offsets = [0, 0], sizes = [192, 4], strides = [1, 1]} : vector<336x4xf32> to vector<192x4xf32>
    %210 = vector.extract_strided_slice %6 {offsets = [0, 4, 0], sizes = [1, 1, 4], strides = [1, 1, 1]} : vector<7x7x4xf32> to vector<1x1x4xf32>
    %211 = vector.shape_cast %210 : vector<1x1x4xf32> to vector<4xf32>
    %212 = vector.shape_cast %211 : vector<4xf32> to vector<1x4xf32>
    %213 = vector.broadcast %212 : vector<1x4xf32> to vector<192x4xf32>
    %214 = arith.mulf %209, %213 : vector<192x4xf32>
    %215 = arith.addf %207, %214 : vector<192x4xf32>
    %216 = vector.extract_strided_slice %208 {offsets = [24, 0], sizes = [192, 4], strides = [1, 1]} : vector<336x4xf32> to vector<192x4xf32>
    %217 = vector.extract_strided_slice %6 {offsets = [1, 4, 0], sizes = [1, 1, 4], strides = [1, 1, 1]} : vector<7x7x4xf32> to vector<1x1x4xf32>
    %218 = vector.shape_cast %217 : vector<1x1x4xf32> to vector<4xf32>
    %219 = vector.shape_cast %218 : vector<4xf32> to vector<1x4xf32>
    %220 = vector.broadcast %219 : vector<1x4xf32> to vector<192x4xf32>
    %221 = arith.mulf %216, %220 : vector<192x4xf32>
    %222 = arith.addf %215, %221 : vector<192x4xf32>
    %223 = vector.extract_strided_slice %208 {offsets = [48, 0], sizes = [192, 4], strides = [1, 1]} : vector<336x4xf32> to vector<192x4xf32>
    %224 = vector.extract_strided_slice %6 {offsets = [2, 4, 0], sizes = [1, 1, 4], strides = [1, 1, 1]} : vector<7x7x4xf32> to vector<1x1x4xf32>
    %225 = vector.shape_cast %224 : vector<1x1x4xf32> to vector<4xf32>
    %226 = vector.shape_cast %225 : vector<4xf32> to vector<1x4xf32>
    %227 = vector.broadcast %226 : vector<1x4xf32> to vector<192x4xf32>
    %228 = arith.mulf %223, %227 : vector<192x4xf32>
    %229 = arith.addf %222, %228 : vector<192x4xf32>
    %230 = vector.extract_strided_slice %208 {offsets = [72, 0], sizes = [192, 4], strides = [1, 1]} : vector<336x4xf32> to vector<192x4xf32>
    %231 = vector.extract_strided_slice %6 {offsets = [3, 4, 0], sizes = [1, 1, 4], strides = [1, 1, 1]} : vector<7x7x4xf32> to vector<1x1x4xf32>
    %232 = vector.shape_cast %231 : vector<1x1x4xf32> to vector<4xf32>
    %233 = vector.shape_cast %232 : vector<4xf32> to vector<1x4xf32>
    %234 = vector.broadcast %233 : vector<1x4xf32> to vector<192x4xf32>
    %235 = arith.mulf %230, %234 : vector<192x4xf32>
    %236 = arith.addf %229, %235 : vector<192x4xf32>
    %237 = vector.extract_strided_slice %208 {offsets = [96, 0], sizes = [192, 4], strides = [1, 1]} : vector<336x4xf32> to vector<192x4xf32>
    %238 = vector.extract_strided_slice %6 {offsets = [4, 4, 0], sizes = [1, 1, 4], strides = [1, 1, 1]} : vector<7x7x4xf32> to vector<1x1x4xf32>
    %239 = vector.shape_cast %238 : vector<1x1x4xf32> to vector<4xf32>
    %240 = vector.shape_cast %239 : vector<4xf32> to vector<1x4xf32>
    %241 = vector.broadcast %240 : vector<1x4xf32> to vector<192x4xf32>
    %242 = arith.mulf %237, %241 : vector<192x4xf32>
    %243 = arith.addf %236, %242 : vector<192x4xf32>
    %244 = vector.extract_strided_slice %208 {offsets = [120, 0], sizes = [192, 4], strides = [1, 1]} : vector<336x4xf32> to vector<192x4xf32>
    %245 = vector.extract_strided_slice %6 {offsets = [5, 4, 0], sizes = [1, 1, 4], strides = [1, 1, 1]} : vector<7x7x4xf32> to vector<1x1x4xf32>
    %246 = vector.shape_cast %245 : vector<1x1x4xf32> to vector<4xf32>
    %247 = vector.shape_cast %246 : vector<4xf32> to vector<1x4xf32>
    %248 = vector.broadcast %247 : vector<1x4xf32> to vector<192x4xf32>
    %249 = arith.mulf %244, %248 : vector<192x4xf32>
    %250 = arith.addf %243, %249 : vector<192x4xf32>
    %251 = vector.extract_strided_slice %208 {offsets = [144, 0], sizes = [192, 4], strides = [1, 1]} : vector<336x4xf32> to vector<192x4xf32>
    %252 = vector.extract_strided_slice %6 {offsets = [6, 4, 0], sizes = [1, 1, 4], strides = [1, 1, 1]} : vector<7x7x4xf32> to vector<1x1x4xf32>
    %253 = vector.shape_cast %252 : vector<1x1x4xf32> to vector<4xf32>
    %254 = vector.shape_cast %253 : vector<4xf32> to vector<1x4xf32>
    %255 = vector.broadcast %254 : vector<1x4xf32> to vector<192x4xf32>
    %256 = arith.mulf %251, %255 : vector<192x4xf32>
    %257 = arith.addf %250, %256 : vector<192x4xf32>
    %c331_i32 = arith.constant 331 : i32
    %258 = tpu.dynamic_rotate %5 by %c331_i32 dim 0 : vector<336x4xf32>, i32 -> vector<336x4xf32>
    %259 = vector.extract_strided_slice %258 {offsets = [0, 0], sizes = [192, 4], strides = [1, 1]} : vector<336x4xf32> to vector<192x4xf32>
    %260 = vector.extract_strided_slice %6 {offsets = [0, 5, 0], sizes = [1, 1, 4], strides = [1, 1, 1]} : vector<7x7x4xf32> to vector<1x1x4xf32>
    %261 = vector.shape_cast %260 : vector<1x1x4xf32> to vector<4xf32>
    %262 = vector.shape_cast %261 : vector<4xf32> to vector<1x4xf32>
    %263 = vector.broadcast %262 : vector<1x4xf32> to vector<192x4xf32>
    %264 = arith.mulf %259, %263 : vector<192x4xf32>
    %265 = arith.addf %257, %264 : vector<192x4xf32>
    %266 = vector.extract_strided_slice %258 {offsets = [24, 0], sizes = [192, 4], strides = [1, 1]} : vector<336x4xf32> to vector<192x4xf32>
    %267 = vector.extract_strided_slice %6 {offsets = [1, 5, 0], sizes = [1, 1, 4], strides = [1, 1, 1]} : vector<7x7x4xf32> to vector<1x1x4xf32>
    %268 = vector.shape_cast %267 : vector<1x1x4xf32> to vector<4xf32>
    %269 = vector.shape_cast %268 : vector<4xf32> to vector<1x4xf32>
    %270 = vector.broadcast %269 : vector<1x4xf32> to vector<192x4xf32>
    %271 = arith.mulf %266, %270 : vector<192x4xf32>
    %272 = arith.addf %265, %271 : vector<192x4xf32>
    %273 = vector.extract_strided_slice %258 {offsets = [48, 0], sizes = [192, 4], strides = [1, 1]} : vector<336x4xf32> to vector<192x4xf32>
    %274 = vector.extract_strided_slice %6 {offsets = [2, 5, 0], sizes = [1, 1, 4], strides = [1, 1, 1]} : vector<7x7x4xf32> to vector<1x1x4xf32>
    %275 = vector.shape_cast %274 : vector<1x1x4xf32> to vector<4xf32>
    %276 = vector.shape_cast %275 : vector<4xf32> to vector<1x4xf32>
    %277 = vector.broadcast %276 : vector<1x4xf32> to vector<192x4xf32>
    %278 = arith.mulf %273, %277 : vector<192x4xf32>
    %279 = arith.addf %272, %278 : vector<192x4xf32>
    %280 = vector.extract_strided_slice %258 {offsets = [72, 0], sizes = [192, 4], strides = [1, 1]} : vector<336x4xf32> to vector<192x4xf32>
    %281 = vector.extract_strided_slice %6 {offsets = [3, 5, 0], sizes = [1, 1, 4], strides = [1, 1, 1]} : vector<7x7x4xf32> to vector<1x1x4xf32>
    %282 = vector.shape_cast %281 : vector<1x1x4xf32> to vector<4xf32>
    %283 = vector.shape_cast %282 : vector<4xf32> to vector<1x4xf32>
    %284 = vector.broadcast %283 : vector<1x4xf32> to vector<192x4xf32>
    %285 = arith.mulf %280, %284 : vector<192x4xf32>
    %286 = arith.addf %279, %285 : vector<192x4xf32>
    %287 = vector.extract_strided_slice %258 {offsets = [96, 0], sizes = [192, 4], strides = [1, 1]} : vector<336x4xf32> to vector<192x4xf32>
    %288 = vector.extract_strided_slice %6 {offsets = [4, 5, 0], sizes = [1, 1, 4], strides = [1, 1, 1]} : vector<7x7x4xf32> to vector<1x1x4xf32>
    %289 = vector.shape_cast %288 : vector<1x1x4xf32> to vector<4xf32>
    %290 = vector.shape_cast %289 : vector<4xf32> to vector<1x4xf32>
    %291 = vector.broadcast %290 : vector<1x4xf32> to vector<192x4xf32>
    %292 = arith.mulf %287, %291 : vector<192x4xf32>
    %293 = arith.addf %286, %292 : vector<192x4xf32>
    %294 = vector.extract_strided_slice %258 {offsets = [120, 0], sizes = [192, 4], strides = [1, 1]} : vector<336x4xf32> to vector<192x4xf32>
    %295 = vector.extract_strided_slice %6 {offsets = [5, 5, 0], sizes = [1, 1, 4], strides = [1, 1, 1]} : vector<7x7x4xf32> to vector<1x1x4xf32>
    %296 = vector.shape_cast %295 : vector<1x1x4xf32> to vector<4xf32>
    %297 = vector.shape_cast %296 : vector<4xf32> to vector<1x4xf32>
    %298 = vector.broadcast %297 : vector<1x4xf32> to vector<192x4xf32>
    %299 = arith.mulf %294, %298 : vector<192x4xf32>
    %300 = arith.addf %293, %299 : vector<192x4xf32>
    %301 = vector.extract_strided_slice %258 {offsets = [144, 0], sizes = [192, 4], strides = [1, 1]} : vector<336x4xf32> to vector<192x4xf32>
    %302 = vector.extract_strided_slice %6 {offsets = [6, 5, 0], sizes = [1, 1, 4], strides = [1, 1, 1]} : vector<7x7x4xf32> to vector<1x1x4xf32>
    %303 = vector.shape_cast %302 : vector<1x1x4xf32> to vector<4xf32>
    %304 = vector.shape_cast %303 : vector<4xf32> to vector<1x4xf32>
    %305 = vector.broadcast %304 : vector<1x4xf32> to vector<192x4xf32>
    %306 = arith.mulf %301, %305 : vector<192x4xf32>
    %307 = arith.addf %300, %306 : vector<192x4xf32>
    %c330_i32 = arith.constant 330 : i32
    %308 = tpu.dynamic_rotate %5 by %c330_i32 dim 0 : vector<336x4xf32>, i32 -> vector<336x4xf32>
    %309 = vector.extract_strided_slice %308 {offsets = [0, 0], sizes = [192, 4], strides = [1, 1]} : vector<336x4xf32> to vector<192x4xf32>
    %310 = vector.extract_strided_slice %6 {offsets = [0, 6, 0], sizes = [1, 1, 4], strides = [1, 1, 1]} : vector<7x7x4xf32> to vector<1x1x4xf32>
    %311 = vector.shape_cast %310 : vector<1x1x4xf32> to vector<4xf32>
    %312 = vector.shape_cast %311 : vector<4xf32> to vector<1x4xf32>
    %313 = vector.broadcast %312 : vector<1x4xf32> to vector<192x4xf32>
    %314 = arith.mulf %309, %313 : vector<192x4xf32>
    %315 = arith.addf %307, %314 : vector<192x4xf32>
    %316 = vector.extract_strided_slice %308 {offsets = [24, 0], sizes = [192, 4], strides = [1, 1]} : vector<336x4xf32> to vector<192x4xf32>
    %317 = vector.extract_strided_slice %6 {offsets = [1, 6, 0], sizes = [1, 1, 4], strides = [1, 1, 1]} : vector<7x7x4xf32> to vector<1x1x4xf32>
    %318 = vector.shape_cast %317 : vector<1x1x4xf32> to vector<4xf32>
    %319 = vector.shape_cast %318 : vector<4xf32> to vector<1x4xf32>
    %320 = vector.broadcast %319 : vector<1x4xf32> to vector<192x4xf32>
    %321 = arith.mulf %316, %320 : vector<192x4xf32>
    %322 = arith.addf %315, %321 : vector<192x4xf32>
    %323 = vector.extract_strided_slice %308 {offsets = [48, 0], sizes = [192, 4], strides = [1, 1]} : vector<336x4xf32> to vector<192x4xf32>
    %324 = vector.extract_strided_slice %6 {offsets = [2, 6, 0], sizes = [1, 1, 4], strides = [1, 1, 1]} : vector<7x7x4xf32> to vector<1x1x4xf32>
    %325 = vector.shape_cast %324 : vector<1x1x4xf32> to vector<4xf32>
    %326 = vector.shape_cast %325 : vector<4xf32> to vector<1x4xf32>
    %327 = vector.broadcast %326 : vector<1x4xf32> to vector<192x4xf32>
    %328 = arith.mulf %323, %327 : vector<192x4xf32>
    %329 = arith.addf %322, %328 : vector<192x4xf32>
    %330 = vector.extract_strided_slice %308 {offsets = [72, 0], sizes = [192, 4], strides = [1, 1]} : vector<336x4xf32> to vector<192x4xf32>
    %331 = vector.extract_strided_slice %6 {offsets = [3, 6, 0], sizes = [1, 1, 4], strides = [1, 1, 1]} : vector<7x7x4xf32> to vector<1x1x4xf32>
    %332 = vector.shape_cast %331 : vector<1x1x4xf32> to vector<4xf32>
    %333 = vector.shape_cast %332 : vector<4xf32> to vector<1x4xf32>
    %334 = vector.broadcast %333 : vector<1x4xf32> to vector<192x4xf32>
    %335 = arith.mulf %330, %334 : vector<192x4xf32>
    %336 = arith.addf %329, %335 : vector<192x4xf32>
    %337 = vector.extract_strided_slice %308 {offsets = [96, 0], sizes = [192, 4], strides = [1, 1]} : vector<336x4xf32> to vector<192x4xf32>
    %338 = vector.extract_strided_slice %6 {offsets = [4, 6, 0], sizes = [1, 1, 4], strides = [1, 1, 1]} : vector<7x7x4xf32> to vector<1x1x4xf32>
    %339 = vector.shape_cast %338 : vector<1x1x4xf32> to vector<4xf32>
    %340 = vector.shape_cast %339 : vector<4xf32> to vector<1x4xf32>
    %341 = vector.broadcast %340 : vector<1x4xf32> to vector<192x4xf32>
    %342 = arith.mulf %337, %341 : vector<192x4xf32>
    %343 = arith.addf %336, %342 : vector<192x4xf32>
    %344 = vector.extract_strided_slice %308 {offsets = [120, 0], sizes = [192, 4], strides = [1, 1]} : vector<336x4xf32> to vector<192x4xf32>
    %345 = vector.extract_strided_slice %6 {offsets = [5, 6, 0], sizes = [1, 1, 4], strides = [1, 1, 1]} : vector<7x7x4xf32> to vector<1x1x4xf32>
    %346 = vector.shape_cast %345 : vector<1x1x4xf32> to vector<4xf32>
    %347 = vector.shape_cast %346 : vector<4xf32> to vector<1x4xf32>
    %348 = vector.broadcast %347 : vector<1x4xf32> to vector<192x4xf32>
    %349 = arith.mulf %344, %348 : vector<192x4xf32>
    %350 = arith.addf %343, %349 : vector<192x4xf32>
    %351 = vector.extract_strided_slice %308 {offsets = [144, 0], sizes = [192, 4], strides = [1, 1]} : vector<336x4xf32> to vector<192x4xf32>
    %352 = vector.extract_strided_slice %6 {offsets = [6, 6, 0], sizes = [1, 1, 4], strides = [1, 1, 1]} : vector<7x7x4xf32> to vector<1x1x4xf32>
    %353 = vector.shape_cast %352 : vector<1x1x4xf32> to vector<4xf32>
    %354 = vector.shape_cast %353 : vector<4xf32> to vector<1x4xf32>
    %355 = vector.broadcast %354 : vector<1x4xf32> to vector<192x4xf32>
    %356 = arith.mulf %351, %355 : vector<192x4xf32>
    %357 = arith.addf %350, %356 : vector<192x4xf32>
    %cst = arith.constant dense<0.000000e+00> : vector<192xf32>
    %358 = vector.multi_reduction <add>, %357, %cst [1] : vector<192x4xf32> to vector<192xf32>
    %359 = vector.shape_cast %358 : vector<192xf32> to vector<192x1xf32>
    %cst_6 = arith.constant 4.000000e+00 : f32
    %360 = vector.broadcast %cst_6 : f32 to vector<192x1xf32>
    %361 = arith.divf %359, %360 : vector<192x1xf32>
    %362 = vector.broadcast %361 : vector<192x1xf32> to vector<192x4xf32>
    %363 = arith.subf %357, %362 : vector<192x4xf32>
    %364 = arith.mulf %363, %363 : vector<192x4xf32>
    %cst_7 = arith.constant dense<0.000000e+00> : vector<192xf32>
    %365 = vector.multi_reduction <add>, %364, %cst_7 [1] : vector<192x4xf32> to vector<192xf32>
    %366 = vector.shape_cast %365 : vector<192xf32> to vector<192x1xf32>
    %cst_8 = arith.constant 4.000000e+00 : f32
    %367 = vector.broadcast %cst_8 : f32 to vector<192x1xf32>
    %368 = arith.divf %366, %367 : vector<192x1xf32>
    %369 = vector.broadcast %361 : vector<192x1xf32> to vector<192x4xf32>
    %370 = arith.subf %357, %369 : vector<192x4xf32>
    %cst_9 = arith.constant 9.99999997E-7 : f32
    %371 = vector.broadcast %cst_9 : f32 to vector<192x1xf32>
    %372 = arith.addf %368, %371 : vector<192x1xf32>
    %373 = math.rsqrt %372 : vector<192x1xf32>
    %374 = vector.broadcast %373 : vector<192x1xf32> to vector<192x4xf32>
    %375 = arith.mulf %370, %374 : vector<192x4xf32>
    %c0_10 = arith.constant 0 : index
    %c0_11 = arith.constant 0 : index
    %376 = vector.load %arg5[%c0_10, %c0_11] : memref<1x4xf32, #tpu.memory_space<vmem>>, vector<1x4xf32>
    %377 = vector.broadcast %376 : vector<1x4xf32> to vector<192x4xf32>
    %378 = arith.mulf %375, %377 : vector<192x4xf32>
    %c0_12 = arith.constant 0 : index
    %c0_13 = arith.constant 0 : index
    %379 = vector.load %arg6[%c0_12, %c0_13] : memref<1x4xf32, #tpu.memory_space<vmem>>, vector<1x4xf32>
    %380 = vector.broadcast %379 : vector<1x4xf32> to vector<192x4xf32>
    %381 = arith.addf %378, %380 : vector<192x4xf32>
    %382 = arith.truncf %381 : vector<192x4xf32> to vector<192x4xbf16>
    %c0_14 = arith.constant 0 : index
    %c0_15 = arith.constant 0 : index
    %383 = vector.load %arg7[%c0_14, %c0_15] : memref<4x16xbf16, #tpu.memory_space<vmem>>, vector<4x16xbf16>
    %cst_16 = arith.constant dense<0.000000e+00> : vector<192x16xf32>
    %384 = tpu.matmul %382, %383, %cst_16 {dimension_numbers = #tpu.dot_dimension_numbers<[1], [0], [0], [1], [0, 0, 1, 1], [], []>} : vector<192x4xbf16>, vector<4x16xbf16>, vector<192x16xf32> -> vector<192x16xf32>
    %c0_17 = arith.constant 0 : index
    %c0_18 = arith.constant 0 : index
    %385 = vector.load %arg8[%c0_17, %c0_18] : memref<1x16xf32, #tpu.memory_space<vmem>>, vector<1x16xf32>
    %386 = vector.broadcast %385 : vector<1x16xf32> to vector<192x16xf32>
    %387 = arith.addf %384, %386 : vector<192x16xf32>
    %cst_19 = arith.constant 5.000000e-01 : f32
    %388 = vector.broadcast %cst_19 : f32 to vector<192x16xf32>
    %389 = arith.mulf %388, %387 : vector<192x16xf32>
    %cst_20 = arith.constant 4.471500e-02 : f32
    %390 = vector.broadcast %cst_20 : f32 to vector<192x16xf32>
    %391 = arith.mulf %390, %387 : vector<192x16xf32>
    %392 = arith.mulf %391, %387 : vector<192x16xf32>
    %393 = arith.mulf %392, %387 : vector<192x16xf32>
    %394 = arith.addf %387, %393 : vector<192x16xf32>
    %cst_21 = arith.constant 0.797884583 : f32
    %395 = vector.broadcast %cst_21 : f32 to vector<192x16xf32>
    %396 = arith.mulf %395, %394 : vector<192x16xf32>
    %397 = math.tanh %396 : vector<192x16xf32>
    %cst_22 = arith.constant 1.000000e+00 : f32
    %398 = vector.broadcast %cst_22 : f32 to vector<192x16xf32>
    %399 = arith.addf %398, %397 : vector<192x16xf32>
    %400 = arith.mulf %389, %399 : vector<192x16xf32>
    %401 = tpu.iota {dimensions = array<i32: 0>} : vector<192x1xi32>
    %c24_i32 = arith.constant 24 : i32
    %c0_i32 = arith.constant 0 : i32
    %402 = arith.cmpi eq, %c24_i32, %c0_i32 : i32
    %c1_i32 = arith.constant 1 : i32
    %403 = arith.select %402, %c1_i32, %c24_i32 : i32
    %404 = vector.broadcast %403 : i32 to vector<192x1xi32>
    %405 = arith.remsi %401, %404 : vector<192x1xi32>
    %c0_i32_23 = arith.constant 0 : i32
    %406 = vector.broadcast %c0_i32_23 : i32 to vector<192x1xi32>
    %407 = arith.cmpi ne, %405, %406 : vector<192x1xi32>
    %c0_i32_24 = arith.constant 0 : i32
    %408 = vector.broadcast %c0_i32_24 : i32 to vector<192x1xi32>
    %409 = arith.cmpi slt, %405, %408 : vector<192x1xi32>
    %c0_i32_25 = arith.constant 0 : i32
    %410 = arith.cmpi slt, %403, %c0_i32_25 : i32
    %411 = vector.broadcast %410 : i1 to vector<192x1xi1>
    %412 = vector.broadcast %411 : vector<192x1xi1> to vector<192x1xi1>
    %413 = arith.xori %409, %412 : vector<192x1xi1>
    %414 = arith.andi %413, %407 : vector<192x1xi1>
    %415 = vector.broadcast %403 : i32 to vector<192x1xi32>
    %416 = arith.addi %405, %415 : vector<192x1xi32>
    %417 = arith.select %414, %416, %405 : vector<192x1xi1>, vector<192x1xi32>
    %c16_i32 = arith.constant 16 : i32
    %418 = vector.broadcast %c16_i32 : i32 to vector<192x1xi32>
    %419 = arith.cmpi slt, %417, %418 : vector<192x1xi32>
    %cst_26 = arith.constant 0.000000e+00 : f32
    %420 = vector.shape_cast %419 : vector<192x1xi1> to vector<192x1xi1>
    %421 = vector.broadcast %420 : vector<192x1xi1> to vector<192x16xi1>
    %422 = vector.broadcast %cst_26 : f32 to vector<192x16xf32>
    %423 = arith.select %421, %400, %422 : vector<192x16xi1>, vector<192x16xf32>
    %424 = arith.truncf %423 : vector<192x16xf32> to vector<192x16xbf16>
    %c0_27 = arith.constant 0 : index
    %c0_28 = arith.constant 0 : index
    %c0_29 = arith.constant 0 : index
    %425 = vector.load %arg9[%c0_27, %c0_28, %c0_29] : memref<1x192x16xbf16, #tpu.memory_space<vmem>>, vector<1x192x16xbf16>
    %426 = vector.shape_cast %425 : vector<1x192x16xbf16> to vector<192x16xbf16>
    %427 = vector.shape_cast %424 : vector<192x16xbf16> to vector<1x192x16xbf16>
    tpu.vector_store %arg9[%c0_27, %c0_28, %c0_29], %427 {strides = array<i32>} : memref<1x192x16xbf16, #tpu.memory_space<vmem>>, vector<1x192x16xbf16>,
    %c0_i32_30 = arith.constant 0 : i32
    %428 = arith.cmpi eq, %arg1, %c0_i32_30 : i32
    %429 = arith.extui %428 : i1 to i32
    %c0_i32_31 = arith.constant 0 : i32
    %430 = arith.cmpi ne, %429, %c0_i32_31 : i32
    scf.if %430 {
      %cst_39 = arith.constant 0.000000e+00 : f32
      %440 = vector.broadcast %cst_39 : f32 to vector<1x16xf32>
      %c0_40 = arith.constant 0 : index
      %c0_41 = arith.constant 0 : index
      %c0_42 = arith.constant 0 : index
      %441 = vector.load %arg10[%c0_40, %c0_41, %c0_42] : memref<1x1x16xf32, #tpu.memory_space<vmem>>, vector<1x1x16xf32>
      %442 = vector.shape_cast %441 : vector<1x1x16xf32> to vector<1x16xf32>
      %443 = vector.shape_cast %440 : vector<1x16xf32> to vector<1x1x16xf32>
      tpu.vector_store %arg10[%c0_40, %c0_41, %c0_42], %443 {strides = array<i32>} : memref<1x1x16xf32, #tpu.memory_space<vmem>>, vector<1x1x16xf32>,
    } else {
    }
    %c0_32 = arith.constant 0 : index
    %c0_33 = arith.constant 0 : index
    %c0_34 = arith.constant 0 : index
    %431 = vector.load %arg10[%c0_32, %c0_33, %c0_34] : memref<1x1x16xf32, #tpu.memory_space<vmem>>, vector<1x1x16xf32>
    %432 = vector.shape_cast %431 : vector<1x1x16xf32> to vector<1x16xf32>
    %433 = arith.mulf %423, %423 : vector<192x16xf32>
    %cst_35 = arith.constant dense<0.000000e+00> : vector<16xf32>
    %434 = vector.multi_reduction <add>, %433, %cst_35 [0] : vector<192x16xf32> to vector<16xf32>
    %435 = vector.shape_cast %434 : vector<16xf32> to vector<1x16xf32>
    %436 = arith.addf %432, %435 : vector<1x16xf32>
    %c0_36 = arith.constant 0 : index
    %c0_37 = arith.constant 0 : index
    %c0_38 = arith.constant 0 : index
    %437 = vector.load %arg10[%c0_36, %c0_37, %c0_38] : memref<1x1x16xf32, #tpu.memory_space<vmem>>, vector<1x1x16xf32>
    %438 = vector.shape_cast %437 : vector<1x1x16xf32> to vector<1x16xf32>
    %439 = vector.shape_cast %436 : vector<1x16xf32> to vector<1x1x16xf32>
    tpu.vector_store %arg10[%c0_36, %c0_37, %c0_38], %439 {strides = array<i32>} : memref<1x1x16xf32, #tpu.memory_space<vmem>>, vector<1x1x16xf32>,
    return
  }
  func.func @transform_0(%arg0: i32, %arg1: i32) -> (i32, i32, i32) {
    %c0_i32 = arith.constant 0 : i32
    %c0_i32_0 = arith.constant 0 : i32
    %c0_i32_1 = arith.constant 0 : i32
    return %arg0, %c0_i32, %c0_i32_0 : i32, i32, i32
  }
  func.func @transform_1(%arg0: i32, %arg1: i32) -> (i32, i32, i32) {
    %c0_i32 = arith.constant 0 : i32
    %c0_i32_0 = arith.constant 0 : i32
    %c0_i32_1 = arith.constant 0 : i32
    %c0_i32_2 = arith.constant 0 : i32
    return %c0_i32, %c0_i32_0, %c0_i32_1 : i32, i32, i32
  }
  func.func @transform_2(%arg0: i32, %arg1: i32) -> (i32, i32) {
    %c0_i32 = arith.constant 0 : i32
    %c0_i32_0 = arith.constant 0 : i32
    %c0_i32_1 = arith.constant 0 : i32
    return %c0_i32, %c0_i32_0 : i32, i32
  }
  func.func @transform_3(%arg0: i32, %arg1: i32) -> (i32, i32) {
    %c0_i32 = arith.constant 0 : i32
    %c0_i32_0 = arith.constant 0 : i32
    %c0_i32_1 = arith.constant 0 : i32
    return %c0_i32, %c0_i32_0 : i32, i32
  }
  func.func @transform_4(%arg0: i32, %arg1: i32) -> (i32, i32) {
    %c0_i32 = arith.constant 0 : i32
    %c0_i32_0 = arith.constant 0 : i32
    %c0_i32_1 = arith.constant 0 : i32
    return %c0_i32, %c0_i32_0 : i32, i32
  }
  func.func @transform_5(%arg0: i32, %arg1: i32) -> (i32, i32) {
    %c0_i32 = arith.constant 0 : i32
    %c0_i32_0 = arith.constant 0 : i32
    %c0_i32_1 = arith.constant 0 : i32
    return %c0_i32, %c0_i32_0 : i32, i32
  }
  func.func @transform_6(%arg0: i32, %arg1: i32) -> (i32, i32) {
    %c0_i32 = arith.constant 0 : i32
    %c0_i32_0 = arith.constant 0 : i32
    %c0_i32_1 = arith.constant 0 : i32
    return %c0_i32, %c0_i32_0 : i32, i32
  }
  func.func @transform_7(%arg0: i32, %arg1: i32) -> (i32, i32, i32) {
    %c0_i32 = arith.constant 0 : i32
    %c0_i32_0 = arith.constant 0 : i32
    return %arg0, %arg1, %c0_i32 : i32, i32, i32
  }
  func.func @transform_8(%arg0: i32, %arg1: i32) -> (i32, i32, i32) {
    %c0_i32 = arith.constant 0 : i32
    %c0_i32_0 = arith.constant 0 : i32
    %c0_i32_1 = arith.constant 0 : i32
    return %arg0, %c0_i32, %c0_i32_0 : i32, i32, i32
  }
}

</mosaic_0001>

<bundles_post_ra>
// kernel: tpu_custom_call.1
= control target key start
LH: loop header
LB: loop body
LE: loop exit
PB: predicated region body
PF: predicated region fallthrough
CT: control target
= control target key end

     0   :  { %14 = vsyncpa [#allocation3], 0  ;;  %s12998_s0 = inlined_call_operand.vmem [shape: bf16[2,528,4], index: 0, kind: input, shape index: {}]   ;;  %s12999_s1 = inlined_call_operand.vmem [shape: f32[7,7,4], index: 1, kind: input, shape index: {}]   ;;  %s13000_s2 = inlined_call_operand.vmem [shape: f32[1,4], index: 2, kind: input, shape index: {}]   ;;  %s13001_s3 = inlined_call_operand.vmem [shape: f32[1,4], index: 3, kind: input, shape index: {}]   ;;  %s13002_s4 = inlined_call_operand.vmem [shape: f32[1,4], index: 4, kind: input, shape index: {}]   ;;  %s13003_s5 = inlined_call_operand.vmem [shape: bf16[4,16], index: 5, kind: input, shape index: {}]   ;;  %s13004_s6 = inlined_call_operand.vmem [shape: f32[1,16], index: 6, kind: input, shape index: {}]   ;;  %s13005_s7 = inlined_call_operand.vmem [shape: bf16[2,384,16], index: 7, kind: output, shape index: {0}]   ;;  %s13006_s8 = inlined_call_operand.hbm [shape: f32[2,1,16], index: 8, kind: output, shape index: {1}]  }
   0x1   :  { %16 = vsyncpa [#allocation3 + $0x1], 0  ;;  %s5713_s27 = smov 0   ;;  %s5715_s28 = smov 0  }
   0x2   :  { %s5717_s29 = smov 0   ;;  %s5719_s30 = smov 0  }
   0x3   :  { %s5721_s9 = smov 0   ;;  %s5723_s10 = smov 0  }
   0x4   :  { %s5725_s11 = smov 0   ;;  %s5727_s12 = smov 0  }
   0x5 LB: > { %13866 = sst [smem:[#allocation5_spill]] %s5656_s10  ;;  %s5127_s13 = sadd.s32 4294967295, %s5664_s12   ;;  %s5664_s12 = sphi %s5727_s12, %s22_s12   ;;  %s5660_s11 = sphi %s5725_s11, %s16283_s11   ;;  %s5656_s10 = sphi %s5723_s10, %s16282_s10   ;;  %s5652_s9 = sphi %s5721_s9, %s16281_s9   ;;  %s5648_s30 = sphi %s5719_s30, %s16280_s30   ;;  %s5644_s29 = sphi %s5717_s29, %s16286_s29   ;;  %s5640_s28 = sphi %s5715_s28, %s16285_s28   ;;  %s5636_s27 = sphi %s5713_s27, %s16284_s27  }
   0x6   : > { %13867 = sst [smem:[#allocation6_spill]] %s5660_s11  ;;  %s5128_s14 = sadd.s32 4294967294, %s5664_s12  }
   0x7   : > { %s31_s15 = sadd.s32 1, %s5656_s10  ;;  %s34_s16 = sadd.s32 1, %s5660_s11 }
   0x8   : > { %p32_p0 = scmp.ge.s32.totalorder %s31_s15, 2  ;;  %p231_p1 = scmp.ne.s32.totalorder %s5644_s29, %s5640_s28 }
   0x9   : > { %p232_p2 = scmp.eq.s32.totalorder %s5127_s13, 3  ;;  %p237_p4 = scmp.ne.s32.totalorder %s5640_s28, %s5636_s27 }
   0xa   : > { %s16288_s15 = smov (%p32_p0, %s31_s15), 0  ;;  %s16290_s16 = smov (!%p32_p0, %s34_s16), %s5660_s11 }
   0xb   : > { %13868 = sst [smem:[#allocation7_spill]] %s16288_s15  ;;  %p5762_p3 = por %p232_p2, %p231_p1 }
   0xc   : > { %p36_p5 = scmp.ge.s32.totalorder %s16290_s16, 2  ;;  %p238_p6 = scmp.eq.s32.totalorder %s5128_s14, 3 }
   0xd   : > { %p5131_p7 = scmp.ge.s32.totalorder %s5664_s12, 1  ;;  %p282_p8 = scmp.lt.s32.totalorder %s5664_s12, 5 }
   0xe   : > { %s16292_s16 = smov (%p36_p5, %s16290_s16), 0  ;;  %p5772_p9 = por %p238_p6, %p237_p4 }
   0xf   : > { %13870 = sst [smem:[#allocation8_spill]] %s16292_s16  ;;  %p283_p10 = pnand %p5131_p7, %p282_p8 }
  0x10   : > { %s218_s19 = ssub.s32 %s5660_s11, %s16292_s16  ;;  %s221_s20 = sadd.s32 1, %s5644_s29 }
  0x11   : > { %p219_p11 = scmp.eq.s32.totalorder %s218_s19, 0  ;;  %286 = sbr.rel (%p283_p10) target bundleno = 1500 (0x5dc), region = 48 }
  0x13   : > { %s5780_s21 = scalar_select %p219_p11, %s5644_s29, %s221_s20  }
  0x16   : > { %p324_p12 = scmp.lt.s32.totalorder %s5652_s9, 1  ;;  %v436_v0 = vlaneseq  ;;  %s340_s22 = smul.u32 192, %s5648_s30  ;;  %v5794_v3 = vld [vmem:[%s12999_s1] sm:$0x7f]  ;;  %v5804_v4 = vld [vmem:[%s12999_s1 + $0x8] sm:$0x7f] }
  0x17   : > { %v5809_v5 = vld [vmem:[%s12999_s1 + $0x10] sm:$0x7f]  ;;  %v5814_v6 = vld [vmem:[%s12999_s1 + $0x18] sm:$0x7f]  ;;  %v5843_v17 = vld [vmem:[%s12999_s1 + $0x20] sm:$0x7f] }
  0x18   : > { %s5785_s23 = scalar_select %p324_p12, %s5652_s9, 1  ;;  %v5787_v1 = vshrl.u32 %v436_v0, 7  ;;  %v5851_v19 = vld [vmem:[%s13000_s2] ss:$0 sm:$0xff]  ;;  %v5880_v30 = vld [vmem:[%s12999_s1 + $0x28] sm:$0x7f] }
  0x19   : > { %s341_s24 = sshra.s32 %s340_s22, 3  ;;  %v5901_v41 = vld [vmem:[%s12999_s1 + $0x30] sm:$0x7f]  ;;  %vm3503_vm6 = vcmask 31744   ;;  %vm3935_vm7 = vcmask 1041408   ;;  %p5175_p0 = scmp.ne.s32.totalorder %s5648_s30, 0 }
  0x1a   : > { %13872 = vst [vmem:[#allocation9_spill] sm:$0xff] %v5787_v1  ;;  %s5350_s25 = smul.u32 264, %s5785_s23  ;;  %s5134_s26 = sshll.u32 %s341_s24, 2  ;;  %v438_v2 = vsub.s32 0, %v5787_v1  ;;  %v896_v61 = vsub.s32 1, %v5787_v1  ;;  %vm851_vm0 = vcmp.lt.s32.totalorder %v5787_v1, 7 }
  0x1b   : > { %vm1300_vm1 = vcmp.lt.s32.totalorder %v5787_v1, 6  ;;  %vm1749_vm2 = vcmp.lt.s32.totalorder %v5787_v1, 5  ;;  %vm2198_vm3 = vcmp.lt.s32.totalorder %v5787_v1, 4  ;;  %vm2647_vm4 = vcmp.lt.s32.totalorder %v5787_v1, 3 }
  0x1c   : > { %s328_s16 = scalar_lea.vmem %s12998_s0, %s5350_s25  ;;  %v5824_v10 = vrot.slane %v5794_v3, %v438_v2  ;;  %v5846_v18 = vrot.slane %v5804_v4, %v438_v2  ;;  %v5854_v20 = vrot.slane %v5809_v5, %v438_v2  ;;  %v5857_v21 = vrot.slane %v5814_v6, %v438_v2  ;;  %s5351_s25 = smul.u32 48, %s5785_s23 }
  0x1d   : > { %s5799_s15 = scalar_lea.vmem %s328_s16, %s5134_s26  ;;  %v5875_v29 = vrot.slane %v5843_v17, %v438_v2  ;;  %v5912_v48 = vrot.slane %v5880_v30, %v438_v2  ;;  %v5928_v56 = vrot.slane %v5901_v41, %v438_v2  ;;  %vm3096_vm5 = vcmp.lt.s32.totalorder %v5787_v1, 2  ;;  %s322_s26 = sand.u32 1, %s5640_s28  }
  0x1e   : > { %v5204_v7 = vld [vmem:[%s5799_s15] sm:$0xff]   ;;  %v5818_v8 = vld [vmem:[%s5799_s15 + $0x8] sm:$0xff]   ;;  %v5821_v9 = vld [vmem:[%s5799_s15 + $0x10] sm:$0xff]   ;;  %13875 = vst [vmem:[#allocation12_spill] sm:$0xff] %v5824_v10  ;;  %s329_s16 = smul.u32 24, %s5648_s30  ;;  %s12873_s13 = scalar_lea.vmem [#allocation2], %s322_s26 }
  0x1f   : > { %13873 = vst [vmem:[#allocation10_spill] sm:$0xff] %v5818_v8  ;;  %13874 = vst [vmem:[#allocation11_spill] sm:$0xff] %v5821_v9  ;;  %v5826_v11 = vunpack.c.l.bf16 %v5204_v7  ;;  %v5828_v12 = vunpack.c.h.bf16 %v5204_v7  ;;  %v5289_v13 = vld [vmem:[%s5799_s15 + $0x18] sm:$0xff]   ;;  %v5832_v14 = vunpack.c.h.bf16 %v5818_v8  ;;  %v5835_v15 = vunpack.c.l.bf16 %v5821_v9  ;;  %v5838_v16 = vld [vmem:[%s5799_s15 + $0x20] sm:$0xff]  }
  0x20   : > { %13878 = vst [vmem:[#allocation15_spill] sm:$0xff] %v5838_v16  ;;  %13879 = vst [vmem:[#allocation16_spill] sm:$0xff] %v5846_v18  ;;  %v5859_v22 = vunpack.c.l.bf16 %v5289_v13  ;;  %v5861_v23 = vunpack.c.h.bf16 %v5289_v13  ;;  %v5868_v26 = vunpack.c.h.bf16 %v5838_v16  ;;  %v5292_v35 = vld [vmem:[%s5799_s15 + $0x30] sm:$0xff]   ;;  %v5896_v40 = vld [vmem:[%s5799_s15 + $0x38] sm:$0xff]   ;;  %p12234_p13 = scmp.lt.s32.totalorder %s329_s16, 47 }
  0x21   : > { %13876 = vst [vmem:[#allocation13_spill] sm:$0xff] %v5826_v11  ;;  %13877 = vst [vmem:[#allocation14_spill] sm:$0xff] %v5832_v14  ;;  %v440_v24 = vmul.f32 %v5826_v11, %v5824_v10  ;;  %v441_v25 = vmul.f32 %v5828_v12, %v5824_v10  ;;  %v443_v27 = vmul.f32 %v5832_v14, %v5824_v10  ;;  %v5914_v49 = vunpack.c.l.bf16 %v5292_v35  ;;  %v5295_v50 = vld [vmem:[%s5799_s15 + $0x48] sm:$0xff]  }
  0x22   : > { %13880 = vst [vmem:[#allocation17_spill] sm:$0xff] %v5854_v20  ;;  %13881 = vst [vmem:[#allocation18_spill] sm:$0xff] %v5857_v21  ;;  %v444_v28 = vmul.f32 %v5835_v15, %v5824_v10  ;;  %v499_v33 = vmul.f32 %v5832_v14, %v5846_v18  ;;  %v500_v34 = vmul.f32 %v5835_v15, %v5846_v18  ;;  %v5922_v54 = vld [vmem:[%s5799_s15 + $0x28] sm:$0xff]   ;;  %v5925_v55 = vunpack.c.h.bf16 %v5896_v40  ;;  %s16294_s16 = smov (!%p12234_p13, %s329_s16), 47 }
  0x23   : > { %13882 = vst [vmem:[#allocation19_spill] sm:$0xff] %v5859_v22  ;;  %13883 = vst [vmem:[#allocation20_spill] sm:$0xff] %v5868_v26  ;;  %v471_v31 = vadd.f32 %v5851_v19, %v440_v24  ;;  %v472_v32 = vadd.f32 %v5851_v19, %v441_v25  ;;  %v474_v36 = vadd.f32 %v5851_v19, %v443_v27  ;;  %v5932_v59 = vunpack.c.l.bf16 %v5295_v50  ;;  %s12321_s23 = sadd.s32 %s5351_s25, %s16294_s16 }
  0x24   : > { %13884 = vst [vmem:[#allocation21_spill] sm:$0xff] %v5875_v29  ;;  %v475_v37 = vadd.f32 %v5851_v19, %v444_v28  ;;  %v502_v38 = vmul.f32 %v5859_v22, %v5846_v18  ;;  %v503_v39 = vmul.f32 %v5861_v23, %v5846_v18  ;;  %13885 = vst [vmem:[#allocation22_spill] sm:$0xff] %v5896_v40  ;;  %v5938_v62 = vunpack.c.l.bf16 %v5922_v54  ;;  %s5133_s19 = sshll.u32 %s12321_s23, 2 }
  0x25   : > { %v523_v42 = vadd.f32 %v499_v33, %v471_v31  ;;  %v524_v43 = vadd.f32 %v500_v34, %v472_v32  ;;  %v551_v44 = vmul.f32 %v5859_v22, %v5854_v20  ;;  %v552_v45 = vmul.f32 %v5861_v23, %v5854_v20  ;;  %13886 = vst [vmem:[#allocation23_spill] sm:$0xff] %v5912_v48  ;;  %s12385_s24 = scalar_lea.vmem %s13005_s7, %s5133_s19 }
  0x26   : > { %v5907_v46 = vadd.f32 %v502_v38, %v474_v36  ;;  %v5909_v47 = vadd.f32 %v503_v39, %v475_v37  ;;  %13887 = vst [vmem:[#allocation24_spill] sm:$0xff] %v5914_v49  ;;  %v603_v53 = vmul.f32 %v5868_v26, %v5857_v21  ;;  %13888 = vst [vmem:[#allocation25_spill] sm:$0xff] %v5922_v54  ;;  %v13010_v2 = vrot.slane %v5826_v11, 1  ;;  %v5958_v36 = vld [vmem:[%s5799_s15 + $0x40] sm:$0xff]  }
  0x27   : > { %v575_v51 = vadd.f32 %v551_v44, %v523_v42  ;;  %v5917_v52 = vadd.f32 %v552_v45, %v524_v43  ;;  %13889 = vst [vmem:[#allocation26_spill] sm:$0xff] %v5925_v55  ;;  %13890 = vst [vmem:[#allocation27_spill] sm:$0xff] %v5928_v56  ;;  %v655_v58 = vmul.f32 %v5914_v49, %v5875_v29  ;;  %v13013_v7 = vrot.slane %v5832_v14, 1 }
  0x28   : > { %13891 = vst [vmem:[#allocation28_spill] sm:$0xff] %v5932_v59  ;;  %v707_v60 = vmul.f32 %v5925_v55, %v5912_v48  ;;  %13892 = vst [vmem:[#allocation29_spill] sm:$0xff] %v5938_v62  ;;  %v759_v0 = vmul.f32 %v5932_v59, %v5928_v56  ;;  %v13014_v13 = vrot.slane %v5835_v15, 1  ;;  %v13012_v25 = vrot.slane %v5828_v12, 1 }
  0x29   : > { %v627_v57 = vadd.f32 %v603_v53, %v575_v51  ;;  %v13011_v27 = vrot.slane %v5859_v22, 1  ;;  %v13017_v28 = vrot.slane %v5861_v23, 1  ;;  %v5950_v31 = vrot.slane %v5794_v3, %v896_v61  ;;  %13895 = vst [vmem:[#allocation32_spill] sm:$0xff] %v5958_v36 }
  0x2a   : > { %v5953_v32 = vrot.slane %v5804_v4, %v896_v61  ;;  %v13015_v33 = vrot.slane %v5868_v26, 1  ;;  %v13016_v34 = vrot.slane %v5938_v62, 1  ;;  %v5966_v38 = vsel %vm851_vm0, %v13013_v7, %v13014_v13 }
  0x2b   : > { %v679_v63 = vadd.f32 %v655_v58, %v627_v57  ;;  %13893 = vst [vmem:[#allocation30_spill] sm:$0xff] %v5950_v31  ;;  %v5969_v39 = vrot.slane %v5809_v5, %v896_v61  ;;  %v5971_v42 = vunpack.c.h.bf16 %v5292_v35  ;;  %v5979_v43 = vsel %vm851_vm0, %v13011_v27, %v13017_v28 }
  0x2c   : > { %13894 = vst [vmem:[#allocation31_spill] sm:$0xff] %v5953_v32  ;;  %13898 = vst [vmem:[#allocation35_spill] sm:$0xff] %v5979_v43  ;;  %v892_v44 = vsel %vm851_vm0, %v13010_v2, %v13012_v25  ;;  %v950_v35 = vmul.f32 %v5953_v32, %v5966_v38  ;;  %v5991_v51 = vrot.slane %v5814_v6, %v896_v61  ;;  %v5994_v53 = vunpack.c.l.bf16 %v5958_v36 }
  0x2d   : > { %v731_v24 = vadd.f32 %v707_v60, %v679_v63  ;;  %13896 = vst [vmem:[#allocation33_spill] sm:$0xff] %v5969_v39  ;;  %13897 = vst [vmem:[#allocation34_spill] sm:$0xff] %v5971_v42  ;;  %v898_v45 = vmul.f32 %v5950_v31, %v892_v44  ;;  %v13018_v57 = vrot.slane %v5914_v49, 1  ;;  %v13019_v58 = vrot.slane %v5971_v42, 1 }
  0x2e   : > { %13899 = vst [vmem:[#allocation36_spill] sm:$0xff] %v5991_v51  ;;  %13900 = vst [vmem:[#allocation37_spill] sm:$0xff] %v5994_v53  ;;  %v6004_v60 = vsel %vm851_vm0, %v13015_v33, %v13016_v34  ;;  %v6011_v44 = vunpack.c.h.bf16 %v5295_v50  ;;  %v13022_v2 = vrot.slane %v5925_v55, 1  ;;  %v13023_v27 = vrot.slane %v5994_v53, 1 }
  0x2f   : > { %v783_v37 = vadd.f32 %v759_v0, %v731_v24  ;;  %13901 = vst [vmem:[#allocation38_spill] sm:$0xff] %v6004_v60  ;;  %v1002_v0 = vmul.f32 %v5969_v39, %v5979_v43  ;;  %v6009_v24 = vrot.slane %v5843_v17, %v896_v61  ;;  %v1345_v25 = vsub.s32 2, %v5787_v1 }
  0x30   : > { %13903 = vst [vmem:[#allocation40_spill] sm:$0xff] %v6011_v44  ;;  %v13026_v33 = vrot.slane %v6011_v44, 1  ;;  %v6029_v50 = vsel %vm851_vm0, %v13018_v57, %v13019_v58  ;;  %v6036_v7 = vrot.slane %v5901_v41, %v896_v61  ;;  %v6045_v57 = vsel %vm851_vm0, %v13022_v2, %v13023_v27 }
  0x31   : > { %v922_v63 = vadd.f32 %v898_v45, %v783_v37  ;;  %13902 = vst [vmem:[#allocation39_spill] sm:$0xff] %v6009_v24  ;;  %v1054_v37 = vmul.f32 %v5991_v51, %v6004_v60  ;;  %v6020_v45 = vrot.slane %v5880_v30, %v896_v61  ;;  %13905 = vst [vmem:[#allocation42_spill] sm:$0xff] %v6029_v50  ;;  %v13914_v2 = vrot.slane %v5835_v15, 2 }
  0x32   : > { %v1106_v28 = vmul.f32 %v6009_v24, %v6029_v50  ;;  %13906 = vst [vmem:[#allocation43_spill] sm:$0xff] %v6036_v7  ;;  %13907 = vst [vmem:[#allocation44_spill] sm:$0xff] %v6045_v57  ;;  %v6052_v61 = vrot.slane %v5794_v3, %v1345_v25  ;;  %v6073_v40 = vrot.slane %v5804_v4, %v1345_v25  ;;  %v13915_v27 = vrot.slane %v5832_v14, 2  ;;  %v6507_v24 = vld [vmem:[%s5799_s15 + $0x50] sm:$0xff]  }
  0x33   : > { %v974_v13 = vadd.f32 %v950_v35, %v922_v63  ;;  %13904 = vst [vmem:[#allocation41_spill] sm:$0xff] %v6020_v45  ;;  %v1158_v34 = vmul.f32 %v6020_v45, %v6045_v57  ;;  %v13909_v35 = vrot.slane %v5932_v59, 1  ;;  %v13960_v45 = vrot.slane %v6011_v44, 3  ;;  %14021 = vst [vmem:[#allocation102_spill] sm:$0xff] %v6507_v24 }
  0x34   : > { %13908 = vst [vmem:[#allocation45_spill] sm:$0xff] %v6052_v61  ;;  %13913 = vst [vmem:[#allocation47_spill] sm:$0xff] %v6073_v40  ;;  %v6083_v54 = vsel %vm1300_vm1, %v13915_v27, %v13914_v2  ;;  %v6100_v2 = vrot.slane %v5814_v6, %v1345_v25 }
  0x35   : > { %v1026_v63 = vadd.f32 %v1002_v0, %v974_v13  ;;  %v6060_v60 = vsel %vm851_vm0, %v13909_v35, %v13026_v33  ;;  %13916 = vst [vmem:[#allocation48_spill] sm:$0xff] %v6083_v54  ;;  %v13919_v35 = vrot.slane %v5859_v22, 2  ;;  %v1399_v9 = vmul.f32 %v6073_v40, %v6083_v54 }
  0x36   : > { %13910 = vst [vmem:[#allocation46_spill] sm:$0xff] %v6060_v60  ;;  %v1210_v36 = vmul.f32 %v6036_v7, %v6060_v60  ;;  %13921 = vst [vmem:[#allocation51_spill] sm:$0xff] %v6100_v2 }
  0x37   : > { %v1078_v0 = vadd.f32 %v1054_v37, %v1026_v63  ;;  %v13911_v37 = vrot.slane %v5828_v12, 2  ;;  %v13912_v63 = vrot.slane %v5826_v11, 2 }
  0x39   : > { %v1341_v58 = vsel %vm1300_vm1, %v13912_v63, %v13911_v37  ;;  %v1130_v13 = vadd.f32 %v1106_v28, %v1078_v0  ;;  %v6087_v0 = vrot.slane %v5809_v5, %v1345_v25  ;;  %v13918_v63 = vrot.slane %v5861_v23, 2 }
  0x3a   : > { %v1347_v28 = vmul.f32 %v6052_v61, %v1341_v58  ;;  %v13922_v58 = vrot.slane %v5938_v62, 2 }
  0x3b   : > { %v1182_v37 = vadd.f32 %v1158_v34, %v1130_v13  ;;  %13917 = vst [vmem:[#allocation49_spill] sm:$0xff] %v6087_v0  ;;  %v6095_v33 = vsel %vm1300_vm1, %v13919_v35, %v13918_v63  ;;  %v13923_v13 = vrot.slane %v5868_v26, 2  ;;  %v6120_v34 = vsub.s32 3, %v5787_v1 }
  0x3c   : > { %13920 = vst [vmem:[#allocation50_spill] sm:$0xff] %v6095_v33  ;;  %v13928_v63 = vrot.slane %v5914_v49, 2 }
  0x3d   : > { %v1234_v16 = vadd.f32 %v1210_v36, %v1182_v37  ;;  %v6110_v8 = vsel %vm1300_vm1, %v13923_v13, %v13922_v58  ;;  %v1451_v36 = vmul.f32 %v6087_v0, %v6095_v33  ;;  %v6115_v37 = vrot.slane %v5843_v17, %v1345_v25 }
  0x3e   : > { %13924 = vst [vmem:[#allocation52_spill] sm:$0xff] %v6110_v8  ;;  %v1503_v58 = vmul.f32 %v6100_v2, %v6110_v8  ;;  %v13927_v13 = vrot.slane %v5971_v42, 2  ;;  %v6142_v8 = vrot.slane %v5901_v41, %v1345_v25  ;;  %v13931_v2 = vrot.slane %v5994_v53, 2 }
  0x3f   : > { %v1371_v35 = vadd.f32 %v1347_v28, %v1234_v16  ;;  %13925 = vst [vmem:[#allocation53_spill] sm:$0xff] %v6115_v37  ;;  %v6126_v16 = vrot.slane %v5880_v30, %v1345_v25  ;;  %v554_v28 = vmul.f32 %v5868_v26, %v5854_v20  ;;  %v555_v25 = vmul.f32 %v5938_v62, %v5854_v20 }
  0x40   : > { %v6135_v27 = vsel %vm1300_vm1, %v13928_v63, %v13927_v13  ;;  %13930 = vst [vmem:[#allocation56_spill] sm:$0xff] %v6142_v8  ;;  %v13932_v63 = vrot.slane %v5925_v55, 2 }
  0x41   : > { %v1423_v7 = vadd.f32 %v1399_v9, %v1371_v35  ;;  %13926 = vst [vmem:[#allocation54_spill] sm:$0xff] %v6126_v16  ;;  %13929 = vst [vmem:[#allocation55_spill] sm:$0xff] %v6135_v27  ;;  %v1555_v40 = vmul.f32 %v6115_v37, %v6135_v27  ;;  %v6163_v37 = vrot.slane %v5794_v3, %v6120_v34  ;;  %v13935_v27 = vrot.slane %v6011_v44, 2 }
  0x42   : > { %v6153_v13 = vsel %vm1300_vm1, %v13932_v63, %v13931_v2  ;;  %v13936_v2 = vrot.slane %v5932_v59, 2  ;;  %v578_v61 = vadd.f32 %v554_v28, %v5907_v46 }
  0x43   : > { %v1475_v35 = vadd.f32 %v1451_v36, %v1423_v7  ;;  %13933 = vst [vmem:[#allocation57_spill] sm:$0xff] %v6153_v13  ;;  %v1607_v9 = vmul.f32 %v6126_v16, %v6153_v13  ;;  %13934 = vst [vmem:[#allocation58_spill] sm:$0xff] %v6163_v37  ;;  %v6183_v13 = vmul.f32 %v5859_v22, %v5824_v10 }
  0x44   : > { %v6171_v63 = vsel %vm1300_vm1, %v13936_v2, %v13935_v27  ;;  %v6189_v2 = vrot.slane %v5804_v4, %v6120_v34  ;;  %v604_v7 = vmul.f32 %v5938_v62, %v5857_v21  ;;  %v6210_v36 = vrot.slane %v5809_v5, %v6120_v34 }
  0x45   : > { %v1527_v0 = vadd.f32 %v1503_v58, %v1475_v35  ;;  %13937 = vst [vmem:[#allocation59_spill] sm:$0xff] %v6171_v63  ;;  %v13938_v58 = vrot.slane %v5828_v12, 3  ;;  %v13939_v35 = vrot.slane %v5826_v11, 3  ;;  %13940 = vst [vmem:[#allocation60_spill] sm:$0xff] %v6183_v13  ;;  %v1659_v27 = vmul.f32 %v6142_v8, %v6171_v63 }
  0x46   : > { %13941 = vst [vmem:[#allocation61_spill] sm:$0xff] %v6189_v2  ;;  %13946 = vst [vmem:[#allocation64_spill] sm:$0xff] %v6210_v36  ;;  %v579_v63 = vadd.f32 %v555_v25, %v5909_v47  ;;  %v6231_v47 = vrot.slane %v5814_v6, %v6120_v34  ;;  %v628_v28 = vadd.f32 %v604_v7, %v5917_v52  ;;  %v13957_v7 = vrot.slane %v5914_v49, 3 }
  0x47   : > { %v1790_v16 = vsel %vm1749_vm2, %v13939_v35, %v13938_v58  ;;  %v1579_v33 = vadd.f32 %v1555_v40, %v1527_v0  ;;  %v13942_v58 = vrot.slane %v5835_v15, 3  ;;  %v13943_v35 = vrot.slane %v5832_v14, 3 }
  0x48   : > { %v6205_v0 = vmul.f32 %v5861_v23, %v5824_v10  ;;  %v1796_v8 = vmul.f32 %v6163_v37, %v1790_v16  ;;  %v607_v16 = vmul.f32 %v5971_v42, %v5857_v21  ;;  %13950 = vst [vmem:[#allocation66_spill] sm:$0xff] %v6231_v47  ;;  %v6250_v52 = vrot.slane %v5843_v17, %v6120_v34 }
  0x49   : > { %v6201_v40 = vsel %vm1749_vm2, %v13943_v35, %v13942_v58  ;;  %v1631_v13 = vadd.f32 %v1607_v9, %v1579_v33  ;;  %v606_v58 = vmul.f32 %v5914_v49, %v5857_v21  ;;  %v13947_v35 = vrot.slane %v5861_v23, 3 }
  0x4a   : > { %13944 = vst [vmem:[#allocation62_spill] sm:$0xff] %v6201_v40  ;;  %13945 = vst [vmem:[#allocation63_spill] sm:$0xff] %v6205_v0  ;;  %v13948_v0 = vrot.slane %v5859_v22, 3  ;;  %v1848_v46 = vmul.f32 %v6189_v2, %v6201_v40 }
  0x4b   : > { %v1683_v9 = vadd.f32 %v1659_v27, %v1631_v13  ;;  %v656_v27 = vmul.f32 %v5971_v42, %v5875_v29  ;;  %13954 = vst [vmem:[#allocation68_spill] sm:$0xff] %v6250_v52 }
  0x4c   : > { %v6223_v33 = vsel %vm1749_vm2, %v13948_v0, %v13947_v35  ;;  %v13951_v0 = vrot.slane %v5938_v62, 3  ;;  %v13952_v35 = vrot.slane %v5868_v26, 3 }
  0x4d   : > { %13949 = vst [vmem:[#allocation65_spill] sm:$0xff] %v6223_v33  ;;  %v1820_v2 = vadd.f32 %v1796_v8, %v1683_v9  ;;  %v1900_v40 = vmul.f32 %v6210_v36, %v6223_v33  ;;  %v6260_v8 = vrot.slane %v5880_v30, %v6120_v34  ;;  %v2243_v9 = vsub.s32 4, %v5787_v1 }
  0x4e   : > { %v6242_v13 = vsel %vm1749_vm2, %v13952_v35, %v13951_v0  ;;  %v13956_v36 = vrot.slane %v5971_v42, 3  ;;  %v680_v0 = vadd.f32 %v656_v27, %v628_v28 }
  0x4f   : > { %13953 = vst [vmem:[#allocation67_spill] sm:$0xff] %v6242_v13  ;;  %v1872_v35 = vadd.f32 %v1848_v46, %v1820_v2  ;;  %v1952_v54 = vmul.f32 %v6231_v47, %v6242_v13  ;;  %13955 = vst [vmem:[#allocation69_spill] sm:$0xff] %v6260_v8  ;;  %v6273_v2 = vrot.slane %v5901_v41, %v6120_v34  ;;  %v13964_v46 = vrot.slane %v5925_v55, 3 }
  0x50   : > { %v6269_v25 = vsel %vm1749_vm2, %v13957_v7, %v13956_v36  ;;  %v708_v13 = vmul.f32 %v5994_v53, %v5912_v48  ;;  %v13961_v36 = vrot.slane %v5932_v59, 3  ;;  %v13963_v7 = vrot.slane %v5994_v53, 3 }
  0x51   : > { %13958 = vst [vmem:[#allocation70_spill] sm:$0xff] %v6269_v25  ;;  %13959 = vst [vmem:[#allocation71_spill] sm:$0xff] %v6273_v2  ;;  %v1924_v47 = vadd.f32 %v1900_v40, %v1872_v35  ;;  %v2004_v33 = vmul.f32 %v6250_v52, %v6269_v25  ;;  %v13968_v40 = vrot.slane %v5826_v11, 4  ;;  %v6335_v27 = vrot.slane %v5809_v5, %v2243_v9 }
  0x52   : > { %v6287_v34 = vsel %vm1749_vm2, %v13961_v36, %v13960_v45  ;;  %v6295_v28 = vsel %vm1749_vm2, %v13964_v46, %v13963_v7  ;;  %v6303_v45 = vrot.slane %v5794_v3, %v2243_v9  ;;  %v13967_v7 = vrot.slane %v5828_v12, 4 }
  0x53   : > { %13962 = vst [vmem:[#allocation72_spill] sm:$0xff] %v6287_v34  ;;  %13965 = vst [vmem:[#allocation73_spill] sm:$0xff] %v6295_v28  ;;  %v1976_v35 = vadd.f32 %v1952_v54, %v1924_v47  ;;  %v2056_v37 = vmul.f32 %v6260_v8, %v6295_v28  ;;  %v2108_v36 = vmul.f32 %v6273_v2, %v6287_v34  ;;  %v13970_v34 = vrot.slane %v5835_v15, 4 }
  0x54   : > { %13966 = vst [vmem:[#allocation74_spill] sm:$0xff] %v6303_v45  ;;  %v2239_v54 = vsel %vm2198_vm3, %v13968_v40, %v13967_v7  ;;  %v6318_v8 = vrot.slane %v5804_v4, %v2243_v9  ;;  %v13971_v28 = vrot.slane %v5832_v14, 4  ;;  %v6331_v40 = vadd.f32 %v606_v58, %v578_v61  ;;  %13974 = vst [vmem:[#allocation78_spill] sm:$0xff] %v6335_v27 }
  0x55   : > { %v2028_v47 = vadd.f32 %v2004_v33, %v1976_v35  ;;  %v2245_v7 = vmul.f32 %v6303_v45, %v2239_v54  ;;  %v6337_v2 = vadd.f32 %v607_v16, %v579_v63  ;;  %v13976_v25 = vrot.slane %v5861_v23, 4 }
  0x56   : > { %13969 = vst [vmem:[#allocation75_spill] sm:$0xff] %v6318_v8  ;;  %v6329_v33 = vsel %vm2198_vm3, %v13971_v28, %v13970_v34  ;;  %13973 = vst [vmem:[#allocation77_spill] sm:$0xff] %v6331_v40  ;;  %v13977_v46 = vrot.slane %v5859_v22, 4  ;;  %v6348_v34 = vrot.slane %v5814_v6, %v2243_v9  ;;  %v6351_v61 = vrot.slane %v5843_v17, %v2243_v9 }
  0x57   : > { %13972 = vst [vmem:[#allocation76_spill] sm:$0xff] %v6329_v33  ;;  %v2080_v35 = vadd.f32 %v2056_v37, %v2028_v47  ;;  %13975 = vst [vmem:[#allocation79_spill] sm:$0xff] %v6337_v2  ;;  %v6353_v37 = vadd.f32 %v708_v13, %v680_v0  ;;  %v13982_v63 = vrot.slane %v5938_v62, 4  ;;  %v13983_v16 = vrot.slane %v5868_v26, 4 }
  0x58   : > { %v6345_v52 = vsel %vm2198_vm3, %v13977_v46, %v13976_v25  ;;  %13979 = vst [vmem:[#allocation81_spill] sm:$0xff] %v6348_v34  ;;  %13980 = vst [vmem:[#allocation82_spill] sm:$0xff] %v6351_v61  ;;  %v2297_v25 = vmul.f32 %v6318_v8, %v6329_v33  ;;  %v13985_v47 = vrot.slane %v5994_v53, 4  ;;  %v13986_v13 = vrot.slane %v5925_v55, 4 }
  0x59   : > { %13978 = vst [vmem:[#allocation80_spill] sm:$0xff] %v6345_v52  ;;  %13981 = vst [vmem:[#allocation83_spill] sm:$0xff] %v6353_v37  ;;  %v2132_v58 = vadd.f32 %v2108_v36, %v2080_v35  ;;  %v6361_v28 = vsel %vm2198_vm3, %v13983_v16, %v13982_v63  ;;  %v13988_v36 = vrot.slane %v5971_v42, 4  ;;  %v13989_v35 = vrot.slane %v5914_v49, 4 }
  0x5a   : > { %13984 = vst [vmem:[#allocation84_spill] sm:$0xff] %v6361_v28  ;;  %v6373_v0 = vsel %vm2198_vm3, %v13986_v13, %v13985_v47  ;;  %v2349_v46 = vmul.f32 %v6335_v27, %v6345_v52  ;;  %v2401_v47 = vmul.f32 %v6348_v34, %v6361_v28  ;;  %v6392_v40 = vrot.slane %v5880_v30, %v2243_v9 }
  0x5b   : > { %13987 = vst [vmem:[#allocation85_spill] sm:$0xff] %v6373_v0  ;;  %v6381_v63 = vsel %vm2198_vm3, %v13989_v35, %v13988_v36  ;;  %v2269_v16 = vadd.f32 %v2245_v7, %v2132_v58  ;;  %v6395_v36 = vrot.slane %v5901_v41, %v2243_v9  ;;  %v2692_v54 = vsub.s32 5, %v5787_v1 }
  0x5c   : > { %13990 = vst [vmem:[#allocation86_spill] sm:$0xff] %v6381_v63  ;;  %v2453_v13 = vmul.f32 %v6351_v61, %v6381_v63  ;;  %13991 = vst [vmem:[#allocation87_spill] sm:$0xff] %v6392_v40  ;;  %v13097_v61 = vrot.slane %v5994_v53, 5  ;;  %v2505_v35 = vmul.f32 %v6392_v40, %v6373_v0  ;;  %v14002_v2 = vrot.slane %v5828_v12, 5 }
  0x5d   : > { %13992 = vst [vmem:[#allocation88_spill] sm:$0xff] %v6395_v36  ;;  %v2321_v7 = vadd.f32 %v2297_v25, %v2269_v16  ;;  %v13993_v25 = vrot.slane %v6011_v44, 4  ;;  %v13994_v16 = vrot.slane %v5932_v59, 4  ;;  %v6423_v28 = vrot.slane %v5794_v3, %v2692_v54 }
  0x5e   : > { %v14003_v37 = vrot.slane %v5826_v11, 5  ;;  %v14004_v40 = vrot.slane %v5938_v62, 5  ;;  %v6465_v8 = vrot.slane %v5804_v4, %v2692_v54  ;;  %v6486_v0 = vrot.slane %v5880_v30, %v2692_v54 }
  0x5f   : > { %v2373_v34 = vadd.f32 %v2349_v46, %v2321_v7  ;;  %v6413_v58 = vsel %vm2198_vm3, %v13994_v16, %v13993_v25  ;;  %13996 = vst [vmem:[#allocation90_spill] sm:$0xff] %v6423_v28  ;;  %v13997_v25 = vrot.slane %v5925_v55, 5  ;;  %v6489_v63 = vrot.slane %v5901_v41, %v2692_v54 }
  0x60   : > { %13995 = vst [vmem:[#allocation89_spill] sm:$0xff] %v6413_v58  ;;  %v2557_v27 = vmul.f32 %v6395_v36, %v6413_v58  ;;  %v2688_v46 = vsel %vm2647_vm4, %v14003_v37, %v14002_v2  ;;  %v14007_v58 = vrot.slane %v5861_v23, 5  ;;  %14010 = vst [vmem:[#allocation95_spill] sm:$0xff] %v6465_v8  ;;  %v14011_v2 = vrot.slane %v5835_v15, 5 }
  0x61   : > { %v2425_v7 = vadd.f32 %v2401_v47, %v2373_v34  ;;  %v6432_v16 = vsel %vm2647_vm4, %v13997_v25, %v13097_v61  ;;  %v13999_v34 = vrot.slane %v5971_v42, 5  ;;  %v14000_v47 = vrot.slane %v5914_v49, 5  ;;  %14016 = vst [vmem:[#allocation99_spill] sm:$0xff] %v6486_v0  ;;  %14017 = vst [vmem:[#allocation100_spill] sm:$0xff] %v6489_v63 }
  0x62   : > { %13998 = vst [vmem:[#allocation91_spill] sm:$0xff] %v6432_v16  ;;  %v14005_v25 = vrot.slane %v5868_v26, 5  ;;  %v14012_v37 = vrot.slane %v5832_v14, 5  ;;  %v3141_v45 = vsub.s32 6, %v5787_v1 }
  0x63   : > { %v6440_v9 = vsel %vm2647_vm4, %v14000_v47, %v13999_v34  ;;  %v2477_v36 = vadd.f32 %v2453_v13, %v2425_v7  ;;  %v14008_v34 = vrot.slane %v5859_v22, 5  ;;  %v6479_v7 = vrot.slane %v5814_v6, %v2692_v54 }
  0x64   : > { %14001 = vst [vmem:[#allocation92_spill] sm:$0xff] %v6440_v9  ;;  %v6454_v61 = vsel %vm2647_vm4, %v14005_v25, %v14004_v40  ;;  %v6473_v13 = vsel %vm2647_vm4, %v14012_v37, %v14011_v2  ;;  %v6476_v40 = vrot.slane %v5809_v5, %v2692_v54  ;;  %v14018_v2 = vrot.slane %v6011_v44, 5 }
  0x65   : > { %14006 = vst [vmem:[#allocation93_spill] sm:$0xff] %v6454_v61  ;;  %v6462_v47 = vsel %vm2647_vm4, %v14008_v34, %v14007_v58  ;;  %14014 = vst [vmem:[#allocation97_spill] sm:$0xff] %v6479_v7  ;;  %v6482_v58 = vrot.slane %v5843_v17, %v2692_v54  ;;  %v2529_v25 = vadd.f32 %v2505_v35, %v2477_v36  ;;  %v14019_v37 = vrot.slane %v5932_v59, 5  ;;  %v5298_v36 = vld [vmem:[%s5799_s15 + $0x60] sm:$0xff]  }
  0x66   : > { %14009 = vst [vmem:[#allocation94_spill] sm:$0xff] %v6462_v47  ;;  %14013 = vst [vmem:[#allocation96_spill] sm:$0xff] %v6476_v40  ;;  %v2694_v34 = vmul.f32 %v6423_v28, %v2688_v46  ;;  %v2746_v54 = vmul.f32 %v6465_v8, %v6473_v13  ;;  %v2954_v28 = vmul.f32 %v6486_v0, %v6432_v16  ;;  %v6534_v0 = vld [vmem:[%s5799_s15 + $0x68] sm:$0xff]  }
  0x67   : > { %14015 = vst [vmem:[#allocation98_spill] sm:$0xff] %v6482_v58  ;;  %v6497_v52 = vsel %vm2647_vm4, %v14019_v37, %v14018_v2  ;;  %v2581_v46 = vadd.f32 %v2557_v27, %v2529_v25  ;;  %v2798_v2 = vmul.f32 %v6476_v40, %v6462_v47  ;;  %v2850_v37 = vmul.f32 %v6479_v7, %v6454_v61  ;;  %v5301_v27 = vld [vmem:[%s5799_s15 + $0x78] sm:$0xff]  }
  0x68   : > { %14020 = vst [vmem:[#allocation101_spill] sm:$0xff] %v6497_v52  ;;  %v2902_v35 = vmul.f32 %v6482_v58, %v6440_v9  ;;  %v3006_v33 = vmul.f32 %v6489_v63, %v6497_v52  ;;  %v6524_v61 = vunpack.c.h.bf16 %v6507_v24  ;;  %v452_v58 = vmul.f32 %v5914_v49, %v5824_v10 }
  0x69   : > { %v2718_v25 = vadd.f32 %v2694_v34, %v2581_v46  ;;  %v511_v34 = vmul.f32 %v5925_v55, %v5846_v18  ;;  %v6537_v7 = vunpack.c.l.bf16 %v5298_v36  ;;  %v563_v8 = vmul.f32 %v5932_v59, %v5854_v20 }
  0x6a   : > { %14022 = vst [vmem:[#allocation103_spill] sm:$0xff] %v6524_v61  ;;  %v483_v52 = vadd.f32 %v5851_v19, %v452_v58  ;;  %v6548_v40 = vunpack.c.h.bf16 %v6534_v0  ;;  %v615_v58 = vmul.f32 %v6524_v61, %v5857_v21  ;;  %v14025_v20 = vrot.slane %v5971_v42, 6 }
  0x6b   : > { %v2770_v46 = vadd.f32 %v2746_v54, %v2718_v25  ;;  %14023 = vst [vmem:[#allocation104_spill] sm:$0xff] %v6537_v7  ;;  %v14028_v25 = vrot.slane %v5938_v62, 6  ;;  %v14029_v63 = vrot.slane %v5868_v26, 6 }
  0x6c   : > { %14024 = vst [vmem:[#allocation105_spill] sm:$0xff] %v6548_v40  ;;  %v535_v9 = vadd.f32 %v511_v34, %v483_v52  ;;  %v6569_v52 = vrot.slane %v5794_v3, %v3141_v45  ;;  %v14034_v34 = vrot.slane %v5826_v11, 6  ;;  %v14036_v3 = vrot.slane %v5861_v23, 6 }
  0x6d   : > { %v2822_v16 = vadd.f32 %v2798_v2, %v2770_v46  ;;  %v14026_v2 = vrot.slane %v5914_v49, 6  ;;  %v6566_v54 = vsel %vm3096_vm5, %v14029_v63, %v14028_v25  ;;  %v667_v63 = vmul.f32 %v6537_v7, %v5875_v29 }
  0x6e   : > { %14030 = vst [vmem:[#allocation107_spill] sm:$0xff] %v6566_v54  ;;  %14031 = vst [vmem:[#allocation108_spill] sm:$0xff] %v6569_v52  ;;  %v587_v26 = vadd.f32 %v563_v8, %v535_v9  ;;  %v14037_v49 = vrot.slane %v5859_v22, 6  ;;  %v14039_v11 = vrot.slane %v5835_v15, 6  ;;  %v6601_v8 = vrot.slane %v5804_v4, %v3141_v45  ;;  %v6618_v4 = vld [vmem:[%s5799_s15 + $0x70] sm:$0xff]  }
  0x6f   : > { %v2874_v24 = vadd.f32 %v2850_v37, %v2822_v16  ;;  %v6558_v46 = vsel %vm3096_vm5, %v14026_v2, %v14025_v20  ;;  %v6572_v16 = vld [vmem:[%s5799_s15 + $0x58] sm:$0xff]   ;;  %v14033_v37 = vrot.slane %v5828_v12, 6  ;;  %v6580_v2 = vunpack.c.l.bf16 %v5301_v27  ;;  %14046 = vst [vmem:[#allocation117_spill] sm:$0xff] %v6618_v4 }
  0x70   : > { %14027 = vst [vmem:[#allocation106_spill] sm:$0xff] %v6558_v46  ;;  %14032 = vst [vmem:[#allocation109_spill] sm:$0xff] %v6572_v16  ;;  %v6590_v42 = vsel %vm3096_vm5, %v14037_v49, %v14036_v3  ;;  %v6607_v9 = vunpack.c.l.bf16 %v6572_v16  ;;  %v719_v49 = vmul.f32 %v6548_v40, %v5912_v48  ;;  %v6613_v22 = vrot.slane %v5814_v6, %v3141_v45 }
  0x71   : > { %v3137_v20 = vsel %vm3096_vm5, %v14034_v34, %v14033_v37  ;;  %14035 = vst [vmem:[#allocation110_spill] sm:$0xff] %v6580_v2  ;;  %v2926_v25 = vadd.f32 %v2902_v35, %v2874_v24  ;;  %14038 = vst [vmem:[#allocation111_spill] sm:$0xff] %v6590_v42  ;;  %v14040_v37 = vrot.slane %v5832_v14, 6  ;;  %v6604_v24 = vrot.slane %v5809_v5, %v3141_v45 }
  0x72   : > { %14041 = vst [vmem:[#allocation112_spill] sm:$0xff] %v6601_v8  ;;  %14043 = vst [vmem:[#allocation114_spill] sm:$0xff] %v6607_v9  ;;  %v639_v35 = vadd.f32 %v615_v58, %v587_v26  ;;  %v3143_v62 = vmul.f32 %v6569_v52, %v3137_v20  ;;  %v6621_v5 = vrot.slane %v5843_v17, %v3141_v45  ;;  %v6635_v17 = vunpack.c.l.bf16 %v6618_v4 }
  0x73   : > { %v6598_v34 = vsel %vm3096_vm5, %v14040_v37, %v14039_v11  ;;  %14042 = vst [vmem:[#allocation113_spill] sm:$0xff] %v6604_v24  ;;  %v2978_v3 = vadd.f32 %v2954_v28, %v2926_v25  ;;  %14044 = vst [vmem:[#allocation115_spill] sm:$0xff] %v6613_v22  ;;  %v6615_v11 = vunpack.c.h.bf16 %v5298_v36  ;;  %v6624_v37 = vrot.slane %v5880_v30, %v3141_v45 }
  0x74   : > { %14047 = vst [vmem:[#allocation118_spill] sm:$0xff] %v6621_v5  ;;  %v691_v26 = vadd.f32 %v667_v63, %v639_v35  ;;  %v771_v58 = vmul.f32 %v6580_v2, %v5928_v56  ;;  %v3195_v20 = vmul.f32 %v6601_v8, %v6598_v34  ;;  %v3247_v25 = vmul.f32 %v6604_v24, %v6590_v42 }
  0x75   : > { %14045 = vst [vmem:[#allocation116_spill] sm:$0xff] %v6615_v11  ;;  %14048 = vst [vmem:[#allocation119_spill] sm:$0xff] %v6624_v37  ;;  %v3030_v28 = vadd.f32 %v3006_v33, %v2978_v3  ;;  %v910_v63 = vmul.f32 %v5950_v31, %v6029_v50  ;;  %v6639_v16 = vunpack.c.h.bf16 %v5301_v27  ;;  %v13156_v33 = vrot.slane %v6537_v7, 1 }
  0x76   : > { %14049 = vst [vmem:[#allocation120_spill] sm:$0xff] %v6635_v17  ;;  %v743_v30 = vadd.f32 %v719_v49, %v691_v26  ;;  %v13157_v3 = vrot.slane %v6615_v11, 1  ;;  %v13158_v8 = vrot.slane %v6635_v17, 1  ;;  %v962_v4 = vmul.f32 %v5953_v32, %v6045_v57  ;;  %v14083_v57 = vld [vmem:[#allocation74_spill] sm:$0xff] }
  0x77   : > { %v3167_v35 = vadd.f32 %v3143_v62, %v3030_v28  ;;  %14050 = vst [vmem:[#allocation121_spill] sm:$0xff] %v6639_v16  ;;  %v3299_v49 = vmul.f32 %v6613_v22, %v6566_v54  ;;  %v6650_v62 = vrot.slane %v5901_v41, %v3141_v45  ;;  %v14052_v27 = vrot.slane %v6607_v9, 1 }
  0x78   : > { %v795_v6 = vadd.f32 %v771_v58, %v743_v30  ;;  %v14053_v26 = vrot.slane %v6524_v61, 1  ;;  %v6666_v41 = vmul.f32 %v5950_v31, %v5966_v38  ;;  %v3351_v36 = vmul.f32 %v6621_v5, %v6558_v46 }
  0x79   : > { %v3219_v24 = vadd.f32 %v3195_v20, %v3167_v35  ;;  %14051 = vst [vmem:[#allocation122_spill] sm:$0xff] %v6650_v62  ;;  %v1014_v35 = vmul.f32 %v5969_v39, %v6060_v60  ;;  %v14063_v28 = vrot.slane %v6011_v44, 6  ;;  %v14074_v60 = vld [vmem:[#allocation50_spill] sm:$0xff] }
  0x7a   : > { %v6658_v58 = vsel %vm851_vm0, %v14053_v26, %v14052_v27  ;;  %v934_v20 = vadd.f32 %v910_v63, %v795_v6  ;;  %14055 = vst [vmem:[#allocation124_spill] sm:$0xff] %v6666_v41  ;;  %v6676_v27 = vsel %vm851_vm0, %v13156_v33, %v13157_v3  ;;  %v14057_v6 = vrot.slane %v5994_v53, 6  ;;  %v14076_v41 = vld [vmem:[#allocation43_spill] sm:$0xff] }
  0x7b   : > { %14054 = vst [vmem:[#allocation123_spill] sm:$0xff] %v6658_v58  ;;  %v3271_v45 = vadd.f32 %v3247_v25, %v3219_v24  ;;  %14056 = vst [vmem:[#allocation125_spill] sm:$0xff] %v6676_v27  ;;  %v14058_v63 = vrot.slane %v5925_v55, 6  ;;  %v14060_v24 = vrot.slane %v6548_v40, 1  ;;  %v1066_v33 = vmul.f32 %v5991_v51, %v6658_v58  ;;  %v14069_v58 = vld [vmem:[#allocation39_spill] sm:$0xff] }
  0x7c   : > { %v986_v26 = vadd.f32 %v962_v4, %v934_v20  ;;  %v6698_v3 = vmul.f32 %v5950_v31, %v5979_v43  ;;  %v14066_v20 = vrot.slane %v6639_v16, 1  ;;  %v15001_v1 = vld [vmem:[#allocation115_spill] sm:$0xff] }
  0x7d   : > { %v6684_v38 = vsel %vm3096_vm5, %v14058_v63, %v14057_v6  ;;  %v6692_v25 = vsel %vm851_vm0, %v14060_v24, %v13158_v8  ;;  %v14064_v6 = vrot.slane %v5932_v59, 6  ;;  %v3323_v30 = vadd.f32 %v3299_v49, %v3271_v45  ;;  %v14070_v49 = vld [vmem:[#allocation41_spill] sm:$0xff] }
  0x7e   : > { %14059 = vst [vmem:[#allocation126_spill] sm:$0xff] %v6684_v38  ;;  %14061 = vst [vmem:[#allocation127_spill] sm:$0xff] %v6692_v25  ;;  %v3403_v24 = vmul.f32 %v6624_v37, %v6684_v38  ;;  %v14067_v8 = vrot.slane %v6580_v2, 1  ;;  %v1038_v54 = vadd.f32 %v1014_v35, %v986_v26  ;;  %v1170_v45 = vmul.f32 %v14070_v49, %v6692_v25  ;;  %v14072_v25 = vld [vmem:[#allocation45_spill] sm:$0xff]  ;;  %v14131_v38 = vld [vmem:[#allocation64_spill] sm:$0xff] }
  0x7f   : > { %14062 = vst [vmem:[#allocation128_spill] sm:$0xff] %v6698_v3  ;;  %v6706_v63 = vsel %vm3096_vm5, %v14064_v6, %v14063_v28  ;;  %v1118_v28 = vmul.f32 %v14069_v58, %v6676_v27  ;;  %v3375_v6 = vadd.f32 %v3351_v36, %v3323_v30  ;;  %v14071_v30 = vld [vmem:[#allocation48_spill] sm:$0xff]  ;;  %v14080_v35 = vld [vmem:[#allocation65_spill] sm:$0xff] }
  0x80   : > { %14065 = vst [vmem:[#allocation129_spill] sm:$0xff] %v6706_v63  ;;  %v3455_v4 = vmul.f32 %v6650_v62, %v6706_v63  ;;  %v6718_v3 = vsel %vm851_vm0, %v14067_v8, %v14066_v20  ;;  %v1090_v50 = vadd.f32 %v1066_v33, %v1038_v54  ;;  %v6734_v27 = vmul.f32 %v14072_v25, %v14071_v30  ;;  %v14077_v8 = vld [vmem:[#allocation62_spill] sm:$0xff]  ;;  %v14082_v36 = vld [vmem:[#allocation76_spill] sm:$0xff]  ;;  %v14104_v59 = vld [vmem:[#allocation49_spill] sm:$0xff] }
  0x81   : > { %14068 = vst [vmem:[#allocation130_spill] sm:$0xff] %v6718_v3  ;;  %v3427_v20 = vadd.f32 %v3403_v24, %v3375_v6  ;;  %v6738_v54 = vmul.f32 %v14072_v25, %v14074_v60  ;;  %v1222_v43 = vmul.f32 %v14076_v41, %v6718_v3  ;;  %v14078_v24 = vld [vmem:[#allocation58_spill] sm:$0xff]  ;;  %v6752_v30 = vmul.f32 %v14083_v57, %v14082_v36  ;;  %v14086_v60 = vld [vmem:[#allocation80_spill] sm:$0xff] }
  0x82   : > { %14073 = vst [vmem:[#allocation48_spill] sm:$0xff] %v6734_v27  ;;  %v1142_v33 = vadd.f32 %v1118_v28, %v1090_v50  ;;  %v6744_v6 = vmul.f32 %v14078_v24, %v14077_v8  ;;  %v6748_v26 = vmul.f32 %v14078_v24, %v14080_v35  ;;  %v6758_v50 = vmul.f32 %v14083_v57, %v14086_v60 }
  0x83   : > { %14075 = vst [vmem:[#allocation131_spill] sm:$0xff] %v6738_v54  ;;  %14084 = vst [vmem:[#allocation76_spill] sm:$0xff] %v6752_v30  ;;  %v6754_v27 = vadd.f32 %v3455_v4, %v3427_v20  ;;  %v14088_v54 = vrot.slane %v6607_v9, 2  ;;  %v14089_v8 = vrot.slane %v6524_v61, 2  ;;  %v14092_v20 = vrot.slane %v6639_v16, 2 }
  0x84   : > { %14079 = vst [vmem:[#allocation62_spill] sm:$0xff] %v6744_v6  ;;  %14081 = vst [vmem:[#allocation132_spill] sm:$0xff] %v6748_v26  ;;  %v1194_v28 = vadd.f32 %v1170_v45, %v1142_v33  ;;  %v14091_v26 = vld [vmem:[#allocation55_spill] sm:$0xff]  ;;  %v14093_v36 = vrot.slane %v6580_v2, 2  ;;  %v14095_v33 = vrot.slane %v6635_v17, 2 }
  0x85   : > { %14085 = vst [vmem:[#allocation133_spill] sm:$0xff] %v6754_v27  ;;  %14087 = vst [vmem:[#allocation134_spill] sm:$0xff] %v6758_v50  ;;  %v6766_v3 = vsel %vm1300_vm1, %v14089_v8, %v14088_v54  ;;  %v1359_v6 = vmul.f32 %v14072_v25, %v14091_v26  ;;  %v3504_v4 = vsel %vm3503_vm6, %v6754_v27, 0.0  ;;  %v14096_v50 = vrot.slane %v6548_v40, 2  ;;  %v14103_v26 = vld [vmem:[#allocation59_spill] sm:$0xff] }
  0x86   : > { %14090 = vst [vmem:[#allocation135_spill] sm:$0xff] %v6766_v3  ;;  %v6778_v45 = vsel %vm1300_vm1, %v14093_v36, %v14092_v20  ;;  %v14098_v8 = vrot.slane %v6615_v11, 2  ;;  %v14099_v27 = vrot.slane %v6537_v7, 2  ;;  %3505 = vadd.xlane.f32.xlu0 %v3504_v4  ;;  %v1246_v60 = vadd.f32 %v1222_v43, %v1194_v28  ;;  %v14101_v20 = vld [vmem:[#allocation57_spill] sm:$0xff]  ;;  %v14102_v36 = vld [vmem:[#allocation47_spill] sm:$0xff] }
  0x87   : > { %14094 = vst [vmem:[#allocation136_spill] sm:$0xff] %v6778_v45  ;;  %v6786_v54 = vsel %vm1300_vm1, %v14096_v50, %v14095_v33  ;;  %v1411_v35 = vmul.f32 %v14102_v36, %v14101_v20  ;;  %v1463_v55 = vmul.f32 %v14104_v59, %v14103_v26  ;;  %v6818_v50 = vmul.f32 %v6569_v52, %v6598_v34  ;;  %v14111_v4 = vld [vmem:[#allocation51_spill] sm:$0xff]  ;;  %v14112_v43 = vld [vmem:[#allocation53_spill] sm:$0xff]  ;;  %v14113_v33 = vld [vmem:[#allocation54_spill] sm:$0xff] }
  0x88   : > { %14097 = vst [vmem:[#allocation137_spill] sm:$0xff] %v6786_v54  ;;  %v6794_v30 = vsel %vm1300_vm1, %v14099_v27, %v14098_v8  ;;  %v1383_v27 = vadd.f32 %v1359_v6, %v1246_v60  ;;  %v14105_v8 = vld [vmem:[#allocation90_spill] sm:$0xff]  ;;  %v6821_v60 = vunpack.c.l.bf16 %v6534_v0  ;;  %v6825_v6 = vmul.f32 %v6569_v52, %v6590_v42  ;;  %v14114_v34 = vld [vmem:[#allocation56_spill] sm:$0xff] }
  0x89   : > { %14100 = vst [vmem:[#allocation138_spill] sm:$0xff] %v6794_v30  ;;  %v6810_v26 = vmul.f32 %v14105_v8, %v6473_v13  ;;  %v6814_v62 = vmul.f32 %v14105_v8, %v6462_v47  ;;  %14108 = vst [vmem:[#allocation141_spill] sm:$0xff] %v6818_v50  ;;  %v1515_v13 = vmul.f32 %v14111_v4, %v6766_v3  ;;  %v14115_v0 = vrot.slane %v6615_v11, 3  ;;  %v14127_v3 = vld [vmem:[#allocation70_spill] sm:$0xff]  ;;  %v14157_v4 = vld [vmem:[#allocation17_spill] sm:$0xff] }
  0x8a   : > { %14109 = vst [vmem:[#allocation142_spill] sm:$0xff] %v6821_v60  ;;  %14110 = vst [vmem:[#allocation143_spill] sm:$0xff] %v6825_v6  ;;  %v1435_v5 = vadd.f32 %v1411_v35, %v1383_v27  ;;  %v1567_v28 = vmul.f32 %v14112_v43, %v6794_v30  ;;  %v1619_v37 = vmul.f32 %v14113_v33, %v6786_v54  ;;  %v14116_v50 = vrot.slane %v6537_v7, 3  ;;  %v14134_v60 = vld [vmem:[#allocation69_spill] sm:$0xff]  ;;  %v14156_v33 = vld [vmem:[#allocation78_spill] sm:$0xff] }
  0x8b   : > { %14106 = vst [vmem:[#allocation139_spill] sm:$0xff] %v6810_v26  ;;  %14107 = vst [vmem:[#allocation140_spill] sm:$0xff] %v6814_v62  ;;  %v1671_v62 = vmul.f32 %v14114_v34, %v6778_v45  ;;  %v14118_v35 = vrot.slane %v6607_v9, 3  ;;  %v14119_v27 = vrot.slane %v6524_v61, 3  ;;  %v14121_v26 = vrot.slane %v6639_v16, 3 }
  0x8c   : > { %v6841_v6 = vsel %vm1749_vm2, %v14116_v50, %v14115_v0  ;;  %v1487_v54 = vadd.f32 %v1463_v55, %v1435_v5  ;;  %v14122_v45 = vrot.slane %v6580_v2, 3  ;;  %v14124_v50 = vrot.slane %v6635_v17, 3  ;;  %v14128_v55 = vld [vmem:[#allocation73_spill] sm:$0xff] }
  0x8d   : > { %14117 = vst [vmem:[#allocation144_spill] sm:$0xff] %v6841_v6  ;;  %v6849_v30 = vsel %vm1749_vm2, %v14119_v27, %v14118_v35  ;;  %v14125_v0 = vrot.slane %v6548_v40, 3  ;;  %v1808_v35 = vmul.f32 %v14078_v24, %v14127_v3  ;;  %v14129_v5 = vld [vmem:[#allocation61_spill] sm:$0xff]  ;;  %v14132_v3 = vld [vmem:[#allocation66_spill] sm:$0xff] }
  0x8e   : > { %14120 = vst [vmem:[#allocation145_spill] sm:$0xff] %v6849_v30  ;;  %v6857_v42 = vsel %vm1749_vm2, %v14122_v45, %v14121_v26  ;;  %v1860_v27 = vmul.f32 %v14129_v5, %v14128_v55  ;;  %v13213_v26 = vrot.slane %v6615_v11, 4  ;;  %v1539_v45 = vadd.f32 %v1515_v13, %v1487_v54  ;;  %v14133_v55 = vld [vmem:[#allocation68_spill] sm:$0xff]  ;;  %v14135_v13 = vld [vmem:[#allocation71_spill] sm:$0xff] }
  0x8f   : > { %14123 = vst [vmem:[#allocation146_spill] sm:$0xff] %v6857_v42  ;;  %v6865_v47 = vsel %vm1749_vm2, %v14125_v0, %v14124_v50  ;;  %v14130_v0 = vld [vmem:[#allocation72_spill] sm:$0xff]  ;;  %v1964_v24 = vmul.f32 %v14132_v3, %v6849_v30  ;;  %v2016_v20 = vmul.f32 %v14133_v55, %v6841_v6  ;;  %v6889_v22 = vmul.f32 %v14135_v13, %v6857_v42  ;;  %v14140_v42 = vld [vmem:[#allocation15_spill] sm:$0xff] }
  0x90   : > { %14126 = vst [vmem:[#allocation147_spill] sm:$0xff] %v6865_v47  ;;  %v1912_v34 = vmul.f32 %v14131_v38, %v14130_v0  ;;  %v6885_v5 = vmul.f32 %v14134_v60, %v6865_v47  ;;  %v1591_v54 = vadd.f32 %v1567_v28, %v1539_v45  ;;  %v14136_v30 = vrot.slane %v6537_v7, 4  ;;  %v14138_v0 = vld [vmem:[#allocation10_spill] sm:$0xff]  ;;  %v14139_v28 = vld [vmem:[#allocation11_spill] sm:$0xff] }
  0x91   : > { %v6902_v47 = vunpack.c.l.bf16 %v14138_v0  ;;  %v6905_v45 = vunpack.c.h.bf16 %v14139_v28  ;;  %v6908_v13 = vunpack.c.l.bf16 %v14140_v42  ;;  %v14141_v50 = vrot.slane %v6635_v17, 4 }
  0x92   : > { %v6899_v6 = vsel %vm2198_vm3, %v14136_v30, %v13213_v26  ;;  %v1643_v63 = vadd.f32 %v1619_v37, %v1591_v54  ;;  %v14142_v60 = vrot.slane %v6548_v40, 4  ;;  %v14144_v30 = vrot.slane %v6607_v9, 4  ;;  %v14147_v26 = vld [vmem:[#allocation86_spill] sm:$0xff]  ;;  %v14148_v37 = vld [vmem:[#allocation25_spill] sm:$0xff] }
  0x93   : > { %14137 = vst [vmem:[#allocation148_spill] sm:$0xff] %v6899_v6  ;;  %v14145_v0 = vrot.slane %v6524_v61, 4  ;;  %v6928_v42 = vmul.f32 %v14083_v57, %v14147_v26  ;;  %v6931_v54 = vunpack.c.h.bf16 %v14148_v37  ;;  %v442_v3 = vmul.f32 %v6902_v47, %v5824_v10  ;;  %v14153_v37 = vld [vmem:[#allocation85_spill] sm:$0xff]  ;;  %v14154_v57 = vld [vmem:[#allocation75_spill] sm:$0xff] }
  0x94   : > { %v6916_v55 = vsel %vm2198_vm3, %v14142_v60, %v14141_v50  ;;  %v445_v60 = vmul.f32 %v6905_v45, %v5824_v10  ;;  %v501_v50 = vmul.f32 %v6905_v45, %v5846_v18  ;;  %v1695_v38 = vadd.f32 %v1671_v62, %v1643_v63  ;;  %v14155_v10 = vld [vmem:[#allocation89_spill] sm:$0xff] }
  0x95   : > { %14143 = vst [vmem:[#allocation10_spill] sm:$0xff] %v6916_v55  ;;  %v6924_v28 = vsel %vm2198_vm3, %v14145_v0, %v14144_v30  ;;  %14149 = vst [vmem:[#allocation15_spill] sm:$0xff] %v6931_v54  ;;  %v14150_v30 = vrot.slane %v6639_v16, 4  ;;  %v14151_v0 = vrot.slane %v6580_v2, 4  ;;  %v6949_v52 = vmul.f32 %v14154_v57, %v14153_v37  ;;  %v14159_v37 = vld [vmem:[#allocation82_spill] sm:$0xff] }
  0x96   : > { %14146 = vst [vmem:[#allocation11_spill] sm:$0xff] %v6924_v28  ;;  %v504_v46 = vmul.f32 %v6908_v13, %v5846_v18  ;;  %v6955_v43 = vmul.f32 %v14156_v33, %v14155_v10  ;;  %v473_v62 = vadd.f32 %v5851_v19, %v442_v3  ;;  %v476_v63 = vadd.f32 %v5851_v19, %v445_v60  ;;  %v14160_v18 = vld [vmem:[#allocation87_spill] sm:$0xff]  ;;  %v14161_v33 = vld [vmem:[#allocation22_spill] sm:$0xff] }
  0x97   : > { %v6945_v26 = vsel %vm2198_vm3, %v14151_v0, %v14150_v30  ;;  %v553_v59 = vmul.f32 %v6908_v13, %v14157_v4  ;;  %v1832_v30 = vadd.f32 %v1808_v35, %v1695_v38  ;;  %v14158_v0 = vld [vmem:[#allocation81_spill] sm:$0xff]  ;;  %v6967_v57 = vmul.f32 %v14159_v37, %v6899_v6 }
  0x98   : > { %14152 = vst [vmem:[#allocation25_spill] sm:$0xff] %v6945_v26  ;;  %v6963_v36 = vmul.f32 %v14158_v0, %v6924_v28  ;;  %v6971_v10 = vmul.f32 %v14160_v18, %v6916_v55  ;;  %v6974_v3 = vunpack.c.l.bf16 %v14161_v33  ;;  %v525_v19 = vadd.f32 %v501_v50, %v473_v62  ;;  %v14164_v28 = vld [vmem:[#allocation32_spill] sm:$0xff] }
  0x99   : > { %v6976_v60 = vadd.f32 %v504_v46, %v476_v63  ;;  %v605_v38 = vmul.f32 %v6931_v54, %v5857_v21  ;;  %v1884_v35 = vadd.f32 %v1860_v27, %v1832_v30  ;;  %v6981_v0 = vunpack.c.h.bf16 %v14164_v28  ;;  %v14166_v63 = vld [vmem:[#allocation88_spill] sm:$0xff]  ;;  %v14167_v30 = vld [vmem:[#allocation102_spill] sm:$0xff] }
  0x9a   : > { %14162 = vst [vmem:[#allocation22_spill] sm:$0xff] %v6974_v3  ;;  %v760_v6 = vmul.f32 %v6011_v44, %v5928_v56  ;;  %v577_v55 = vadd.f32 %v553_v59, %v525_v19  ;;  %v657_v33 = vmul.f32 %v6974_v3, %v5875_v29  ;;  %v809_v50 = vrot.slane %v6902_v47, 1 }
  0x9b   : > { %14163 = vst [vmem:[#allocation149_spill] sm:$0xff] %v6976_v60  ;;  %14165 = vst [vmem:[#allocation32_spill] sm:$0xff] %v6981_v0  ;;  %v812_v46 = vrot.slane %v6905_v45, 1  ;;  %v1936_v62 = vadd.f32 %v1912_v34, %v1884_v35  ;;  %v6992_v27 = vmul.f32 %v14166_v63, %v6945_v26  ;;  %v6996_v18 = vunpack.c.l.bf16 %v14167_v30  ;;  %v14169_v35 = vld [vmem:[#allocation83_spill] sm:$0xff] }
  0x9c   : > { %v629_v59 = vadd.f32 %v605_v38, %v577_v55  ;;  %v709_v19 = vmul.f32 %v6981_v0, %v5912_v48  ;;  %v784_v26 = vadd.f32 %v760_v6, %v14169_v35  ;;  %v14170_v63 = vrot.slane %v6908_v13, 1 }
  0x9d   : > { %14168 = vst [vmem:[#allocation102_spill] sm:$0xff] %v6996_v18  ;;  %v1988_v21 = vadd.f32 %v1964_v24, %v1936_v62  ;;  %v761_v34 = vmul.f32 %v6996_v18, %v5928_v56  ;;  %v14171_v28 = vrot.slane %v5861_v23, 1  ;;  %v14173_v38 = vrot.slane %v5835_v15, 1 }
  0x9e   : > { %v681_v55 = vadd.f32 %v657_v33, %v629_v59  ;;  %v14174_v24 = vrot.slane %v5832_v14, 1  ;;  %v14175_v62 = vrot.slane %v5828_v12, 1  ;;  %v14176_v33 = vld [vmem:[#allocation19_spill] sm:$0xff]  ;;  %v14178_v56 = vrot.slane %v6931_v54, 1 }
  0x9f   : > { %v7011_v30 = vsel %vm851_vm0, %v14171_v28, %v14170_v63  ;;  %v7017_v37 = vsel %vm851_vm0, %v14173_v38, %v812_v46  ;;  %v2040_v29 = vadd.f32 %v2016_v20, %v1988_v21  ;;  %v14177_v28 = vrot.slane %v14176_v33, 1 }
  0xa0   : > { %14172 = vst [vmem:[#allocation83_spill] sm:$0xff] %v7011_v30  ;;  %v890_v6 = vsel %vm851_vm0, %v809_v50, %v14174_v24  ;;  %v891_v35 = vsel %vm851_vm0, %v14175_v62, %v809_v50  ;;  %v733_v14 = vadd.f32 %v709_v19, %v681_v55  ;;  %v14179_v24 = vld [vmem:[#allocation29_spill] sm:$0xff]  ;;  %v951_v20 = vmul.f32 %v5953_v32, %v7017_v37 }
  0xa1   : > { %v7032_v59 = vsel %vm851_vm0, %v812_v46, %v14177_v28  ;;  %v899_v38 = vmul.f32 %v5950_v31, %v891_v35  ;;  %v14180_v48 = vrot.slane %v14179_v24, 1  ;;  %v900_v21 = vmul.f32 %v5950_v31, %v890_v6 }
  0xa2   : > { %v2092_v50 = vadd.f32 %v6885_v5, %v2040_v29  ;;  %v1003_v19 = vmul.f32 %v5969_v39, %v7011_v30  ;;  %v785_v35 = vadd.f32 %v761_v34, %v733_v14  ;;  %v13241_v28 = vrot.slane %v6981_v0, 1  ;;  %v14208_v30 = vld [vmem:[#allocation91_spill] sm:$0xff] }
  0xa3   : > { %v7041_v60 = vsel %vm851_vm0, %v14180_v48, %v14178_v56  ;;  %v923_v62 = vadd.f32 %v899_v38, %v784_v26  ;;  %v952_v48 = vmul.f32 %v5953_v32, %v7032_v59  ;;  %v14182_v26 = vrot.slane %v6974_v3, 1  ;;  %v14183_v38 = vld [vmem:[#allocation34_spill] sm:$0xff] }
  0xa4   : > { %14181 = vst [vmem:[#allocation150_spill] sm:$0xff] %v7041_v60  ;;  %v2144_v56 = vadd.f32 %v6889_v22, %v2092_v50  ;;  %v1055_v29 = vmul.f32 %v5991_v51, %v7041_v60  ;;  %v14184_v46 = vrot.slane %v14183_v38, 1  ;;  %v924_v34 = vadd.f32 %v900_v21, %v785_v35  ;;  %v14261_v32 = vld [vmem:[#allocation18_spill] sm:$0xff] }
  0xa5   : > { %v975_v63 = vadd.f32 %v951_v20, %v923_v62  ;;  %v13242_v55 = vrot.slane %v6902_v47, 2  ;;  %v13243_v20 = vrot.slane %v6635_v17, 5  ;;  %v14186_v5 = vrot.slane %v5994_v53, 1 }
  0xa6   : > { %v7065_v14 = vsel %vm851_vm0, %v14184_v46, %v14182_v26  ;;  %v2281_v22 = vadd.f32 %v6928_v42, %v2144_v56  ;;  %v7081_v21 = vadd.f32 %v952_v48, %v924_v34  ;;  %v14189_v26 = vrot.slane %v6607_v9, 5 }
  0xa7   : > { %14185 = vst [vmem:[#allocation151_spill] sm:$0xff] %v7065_v14  ;;  %v1027_v50 = vadd.f32 %v1003_v19, %v975_v63  ;;  %v1107_v62 = vmul.f32 %v14069_v58, %v7065_v14  ;;  %v7079_v46 = vsel %vm851_vm0, %v14186_v5, %v13241_v28  ;;  %v14190_v6 = vrot.slane %v6524_v61, 5  ;;  %v14219_v58 = vld [vmem:[#allocation100_spill] sm:$0xff] }
  0xa8   : > { %14187 = vst [vmem:[#allocation152_spill] sm:$0xff] %v7079_v46  ;;  %14188 = vst [vmem:[#allocation153_spill] sm:$0xff] %v7081_v21  ;;  %v2333_v35 = vadd.f32 %v6949_v52, %v2281_v22  ;;  %v1159_v56 = vmul.f32 %v14070_v49, %v7079_v46  ;;  %v14192_v48 = vrot.slane %v6996_v18, 1  ;;  %v14193_v34 = vrot.slane %v6011_v44, 1  ;;  %v14210_v21 = vld [vmem:[#allocation101_spill] sm:$0xff] }
  0xa9   : > { %v1079_v19 = vadd.f32 %v1055_v29, %v1027_v50  ;;  %v7094_v5 = vsel %vm2647_vm4, %v14190_v6, %v14189_v26  ;;  %v14195_v22 = vrot.slane %v5828_v12, 2  ;;  %v14196_v26 = vld [vmem:[#allocation92_spill] sm:$0xff]  ;;  %v14199_v29 = vrot.slane %v6615_v11, 5 }
  0xaa   : > { %14191 = vst [vmem:[#allocation154_spill] sm:$0xff] %v7094_v5  ;;  %v7102_v52 = vsel %vm851_vm0, %v14193_v34, %v14192_v48  ;;  %v2385_v6 = vadd.f32 %v6955_v43, %v2333_v35  ;;  %v2706_v28 = vmul.f32 %v14105_v8, %v14196_v26  ;;  %v14197_v48 = vrot.slane %v6548_v40, 5  ;;  %v14209_v26 = vld [vmem:[#allocation95_spill] sm:$0xff] }
  0xab   : > { %14194 = vst [vmem:[#allocation155_spill] sm:$0xff] %v7102_v52  ;;  %v1340_v50 = vsel %vm1300_vm1, %v14195_v22, %v13242_v55  ;;  %v1131_v63 = vadd.f32 %v1107_v62, %v1079_v19  ;;  %v1211_v42 = vmul.f32 %v14076_v41, %v7102_v52  ;;  %v14200_v22 = vrot.slane %v6537_v7, 5  ;;  %v14211_v41 = vld [vmem:[#allocation96_spill] sm:$0xff] }
  0xac   : > { %v7122_v34 = vsel %vm2647_vm4, %v14197_v48, %v13243_v20  ;;  %v14202_v35 = vrot.slane %v6905_v45, 2  ;;  %v14203_v19 = vrot.slane %v5835_v15, 2  ;;  %v2437_v48 = vadd.f32 %v6963_v36, %v2385_v6 }
  0xad   : > { %14198 = vst [vmem:[#allocation156_spill] sm:$0xff] %v7122_v34  ;;  %v7130_v43 = vsel %vm2647_vm4, %v14200_v22, %v14199_v29  ;;  %v14205_v20 = vrot.slane %v6639_v16, 5  ;;  %v14206_v60 = vrot.slane %v6580_v2, 5  ;;  %v1183_v22 = vadd.f32 %v1159_v56, %v1131_v63  ;;  %v14216_v63 = vld [vmem:[#allocation98_spill] sm:$0xff] }
  0xae   : > { %14201 = vst [vmem:[#allocation157_spill] sm:$0xff] %v7130_v43  ;;  %v7139_v55 = vsel %vm1300_vm1, %v14203_v19, %v14202_v35  ;;  %v1348_v62 = vmul.f32 %v14072_v25, %v1340_v50  ;;  %v2758_v33 = vmul.f32 %v14209_v26, %v14208_v30  ;;  %v2810_v35 = vmul.f32 %v14211_v41, %v14210_v21  ;;  %v14212_v19 = vld [vmem:[#allocation97_spill] sm:$0xff]  ;;  %v14217_v30 = vld [vmem:[#allocation47_spill] sm:$0xff] }
  0xaf   : > { %14204 = vst [vmem:[#allocation158_spill] sm:$0xff] %v7139_v55  ;;  %v7148_v29 = vsel %vm2647_vm4, %v14206_v60, %v14205_v20  ;;  %v2862_v36 = vmul.f32 %v14212_v19, %v7094_v5  ;;  %v14213_v6 = vrot.slane %v6908_v13, 2  ;;  %v14214_v49 = vrot.slane %v5861_v23, 2  ;;  %v14218_v25 = vld [vmem:[#allocation99_spill] sm:$0xff] }
  0xb0   : > { %14207 = vst [vmem:[#allocation159_spill] sm:$0xff] %v7148_v29  ;;  %v2489_v20 = vadd.f32 %v6967_v57, %v2437_v48  ;;  %v2914_v56 = vmul.f32 %v14216_v63, %v7130_v43  ;;  %v1235_v50 = vadd.f32 %v1211_v42, %v1183_v22  ;;  %v1400_v21 = vmul.f32 %v14217_v30, %v7139_v55 }
  0xb1   : > { %v7163_v60 = vsel %vm1300_vm1, %v14214_v49, %v14213_v6  ;;  %v2966_v5 = vmul.f32 %v14218_v25, %v7122_v34  ;;  %v7174_v51 = vmul.f32 %v14219_v58, %v7148_v29  ;;  %v14220_v49 = vrot.slane %v6931_v54, 2  ;;  %v14223_v34 = vld [vmem:[#allocation49_spill] sm:$0xff] }
  0xb2   : > { %14215 = vst [vmem:[#allocation160_spill] sm:$0xff] %v7163_v60  ;;  %v14221_v57 = vrot.slane %v14179_v24, 2  ;;  %v2541_v42 = vadd.f32 %v6971_v10, %v2489_v20  ;;  %v1372_v6 = vadd.f32 %v1348_v62, %v1235_v50  ;;  %v1452_v43 = vmul.f32 %v14223_v34, %v7163_v60  ;;  %v14224_v10 = vld [vmem:[#allocation51_spill] sm:$0xff]  ;;  %v14249_v34 = vld [vmem:[#allocation126_spill] sm:$0xff] }
  0xb3   : > { %v13269_v29 = vrot.slane %v6607_v9, 6  ;;  %v14225_v22 = vrot.slane %v6974_v3, 2  ;;  %v14226_v39 = vrot.slane %v14183_v38, 2  ;;  %v14229_v50 = vrot.slane %v6524_v61, 6 }
  0xb4   : > { %v7183_v48 = vsel %vm1300_vm1, %v14221_v57, %v14220_v49  ;;  %v2593_v52 = vadd.f32 %v6992_v27, %v2541_v42  ;;  %v1424_v57 = vadd.f32 %v1400_v21, %v1372_v6  ;;  %v14228_v49 = vld [vmem:[#allocation53_spill] sm:$0xff]  ;;  %v14235_v21 = vrot.slane %v6537_v7, 6  ;;  %v14244_v7 = vld [vmem:[#allocation108_spill] sm:$0xff] }
  0xb5   : > { %14222 = vst [vmem:[#allocation161_spill] sm:$0xff] %v7183_v48  ;;  %v1504_v20 = vmul.f32 %v14224_v10, %v7183_v48  ;;  %v7205_v55 = vsel %vm1300_vm1, %v14226_v39, %v14225_v22  ;;  %v7218_v48 = vsel %vm3096_vm5, %v14229_v50, %v13269_v29  ;;  %v14231_v39 = vrot.slane %v6981_v0, 2  ;;  %v14237_v29 = vld [vmem:[#allocation54_spill] sm:$0xff] }
  0xb6   : > { %14227 = vst [vmem:[#allocation162_spill] sm:$0xff] %v7205_v55  ;;  %v2730_v42 = vadd.f32 %v2706_v28, %v2593_v52  ;;  %v1476_v6 = vadd.f32 %v1452_v43, %v1424_v57  ;;  %v1556_v30 = vmul.f32 %v14228_v49, %v7205_v55  ;;  %14230 = vst [vmem:[#allocation163_spill] sm:$0xff] %v7218_v48  ;;  %v14232_v28 = vrot.slane %v5994_v53, 2  ;;  %v14243_v43 = vld [vmem:[#allocation106_spill] sm:$0xff]  ;;  %v14245_v49 = vld [vmem:[#allocation56_spill] sm:$0xff] }
  0xb7   : > { %v14234_v57 = vrot.slane %v6615_v11, 6  ;;  %v556_v60 = vmul.f32 %v6931_v54, %v14157_v4  ;;  %v3155_v61 = vmul.f32 %v14244_v7, %v14243_v43  ;;  %v14255_v43 = vrot.slane %v6548_v40, 6  ;;  %v14260_v7 = vld [vmem:[#allocation149_spill] sm:$0xff]  ;;  %v14268_v40 = vld [vmem:[#allocation119_spill] sm:$0xff] }
  0xb8   : > { %v7226_v52 = vsel %vm1300_vm1, %v14232_v28, %v14231_v39  ;;  %v2782_v22 = vadd.f32 %v2758_v33, %v2730_v42  ;;  %v1528_v50 = vadd.f32 %v1504_v20, %v1476_v6  ;;  %v14238_v39 = vrot.slane %v6996_v18, 2 }
  0xb9   : > { %14233 = vst [vmem:[#allocation164_spill] sm:$0xff] %v7226_v52  ;;  %v7235_v62 = vsel %vm3096_vm5, %v14235_v21, %v14234_v57  ;;  %v1608_v27 = vmul.f32 %v14237_v29, %v7226_v52  ;;  %v14239_v28 = vrot.slane %v6011_v44, 2  ;;  %v14241_v21 = vrot.slane %v6902_v47, 3  ;;  %v14250_v52 = vld [vmem:[#allocation112_spill] sm:$0xff] }
  0xba   : > { %14236 = vst [vmem:[#allocation165_spill] sm:$0xff] %v7235_v62  ;;  %v14242_v20 = vrot.slane %v5828_v12, 3  ;;  %v2834_v57 = vadd.f32 %v2810_v35, %v2782_v22  ;;  %v1580_v29 = vadd.f32 %v1556_v30, %v1528_v50  ;;  %v3207_v55 = vmul.f32 %v14250_v52, %v14249_v34  ;;  %v14257_v34 = vld [vmem:[#allocation58_spill] sm:$0xff] }
  0xbb   : > { %v7247_v33 = vsel %vm1300_vm1, %v14239_v28, %v14238_v39  ;;  %v14246_v39 = vrot.slane %v6639_v16, 6  ;;  %v14247_v28 = vrot.slane %v6580_v2, 6  ;;  %v14251_v22 = vrot.slane %v6905_v45, 3  ;;  %v14258_v2 = vld [vmem:[#allocation129_spill] sm:$0xff] }
  0xbc   : > { %14240 = vst [vmem:[#allocation166_spill] sm:$0xff] %v7247_v33  ;;  %v1789_v6 = vsel %vm1749_vm2, %v14242_v20, %v14241_v21  ;;  %v1660_v10 = vmul.f32 %v14245_v49, %v7247_v33  ;;  %v14252_v30 = vrot.slane %v5835_v15, 3  ;;  %v2886_v21 = vadd.f32 %v2862_v36, %v2834_v57  ;;  %v14259_v49 = vld [vmem:[#allocation113_spill] sm:$0xff] }
  0xbd   : > { %v7266_v42 = vsel %vm3096_vm5, %v14247_v28, %v14246_v39  ;;  %v14254_v20 = vrot.slane %v6635_v17, 6  ;;  %v1632_v28 = vadd.f32 %v1608_v27, %v1580_v29  ;;  %v1797_v35 = vmul.f32 %v14257_v34, %v1789_v6  ;;  %v14265_v29 = vld [vmem:[#allocation115_spill] sm:$0xff] }
  0xbe   : > { %14248 = vst [vmem:[#allocation167_spill] sm:$0xff] %v7266_v42  ;;  %v7277_v50 = vsel %vm1749_vm2, %v14252_v30, %v14251_v22  ;;  %v3259_v33 = vmul.f32 %v14259_v49, %v14258_v2  ;;  %v580_v52 = vadd.f32 %v556_v60, %v14260_v7  ;;  %v608_v22 = vmul.f32 %v6974_v3, %v14261_v32  ;;  %v14267_v7 = vld [vmem:[#allocation118_spill] sm:$0xff] }
  0xbf   : > { %14253 = vst [vmem:[#allocation168_spill] sm:$0xff] %v7277_v50  ;;  %v7285_v39 = vsel %vm3096_vm5, %v14255_v43, %v14254_v20  ;;  %v14262_v36 = vrot.slane %v6908_v13, 3  ;;  %v14263_v57 = vrot.slane %v5861_v23, 3  ;;  %v2938_v43 = vadd.f32 %v2914_v56, %v2886_v21  ;;  %v14266_v20 = vld [vmem:[#allocation61_spill] sm:$0xff]  ;;  %v14272_v21 = vld [vmem:[#allocation122_spill] sm:$0xff] }
  0xc0   : > { %14256 = vst [vmem:[#allocation169_spill] sm:$0xff] %v7285_v39  ;;  %v3311_v27 = vmul.f32 %v14265_v29, %v7218_v48  ;;  %v1684_v6 = vadd.f32 %v1660_v10, %v1632_v28  ;;  %v1849_v2 = vmul.f32 %v14266_v20, %v7277_v50  ;;  %v3363_v60 = vmul.f32 %v14267_v7, %v7235_v62  ;;  %v14273_v62 = vld [vmem:[#allocation64_spill] sm:$0xff] }
  0xc1   : > { %v7299_v30 = vsel %vm1749_vm2, %v14263_v57, %v14262_v36  ;;  %v3415_v34 = vmul.f32 %v14268_v40, %v7285_v39  ;;  %v14269_v46 = vrot.slane %v6931_v54, 3  ;;  %v14270_v36 = vrot.slane %v14179_v24, 3  ;;  %v14274_v39 = vld [vmem:[#allocation12_spill] sm:$0xff] }
  0xc2   : > { %14264 = vst [vmem:[#allocation149_spill] sm:$0xff] %v7299_v30  ;;  %v2990_v10 = vadd.f32 %v2966_v5, %v2938_v43  ;;  %v7320_v28 = vmul.f32 %v14272_v21, %v7266_v42  ;;  %v1821_v57 = vadd.f32 %v1797_v35, %v1684_v6  ;;  %v1901_v50 = vmul.f32 %v14273_v62, %v7299_v30  ;;  %v14278_v35 = vld [vmem:[#allocation66_spill] sm:$0xff] }
  0xc3   : > { %v7316_v56 = vsel %vm1749_vm2, %v14270_v36, %v14269_v46  ;;  %v7326_v49 = vmul.f32 %v6908_v13, %v14274_v39  ;;  %v7328_v48 = vadd.f32 %v608_v22, %v580_v52  ;;  %v7332_v20 = vmul.f32 %v5950_v31, %v7017_v37  ;;  %v14314_v62 = vld [vmem:[#allocation78_spill] sm:$0xff] }
  0xc4   : > { %14271 = vst [vmem:[#allocation170_spill] sm:$0xff] %v7316_v56  ;;  %v3042_v5 = vadd.f32 %v7174_v51, %v2990_v10  ;;  %v1873_v43 = vadd.f32 %v1849_v2, %v1821_v57  ;;  %v1953_v6 = vmul.f32 %v14278_v35, %v7316_v56  ;;  %v14280_v52 = vrot.slane %v14183_v38, 3  ;;  %v14282_v57 = vld [vmem:[#allocation68_spill] sm:$0xff] }
  0xc5   : > { %14275 = vst [vmem:[#allocation171_spill] sm:$0xff] %v7326_v49  ;;  %14276 = vst [vmem:[#allocation172_spill] sm:$0xff] %v7328_v48  ;;  %v14279_v49 = vrot.slane %v6974_v3, 3  ;;  %v14283_v42 = vrot.slane %v6981_v0, 3  ;;  %v14284_v56 = vrot.slane %v5994_v53, 3  ;;  %v14287_v36 = vrot.slane %v6905_v45, 4 }
  0xc6   : > { %14277 = vst [vmem:[#allocation173_spill] sm:$0xff] %v7332_v20  ;;  %v3179_v2 = vadd.f32 %v3155_v61, %v3042_v5  ;;  %v1925_v10 = vadd.f32 %v1901_v50, %v1873_v43  ;;  %v14286_v43 = vld [vmem:[#allocation69_spill] sm:$0xff]  ;;  %v14288_v51 = vrot.slane %v5835_v15, 4  ;;  %v14301_v20 = vrot.slane %v14179_v24, 4 }
  0xc7   : > { %v7346_v37 = vsel %vm1749_vm2, %v14280_v52, %v14279_v49  ;;  %v7359_v30 = vsel %vm1749_vm2, %v14284_v56, %v14283_v42  ;;  %v7376_v42 = vmul.f32 %v5950_v31, %v7032_v59  ;;  %v14291_v56 = vrot.slane %v6996_v18, 3 }
  0xc8   : > { %14281 = vst [vmem:[#allocation174_spill] sm:$0xff] %v7346_v37  ;;  %v2005_v46 = vmul.f32 %v14282_v57, %v7346_v37  ;;  %14285 = vst [vmem:[#allocation175_spill] sm:$0xff] %v7359_v30  ;;  %v3231_v50 = vadd.f32 %v3207_v55, %v3179_v2  ;;  %v1977_v5 = vadd.f32 %v1953_v6, %v1925_v10  ;;  %v14292_v55 = vrot.slane %v6011_v44, 3  ;;  %v14313_v57 = vld [vmem:[#allocation74_spill] sm:$0xff] }
  0xc9   : > { %v2057_v22 = vmul.f32 %v14286_v43, %v7359_v30  ;;  %v7372_v48 = vsel %vm2198_vm3, %v14288_v51, %v14287_v36  ;;  %14290 = vst [vmem:[#allocation177_spill] sm:$0xff] %v7376_v42  ;;  %v14294_v2 = vrot.slane %v6908_v13, 4  ;;  %v14295_v10 = vrot.slane %v5861_v23, 4  ;;  %v14316_v30 = vld [vmem:[#allocation82_spill] sm:$0xff] }
  0xca   : > { %14289 = vst [vmem:[#allocation176_spill] sm:$0xff] %v7372_v48  ;;  %v7384_v6 = vsel %vm1749_vm2, %v14292_v55, %v14291_v56  ;;  %v14297_v51 = vrot.slane %v6902_v47, 4  ;;  %v14298_v59 = vrot.slane %v5828_v12, 4  ;;  %v3283_v52 = vadd.f32 %v3259_v33, %v3231_v50  ;;  %v14299_v56 = vld [vmem:[#allocation71_spill] sm:$0xff] }
  0xcb   : > { %14293 = vst [vmem:[#allocation178_spill] sm:$0xff] %v7384_v6  ;;  %v7392_v36 = vsel %vm2198_vm3, %v14295_v10, %v14294_v2  ;;  %v2029_v61 = vadd.f32 %v2005_v46, %v1977_v5  ;;  %v2109_v55 = vmul.f32 %v14299_v56, %v7384_v6  ;;  %v14300_v42 = vrot.slane %v6931_v54, 4 }
  0xcc   : > { %14296 = vst [vmem:[#allocation179_spill] sm:$0xff] %v7392_v36  ;;  %v2238_v49 = vsel %vm2198_vm3, %v14298_v59, %v14297_v51  ;;  %v14303_v10 = vrot.slane %v6996_v18, 4  ;;  %v14304_v43 = vrot.slane %v6011_v44, 4  ;;  %v14306_v33 = vrot.slane %v6981_v0, 4  ;;  %v14312_v59 = vld [vmem:[#allocation75_spill] sm:$0xff] }
  0xcd   : > { %v7408_v2 = vsel %vm2198_vm3, %v14301_v20, %v14300_v42  ;;  %v14307_v46 = vrot.slane %v5994_v53, 4  ;;  %v14309_v5 = vrot.slane %v6974_v3, 4  ;;  %v14310_v20 = vrot.slane %v14183_v38, 4 }
  0xce   : > { %14302 = vst [vmem:[#allocation180_spill] sm:$0xff] %v7408_v2  ;;  %v7416_v51 = vsel %vm2198_vm3, %v14304_v43, %v14303_v10  ;;  %v2298_v43 = vmul.f32 %v14312_v59, %v7372_v48  ;;  %v3335_v10 = vadd.f32 %v3311_v27, %v3283_v52  ;;  %v2081_v56 = vadd.f32 %v2057_v22, %v2029_v61  ;;  %v14318_v22 = vld [vmem:[#allocation87_spill] sm:$0xff] }
  0xcf   : > { %14305 = vst [vmem:[#allocation181_spill] sm:$0xff] %v7416_v51  ;;  %v7424_v50 = vsel %vm2198_vm3, %v14307_v46, %v14306_v33  ;;  %v7432_v42 = vsel %vm2198_vm3, %v14310_v20, %v14309_v5  ;;  %v2246_v35 = vmul.f32 %v14313_v57, %v2238_v49  ;;  %v2350_v6 = vmul.f32 %v14314_v62, %v7392_v36  ;;  %v14315_v33 = vld [vmem:[#allocation81_spill] sm:$0xff]  ;;  %v14317_v20 = vld [vmem:[#allocation16_spill] sm:$0xff] }
  0xd0   : > { %14308 = vst [vmem:[#allocation182_spill] sm:$0xff] %v7424_v50  ;;  %14311 = vst [vmem:[#allocation183_spill] sm:$0xff] %v7432_v42  ;;  %v2402_v46 = vmul.f32 %v14315_v33, %v7408_v2  ;;  %v2454_v37 = vmul.f32 %v14316_v30, %v7432_v42  ;;  %v453_v5 = vmul.f32 %v14183_v38, %v14274_v39  ;;  %v7455_v36 = vld [vmem:[%s13000_s2] ss:$0 sm:$0xff]  ;;  %v13317_v52 = vrot.slane %v6996_v18, 5  ;;  %v14330_v2 = vld [vmem:[#allocation21_spill] sm:$0xff] }
  0xd1   : > { %v512_v21 = vmul.f32 %v5994_v53, %v14317_v20  ;;  %v3387_v48 = vadd.f32 %v3363_v60, %v3335_v10  ;;  %v2133_v27 = vadd.f32 %v2109_v55, %v2081_v56  ;;  %v2506_v49 = vmul.f32 %v14318_v22, %v7424_v50  ;;  %14319 = vst [vmem:[#allocation184_spill] sm:$0xff] %v7455_v36 }
  0xd2   : > { %v484_v39 = vadd.f32 %v7455_v36, %v453_v5  ;;  %v564_v60 = vmul.f32 %v6011_v44, %v14157_v4  ;;  %v616_v22 = vmul.f32 %v6607_v9, %v14261_v32  ;;  %v14321_v4 = vld [vmem:[#allocation88_spill] sm:$0xff]  ;;  %v14333_v32 = vrot.slane %v6931_v54, 5 }
  0xd3   : > { %v3439_v56 = vadd.f32 %v3415_v34, %v3387_v48  ;;  %v2270_v55 = vadd.f32 %v2246_v35, %v2133_v27  ;;  %v2558_v34 = vmul.f32 %v14321_v4, %v7416_v51  ;;  %v14322_v48 = vrot.slane %v6908_v13, 5 }
  0xd4   : > { %v536_v20 = vadd.f32 %v512_v21, %v484_v39  ;;  %v14323_v35 = vrot.slane %v5861_v23, 5  ;;  %v14325_v39 = vrot.slane %v6905_v45, 5  ;;  %v14326_v21 = vrot.slane %v5835_v15, 5 }
  0xd5   : > { %v7467_v30 = vadd.f32 %v7320_v28, %v3439_v56  ;;  %v2322_v5 = vadd.f32 %v2298_v43, %v2270_v55  ;;  %v14328_v43 = vrot.slane %v6902_v47, 5  ;;  %v14329_v56 = vrot.slane %v5828_v12, 5 }
  0xd6   : > { %v7477_v27 = vsel %vm2647_vm4, %v14323_v35, %v14322_v48  ;;  %v7485_v28 = vsel %vm2647_vm4, %v14326_v21, %v14325_v39  ;;  %v588_v61 = vadd.f32 %v564_v60, %v536_v20  ;;  %v668_v48 = vmul.f32 %v6615_v11, %v14330_v2 }
  0xd7   : > { %14320 = vst [vmem:[#allocation185_spill] sm:$0xff] %v7467_v30  ;;  %14324 = vst [vmem:[#allocation186_spill] sm:$0xff] %v7477_v27  ;;  %v2687_v55 = vsel %vm2647_vm4, %v14329_v56, %v14328_v43  ;;  %v3540_v35 = vsel %vm3503_vm6, %v7467_v30, 0.0  ;;  %v2374_v10 = vadd.f32 %v2350_v6, %v2322_v5  ;;  %v14331_v39 = vrot.slane %v6011_v44, 5 }
  0xd8   : > { %14327 = vst [vmem:[#allocation187_spill] sm:$0xff] %v7485_v28  ;;  %v14334_v43 = vrot.slane %v14179_v24, 5  ;;  %3541 = vadd.xlane.f32.xlu1 %v3540_v35  ;;  %v14336_v60 = vrot.slane %v6981_v0, 5  ;;  %v14337_v6 = vrot.slane %v5994_v53, 5  ;;  %v14339_v56 = vrot.slane %v6974_v3, 5 }
  0xd9   : > { %v7503_v21 = vsel %vm2647_vm4, %v14331_v39, %v13317_v52  ;;  %v14340_v39 = vrot.slane %v14183_v38, 5  ;;  %v640_v30 = vadd.f32 %v616_v22, %v588_v61  ;;  %v2695_v36 = vmul.f32 %v14105_v8, %v2687_v55  ;;  %v14345_v61 = vld [vmem:[#allocation27_spill] sm:$0xff]  ;;  %v14434_v8 = vld [vmem:[#allocation64_spill] sm:$0xff] }
  0xda   : > { %14332 = vst [vmem:[#allocation188_spill] sm:$0xff] %v7503_v21  ;;  %v7511_v20 = vsel %vm2647_vm4, %v14334_v43, %v14333_v32  ;;  %v7519_v5 = vsel %vm2647_vm4, %v14337_v6, %v14336_v60  ;;  %v14342_v32 = vld [vmem:[#allocation23_spill] sm:$0xff]  ;;  %v2426_v43 = vadd.f32 %v2402_v46, %v2374_v10  ;;  %v2747_v60 = vmul.f32 %v14209_v26, %v7485_v28  ;;  %v14343_v6 = vld [vmem:[#allocation109_spill] sm:$0xff] }
  0xdb   : > { %14335 = vst [vmem:[#allocation189_spill] sm:$0xff] %v7511_v20  ;;  %14338 = vst [vmem:[#allocation190_spill] sm:$0xff] %v7519_v5  ;;  %v7527_v52 = vsel %vm2647_vm4, %v14340_v39, %v14339_v56  ;;  %v720_v35 = vmul.f32 %v6635_v17, %v14342_v32  ;;  %v7535_v2 = vunpack.c.h.bf16 %v14343_v6  ;;  %v2799_v4 = vmul.f32 %v14211_v41, %v7477_v27  ;;  %v14347_v28 = vld [vmem:[#allocation117_spill] sm:$0xff]  ;;  %v14351_v41 = vld [vmem:[#allocation31_spill] sm:$0xff] }
  0xdc   : > { %14341 = vst [vmem:[#allocation191_spill] sm:$0xff] %v7527_v52  ;;  %v2851_v56 = vmul.f32 %v14212_v19, %v7511_v20  ;;  %v692_v22 = vadd.f32 %v668_v48, %v640_v30  ;;  %v772_v39 = vmul.f32 %v6639_v16, %v14345_v61  ;;  %v2478_v32 = vadd.f32 %v2454_v37, %v2426_v43  ;;  %v7556_v30 = vld [vmem:[%s5799_s15 + $0x80] sm:$0xff]  }
  0xdd   : > { %14344 = vst [vmem:[#allocation109_spill] sm:$0xff] %v7535_v2  ;;  %v2903_v46 = vmul.f32 %v14216_v63, %v7527_v52  ;;  %v7547_v10 = vmul.f32 %v14218_v25, %v7519_v5  ;;  %v7552_v6 = vmul.f32 %v14219_v58, %v7503_v21  ;;  %14346 = vst [vmem:[#allocation192_spill] sm:$0xff] %v7556_v30  ;;  %v7562_v61 = vunpack.c.h.bf16 %v14347_v28  ;;  %v14349_v25 = vld [vmem:[#allocation142_spill] sm:$0xff]  ;;  %v14350_v20 = vld [vmem:[#allocation152_spill] sm:$0xff] }
  0xde   : > { %v744_v48 = vadd.f32 %v720_v35, %v692_v22  ;;  %v911_v37 = vmul.f32 %v5950_v31, %v7065_v14  ;;  %v2530_v43 = vadd.f32 %v2506_v49, %v2478_v32  ;;  %v963_v21 = vmul.f32 %v14351_v41, %v14350_v20  ;;  %v14356_v63 = vld [vmem:[#allocation155_spill] sm:$0xff]  ;;  %v14433_v5 = vld [vmem:[#allocation178_spill] sm:$0xff] }
  0xdf   : > { %14348 = vst [vmem:[#allocation117_spill] sm:$0xff] %v7562_v61  ;;  %v7570_v22 = vunpack.c.l.bf16 %v7556_v30  ;;  %v14353_v32 = vrot.slane %v7535_v2, 1  ;;  %v14354_v28 = vrot.slane %v6607_v9, 1  ;;  %v14358_v14 = vrot.slane %v14349_v25, 1 }
  0xe0   : > { %v796_v19 = vadd.f32 %v772_v39, %v744_v48  ;;  %v2582_v35 = vadd.f32 %v2558_v34, %v2530_v43  ;;  %v14357_v34 = vld [vmem:[#allocation33_spill] sm:$0xff]  ;;  %v14359_v30 = vrot.slane %v6615_v11, 1  ;;  %v14368_v39 = vrot.slane %v6981_v0, 6 }
  0xe1   : > { %14352 = vst [vmem:[#allocation193_spill] sm:$0xff] %v7570_v22  ;;  %v7579_v27 = vsel %vm851_vm0, %v14354_v28, %v14353_v32  ;;  %v1015_v43 = vmul.f32 %v14357_v34, %v14356_v63  ;;  %v14361_v28 = vrot.slane %v6931_v54, 6  ;;  %v14383_v63 = vrot.slane %v6996_v18, 6 }
  0xe2   : > { %14355 = vst [vmem:[#allocation194_spill] sm:$0xff] %v7579_v27  ;;  %v935_v48 = vadd.f32 %v911_v37, %v796_v19  ;;  %v2719_v55 = vadd.f32 %v2695_v36, %v2582_v35  ;;  %v7593_v32 = vsel %vm851_vm0, %v14359_v30, %v14358_v14  ;;  %v14362_v19 = vrot.slane %v14179_v24, 6  ;;  %v14367_v14 = vld [vmem:[#allocation36_spill] sm:$0xff] }
  0xe3   : > { %14360 = vst [vmem:[#allocation195_spill] sm:$0xff] %v7593_v32  ;;  %v14364_v36 = vrot.slane %v6905_v45, 6  ;;  %v14365_v35 = vrot.slane %v5835_v15, 6  ;;  %v1067_v30 = vmul.f32 %v14367_v14, %v7579_v27  ;;  %v14369_v24 = vrot.slane %v5994_v53, 6  ;;  %v14382_v27 = vld [vmem:[#allocation39_spill] sm:$0xff] }
  0xe4   : > { %v7601_v37 = vsel %vm3096_vm5, %v14362_v19, %v14361_v28  ;;  %v987_v20 = vadd.f32 %v963_v21, %v935_v48  ;;  %v2771_v58 = vadd.f32 %v2747_v60, %v2719_v55  ;;  %v14371_v19 = vrot.slane %v6908_v13, 6 }
  0xe5   : > { %14363 = vst [vmem:[#allocation196_spill] sm:$0xff] %v7601_v37  ;;  %v7609_v49 = vsel %vm3096_vm5, %v14365_v35, %v14364_v36  ;;  %v7619_v28 = vsel %vm3096_vm5, %v14369_v24, %v14368_v39  ;;  %v14372_v15 = vrot.slane %v5861_v23, 6  ;;  %v14374_v21 = vrot.slane %v7562_v61, 1 }
  0xe6   : > { %14366 = vst [vmem:[#allocation197_spill] sm:$0xff] %v7609_v49  ;;  %14370 = vst [vmem:[#allocation198_spill] sm:$0xff] %v7619_v28  ;;  %v14375_v60 = vrot.slane %v6635_v17, 1  ;;  %v14377_v48 = vrot.slane %v6974_v3, 6  ;;  %v14378_v24 = vrot.slane %v14183_v38, 6  ;;  %v14380_v23 = vrot.slane %v6902_v47, 6 }
  0xe7   : > { %v7627_v36 = vsel %vm3096_vm5, %v14372_v15, %v14371_v19  ;;  %v14381_v35 = vrot.slane %v5828_v12, 6  ;;  %v1039_v15 = vadd.f32 %v1015_v43, %v987_v20  ;;  %v14384_v38 = vrot.slane %v6011_v44, 6  ;;  %v14392_v44 = vld [vmem:[#allocation108_spill] sm:$0xff] }
  0xe8   : > { %14373 = vst [vmem:[#allocation199_spill] sm:$0xff] %v7627_v36  ;;  %v7635_v55 = vsel %vm851_vm0, %v14375_v60, %v14374_v21  ;;  %v7643_v39 = vsel %vm3096_vm5, %v14378_v24, %v14377_v48  ;;  %v1119_v21 = vmul.f32 %v14382_v27, %v7593_v32  ;;  %v2823_v60 = vadd.f32 %v2799_v4, %v2771_v58  ;;  %v14386_v24 = vld [vmem:[#allocation112_spill] sm:$0xff]  ;;  %v14390_v58 = vld [vmem:[#allocation113_spill] sm:$0xff] }
  0xe9   : > { %14376 = vst [vmem:[#allocation200_spill] sm:$0xff] %v7635_v55  ;;  %14379 = vst [vmem:[#allocation201_spill] sm:$0xff] %v7643_v39  ;;  %v3136_v19 = vsel %vm3096_vm5, %v14381_v35, %v14380_v23  ;;  %v7659_v48 = vsel %vm3096_vm5, %v14384_v38, %v14383_v63  ;;  %v3196_v53 = vmul.f32 %v14386_v24, %v7609_v49  ;;  %v14387_v12 = vrot.slane %v7570_v22, 1  ;;  %v14391_v35 = vld [vmem:[#allocation41_spill] sm:$0xff] }
  0xea   : > { %14385 = vst [vmem:[#allocation202_spill] sm:$0xff] %v7659_v48  ;;  %v14388_v23 = vrot.slane %v6639_v16, 1  ;;  %v3248_v4 = vmul.f32 %v14390_v58, %v7627_v36  ;;  %v1091_v43 = vadd.f32 %v1067_v30, %v1039_v15  ;;  %v1171_v32 = vmul.f32 %v14391_v35, %v7635_v55 }
  0xeb   : > { %v2875_v63 = vadd.f32 %v2851_v56, %v2823_v60  ;;  %v3144_v49 = vmul.f32 %v14392_v44, %v3136_v19  ;;  %v3300_v31 = vmul.f32 %v14265_v29, %v7601_v37  ;;  %v3352_v38 = vmul.f32 %v14267_v7, %v7643_v39  ;;  %v14394_v19 = vld [vmem:[#allocation162_spill] sm:$0xff]  ;;  %v14395_v60 = vld [vmem:[#allocation45_spill] sm:$0xff] }
  0xec   : > { %v7669_v20 = vsel %vm851_vm0, %v14388_v23, %v14387_v12  ;;  %v1143_v24 = vadd.f32 %v1119_v21, %v1091_v43  ;;  %v14393_v12 = vld [vmem:[#allocation43_spill] sm:$0xff]  ;;  %v7688_v56 = vmul.f32 %v14268_v40, %v7619_v28  ;;  %v1360_v55 = vmul.f32 %v14395_v60, %v14394_v19  ;;  %v14412_v29 = vld [vmem:[#allocation49_spill] sm:$0xff] }
  0xed   : > { %14389 = vst [vmem:[#allocation203_spill] sm:$0xff] %v7669_v20  ;;  %v1223_v23 = vmul.f32 %v14393_v12, %v7669_v20  ;;  %v2927_v15 = vadd.f32 %v2903_v46, %v2875_v63  ;;  %v14396_v21 = vrot.slane %v7535_v2, 2  ;;  %v14397_v43 = vrot.slane %v6607_v9, 2  ;;  %v14403_v19 = vld [vmem:[#allocation47_spill] sm:$0xff]  ;;  %v14414_v44 = vld [vmem:[#allocation53_spill] sm:$0xff] }
  0xee   : > { %v1195_v41 = vadd.f32 %v1171_v32, %v1143_v24  ;;  %v14399_v20 = vrot.slane %v14349_v25, 2  ;;  %v14400_v37 = vrot.slane %v6615_v11, 2  ;;  %v14402_v24 = vld [vmem:[#allocation164_spill] sm:$0xff]  ;;  %v14404_v46 = vrot.slane %v7570_v22, 2 }
  0xef   : > { %v7698_v36 = vsel %vm1300_vm1, %v14397_v43, %v14396_v21  ;;  %v2979_v30 = vadd.f32 %v7547_v10, %v2927_v15  ;;  %v1412_v40 = vmul.f32 %v14403_v19, %v14402_v24  ;;  %v14405_v63 = vrot.slane %v6639_v16, 2  ;;  %v14411_v24 = vld [vmem:[#allocation166_spill] sm:$0xff] }
  0xf0   : > { %14398 = vst [vmem:[#allocation204_spill] sm:$0xff] %v7698_v36  ;;  %v7709_v32 = vsel %vm1300_vm1, %v14400_v37, %v14399_v20  ;;  %v1247_v43 = vadd.f32 %v1223_v23, %v1195_v41  ;;  %v14407_v15 = vrot.slane %v7562_v61, 2  ;;  %v14408_v7 = vrot.slane %v6635_v17, 2  ;;  %v14410_v23 = vld [vmem:[#allocation122_spill] sm:$0xff] }
  0xf1   : > { %14401 = vst [vmem:[#allocation205_spill] sm:$0xff] %v7709_v32  ;;  %v7720_v10 = vsel %vm1300_vm1, %v14405_v63, %v14404_v46  ;;  %v3031_v41 = vadd.f32 %v7552_v6, %v2979_v30  ;;  %v3456_v21 = vmul.f32 %v14410_v23, %v7659_v48  ;;  %v1464_v58 = vmul.f32 %v14412_v29, %v14411_v24  ;;  %v14413_v46 = vld [vmem:[#allocation51_spill] sm:$0xff] }
  0xf2   : > { %14406 = vst [vmem:[#allocation206_spill] sm:$0xff] %v7720_v10  ;;  %v7728_v37 = vsel %vm1300_vm1, %v14408_v7, %v14407_v15  ;;  %v1516_v63 = vmul.f32 %v14413_v46, %v7698_v36  ;;  %v1384_v28 = vadd.f32 %v1360_v55, %v1247_v43  ;;  %v1568_v39 = vmul.f32 %v14414_v44, %v7709_v32  ;;  %v14421_v43 = vld [vmem:[#allocation54_spill] sm:$0xff]  ;;  %v14422_v36 = vld [vmem:[#allocation56_spill] sm:$0xff] }
  0xf3   : > { %14409 = vst [vmem:[#allocation207_spill] sm:$0xff] %v7728_v37  ;;  %v14415_v7 = vrot.slane %v14349_v25, 3  ;;  %v14416_v15 = vrot.slane %v6615_v11, 3  ;;  %v14418_v30 = vrot.slane %v7535_v2, 3  ;;  %v14419_v20 = vrot.slane %v6607_v9, 3 }
  0xf4   : > { %v3168_v55 = vadd.f32 %v3144_v49, %v3031_v41  ;;  %v1620_v32 = vmul.f32 %v14421_v43, %v7728_v37  ;;  %v1672_v23 = vmul.f32 %v14422_v36, %v7720_v10  ;;  %v14423_v48 = vrot.slane %v7562_v61, 3  ;;  %v14429_v41 = vld [vmem:[#allocation174_spill] sm:$0xff]  ;;  %v14431_v37 = vld [vmem:[#allocation175_spill] sm:$0xff]  ;;  %v14432_v36 = vld [vmem:[#allocation61_spill] sm:$0xff] }
  0xf5   : > { %v7746_v6 = vsel %vm1749_vm2, %v14416_v15, %v14415_v7  ;;  %v7754_v24 = vsel %vm1749_vm2, %v14419_v20, %v14418_v30  ;;  %v14424_v7 = vrot.slane %v6635_v17, 3  ;;  %v1436_v44 = vadd.f32 %v1412_v40, %v1384_v28  ;;  %v14430_v30 = vld [vmem:[#allocation58_spill] sm:$0xff] }
  0xf6   : > { %14417 = vst [vmem:[#allocation208_spill] sm:$0xff] %v7746_v6  ;;  %14420 = vst [vmem:[#allocation209_spill] sm:$0xff] %v7754_v24  ;;  %v14426_v46 = vrot.slane %v7570_v22, 3  ;;  %v14427_v20 = vrot.slane %v6639_v16, 3  ;;  %v1809_v10 = vmul.f32 %v14430_v30, %v14429_v41  ;;  %v1861_v43 = vmul.f32 %v14432_v36, %v14431_v37  ;;  %v14435_v40 = vld [vmem:[#allocation66_spill] sm:$0xff]  ;;  %v14438_v41 = vld [vmem:[#allocation24_spill] sm:$0xff] }
  0xf7   : > { %v7766_v15 = vsel %vm1749_vm2, %v14424_v7, %v14423_v48  ;;  %v3220_v26 = vadd.f32 %v3196_v53, %v3168_v55  ;;  %v1913_v48 = vmul.f32 %v14434_v8, %v14433_v5  ;;  %v7784_v28 = vmul.f32 %v14435_v40, %v7754_v24  ;;  %v14436_v7 = vld [vmem:[#allocation68_spill] sm:$0xff]  ;;  %v14447_v8 = vld [vmem:[#allocation26_spill] sm:$0xff] }
  0xf8   : > { %14425 = vst [vmem:[#allocation210_spill] sm:$0xff] %v7766_v15  ;;  %v7774_v49 = vsel %vm1749_vm2, %v14427_v20, %v14426_v46  ;;  %v7788_v52 = vmul.f32 %v14436_v7, %v7746_v6  ;;  %v1488_v46 = vadd.f32 %v1464_v58, %v1436_v44  ;;  %v14437_v20 = vld [vmem:[#allocation69_spill] sm:$0xff]  ;;  %v14439_v30 = vrot.slane %v14438_v41, 1  ;;  %v14442_v5 = vld [vmem:[#allocation20_spill] sm:$0xff] }
  0xf9   : > { %14428 = vst [vmem:[#allocation211_spill] sm:$0xff] %v7774_v49  ;;  %v7792_v29 = vmul.f32 %v14437_v20, %v7766_v15  ;;  %v14440_v53 = vrot.slane %v6931_v54, 1  ;;  %v14443_v24 = vrot.slane %v14442_v5, 1  ;;  %v14444_v37 = vrot.slane %v6908_v13, 1  ;;  %v14451_v58 = vld [vmem:[#allocation153_spill] sm:$0xff] }
  0xfa   : > { %v3272_v44 = vadd.f32 %v3248_v4, %v3220_v26  ;;  %v1540_v7 = vadd.f32 %v1516_v63, %v1488_v46  ;;  %v14448_v36 = vrot.slane %v14447_v8, 1  ;;  %v7835_v40 = vmul.f32 %v14313_v57, %v7432_v42 }
  0xfb   : > { %v7800_v55 = vsel %vm851_vm0, %v14440_v53, %v14439_v30  ;;  %v7808_v6 = vsel %vm851_vm0, %v14444_v37, %v14443_v24  ;;  %v14446_v30 = vld [vmem:[#allocation71_spill] sm:$0xff]  ;;  %v14449_v24 = vrot.slane %v6974_v3, 1  ;;  %v14460_v42 = vrot.slane %v6607_v9, 4 }
  0xfc   : > { %14441 = vst [vmem:[#allocation212_spill] sm:$0xff] %v7800_v55  ;;  %14445 = vst [vmem:[#allocation213_spill] sm:$0xff] %v7808_v6  ;;  %v1004_v15 = vmul.f32 %v14357_v34, %v7808_v6  ;;  %v1056_v20 = vmul.f32 %v14367_v14, %v7800_v55  ;;  %v7817_v53 = vmul.f32 %v14446_v30, %v7774_v49  ;;  %v14452_v6 = vld [vmem:[#allocation28_spill] sm:$0xff]  ;;  %v14459_v49 = vrot.slane %v7535_v2, 4 }
  0xfd   : > { %v7826_v26 = vsel %vm851_vm0, %v14449_v24, %v14448_v36  ;;  %v3324_v4 = vadd.f32 %v3300_v31, %v3272_v44  ;;  %v1592_v46 = vadd.f32 %v1568_v39, %v1540_v7  ;;  %v14453_v14 = vrot.slane %v14452_v6, 1 }
  0xfe   : > { %14450 = vst [vmem:[#allocation214_spill] sm:$0xff] %v7826_v26  ;;  %v1028_v55 = vadd.f32 %v1004_v15, %v14451_v58  ;;  %v1108_v63 = vmul.f32 %v14382_v27, %v7826_v26  ;;  %v14454_v36 = vrot.slane %v6981_v0, 1  ;;  %v14456_v15 = vrot.slane %v14349_v25, 4  ;;  %v14515_v27 = vld [vmem:[#allocation98_spill] sm:$0xff] }
  0xff   : > { %v3376_v44 = vadd.f32 %v3352_v38, %v3324_v4  ;;  %v14457_v58 = vrot.slane %v6615_v11, 4  ;;  %v1644_v37 = vadd.f32 %v1620_v32, %v1592_v46  ;;  %v14462_v38 = vld [vmem:[#allocation103_spill] sm:$0xff]  ;;  %v14468_v32 = vrot.slane %v6902_v47, 2 }
 0x100   : > { %v7843_v31 = vsel %vm851_vm0, %v14454_v36, %v14453_v14  ;;  %v1080_v7 = vadd.f32 %v1056_v20, %v1028_v55  ;;  %v7861_v14 = vsel %vm2198_vm3, %v14460_v42, %v14459_v49  ;;  %v14463_v4 = vrot.slane %v14462_v38, 1  ;;  %v14466_v20 = vld [vmem:[#allocation14_spill] sm:$0xff] }
 0x101   : > { %14455 = vst [vmem:[#allocation153_spill] sm:$0xff] %v7843_v31  ;;  %v7851_v39 = vsel %vm2198_vm3, %v14457_v58, %v14456_v15  ;;  %v1160_v24 = vmul.f32 %v14391_v35, %v7843_v31  ;;  %14461 = vst [vmem:[#allocation216_spill] sm:$0xff] %v7861_v14  ;;  %v14464_v36 = vrot.slane %v6996_v18, 1  ;;  %v14467_v55 = vrot.slane %v14466_v20, 2 }
 0x102   : > { %14458 = vst [vmem:[#allocation215_spill] sm:$0xff] %v7851_v39  ;;  %v3428_v58 = vadd.f32 %v7688_v56, %v3376_v44  ;;  %v7880_v42 = vmul.f32 %v14312_v59, %v7424_v50  ;;  %v1132_v49 = vadd.f32 %v1108_v63, %v1080_v7  ;;  %v1696_v26 = vadd.f32 %v1672_v23, %v1644_v37  ;;  %v14475_v63 = vld [vmem:[#allocation19_spill] sm:$0xff] }
 0x103   : > { %v7869_v15 = vsel %vm851_vm0, %v14464_v36, %v14463_v4  ;;  %v1339_v46 = vsel %vm1300_vm1, %v14468_v32, %v14467_v55  ;;  %v14469_v4 = vrot.slane %v7570_v22, 4  ;;  %v14470_v36 = vrot.slane %v6639_v16, 4 }
 0x104   : > { %14465 = vst [vmem:[#allocation217_spill] sm:$0xff] %v7869_v15  ;;  %v1212_v31 = vmul.f32 %v14393_v12, %v7869_v15  ;;  %v14472_v55 = vrot.slane %v7562_v61, 4  ;;  %v14473_v56 = vrot.slane %v6635_v17, 4  ;;  %v14476_v7 = vrot.slane %v14475_v63, 2 }
 0x105   : > { %v7890_v35 = vsel %vm2198_vm3, %v14470_v36, %v14469_v4  ;;  %v14477_v23 = vrot.slane %v6905_v45, 2  ;;  %v7908_v32 = vadd.f32 %v3456_v21, %v3428_v58  ;;  %v7912_v4 = vmul.f32 %v14314_v62, %v7416_v51  ;;  %v14493_v51 = vld [vmem:[#allocation191_spill] sm:$0xff] }
 0x106   : > { %14471 = vst [vmem:[#allocation14_spill] sm:$0xff] %v7890_v35  ;;  %v7898_v44 = vsel %vm2198_vm3, %v14473_v56, %v14472_v55  ;;  %v1184_v36 = vadd.f32 %v1160_v24, %v1132_v49  ;;  %v1349_v50 = vmul.f32 %v14395_v60, %v1339_v46  ;;  %v1833_v15 = vadd.f32 %v1809_v10, %v1696_v26  ;;  %v14486_v46 = vld [vmem:[#allocation82_spill] sm:$0xff] }
 0x107   : > { %14474 = vst [vmem:[#allocation218_spill] sm:$0xff] %v7898_v44  ;;  %v7906_v37 = vsel %vm1300_vm1, %v14477_v23, %v14476_v7  ;;  %14479 = vst [vmem:[#allocation219_spill] sm:$0xff] %v7908_v32  ;;  %v7917_v55 = vmul.f32 %v14315_v33, %v7861_v14  ;;  %v14480_v12 = vrot.slane %v14442_v5, 2  ;;  %v14481_v7 = vrot.slane %v6908_v13, 2 }
 0x108   : > { %14478 = vst [vmem:[#allocation19_spill] sm:$0xff] %v7906_v37  ;;  %v3507_v24 = vsel %vm3503_vm6, %v7908_v32, 0.0  ;;  %v1236_v10 = vadd.f32 %v1212_v31, %v1184_v36  ;;  %v1401_v26 = vmul.f32 %v14403_v19, %v7906_v37  ;;  %v1885_v58 = vadd.f32 %v1861_v43, %v1833_v15  ;;  %v14487_v36 = vld [vmem:[#allocation87_spill] sm:$0xff]  ;;  %v14488_v15 = vld [vmem:[#allocation49_spill] sm:$0xff]  ;;  %v14489_v32 = vld [vmem:[#allocation88_spill] sm:$0xff] }
 0x109   : > { %v7926_v21 = vsel %vm1300_vm1, %v14481_v7, %v14480_v12  ;;  %3508 = vadd.xlane.f32.xlu0 %v3507_v24  ;;  %v14483_v56 = vrot.slane %v14438_v41, 2  ;;  %v14484_v12 = vrot.slane %v6931_v54, 2  ;;  %v7945_v31 = vmul.f32 %v14486_v46, %v7851_v39 }
 0x10a   : > { %14482 = vst [vmem:[#allocation220_spill] sm:$0xff] %v7926_v21  ;;  %v7949_v24 = vmul.f32 %v14487_v36, %v7898_v44  ;;  %v1373_v43 = vadd.f32 %v1349_v50, %v1236_v10  ;;  %v1453_v49 = vmul.f32 %v14488_v15, %v7926_v21  ;;  %v1937_v23 = vadd.f32 %v1913_v48, %v1885_v58  ;;  %v14494_v44 = vld [vmem:[#allocation90_spill] sm:$0xff] }
 0x10b   : > { %v7941_v7 = vsel %vm1300_vm1, %v14484_v12, %v14483_v56  ;;  %v7955_v14 = vmul.f32 %v14489_v32, %v7890_v35  ;;  %v14490_v56 = vrot.slane %v7535_v2, 5  ;;  %v14491_v12 = vrot.slane %v6607_v9, 5  ;;  %v14498_v58 = vld [vmem:[#allocation190_spill] sm:$0xff]  ;;  %v14499_v35 = vld [vmem:[#allocation95_spill] sm:$0xff] }
 0x10c   : > { %14485 = vst [vmem:[#allocation221_spill] sm:$0xff] %v7941_v7  ;;  %v7967_v37 = vmul.f32 %v14494_v44, %v14493_v51  ;;  %v14495_v50 = vrot.slane %v14349_v25, 5  ;;  %v14496_v48 = vrot.slane %v6615_v11, 5  ;;  %v7979_v21 = vmul.f32 %v14499_v35, %v14498_v58  ;;  %v14511_v58 = vld [vmem:[#allocation188_spill] sm:$0xff] }
 0x10d   : > { %v7963_v39 = vsel %vm2647_vm4, %v14491_v12, %v14490_v56  ;;  %v1425_v60 = vadd.f32 %v1401_v26, %v1373_v43  ;;  %v14501_v56 = vld [vmem:[#allocation51_spill] sm:$0xff]  ;;  %v1989_v15 = vadd.f32 %v7784_v28, %v1937_v23  ;;  %v14502_v51 = vrot.slane %v7570_v22, 5 }
 0x10e   : > { %14492 = vst [vmem:[#allocation222_spill] sm:$0xff] %v7963_v39  ;;  %v7975_v10 = vsel %vm2647_vm4, %v14496_v48, %v14495_v50  ;;  %14500 = vst [vmem:[#allocation224_spill] sm:$0xff] %v7979_v21  ;;  %v1505_v12 = vmul.f32 %v14501_v56, %v7941_v7  ;;  %v14503_v19 = vrot.slane %v6639_v16, 5  ;;  %v14505_v50 = vrot.slane %v7562_v61, 5  ;;  %v14512_v7 = vld [vmem:[#allocation96_spill] sm:$0xff] }
 0x10f   : > { %14497 = vst [vmem:[#allocation223_spill] sm:$0xff] %v7975_v10  ;;  %v14506_v48 = vrot.slane %v6635_v17, 5  ;;  %v14508_v43 = vrot.slane %v14447_v8, 2  ;;  %v14509_v28 = vrot.slane %v6974_v3, 2  ;;  %v1477_v35 = vadd.f32 %v1453_v49, %v1425_v60 }
 0x110   : > { %v7990_v44 = vsel %vm2647_vm4, %v14503_v19, %v14502_v51  ;;  %v8010_v51 = vmul.f32 %v14512_v7, %v14511_v58  ;;  %v14513_v19 = vld [vmem:[#allocation97_spill] sm:$0xff]  ;;  %v2041_v21 = vadd.f32 %v7788_v52, %v1989_v15  ;;  %v8021_v32 = vmul.f32 %v14515_v27, %v7975_v10  ;;  %v14520_v52 = vld [vmem:[#allocation54_spill] sm:$0xff] }
 0x111   : > { %14504 = vst [vmem:[#allocation225_spill] sm:$0xff] %v7990_v44  ;;  %v7998_v26 = vsel %vm2647_vm4, %v14506_v48, %v14505_v50  ;;  %v8006_v23 = vsel %vm1300_vm1, %v14509_v28, %v14508_v43  ;;  %v8014_v56 = vmul.f32 %v14513_v19, %v7963_v39  ;;  %v14514_v50 = vld [vmem:[#allocation53_spill] sm:$0xff]  ;;  %v14517_v28 = vrot.slane %v14452_v6, 2 }
 0x112   : > { %14507 = vst [vmem:[#allocation226_spill] sm:$0xff] %v7998_v26  ;;  %14510 = vst [vmem:[#allocation227_spill] sm:$0xff] %v8006_v23  ;;  %v1557_v48 = vmul.f32 %v14514_v50, %v8006_v23  ;;  %v14518_v58 = vrot.slane %v6981_v0, 2  ;;  %v1529_v23 = vadd.f32 %v1505_v12, %v1477_v35  ;;  %v2093_v10 = vadd.f32 %v7792_v29, %v2041_v21  ;;  %v14526_v12 = vld [vmem:[#allocation99_spill] sm:$0xff]  ;;  %v14528_v21 = vld [vmem:[#allocation100_spill] sm:$0xff] }
 0x113   : > { %14516 = vst [vmem:[#allocation228_spill] sm:$0xff] %v8021_v32  ;;  %v14521_v50 = vrot.slane %v14462_v38, 2  ;;  %v14522_v32 = vrot.slane %v6996_v18, 2  ;;  %v14525_v60 = vrot.slane %v6902_v47, 3  ;;  %v8054_v29 = vmul.f32 %v14526_v12, %v7998_v26  ;;  %v14534_v26 = vld [vmem:[#allocation108_spill] sm:$0xff] }
 0x114   : > { %v8030_v39 = vsel %vm1300_vm1, %v14518_v58, %v14517_v28  ;;  %v14524_v28 = vrot.slane %v14466_v20, 3  ;;  %v8058_v43 = vmul.f32 %v14528_v21, %v7990_v44  ;;  %v1581_v49 = vadd.f32 %v1557_v48, %v1529_v23 }
 0x115   : > { %14519 = vst [vmem:[#allocation229_spill] sm:$0xff] %v8030_v39  ;;  %v1609_v15 = vmul.f32 %v14520_v52, %v8030_v39  ;;  %v8044_v58 = vsel %vm1300_vm1, %v14522_v32, %v14521_v50  ;;  %14527 = vst [vmem:[#allocation231_spill] sm:$0xff] %v8054_v29  ;;  %v14529_v39 = vld [vmem:[#allocation56_spill] sm:$0xff]  ;;  %v2145_v50 = vadd.f32 %v7817_v53, %v2093_v10  ;;  %v14530_v52 = vrot.slane %v7535_v2, 6 }
 0x116   : > { %14523 = vst [vmem:[#allocation230_spill] sm:$0xff] %v8044_v58  ;;  %v1788_v35 = vsel %vm1749_vm2, %v14525_v60, %v14524_v28  ;;  %v1661_v32 = vmul.f32 %v14529_v39, %v8044_v58  ;;  %v14531_v27 = vrot.slane %v6607_v9, 6  ;;  %v14533_v28 = vld [vmem:[#allocation201_spill] sm:$0xff]  ;;  %v14536_v44 = vrot.slane %v14475_v63, 3  ;;  %v14545_v39 = vld [vmem:[#allocation58_spill] sm:$0xff] }
 0x117   : > { %v8073_v29 = vmul.f32 %v14534_v26, %v14533_v28  ;;  %v14537_v23 = vrot.slane %v6905_v45, 3  ;;  %v14539_v53 = vrot.slane %v7562_v61, 6  ;;  %v14540_v10 = vrot.slane %v6635_v17, 6 }
 0x118   : > { %v8069_v60 = vsel %vm3096_vm5, %v14531_v27, %v14530_v52  ;;  %v14542_v52 = vrot.slane %v14349_v25, 6  ;;  %v14543_v28 = vrot.slane %v6615_v11, 6  ;;  %v1633_v58 = vadd.f32 %v1609_v15, %v1581_v49 }
 0x119   : > { %14532 = vst [vmem:[#allocation232_spill] sm:$0xff] %v8069_v60  ;;  %14535 = vst [vmem:[#allocation233_spill] sm:$0xff] %v8073_v29  ;;  %v8081_v48 = vsel %vm1749_vm2, %v14537_v23, %v14536_v44  ;;  %v8089_v27 = vsel %vm3096_vm5, %v14540_v10, %v14539_v53  ;;  %v1798_v44 = vmul.f32 %v14545_v39, %v1788_v35  ;;  %v14546_v26 = vrot.slane %v7570_v22, 6  ;;  %v14549_v10 = vld [vmem:[#allocation198_spill] sm:$0xff]  ;;  %v14550_v29 = vld [vmem:[#allocation112_spill] sm:$0xff] }
 0x11a   : > { %14538 = vst [vmem:[#allocation234_spill] sm:$0xff] %v8081_v48  ;;  %14541 = vst [vmem:[#allocation235_spill] sm:$0xff] %v8089_v27  ;;  %v8097_v9 = vsel %vm3096_vm5, %v14543_v28, %v14542_v52  ;;  %v2282_v23 = vadd.f32 %v7835_v40, %v2145_v50  ;;  %v14547_v17 = vrot.slane %v6639_v16, 6  ;;  %v8111_v11 = vmul.f32 %v14550_v29, %v14549_v10  ;;  %v14555_v40 = vld [vmem:[#allocation202_spill] sm:$0xff]  ;;  %v14556_v35 = vld [vmem:[#allocation113_spill] sm:$0xff] }
 0x11b   : > { %14544 = vst [vmem:[#allocation236_spill] sm:$0xff] %v8097_v9  ;;  %v14552_v28 = vrot.slane %v14442_v5, 3  ;;  %v14553_v49 = vrot.slane %v6908_v13, 3  ;;  %v8123_v50 = vmul.f32 %v14556_v35, %v14555_v40  ;;  %v14557_v52 = vld [vmem:[#allocation115_spill] sm:$0xff]  ;;  %v14559_v10 = vld [vmem:[#allocation61_spill] sm:$0xff]  ;;  %v14560_v29 = vld [vmem:[#allocation118_spill] sm:$0xff] }
 0x11c   : > { %v8107_v53 = vsel %vm3096_vm5, %v14547_v17, %v14546_v26  ;;  %14551 = vst [vmem:[#allocation238_spill] sm:$0xff] %v8111_v11  ;;  %v8127_v17 = vmul.f32 %v14557_v52, %v8069_v60  ;;  %v1685_v26 = vadd.f32 %v1661_v32, %v1633_v58  ;;  %v1850_v16 = vmul.f32 %v14559_v10, %v8081_v48  ;;  %v14567_v32 = vld [vmem:[#allocation122_spill] sm:$0xff]  ;;  %v14570_v48 = vld [vmem:[#allocation21_spill] sm:$0xff]  ;;  %v14580_v10 = vld [vmem:[#allocation27_spill] sm:$0xff] }
 0x11d   : > { %14548 = vst [vmem:[#allocation237_spill] sm:$0xff] %v8107_v53  ;;  %v8119_v15 = vsel %vm1749_vm2, %v14553_v49, %v14552_v28  ;;  %v2334_v39 = vadd.f32 %v7880_v42, %v2282_v23  ;;  %v8134_v11 = vmul.f32 %v14560_v29, %v8097_v9  ;;  %v14562_v28 = vld [vmem:[#allocation119_spill] sm:$0xff]  ;;  %v14564_v40 = vrot.slane %v14438_v41, 3  ;;  %v14569_v23 = vld [vmem:[#allocation64_spill] sm:$0xff] }
 0x11e   : > { %14554 = vst [vmem:[#allocation239_spill] sm:$0xff] %v8119_v15  ;;  %14558 = vst [vmem:[#allocation240_spill] sm:$0xff] %v8127_v17  ;;  %v8138_v49 = vmul.f32 %v14562_v28, %v8089_v27  ;;  %v14565_v35 = vrot.slane %v6931_v54, 3  ;;  %v8150_v60 = vmul.f32 %v14567_v32, %v8107_v53  ;;  %v1822_v42 = vadd.f32 %v1798_v44, %v1685_v26  ;;  %v14577_v53 = vld [vmem:[#allocation23_spill] sm:$0xff] }
 0x11f   : > { %14561 = vst [vmem:[#allocation241_spill] sm:$0xff] %v8134_v11  ;;  %v1902_v9 = vmul.f32 %v14569_v23, %v8119_v15  ;;  %v658_v27 = vmul.f32 %v14447_v8, %v14570_v48  ;;  %v2386_v28 = vadd.f32 %v7912_v4, %v2334_v39  ;;  %v14571_v29 = vrot.slane %v14452_v6, 3  ;;  %v14578_v4 = vld [vmem:[#allocation66_spill] sm:$0xff] }
 0x120   : > { %14563 = vst [vmem:[#allocation242_spill] sm:$0xff] %v8138_v49  ;;  %v8146_v58 = vsel %vm1749_vm2, %v14565_v35, %v14564_v40  ;;  %14568 = vst [vmem:[#allocation244_spill] sm:$0xff] %v8150_v60  ;;  %v14572_v49 = vrot.slane %v6981_v0, 3  ;;  %v14574_v35 = vrot.slane %v14447_v8, 3  ;;  %v14575_v44 = vrot.slane %v6974_v3, 3  ;;  %v14579_v60 = vld [vmem:[#allocation77_spill] sm:$0xff] }
 0x121   : > { %14566 = vst [vmem:[#allocation243_spill] sm:$0xff] %v8146_v58  ;;  %v710_v15 = vmul.f32 %v14452_v6, %v14577_v53  ;;  %v1874_v39 = vadd.f32 %v1850_v16, %v1822_v42  ;;  %v1954_v32 = vmul.f32 %v14578_v4, %v8146_v58  ;;  %v682_v23 = vadd.f32 %v658_v27, %v14579_v60  ;;  %v14584_v16 = vld [vmem:[#allocation68_spill] sm:$0xff] }
 0x122   : > { %v8163_v40 = vsel %vm1749_vm2, %v14572_v49, %v14571_v29  ;;  %v8171_v26 = vsel %vm1749_vm2, %v14575_v44, %v14574_v35  ;;  %v762_v29 = vmul.f32 %v14462_v38, %v14580_v10  ;;  %v2438_v49 = vadd.f32 %v7917_v55, %v2386_v28  ;;  %v14585_v44 = vld [vmem:[#allocation69_spill] sm:$0xff] }
 0x123   : > { %14573 = vst [vmem:[#allocation245_spill] sm:$0xff] %v8163_v40  ;;  %14576 = vst [vmem:[#allocation246_spill] sm:$0xff] %v8171_v26  ;;  %v14581_v11 = vrot.slane %v14462_v38, 3  ;;  %v14582_v52 = vrot.slane %v6996_v18, 3  ;;  %v2006_v42 = vmul.f32 %v14584_v16, %v8171_v26  ;;  %v2058_v58 = vmul.f32 %v14585_v44, %v8163_v40 }
 0x124   : > { %v1926_v60 = vadd.f32 %v1902_v9, %v1874_v39  ;;  %v14586_v55 = vrot.slane %v14466_v20, 4  ;;  %v14587_v28 = vrot.slane %v6902_v47, 4  ;;  %v734_v17 = vadd.f32 %v710_v15, %v682_v23 }
 0x125   : > { %v8187_v35 = vsel %vm1749_vm2, %v14582_v52, %v14581_v11  ;;  %v2490_v11 = vadd.f32 %v7945_v31, %v2438_v49  ;;  %v14588_v52 = vrot.slane %v14462_v38, 4  ;;  %v14589_v26 = vrot.slane %v6996_v18, 4 }
 0x126   : > { %14583 = vst [vmem:[#allocation77_spill] sm:$0xff] %v8187_v35  ;;  %v2110_v27 = vmul.f32 %v14446_v30, %v8187_v35  ;;  %v2237_v4 = vsel %vm2198_vm3, %v14587_v28, %v14586_v55  ;;  %v14591_v39 = vrot.slane %v14438_v41, 4  ;;  %v14592_v35 = vrot.slane %v6931_v54, 4 }
 0x127   : > { %v8208_v9 = vsel %vm2198_vm3, %v14589_v26, %v14588_v52  ;;  %v14594_v15 = vrot.slane %v14475_v63, 4  ;;  %v14595_v31 = vrot.slane %v6905_v45, 4  ;;  %v1978_v49 = vadd.f32 %v1954_v32, %v1926_v60 }
 0x128   : > { %14590 = vst [vmem:[#allocation247_spill] sm:$0xff] %v8208_v9  ;;  %v8216_v40 = vsel %vm2198_vm3, %v14592_v35, %v14591_v39  ;;  %v14597_v26 = vrot.slane %v14442_v5, 4  ;;  %v14598_v55 = vrot.slane %v6908_v13, 4  ;;  %v786_v52 = vadd.f32 %v762_v29, %v734_v17  ;;  %v14600_v35 = vld [vmem:[#allocation35_spill] sm:$0xff] }
 0x129   : > { %14593 = vst [vmem:[#allocation248_spill] sm:$0xff] %v8216_v40  ;;  %v8224_v23 = vsel %vm2198_vm3, %v14595_v31, %v14594_v15  ;;  %v14601_v39 = vld [vmem:[#allocation31_spill] sm:$0xff]  ;;  %v2542_v44 = vadd.f32 %v7949_v24, %v2490_v11  ;;  %v14602_v16 = vrot.slane %v14452_v6, 4  ;;  %v14603_v15 = vrot.slane %v6981_v0, 4  ;;  %v14608_v11 = vld [vmem:[#allocation124_spill] sm:$0xff] }
 0x12a   : > { %14596 = vst [vmem:[#allocation249_spill] sm:$0xff] %v8224_v23  ;;  %v8232_v28 = vsel %vm2198_vm3, %v14598_v55, %v14597_v26  ;;  %v953_v30 = vmul.f32 %v14601_v39, %v14600_v35  ;;  %v14605_v60 = vrot.slane %v14447_v8, 4  ;;  %v14606_v31 = vrot.slane %v6974_v3, 4  ;;  %v14609_v35 = vld [vmem:[#allocation38_spill] sm:$0xff] }
 0x12b   : > { %14599 = vst [vmem:[#allocation250_spill] sm:$0xff] %v8232_v28  ;;  %v8243_v32 = vsel %vm2198_vm3, %v14603_v15, %v14602_v16  ;;  %v2247_v29 = vmul.f32 %v14313_v57, %v2237_v4  ;;  %v2030_v26 = vadd.f32 %v2006_v42, %v1978_v49  ;;  %v2299_v24 = vmul.f32 %v14312_v59, %v8224_v23 }
 0x12c   : > { %14604 = vst [vmem:[#allocation35_spill] sm:$0xff] %v8243_v32  ;;  %v8251_v17 = vsel %vm2198_vm3, %v14606_v31, %v14605_v60  ;;  %v925_v55 = vadd.f32 %v14608_v11, %v786_v52  ;;  %v1005_v16 = vmul.f32 %v14357_v34, %v14609_v35  ;;  %v2594_v15 = vadd.f32 %v7955_v14, %v2542_v44  ;;  %v14610_v52 = vld [vmem:[#allocation42_spill] sm:$0xff]  ;;  %v14611_v11 = vld [vmem:[#allocation36_spill] sm:$0xff] }
 0x12d   : > { %14607 = vst [vmem:[#allocation251_spill] sm:$0xff] %v8251_v17  ;;  %v2351_v39 = vmul.f32 %v14314_v62, %v8232_v28  ;;  %v2403_v60 = vmul.f32 %v14315_v33, %v8216_v40  ;;  %v2455_v4 = vmul.f32 %v14486_v46, %v8251_v17  ;;  %v2082_v42 = vadd.f32 %v2058_v58, %v2030_v26  ;;  %v14612_v14 = vld [vmem:[#allocation88_spill] sm:$0xff]  ;;  %v14638_v62 = vld [vmem:[#allocation90_spill] sm:$0xff] }
 0x12e   : > { %v2507_v49 = vmul.f32 %v14487_v36, %v8243_v32  ;;  %v977_v31 = vadd.f32 %v953_v30, %v925_v55  ;;  %v1057_v23 = vmul.f32 %v14611_v11, %v14610_v52  ;;  %v2731_v35 = vadd.f32 %v7967_v37, %v2594_v15  ;;  %v14621_v32 = vld [vmem:[#allocation44_spill] sm:$0xff]  ;;  %v14640_v11 = vld [vmem:[#allocation123_spill] sm:$0xff] }
 0x12f   : > { %v2559_v44 = vmul.f32 %v14612_v14, %v8208_v9  ;;  %v14613_v28 = vrot.slane %v14442_v5, 5  ;;  %v14614_v40 = vrot.slane %v6908_v13, 5  ;;  %v14616_v58 = vrot.slane %v14475_v63, 5  ;;  %v14623_v17 = vld [vmem:[#allocation224_spill] sm:$0xff] }
 0x130   : > { %v14617_v30 = vrot.slane %v6905_v45, 5  ;;  %v2134_v37 = vadd.f32 %v2110_v27, %v2082_v42  ;;  %v14619_v55 = vrot.slane %v14466_v20, 5  ;;  %v14620_v15 = vrot.slane %v6902_v47, 5 }
 0x131   : > { %v8279_v57 = vsel %vm2647_vm4, %v14614_v40, %v14613_v28  ;;  %v1029_v9 = vadd.f32 %v1005_v16, %v977_v31  ;;  %v14622_v40 = vld [vmem:[#allocation39_spill] sm:$0xff]  ;;  %v2783_v14 = vadd.f32 %v14623_v17, %v2731_v35  ;;  %v14624_v36 = vrot.slane %v14462_v38, 5 }
 0x132   : > { %14615 = vst [vmem:[#allocation124_spill] sm:$0xff] %v8279_v57  ;;  %v8287_v26 = vsel %vm2647_vm4, %v14617_v30, %v14616_v58  ;;  %v2686_v52 = vsel %vm2647_vm4, %v14620_v15, %v14619_v55  ;;  %v1109_v28 = vmul.f32 %v14622_v40, %v14621_v32  ;;  %v14625_v46 = vrot.slane %v6996_v18, 5 }
 0x133   : > { %14618 = vst [vmem:[#allocation252_spill] sm:$0xff] %v8287_v26  ;;  %v14627_v42 = vrot.slane %v14452_v6, 5  ;;  %v14628_v58 = vrot.slane %v6981_v0, 5  ;;  %v14630_v31 = vrot.slane %v14447_v8, 5  ;;  %v14631_v17 = vrot.slane %v6974_v3, 5 }
 0x134   : > { %v8304_v27 = vsel %vm2647_vm4, %v14625_v46, %v14624_v36  ;;  %v2271_v30 = vadd.f32 %v2247_v29, %v2134_v37  ;;  %v14633_v46 = vrot.slane %v14438_v41, 5  ;;  %v14634_v36 = vrot.slane %v6931_v54, 5 }
 0x135   : > { %14626 = vst [vmem:[#allocation224_spill] sm:$0xff] %v8304_v27  ;;  %v8312_v16 = vsel %vm2647_vm4, %v14628_v58, %v14627_v42  ;;  %v8320_v35 = vsel %vm2647_vm4, %v14631_v17, %v14630_v31  ;;  %v1081_v15 = vadd.f32 %v1057_v23, %v1029_v9  ;;  %v14636_v42 = vld [vmem:[#allocation46_spill] sm:$0xff]  ;;  %v14637_v58 = vld [vmem:[#allocation41_spill] sm:$0xff]  ;;  %v2835_v33 = vadd.f32 %v8010_v51, %v2783_v14  ;;  %v14639_v31 = vld [vmem:[#allocation95_spill] sm:$0xff] }
 0x136   : > { %14629 = vst [vmem:[#allocation253_spill] sm:$0xff] %v8312_v16  ;;  %14632 = vst [vmem:[#allocation254_spill] sm:$0xff] %v8320_v35  ;;  %v8328_v55 = vsel %vm2647_vm4, %v14634_v36, %v14633_v46  ;;  %v1161_v32 = vmul.f32 %v14637_v58, %v14636_v42  ;;  %v2696_v59 = vmul.f32 %v14638_v62, %v2686_v52  ;;  %v14641_v46 = vld [vmem:[#allocation43_spill] sm:$0xff]  ;;  %v14642_v9 = vld [vmem:[#allocation12_spill] sm:$0xff] }
 0x137   : > { %14635 = vst [vmem:[#allocation255_spill] sm:$0xff] %v8328_v55  ;;  %v2748_v17 = vmul.f32 %v14639_v31, %v8287_v26  ;;  %v8338_v29 = vmul.f32 %v14512_v7, %v8279_v57  ;;  %v2323_v37 = vadd.f32 %v2299_v24, %v2271_v30  ;;  %v1133_v40 = vadd.f32 %v1109_v28, %v1081_v15  ;;  %v14643_v52 = vld [vmem:[#allocation98_spill] sm:$0xff]  ;;  %v14644_v57 = vld [vmem:[#allocation16_spill] sm:$0xff] }
 0x138   : > { %v1213_v36 = vmul.f32 %v14641_v46, %v14640_v11  ;;  %v454_v23 = vmul.f32 %v6974_v3, %v14642_v9  ;;  %v2887_v42 = vadd.f32 %v8014_v56, %v2835_v33  ;;  %v8347_v51 = vmul.f32 %v14513_v19, %v8328_v55  ;;  %v14645_v15 = vld [vmem:[#allocation184_spill] sm:$0xff]  ;;  %v14646_v11 = vld [vmem:[#allocation17_spill] sm:$0xff] }
 0x139   : > { %v8351_v14 = vmul.f32 %v14643_v52, %v8320_v35  ;;  %v513_v24 = vmul.f32 %v6981_v0, %v14644_v57  ;;  %v2375_v28 = vadd.f32 %v2351_v39, %v2323_v37  ;;  %v1185_v30 = vadd.f32 %v1161_v32, %v1133_v40  ;;  %v14647_v9 = vld [vmem:[#allocation228_spill] sm:$0xff]  ;;  %v14648_v35 = vld [vmem:[#allocation50_spill] sm:$0xff]  ;;  %v14649_v52 = vld [vmem:[#allocation47_spill] sm:$0xff] }
 0x13a   : > { %v485_v26 = vadd.f32 %v14645_v15, %v454_v23  ;;  %v565_v62 = vmul.f32 %v6996_v18, %v14646_v11  ;;  %v2939_v33 = vadd.f32 %v14647_v9, %v2887_v42  ;;  %v8361_v56 = vmul.f32 %v14526_v12, %v8312_v16  ;;  %v14650_v37 = vld [vmem:[#allocation18_spill] sm:$0xff]  ;;  %v14651_v11 = vld [vmem:[#allocation231_spill] sm:$0xff] }
 0x13b   : > { %v8365_v55 = vmul.f32 %v14528_v21, %v8304_v27  ;;  %v1402_v57 = vmul.f32 %v14649_v52, %v14648_v35  ;;  %v2427_v39 = vadd.f32 %v2403_v60, %v2375_v28  ;;  %v1237_v32 = vadd.f32 %v1213_v36, %v1185_v30  ;;  %v14659_v36 = vld [vmem:[#allocation49_spill] sm:$0xff]  ;;  %v14660_v28 = vld [vmem:[#allocation48_spill] sm:$0xff] }
 0x13c   : > { %v537_v40 = vadd.f32 %v513_v24, %v485_v26  ;;  %v617_v23 = vmul.f32 %v7535_v2, %v14650_v37  ;;  %v2991_v15 = vadd.f32 %v14651_v11, %v2939_v33  ;;  %v14652_v42 = vrot.slane %v14462_v38, 6  ;;  %v14658_v26 = vld [vmem:[#allocation52_spill] sm:$0xff]  ;;  %v14737_v38 = vld [vmem:[#allocation78_spill] sm:$0xff] }
 0x13d   : > { %v14653_v9 = vrot.slane %v6996_v18, 6  ;;  %v14655_v27 = vrot.slane %v14452_v6, 6  ;;  %v14656_v35 = vrot.slane %v6981_v0, 6  ;;  %v1454_v24 = vmul.f32 %v14659_v36, %v14658_v26  ;;  %v14669_v26 = vld [vmem:[#allocation233_spill] sm:$0xff] }
 0x13e   : > { %v2479_v11 = vadd.f32 %v2455_v4, %v2427_v39  ;;  %v1374_v30 = vadd.f32 %v14660_v28, %v1237_v32  ;;  %v589_v33 = vadd.f32 %v565_v62, %v537_v40  ;;  %v669_v18 = vmul.f32 %v14349_v25, %v14570_v48  ;;  %v14667_v39 = vld [vmem:[#allocation55_spill] sm:$0xff]  ;;  %v14739_v6 = vld [vmem:[#allocation81_spill] sm:$0xff] }
 0x13f   : > { %v8378_v16 = vsel %vm3096_vm5, %v14653_v9, %v14652_v42  ;;  %v8386_v60 = vsel %vm3096_vm5, %v14656_v35, %v14655_v27  ;;  %v3043_v42 = vadd.f32 %v8058_v43, %v2991_v15  ;;  %v14661_v9 = vrot.slane %v14447_v8, 6  ;;  %v14668_v32 = vld [vmem:[#allocation51_spill] sm:$0xff] }
 0x140   : > { %14654 = vst [vmem:[#allocation228_spill] sm:$0xff] %v8378_v16  ;;  %14657 = vst [vmem:[#allocation50_spill] sm:$0xff] %v8386_v60  ;;  %v14662_v0 = vrot.slane %v6974_v3, 6  ;;  %v14664_v35 = vrot.slane %v14475_v63, 6  ;;  %v14665_v4 = vrot.slane %v6905_v45, 6  ;;  %v1506_v40 = vmul.f32 %v14668_v32, %v14667_v39 }
 0x141   : > { %v2531_v43 = vadd.f32 %v2507_v49, %v2479_v11  ;;  %v1426_v15 = vadd.f32 %v1402_v57, %v1374_v30  ;;  %v641_v28 = vadd.f32 %v617_v23, %v589_v33  ;;  %v721_v3 = vmul.f32 %v7562_v61, %v14577_v53  ;;  %v14675_v49 = vld [vmem:[#allocation57_spill] sm:$0xff] }
 0x142   : > { %v8400_v27 = vsel %vm3096_vm5, %v14662_v0, %v14661_v9  ;;  %v8408_v62 = vsel %vm3096_vm5, %v14665_v4, %v14664_v35  ;;  %v3180_v0 = vadd.f32 %v14669_v26, %v3043_v42  ;;  %v14670_v9 = vrot.slane %v14442_v5, 6  ;;  %v14676_v23 = vld [vmem:[#allocation53_spill] sm:$0xff]  ;;  %v14677_v42 = vld [vmem:[#allocation238_spill] sm:$0xff] }
 0x143   : > { %14663 = vst [vmem:[#allocation231_spill] sm:$0xff] %v8400_v27  ;;  %14666 = vst [vmem:[#allocation48_spill] sm:$0xff] %v8408_v62  ;;  %v14671_v63 = vrot.slane %v6908_v13, 6  ;;  %v14673_v35 = vrot.slane %v14466_v20, 6  ;;  %v14674_v4 = vrot.slane %v6902_v47, 6  ;;  %v1558_v11 = vmul.f32 %v14676_v23, %v14675_v49  ;;  %v14688_v49 = vld [vmem:[#allocation135_spill] sm:$0xff] }
 0x144   : > { %v2583_v30 = vadd.f32 %v2559_v44, %v2531_v43  ;;  %v1478_v26 = vadd.f32 %v1454_v24, %v1426_v15  ;;  %v693_v33 = vadd.f32 %v669_v18, %v641_v28  ;;  %v773_v13 = vmul.f32 %v7570_v22, %v14580_v10  ;;  %v14682_v44 = vld [vmem:[#allocation59_spill] sm:$0xff]  ;;  %v14683_v24 = vld [vmem:[#allocation54_spill] sm:$0xff] }
 0x145   : > { %v8421_v45 = vsel %vm3096_vm5, %v14671_v63, %v14670_v9  ;;  %v3135_v57 = vsel %vm3096_vm5, %v14674_v4, %v14673_v35  ;;  %v3232_v39 = vadd.f32 %v14677_v42, %v3180_v0  ;;  %v14678_v9 = vrot.slane %v14438_v41, 6  ;;  %v14681_v63 = vld [vmem:[#allocation112_spill] sm:$0xff]  ;;  %v14684_v4 = vld [vmem:[#allocation214_spill] sm:$0xff] }
 0x146   : > { %14672 = vst [vmem:[#allocation233_spill] sm:$0xff] %v8421_v45  ;;  %v14679_v20 = vrot.slane %v6931_v54, 6  ;;  %v8444_v35 = vmul.f32 %v14681_v63, %v8408_v62  ;;  %v1610_v18 = vmul.f32 %v14683_v24, %v14682_v44  ;;  %v2720_v43 = vadd.f32 %v2696_v59, %v2583_v30  ;;  %v14685_v0 = vld [vmem:[#allocation30_spill] sm:$0xff]  ;;  %v14686_v54 = vld [vmem:[#allocation108_spill] sm:$0xff]  ;;  %v14690_v59 = vld [vmem:[#allocation153_spill] sm:$0xff] }
 0x147   : > { %v1530_v15 = vadd.f32 %v1506_v40, %v1478_v26  ;;  %v745_v28 = vadd.f32 %v721_v3, %v693_v33  ;;  %v912_v42 = vmul.f32 %v14685_v0, %v14684_v4  ;;  %v3284_v41 = vadd.f32 %v8123_v50, %v3232_v39  ;;  %v14689_v62 = vld [vmem:[#allocation56_spill] sm:$0xff]  ;;  %v14691_v40 = vld [vmem:[#allocation31_spill] sm:$0xff] }
 0x148   : > { %v8440_v47 = vsel %vm3096_vm5, %v14679_v20, %v14678_v9  ;;  %v3145_v5 = vmul.f32 %v14686_v54, %v3135_v57  ;;  %v14687_v9 = vld [vmem:[#allocation113_spill] sm:$0xff]  ;;  %v1662_v10 = vmul.f32 %v14689_v62, %v14688_v49  ;;  %v2772_v53 = vadd.f32 %v2748_v17, %v2720_v43  ;;  %v14692_v30 = vld [vmem:[#allocation240_spill] sm:$0xff]  ;;  %v14693_v33 = vld [vmem:[#allocation115_spill] sm:$0xff] }
 0x149   : > { %14680 = vst [vmem:[#allocation238_spill] sm:$0xff] %v8440_v47  ;;  %v8454_v20 = vmul.f32 %v14687_v9, %v8421_v45  ;;  %v1582_v48 = vadd.f32 %v1558_v11, %v1530_v15  ;;  %v797_v44 = vadd.f32 %v773_v13, %v745_v28  ;;  %v964_v3 = vmul.f32 %v14691_v40, %v14690_v59  ;;  %v14694_v39 = vld [vmem:[#allocation192_spill] sm:$0xff]  ;;  %v14701_v28 = vld [vmem:[#allocation241_spill] sm:$0xff] }
 0x14a   : > { %v3336_v26 = vadd.f32 %v14692_v30, %v3284_v41  ;;  %v8463_v50 = vmul.f32 %v14693_v33, %v8440_v47  ;;  %v8466_v57 = vunpack.c.h.bf16 %v14694_v39  ;;  %v14696_v45 = vld [vmem:[#allocation104_spill] sm:$0xff]  ;;  %v14698_v54 = vrot.slane %v7535_v2, 1  ;;  %v14700_v41 = vld [vmem:[#allocation217_spill] sm:$0xff] }
 0x14b   : > { %v14697_v4 = vrot.slane %v14696_v45, 1  ;;  %v2824_v11 = vadd.f32 %v8338_v29, %v2772_v53  ;;  %v1634_v13 = vadd.f32 %v1610_v18, %v1582_v48  ;;  %v936_v43 = vadd.f32 %v912_v42, %v797_v44  ;;  %v14702_v47 = vld [vmem:[#allocation65_spill] sm:$0xff]  ;;  %v14708_v44 = vld [vmem:[#allocation36_spill] sm:$0xff] }
 0x14c   : > { %14695 = vst [vmem:[#allocation240_spill] sm:$0xff] %v8466_v57  ;;  %v1016_v15 = vmul.f32 %v14357_v34, %v14700_v41  ;;  %v3388_v30 = vadd.f32 %v14701_v28, %v3336_v26  ;;  %v14703_v39 = vld [vmem:[#allocation61_spill] sm:$0xff]  ;;  %v14706_v37 = vrot.slane %v14349_v25, 1  ;;  %v14711_v28 = vld [vmem:[#allocation67_spill] sm:$0xff]  ;;  %v14712_v49 = vld [vmem:[#allocation64_spill] sm:$0xff] }
 0x14d   : > { %v8474_v17 = vsel %vm851_vm0, %v14698_v54, %v14697_v4  ;;  %v1851_v59 = vmul.f32 %v14703_v39, %v14702_v47  ;;  %v14704_v40 = vld [vmem:[#allocation105_spill] sm:$0xff]  ;;  %v2876_v48 = vadd.f32 %v8347_v51, %v2824_v11  ;;  %v1686_v53 = vadd.f32 %v1662_v10, %v1634_v13  ;;  %v14709_v4 = vld [vmem:[#allocation242_spill] sm:$0xff]  ;;  %v14718_v13 = vld [vmem:[#allocation39_spill] sm:$0xff] }
 0x14e   : > { %14699 = vst [vmem:[#allocation192_spill] sm:$0xff] %v8474_v17  ;;  %v14705_v0 = vrot.slane %v14704_v40, 1  ;;  %v988_v29 = vadd.f32 %v964_v3, %v936_v43  ;;  %v1068_v18 = vmul.f32 %v14708_v44, %v8474_v17  ;;  %v3440_v42 = vadd.f32 %v14709_v4, %v3388_v30  ;;  %v14710_v47 = vld [vmem:[#allocation118_spill] sm:$0xff]  ;;  %v14719_v30 = vld [vmem:[#allocation244_spill] sm:$0xff] }
 0x14f   : > { %v3353_v26 = vmul.f32 %v14710_v47, %v8400_v27  ;;  %v1903_v41 = vmul.f32 %v14712_v49, %v14711_v28  ;;  %v14713_v34 = vld [vmem:[#allocation110_spill] sm:$0xff]  ;;  %v2928_v10 = vadd.f32 %v8351_v14, %v2876_v48  ;;  %v14721_v28 = vld [vmem:[#allocation119_spill] sm:$0xff] }
 0x150   : > { %v8489_v54 = vsel %vm851_vm0, %v14706_v37, %v14705_v0  ;;  %v14714_v39 = vrot.slane %v14713_v34, 1  ;;  %v14715_v37 = vrot.slane %v7562_v61, 1  ;;  %v14717_v0 = vld [vmem:[#allocation62_spill] sm:$0xff]  ;;  %v1040_v11 = vadd.f32 %v1016_v15, %v988_v29 }
 0x151   : > { %14707 = vst [vmem:[#allocation241_spill] sm:$0xff] %v8489_v54  ;;  %v1823_v3 = vadd.f32 %v14717_v0, %v1686_v53  ;;  %v1120_v43 = vmul.f32 %v14718_v13, %v8489_v54  ;;  %v8512_v4 = vadd.f32 %v14719_v30, %v3440_v42  ;;  %v3405_v17 = vmul.f32 %v14721_v28, %v8386_v60  ;;  %v14722_v27 = vld [vmem:[#allocation70_spill] sm:$0xff]  ;;  %v14729_v54 = vld [vmem:[#allocation68_spill] sm:$0xff] }
 0x152   : > { %v8505_v51 = vsel %vm851_vm0, %v14715_v37, %v14714_v39  ;;  %v14723_v44 = vld [vmem:[#allocation66_spill] sm:$0xff]  ;;  %v14724_v39 = vrot.slane %v8466_v57, 1  ;;  %v14725_v37 = vrot.slane %v7570_v22, 1  ;;  %v2980_v15 = vadd.f32 %v8361_v56, %v2928_v10  ;;  %v14730_v13 = vld [vmem:[#allocation72_spill] sm:$0xff] }
 0x153   : > { %14716 = vst [vmem:[#allocation65_spill] sm:$0xff] %v8505_v51  ;;  %14720 = vst [vmem:[#allocation242_spill] sm:$0xff] %v8512_v4  ;;  %v1955_v49 = vmul.f32 %v14723_v44, %v14722_v27  ;;  %v1875_v48 = vadd.f32 %v1851_v59, %v1823_v3  ;;  %v1092_v53 = vadd.f32 %v1068_v18, %v1040_v11  ;;  %v3543_v42 = vsel %vm3503_vm6, %v8512_v4, 0.0  ;;  %v14727_v0 = vld [vmem:[#allocation122_spill] sm:$0xff]  ;;  %v14728_v27 = vld [vmem:[#allocation73_spill] sm:$0xff] }
 0x154   : > { %v8524_v14 = vsel %vm851_vm0, %v14725_v37, %v14724_v39  ;;  %v1172_v29 = vmul.f32 %v14637_v58, %v8505_v51  ;;  %v3457_v30 = vmul.f32 %v14727_v0, %v8378_v16  ;;  %v2007_v60 = vmul.f32 %v14729_v54, %v14728_v27  ;;  %v14731_v44 = vld [vmem:[#allocation69_spill] sm:$0xff]  ;;  %3544 = vadd.xlane.f32.xlu1 %v3543_v42  ;;  %v14733_v11 = vld [vmem:[#allocation71_spill] sm:$0xff]  ;;  %v14734_v4 = vld [vmem:[#allocation80_spill] sm:$0xff] }
 0x155   : > { %14726 = vst [vmem:[#allocation62_spill] sm:$0xff] %v8524_v14  ;;  %v2059_v39 = vmul.f32 %v14731_v44, %v14730_v13  ;;  %v3032_v56 = vadd.f32 %v8365_v55, %v2980_v15  ;;  %v1927_v59 = vadd.f32 %v1903_v41, %v1875_v48  ;;  %v1144_v18 = vadd.f32 %v1120_v43, %v1092_v53  ;;  %v14732_v3 = vld [vmem:[#allocation145_spill] sm:$0xff]  ;;  %v14735_v51 = vld [vmem:[#allocation75_spill] sm:$0xff]  ;;  %v14736_v58 = vld [vmem:[#allocation84_spill] sm:$0xff] }
 0x156   : > { %v1224_v10 = vmul.f32 %v14641_v46, %v8524_v14  ;;  %v2111_v37 = vmul.f32 %v14733_v11, %v14732_v3  ;;  %v2300_v16 = vmul.f32 %v14735_v51, %v14734_v4  ;;  %v2352_v27 = vmul.f32 %v14737_v38, %v14736_v58  ;;  %v14738_v54 = vld [vmem:[#allocation86_spill] sm:$0xff]  ;;  %v14740_v41 = vld [vmem:[#allocation227_spill] sm:$0xff]  ;;  %v14741_v43 = vld [vmem:[#allocation45_spill] sm:$0xff] }
 0x157   : > { %v2404_v13 = vmul.f32 %v14739_v6, %v14738_v54  ;;  %v3169_v42 = vadd.f32 %v3145_v5, %v3032_v56  ;;  %v1979_v44 = vadd.f32 %v1955_v49, %v1927_v59  ;;  %v1196_v55 = vadd.f32 %v1172_v29, %v1144_v18  ;;  %v14742_v48 = vld [vmem:[#allocation85_spill] sm:$0xff]  ;;  %v14743_v53 = vld [vmem:[#allocation82_spill] sm:$0xff]  ;;  %v14745_v3 = vld [vmem:[#allocation87_spill] sm:$0xff] }
 0x158   : > { %v1361_v15 = vmul.f32 %v14741_v43, %v14740_v41  ;;  %v2456_v14 = vmul.f32 %v14743_v53, %v14742_v48  ;;  %v14744_v46 = vld [vmem:[#allocation89_spill] sm:$0xff]  ;;  %v14746_v4 = vld [vmem:[#allocation11_spill] sm:$0xff]  ;;  %v14747_v51 = vld [vmem:[#allocation88_spill] sm:$0xff]  ;;  %v14753_v43 = vrot.slane %v7535_v2, 2 }
 0x159   : > { %v8554_v11 = vmul.f32 %v14745_v3, %v14744_v46  ;;  %v8558_v8 = vmul.f32 %v14747_v51, %v14746_v4  ;;  %v14748_v58 = vld [vmem:[#allocation94_spill] sm:$0xff]  ;;  %v3221_v5 = vadd.f32 %v8444_v35, %v3169_v42  ;;  %v2031_v49 = vadd.f32 %v2007_v60, %v1979_v44  ;;  %v14749_v56 = vld [vmem:[#allocation229_spill] sm:$0xff]  ;;  %v14751_v46 = vld [vmem:[#allocation92_spill] sm:$0xff] }
 0x15a   : > { %v8562_v54 = vmul.f32 %v14639_v31, %v14748_v58  ;;  %v1248_v29 = vadd.f32 %v1224_v10, %v1196_v55  ;;  %v1413_v59 = vmul.f32 %v14649_v52, %v14749_v56  ;;  %v14750_v18 = vld [vmem:[#allocation93_spill] sm:$0xff]  ;;  %v8573_v48 = vmul.f32 %v14513_v19, %v14751_v46  ;;  %v14755_v42 = vld [vmem:[#allocation230_spill] sm:$0xff] }
 0x15b   : > { %v8569_v41 = vmul.f32 %v14512_v7, %v14750_v18  ;;  %v14752_v58 = vrot.slane %v14696_v45, 2  ;;  %v3273_v35 = vadd.f32 %v8454_v20, %v3221_v5  ;;  %v2083_v44 = vadd.f32 %v2059_v39, %v2031_v49  ;;  %v14756_v18 = vld [vmem:[#allocation91_spill] sm:$0xff]  ;;  %v14757_v46 = vld [vmem:[#allocation98_spill] sm:$0xff]  ;;  %v14758_v4 = vld [vmem:[#allocation101_spill] sm:$0xff] }
 0x15c   : > { %v1385_v10 = vadd.f32 %v1361_v15, %v1248_v29  ;;  %v1465_v55 = vmul.f32 %v14659_v36, %v14755_v42  ;;  %v8589_v56 = vmul.f32 %v14757_v46, %v14756_v18  ;;  %v8593_v52 = vmul.f32 %v14526_v12, %v14758_v4  ;;  %v14759_v19 = vld [vmem:[#allocation154_spill] sm:$0xff]  ;;  %v14776_v36 = vld [vmem:[#allocation129_spill] sm:$0xff] }
 0x15d   : > { %v8582_v60 = vsel %vm1300_vm1, %v14753_v43, %v14752_v58  ;;  %v8597_v7 = vmul.f32 %v14528_v21, %v14759_v19  ;;  %v14760_v43 = vrot.slane %v14704_v40, 2  ;;  %v14761_v20 = vrot.slane %v14349_v25, 2  ;;  %v14763_v58 = vld [vmem:[#allocation111_spill] sm:$0xff] }
 0x15e   : > { %14754 = vst [vmem:[#allocation244_spill] sm:$0xff] %v8582_v60  ;;  %v3325_v15 = vadd.f32 %v8463_v50, %v3273_v35  ;;  %v2135_v5 = vadd.f32 %v2111_v37, %v2083_v44  ;;  %v1437_v49 = vadd.f32 %v1413_v59, %v1385_v10  ;;  %v1517_v29 = vmul.f32 %v14668_v32, %v8582_v60  ;;  %v14764_v19 = vld [vmem:[#allocation107_spill] sm:$0xff]  ;;  %v14772_v10 = vld [vmem:[#allocation76_spill] sm:$0xff]  ;;  %v14773_v60 = vld [vmem:[#allocation106_spill] sm:$0xff] }
 0x15f   : > { %v8605_v39 = vsel %vm1300_vm1, %v14761_v20, %v14760_v43  ;;  %v8612_v42 = vmul.f32 %v14681_v63, %v14763_v58  ;;  %v8616_v4 = vmul.f32 %v14687_v9, %v14764_v19  ;;  %v14766_v18 = vrot.slane %v8466_v57, 2 }
 0x160   : > { %14762 = vst [vmem:[#allocation80_spill] sm:$0xff] %v8605_v39  ;;  %v14767_v43 = vrot.slane %v7570_v22, 2  ;;  %v14769_v37 = vrot.slane %v14713_v34, 2  ;;  %v14770_v59 = vrot.slane %v7562_v61, 2  ;;  %v3377_v44 = vadd.f32 %v3353_v26, %v3325_v15 }
 0x161   : > { %14765 = vst [vmem:[#allocation94_spill] sm:$0xff] %v8616_v4  ;;  %v2272_v20 = vadd.f32 %v14772_v10, %v2135_v5  ;;  %v1489_v58 = vadd.f32 %v1465_v55, %v1437_v49  ;;  %v1569_v19 = vmul.f32 %v14676_v23, %v8605_v39  ;;  %v8639_v32 = vmul.f32 %v14693_v33, %v14773_v60  ;;  %v14780_v60 = vld [vmem:[#allocation12_spill] sm:$0xff]  ;;  %v14781_v39 = vld [vmem:[#allocation26_spill] sm:$0xff] }
 0x162   : > { %v8624_v50 = vsel %vm1300_vm1, %v14767_v43, %v14766_v18  ;;  %v8632_v35 = vsel %vm1300_vm1, %v14770_v59, %v14769_v37  ;;  %v14774_v18 = vld [vmem:[#allocation126_spill] sm:$0xff]  ;;  %v8647_v4 = vmul.f32 %v14721_v28, %v14776_v36  ;;  %v14778_v37 = vld [vmem:[#allocation163_spill] sm:$0xff]  ;;  %v3429_v55 = vadd.f32 %v3405_v17, %v3377_v44  ;;  %v14782_v36 = vld [vmem:[#allocation16_spill] sm:$0xff] }
 0x163   : > { %14768 = vst [vmem:[#allocation111_spill] sm:$0xff] %v8624_v50  ;;  %14771 = vst [vmem:[#allocation256_spill] sm:$0xff] %v8632_v35  ;;  %v8643_v43 = vmul.f32 %v14710_v47, %v14774_v18  ;;  %v8651_v26 = vmul.f32 %v14727_v0, %v14778_v37  ;;  %v2324_v15 = vadd.f32 %v2300_v16, %v2272_v20  ;;  %v14785_v16 = vrot.slane %v14713_v34, 3 }
 0x164   : > { %14777 = vst [vmem:[#allocation257_spill] sm:$0xff] %v8647_v4  ;;  %v1541_v5 = vadd.f32 %v1517_v29, %v1489_v58  ;;  %v1621_v49 = vmul.f32 %v14683_v24, %v8632_v35  ;;  %v1673_v59 = vmul.f32 %v14689_v62, %v8624_v50  ;;  %v455_v18 = vmul.f32 %v14781_v39, %v14780_v60  ;;  %v14783_v4 = vld [vmem:[#allocation28_spill] sm:$0xff]  ;;  %v14809_v24 = vld [vmem:[#allocation21_spill] sm:$0xff] }
 0x165   : > { %14775 = vst [vmem:[#allocation76_spill] sm:$0xff] %v8643_v43  ;;  %14779 = vst [vmem:[#allocation258_spill] sm:$0xff] %v8651_v26  ;;  %v514_v43 = vmul.f32 %v14783_v4, %v14782_v36  ;;  %v8662_v23 = vadd.f32 %v3457_v30, %v3429_v55  ;;  %v2376_v37 = vadd.f32 %v2352_v27, %v2324_v15  ;;  %v14786_v29 = vrot.slane %v7562_v61, 3  ;;  %v14794_v55 = vld [vmem:[#allocation184_spill] sm:$0xff]  ;;  %v14807_v26 = vld [vmem:[#allocation66_spill] sm:$0xff] }
 0x166   : > { %v1593_v17 = vadd.f32 %v1569_v19, %v1541_v5  ;;  %v14788_v20 = vrot.slane %v14704_v40, 3  ;;  %v14789_v58 = vrot.slane %v14349_v25, 3  ;;  %v14791_v30 = vrot.slane %v14696_v45, 3  ;;  %v14795_v5 = vld [vmem:[#allocation17_spill] sm:$0xff] }
 0x167   : > { %14784 = vst [vmem:[#allocation259_spill] sm:$0xff] %v8662_v23  ;;  %v8670_v44 = vsel %vm1749_vm2, %v14786_v29, %v14785_v16  ;;  %v14792_v19 = vrot.slane %v7535_v2, 3  ;;  %v486_v15 = vadd.f32 %v14794_v55, %v455_v18  ;;  %v14796_v16 = vld [vmem:[#allocation103_spill] sm:$0xff]  ;;  %v3510_v39 = vsel %vm3503_vm6, %v8662_v23, 0.0  ;;  %v14802_v18 = vld [vmem:[#allocation245_spill] sm:$0xff]  ;;  %v14806_v23 = vld [vmem:[#allocation64_spill] sm:$0xff] }
 0x168   : > { %14787 = vst [vmem:[#allocation260_spill] sm:$0xff] %v8670_v44  ;;  %v8678_v10 = vsel %vm1749_vm2, %v14789_v58, %v14788_v20  ;;  %v566_v29 = vmul.f32 %v14796_v16, %v14795_v5  ;;  %v2428_v50 = vadd.f32 %v2404_v13, %v2376_v37  ;;  %v1645_v35 = vadd.f32 %v1621_v49, %v1593_v17  ;;  %v14797_v20 = vld [vmem:[#allocation246_spill] sm:$0xff]  ;;  %v14805_v17 = vld [vmem:[#allocation77_spill] sm:$0xff] }
 0x169   : > { %14790 = vst [vmem:[#allocation261_spill] sm:$0xff] %v8678_v10  ;;  %v8686_v27 = vsel %vm1749_vm2, %v14792_v19, %v14791_v30  ;;  %v14798_v58 = vld [vmem:[#allocation58_spill] sm:$0xff]  ;;  %3511 = vadd.xlane.f32.xlu0 %v3510_v39  ;;  %v14799_v36 = vrot.slane %v8466_v57, 3  ;;  %v14800_v60 = vrot.slane %v7570_v22, 3  ;;  %v14803_v19 = vld [vmem:[#allocation61_spill] sm:$0xff]  ;;  %v538_v16 = vadd.f32 %v514_v43, %v486_v15 }
 0x16a   : > { %14793 = vst [vmem:[#allocation262_spill] sm:$0xff] %v8686_v27  ;;  %v1810_v4 = vmul.f32 %v14798_v58, %v14797_v20  ;;  %v1862_v55 = vmul.f32 %v14803_v19, %v14802_v18  ;;  %v14804_v5 = vld [vmem:[#allocation18_spill] sm:$0xff]  ;;  %v2480_v37 = vadd.f32 %v2456_v14, %v2428_v50  ;;  %v1697_v49 = vadd.f32 %v1673_v59, %v1645_v35  ;;  %v14810_v14 = vld [vmem:[#allocation69_spill] sm:$0xff]  ;;  %v14811_v35 = vld [vmem:[#allocation71_spill] sm:$0xff] }
 0x16b   : > { %v8701_v30 = vsel %vm1749_vm2, %v14800_v60, %v14799_v36  ;;  %v618_v13 = vmul.f32 %v14696_v45, %v14804_v5  ;;  %v1914_v39 = vmul.f32 %v14806_v23, %v14805_v17  ;;  %v1966_v58 = vmul.f32 %v14807_v26, %v8686_v27  ;;  %v14808_v36 = vld [vmem:[#allocation68_spill] sm:$0xff]  ;;  %v14831_v23 = vld [vmem:[#allocation247_spill] sm:$0xff] }
 0x16c   : > { %14801 = vst [vmem:[#allocation184_spill] sm:$0xff] %v8701_v30  ;;  %v2018_v60 = vmul.f32 %v14808_v36, %v8678_v10  ;;  %v590_v62 = vadd.f32 %v566_v29, %v538_v16  ;;  %v670_v43 = vmul.f32 %v14704_v40, %v14809_v24  ;;  %v2532_v15 = vadd.f32 %v8554_v11, %v2480_v37  ;;  %v14818_v37 = vld [vmem:[#allocation23_spill] sm:$0xff] }
 0x16d   : > { %v1834_v18 = vadd.f32 %v1810_v4, %v1697_v49  ;;  %v2070_v50 = vmul.f32 %v14810_v14, %v8670_v44  ;;  %v2122_v59 = vmul.f32 %v14811_v35, %v8701_v30  ;;  %v14812_v20 = vrot.slane %v14713_v34, 4  ;;  %v14829_v14 = vld [vmem:[#allocation27_spill] sm:$0xff] }
 0x16e   : > { %v14813_v27 = vrot.slane %v7562_v61, 4  ;;  %v14815_v16 = vrot.slane %v14696_v45, 4  ;;  %v14816_v29 = vrot.slane %v7535_v2, 4  ;;  %v642_v4 = vadd.f32 %v618_v13, %v590_v62  ;;  %v14825_v13 = vld [vmem:[#allocation251_spill] sm:$0xff] }
 0x16f   : > { %v722_v49 = vmul.f32 %v14713_v34, %v14818_v37  ;;  %v2584_v30 = vadd.f32 %v8558_v8, %v2532_v15  ;;  %v1886_v44 = vadd.f32 %v1862_v55, %v1834_v18  ;;  %v14819_v17 = vrot.slane %v8466_v57, 4  ;;  %v14827_v18 = vld [vmem:[#allocation35_spill] sm:$0xff] }
 0x170   : > { %v8727_v10 = vsel %vm2198_vm3, %v14813_v27, %v14812_v20  ;;  %v8735_v11 = vsel %vm2198_vm3, %v14816_v29, %v14815_v16  ;;  %v14820_v27 = vrot.slane %v7570_v22, 4  ;;  %v14822_v5 = vrot.slane %v14704_v40, 4  ;;  %v14826_v29 = vld [vmem:[#allocation74_spill] sm:$0xff]  ;;  %v14828_v55 = vld [vmem:[#allocation75_spill] sm:$0xff] }
 0x171   : > { %14814 = vst [vmem:[#allocation263_spill] sm:$0xff] %v8727_v10  ;;  %14817 = vst [vmem:[#allocation264_spill] sm:$0xff] %v8735_v11  ;;  %v14823_v16 = vrot.slane %v14349_v25, 4  ;;  %v2259_v8 = vmul.f32 %v14826_v29, %v14825_v13  ;;  %v2311_v15 = vmul.f32 %v14828_v55, %v14827_v18  ;;  %v694_v35 = vadd.f32 %v670_v43, %v642_v4  ;;  %v8775_v43 = vld [vmem:[%s5799_s15 + $0x88] sm:$0xff]   ;;  %v14833_v13 = vld [vmem:[#allocation44_spill] sm:$0xff] }
 0x172   : > { %v8746_v20 = vsel %vm2198_vm3, %v14820_v27, %v14819_v17  ;;  %v774_v36 = vmul.f32 %v8466_v57, %v14829_v14  ;;  %v14830_v17 = vld [vmem:[#allocation139_spill] sm:$0xff]  ;;  %v1938_v26 = vadd.f32 %v1914_v39, %v1886_v44  ;;  %v2363_v19 = vmul.f32 %v14737_v38, %v14831_v23  ;;  %v14834_v55 = vld [vmem:[#allocation30_spill] sm:$0xff]  ;;  %v14855_v38 = vld [vmem:[#allocation224_spill] sm:$0xff] }
 0x173   : > { %14821 = vst [vmem:[#allocation265_spill] sm:$0xff] %v8746_v20  ;;  %v8754_v62 = vsel %vm2198_vm3, %v14823_v16, %v14822_v5  ;;  %v2721_v27 = vadd.f32 %v14830_v17, %v2584_v30  ;;  %v8767_v5 = vmul.f32 %v14739_v6, %v8735_v11  ;;  %14832 = vst [vmem:[#allocation139_spill] sm:$0xff] %v8775_v43  ;;  %v14836_v18 = vrot.slane %v7562_v61, 5 }
 0x174   : > { %14824 = vst [vmem:[#allocation266_spill] sm:$0xff] %v8754_v62  ;;  %v8771_v16 = vmul.f32 %v14743_v53, %v8754_v62  ;;  %v746_v4 = vadd.f32 %v722_v49, %v694_v35  ;;  %v913_v30 = vmul.f32 %v14834_v55, %v14833_v13  ;;  %v1990_v39 = vadd.f32 %v1966_v58, %v1938_v26  ;;  %v14842_v13 = vld [vmem:[#allocation31_spill] sm:$0xff] }
 0x175   : > { %v2773_v44 = vadd.f32 %v8562_v54, %v2721_v27  ;;  %v8782_v17 = vmul.f32 %v14745_v3, %v8727_v10  ;;  %v8786_v11 = vmul.f32 %v14747_v51, %v8746_v20  ;;  %v14835_v62 = vrot.slane %v14713_v34, 5  ;;  %v14841_v27 = vld [vmem:[#allocation46_spill] sm:$0xff]  ;;  %v14854_v3 = vld [vmem:[#allocation253_spill] sm:$0xff] }
 0x176   : > { %v14838_v49 = vrot.slane %v14704_v40, 5  ;;  %v14839_v54 = vrot.slane %v14349_v25, 5  ;;  %v798_v58 = vadd.f32 %v774_v36, %v746_v4  ;;  %v965_v20 = vmul.f32 %v14842_v13, %v14841_v27  ;;  %v14853_v27 = vld [vmem:[#allocation33_spill] sm:$0xff] }
 0x177   : > { %v8794_v35 = vsel %vm2647_vm4, %v14836_v18, %v14835_v62  ;;  %v2825_v10 = vadd.f32 %v8569_v41, %v2773_v44  ;;  %v2042_v23 = vadd.f32 %v2018_v60, %v1990_v39  ;;  %v14843_v55 = vrot.slane %v14696_v45, 5  ;;  %v14850_v41 = vld [vmem:[#allocation254_spill] sm:$0xff] }
 0x178   : > { %14837 = vst [vmem:[#allocation267_spill] sm:$0xff] %v8794_v35  ;;  %v8802_v26 = vsel %vm2647_vm4, %v14839_v54, %v14838_v49  ;;  %v14844_v62 = vrot.slane %v7535_v2, 5  ;;  %v8816_v51 = vunpack.c.l.bf16 %v8775_v43  ;;  %v14847_v49 = vrot.slane %v8466_v57, 5  ;;  %v14851_v60 = vld [vmem:[#allocation90_spill] sm:$0xff]  ;;  %v14852_v54 = vld [vmem:[#allocation123_spill] sm:$0xff] }
 0x179   : > { %14840 = vst [vmem:[#allocation268_spill] sm:$0xff] %v8802_v26  ;;  %v14848_v36 = vrot.slane %v7570_v22, 5  ;;  %v8828_v44 = vmul.f32 %v14851_v60, %v14850_v41  ;;  %v937_v39 = vadd.f32 %v913_v30, %v798_v58  ;;  %v2094_v43 = vadd.f32 %v2070_v50, %v2042_v23  ;;  %v14857_v30 = vld [vmem:[#allocation125_spill] sm:$0xff]  ;;  %v14858_v58 = vld [vmem:[#allocation36_spill] sm:$0xff]  ;;  %v14860_v41 = vld [vmem:[#allocation127_spill] sm:$0xff] }
 0x17a   : > { %v8813_v18 = vsel %vm2647_vm4, %v14844_v62, %v14843_v55  ;;  %14846 = vst [vmem:[#allocation270_spill] sm:$0xff] %v8816_v51  ;;  %v1017_v55 = vmul.f32 %v14853_v27, %v14852_v54  ;;  %v2877_v62 = vadd.f32 %v8573_v48, %v2825_v10  ;;  %v8835_v53 = vmul.f32 %v14639_v31, %v14854_v3  ;;  %v14859_v23 = vld [vmem:[#allocation97_spill] sm:$0xff] }
 0x17b   : > { %14845 = vst [vmem:[#allocation269_spill] sm:$0xff] %v8813_v18  ;;  %v8824_v4 = vsel %vm2647_vm4, %v14848_v36, %v14847_v49  ;;  %v14856_v49 = vld [vmem:[#allocation96_spill] sm:$0xff]  ;;  %v989_v60 = vadd.f32 %v965_v20, %v937_v39  ;;  %v1069_v29 = vmul.f32 %v14858_v58, %v14857_v30  ;;  %v2146_v48 = vadd.f32 %v2122_v59, %v2094_v43 }
 0x17c   : > { %14849 = vst [vmem:[#allocation271_spill] sm:$0xff] %v8824_v4  ;;  %v8840_v36 = vmul.f32 %v14856_v49, %v14855_v38  ;;  %v2929_v54 = vadd.f32 %v8589_v56, %v2877_v62  ;;  %v8848_v10 = vmul.f32 %v14859_v23, %v8813_v18  ;;  %v8852_v50 = vmul.f32 %v14757_v46, %v8802_v26  ;;  %v14861_v56 = vld [vmem:[#allocation39_spill] sm:$0xff] }
 0x17d   : > { %v8856_v6 = vmul.f32 %v14526_v12, %v8794_v35  ;;  %v8860_v20 = vmul.f32 %v14528_v21, %v8824_v4  ;;  %v1041_v39 = vadd.f32 %v1017_v55, %v989_v60  ;;  %v1121_v59 = vmul.f32 %v14861_v56, %v14860_v41  ;;  %v14874_v41 = vld [vmem:[#allocation130_spill] sm:$0xff] }
 0x17e   : > { %v2981_v43 = vadd.f32 %v8593_v52, %v2929_v54  ;;  %v2283_v62 = vadd.f32 %v2259_v8, %v2146_v48  ;;  %v14862_v30 = vrot.slane %v14713_v34, 6  ;;  %v14863_v26 = vrot.slane %v7562_v61, 6 }
 0x17f   : > { %v14865_v35 = vrot.slane %v8816_v51, 1  ;;  %v14866_v4 = vrot.slane %v8466_v57, 1  ;;  %v14868_v55 = vrot.slane %v8466_v57, 6  ;;  %v14869_v52 = vrot.slane %v7570_v22, 6 }
 0x180   : > { %v8871_v18 = vsel %vm3096_vm5, %v14863_v26, %v14862_v30  ;;  %v14871_v54 = vrot.slane %v14704_v40, 6  ;;  %v14872_v26 = vrot.slane %v14349_v25, 6  ;;  %v1093_v48 = vadd.f32 %v1069_v29, %v1041_v39  ;;  %v14879_v40 = vld [vmem:[#allocation231_spill] sm:$0xff]  ;;  %v14880_v25 = vld [vmem:[#allocation108_spill] sm:$0xff] }
 0x181   : > { %14864 = vst [vmem:[#allocation272_spill] sm:$0xff] %v8871_v18  ;;  %v8879_v60 = vsel %vm851_vm0, %v14866_v4, %v14865_v35  ;;  %v8887_v8 = vsel %vm3096_vm5, %v14869_v52, %v14868_v55  ;;  %v14875_v35 = vld [vmem:[#allocation41_spill] sm:$0xff]  ;;  %v3033_v34 = vadd.f32 %v8597_v7, %v2981_v43  ;;  %v2335_v61 = vadd.f32 %v2311_v15, %v2283_v62  ;;  %v14882_v39 = vld [vmem:[#allocation228_spill] sm:$0xff]  ;;  %v14883_v43 = vld [vmem:[#allocation43_spill] sm:$0xff] }
 0x182   : > { %14867 = vst [vmem:[#allocation273_spill] sm:$0xff] %v8879_v60  ;;  %14870 = vst [vmem:[#allocation274_spill] sm:$0xff] %v8887_v8  ;;  %v8895_v30 = vsel %vm3096_vm5, %v14872_v26, %v14871_v54  ;;  %v1173_v4 = vmul.f32 %v14875_v35, %v14874_v41  ;;  %v14876_v22 = vrot.slane %v14696_v45, 6  ;;  %v14877_v55 = vrot.slane %v7535_v2, 6  ;;  %v14881_v54 = vld [vmem:[#allocation50_spill] sm:$0xff]  ;;  %v14884_v26 = vld [vmem:[#allocation141_spill] sm:$0xff] }
 0x183   : > { %14873 = vst [vmem:[#allocation275_spill] sm:$0xff] %v8895_v30  ;;  %v8910_v38 = vmul.f32 %v14880_v25, %v14879_v40  ;;  %v8914_v29 = vmul.f32 %v14681_v63, %v14881_v54  ;;  %v8918_v7 = vmul.f32 %v14687_v9, %v14882_v39  ;;  %v1145_v15 = vadd.f32 %v1121_v59, %v1093_v48  ;;  %v14886_v40 = vld [vmem:[#allocation40_spill] sm:$0xff]  ;;  %v14888_v59 = vld [vmem:[#allocation57_spill] sm:$0xff]  ;;  %v14894_v39 = vld [vmem:[#allocation59_spill] sm:$0xff] }
 0x184   : > { %v8906_v52 = vsel %vm3096_vm5, %v14877_v55, %v14876_v22  ;;  %v1225_v62 = vmul.f32 %v14883_v43, %v8879_v60  ;;  %v3170_v41 = vadd.f32 %v14884_v26, %v3033_v34  ;;  %v2387_v22 = vadd.f32 %v2363_v19, %v2335_v61  ;;  %v14885_v55 = vld [vmem:[#allocation37_spill] sm:$0xff]  ;;  %v14890_v34 = vld [vmem:[#allocation79_spill] sm:$0xff]  ;;  %v14891_v26 = vld [vmem:[#allocation114_spill] sm:$0xff] }
 0x185   : > { %14878 = vst [vmem:[#allocation276_spill] sm:$0xff] %v8906_v52  ;;  %v659_v45 = vmul.f32 %v14885_v55, %v14809_v24  ;;  %v711_v3 = vmul.f32 %v14886_v40, %v14818_v37  ;;  %v8929_v54 = vmul.f32 %v14693_v33, %v8906_v52  ;;  %v1197_v63 = vadd.f32 %v1173_v4, %v1145_v15  ;;  %v14889_v48 = vld [vmem:[#allocation45_spill] sm:$0xff] }
 0x186   : > { %v1362_v9 = vmul.f32 %v14889_v48, %v14888_v59  ;;  %v3222_v60 = vadd.f32 %v8612_v42, %v3170_v41  ;;  %v2439_v61 = vadd.f32 %v8767_v5, %v2387_v22  ;;  %v763_v55 = vmul.f32 %v14891_v26, %v14829_v14  ;;  %v14895_v59 = vld [vmem:[#allocation47_spill] sm:$0xff]  ;;  %v14896_v42 = vld [vmem:[#allocation94_spill] sm:$0xff] }
 0x187   : > { %14887 = vst [vmem:[#allocation141_spill] sm:$0xff] %v8929_v54  ;;  %v683_v19 = vadd.f32 %v659_v45, %v14890_v34  ;;  %v8941_v40 = vmul.f32 %v14710_v47, %v8895_v30  ;;  %v8945_v4 = vmul.f32 %v14721_v28, %v8871_v18  ;;  %v1249_v15 = vadd.f32 %v1225_v62, %v1197_v63  ;;  %v14901_v62 = vld [vmem:[#allocation135_spill] sm:$0xff]  ;;  %v14906_v28 = vld [vmem:[#allocation137_spill] sm:$0xff]  ;;  %v14910_v47 = vld [vmem:[#allocation76_spill] sm:$0xff] }
 0x188   : > { %v1414_v52 = vmul.f32 %v14895_v59, %v14894_v39  ;;  %v3274_v41 = vadd.f32 %v14896_v42, %v3222_v60  ;;  %v2491_v5 = vadd.f32 %v8771_v16, %v2439_v61  ;;  %v8953_v45 = vmul.f32 %v14727_v0, %v8887_v8  ;;  %v14902_v39 = vld [vmem:[#allocation49_spill] sm:$0xff]  ;;  %v14903_v60 = vld [vmem:[#allocation138_spill] sm:$0xff]  ;;  %v14904_v42 = vld [vmem:[#allocation51_spill] sm:$0xff] }
 0x189   : > { %14892 = vst [vmem:[#allocation79_spill] sm:$0xff] %v8941_v40  ;;  %14893 = vst [vmem:[#allocation277_spill] sm:$0xff] %v8945_v4  ;;  %v735_v22 = vadd.f32 %v711_v3, %v683_v19  ;;  %v14898_v34 = vrot.slane %v8816_v51, 2  ;;  %v14899_v30 = vrot.slane %v8466_v57, 2  ;;  %v1386_v63 = vadd.f32 %v1362_v9, %v1249_v15  ;;  %v14905_v19 = vld [vmem:[#allocation83_spill] sm:$0xff]  ;;  %v14907_v4 = vld [vmem:[#allocation53_spill] sm:$0xff] }
 0x18a   : > { %14897 = vst [vmem:[#allocation94_spill] sm:$0xff] %v8953_v45  ;;  %v1466_v26 = vmul.f32 %v14902_v39, %v14901_v62  ;;  %v1518_v16 = vmul.f32 %v14904_v42, %v14903_v60  ;;  %v3326_v61 = vadd.f32 %v8639_v32, %v3274_v41  ;;  %v2543_v8 = vadd.f32 %v8782_v17, %v2491_v5  ;;  %v14909_v9 = vld [vmem:[#allocation54_spill] sm:$0xff]  ;;  %v14911_v32 = vld [vmem:[#allocation173_spill] sm:$0xff]  ;;  %v14916_v40 = vld [vmem:[#allocation72_spill] sm:$0xff] }
 0x18b   : > { %v8961_v18 = vsel %vm1300_vm1, %v14899_v30, %v14898_v34  ;;  %v787_v3 = vadd.f32 %v763_v55, %v735_v22  ;;  %v954_v45 = vmul.f32 %v14842_v13, %v14905_v19  ;;  %v1438_v0 = vadd.f32 %v1414_v52, %v1386_v63  ;;  %v14908_v34 = vld [vmem:[#allocation136_spill] sm:$0xff]  ;;  %v14912_v17 = vld [vmem:[#allocation150_spill] sm:$0xff]  ;;  %v14914_v63 = vld [vmem:[#allocation73_spill] sm:$0xff] }
 0x18c   : > { %14900 = vst [vmem:[#allocation278_spill] sm:$0xff] %v8961_v18  ;;  %v1570_v30 = vmul.f32 %v14907_v4, %v14906_v28  ;;  %v1622_v15 = vmul.f32 %v14909_v9, %v14908_v34  ;;  %v3378_v33 = vadd.f32 %v14910_v47, %v3326_v61  ;;  %v2595_v60 = vadd.f32 %v8786_v11, %v2543_v8  ;;  %v14913_v52 = vld [vmem:[#allocation56_spill] sm:$0xff]  ;;  %v14915_v28 = vld [vmem:[#allocation58_spill] sm:$0xff]  ;;  %v14917_v34 = vld [vmem:[#allocation61_spill] sm:$0xff] }
 0x18d   : > { %v926_v41 = vadd.f32 %v14911_v32, %v787_v3  ;;  %v1006_v55 = vmul.f32 %v14853_v27, %v14912_v17  ;;  %v1490_v5 = vadd.f32 %v1466_v26, %v1438_v0  ;;  %v1674_v22 = vmul.f32 %v14913_v52, %v8961_v18  ;;  %v14918_v62 = vld [vmem:[#allocation257_spill] sm:$0xff]  ;;  %v14919_v8 = vld [vmem:[#allocation151_spill] sm:$0xff]  ;;  %v14929_v17 = vld [vmem:[#allocation66_spill] sm:$0xff] }
 0x18e   : > { %v1811_v19 = vmul.f32 %v14915_v28, %v14914_v63  ;;  %v1863_v54 = vmul.f32 %v14917_v34, %v14916_v40  ;;  %v3430_v25 = vadd.f32 %v14918_v62, %v3378_v33  ;;  %v2732_v47 = vadd.f32 %v8828_v44, %v2595_v60  ;;  %v14923_v18 = vld [vmem:[#allocation145_spill] sm:$0xff]  ;;  %v14924_v63 = vld [vmem:[#allocation64_spill] sm:$0xff]  ;;  %v14925_v62 = vld [vmem:[#allocation258_spill] sm:$0xff] }
 0x18f   : > { %v978_v11 = vadd.f32 %v954_v45, %v926_v41  ;;  %v1058_v61 = vmul.f32 %v14858_v58, %v14919_v8  ;;  %v1542_v3 = vadd.f32 %v1518_v16, %v1490_v5  ;;  %v14920_v0 = vrot.slane %v8816_v51, 3  ;;  %v14927_v16 = vld [vmem:[#allocation152_spill] sm:$0xff]  ;;  %v14932_v58 = vld [vmem:[#allocation146_spill] sm:$0xff]  ;;  %v14936_v33 = vld [vmem:[#allocation85_spill] sm:$0xff] }
 0x190   : > { %v14921_v26 = vrot.slane %v8466_v57, 3  ;;  %v1915_v40 = vmul.f32 %v14924_v63, %v14923_v18  ;;  %v9003_v44 = vadd.f32 %v14925_v62, %v3430_v25  ;;  %v2784_v45 = vadd.f32 %v8835_v53, %v2732_v47  ;;  %v14928_v8 = vld [vmem:[#allocation144_spill] sm:$0xff]  ;;  %v14933_v18 = vld [vmem:[#allocation69_spill] sm:$0xff] }
 0x191   : > { %v1030_v60 = vadd.f32 %v1006_v55, %v978_v11  ;;  %v1110_v41 = vmul.f32 %v14861_v56, %v14927_v16  ;;  %v1594_v5 = vadd.f32 %v1570_v30, %v1542_v3  ;;  %v1967_v34 = vmul.f32 %v14929_v17, %v14928_v8  ;;  %v14934_v55 = vld [vmem:[#allocation155_spill] sm:$0xff] }
 0x192   : > { %v8997_v32 = vsel %vm1749_vm2, %v14921_v26, %v14920_v0  ;;  %14926 = vst [vmem:[#allocation173_spill] sm:$0xff] %v9003_v44  ;;  %v14930_v0 = vld [vmem:[#allocation147_spill] sm:$0xff]  ;;  %v14931_v26 = vld [vmem:[#allocation68_spill] sm:$0xff]  ;;  %v2071_v63 = vmul.f32 %v14933_v18, %v14932_v58  ;;  %v3513_v25 = vsel %vm3503_vm6, %v9003_v44, 0.0  ;;  %v2836_v62 = vadd.f32 %v8840_v36, %v2784_v45  ;;  %v14938_v58 = vld [vmem:[#allocation89_spill] sm:$0xff] }
 0x193   : > { %14922 = vst [vmem:[#allocation76_spill] sm:$0xff] %v8997_v32  ;;  %v2019_v28 = vmul.f32 %v14931_v26, %v14930_v0  ;;  %v1082_v53 = vadd.f32 %v1058_v61, %v1030_v60  ;;  %v1162_v47 = vmul.f32 %v14875_v35, %v14934_v55  ;;  %3514 = vadd.xlane.f32.xlu1 %v3513_v25  ;;  %v14935_v11 = vld [vmem:[#allocation71_spill] sm:$0xff]  ;;  %v14937_v0 = vld [vmem:[#allocation74_spill] sm:$0xff]  ;;  %v14940_v61 = vrot.slane %v8816_v51, 4 }
 0x194   : > { %v1646_v30 = vadd.f32 %v1622_v15, %v1594_v5  ;;  %v9021_v3 = vmul.f32 %v14935_v11, %v8997_v32  ;;  %v9025_v8 = vmul.f32 %v14937_v0, %v14936_v33  ;;  %v14939_v16 = vld [vmem:[#allocation75_spill] sm:$0xff]  ;;  %v2888_v36 = vadd.f32 %v8848_v10, %v2836_v62  ;;  %v14943_v5 = vld [vmem:[#allocation194_spill] sm:$0xff] }
 0x195   : > { %v9029_v18 = vmul.f32 %v14939_v16, %v14938_v58  ;;  %v14941_v45 = vrot.slane %v8466_v57, 4  ;;  %v1134_v60 = vadd.f32 %v1110_v41, %v1082_v53  ;;  %v1214_v25 = vmul.f32 %v14883_v43, %v14943_v5  ;;  %v14944_v32 = vld [vmem:[#allocation11_spill] sm:$0xff]  ;;  %v14945_v33 = vld [vmem:[#allocation78_spill] sm:$0xff]  ;;  %v14946_v58 = vld [vmem:[#allocation148_spill] sm:$0xff] }
 0x196   : > { %v1698_v44 = vadd.f32 %v1674_v22, %v1646_v30  ;;  %v9044_v55 = vmul.f32 %v14945_v33, %v14944_v32  ;;  %v14947_v16 = vld [vmem:[#allocation81_spill] sm:$0xff]  ;;  %v14948_v62 = vld [vmem:[#allocation10_spill] sm:$0xff]  ;;  %v14951_v41 = vld [vmem:[#allocation87_spill] sm:$0xff] }
 0x197   : > { %v9038_v15 = vsel %vm2198_vm3, %v14941_v45, %v14940_v61  ;;  %v9048_v10 = vmul.f32 %v14947_v16, %v14946_v58  ;;  %v14949_v0 = vld [vmem:[#allocation82_spill] sm:$0xff]  ;;  %v2940_v61 = vadd.f32 %v8852_v50, %v2888_v36  ;;  %v14950_v45 = vld [vmem:[#allocation25_spill] sm:$0xff]  ;;  %v1186_v5 = vadd.f32 %v1162_v47, %v1134_v60  ;;  %v14953_v33 = vld [vmem:[#allocation88_spill] sm:$0xff] }
 0x198   : > { %14942 = vst [vmem:[#allocation257_spill] sm:$0xff] %v9038_v15  ;;  %v9052_v11 = vmul.f32 %v14949_v0, %v14948_v62  ;;  %v9057_v53 = vmul.f32 %v14951_v41, %v14950_v45  ;;  %v14952_v22 = vld [vmem:[#allocation158_spill] sm:$0xff]  ;;  %v1835_v32 = vadd.f32 %v1811_v19, %v1698_v44  ;;  %v9063_v26 = vmul.f32 %v14953_v33, %v9038_v15  ;;  %v14955_v16 = vld [vmem:[#allocation91_spill] sm:$0xff]  ;;  %v14958_v45 = vld [vmem:[#allocation160_spill] sm:$0xff] }
 0x199   : > { %v1351_v30 = vmul.f32 %v14889_v48, %v14952_v22  ;;  %v14956_v62 = vld [vmem:[#allocation90_spill] sm:$0xff]  ;;  %v2992_v50 = vadd.f32 %v8856_v6, %v2940_v61  ;;  %v1238_v36 = vadd.f32 %v1214_v25, %v1186_v5  ;;  %v1403_v47 = vmul.f32 %v14895_v59, %v14958_v45  ;;  %v14959_v60 = vld [vmem:[#allocation32_spill] sm:$0xff]  ;;  %v14960_v44 = vld [vmem:[#allocation101_spill] sm:$0xff] }
 0x19a   : > { %14954 = vst [vmem:[#allocation258_spill] sm:$0xff] %v9063_v26  ;;  %v9068_v0 = vmul.f32 %v14956_v62, %v14955_v16  ;;  %v660_v22 = vmul.f32 %v14959_v60, %v14809_v24  ;;  %v1887_v19 = vadd.f32 %v1863_v54, %v1835_v32  ;;  %v9077_v15 = vmul.f32 %v14639_v31, %v14960_v44  ;;  %v14961_v26 = vld [vmem:[#allocation161_spill] sm:$0xff]  ;;  %v14962_v16 = vld [vmem:[#allocation102_spill] sm:$0xff]  ;;  %v14963_v25 = vld [vmem:[#allocation172_spill] sm:$0xff] }
 0x19b   : > { %v1455_v58 = vmul.f32 %v14902_v39, %v14961_v26  ;;  %v3044_v6 = vadd.f32 %v8860_v20, %v2992_v50  ;;  %v1375_v5 = vadd.f32 %v1351_v30, %v1238_v36  ;;  %v764_v45 = vmul.f32 %v7535_v2, %v14829_v14  ;;  %v14967_v26 = vld [vmem:[#allocation154_spill] sm:$0xff]  ;;  %v14968_v20 = vld [vmem:[#allocation157_spill] sm:$0xff]  ;;  %v14971_v2 = vld [vmem:[#allocation156_spill] sm:$0xff] }
 0x19c   : > { %14957 = vst [vmem:[#allocation158_spill] sm:$0xff] %v9068_v0  ;;  %v712_v0 = vmul.f32 %v14962_v16, %v14818_v37  ;;  %v684_v61 = vadd.f32 %v660_v22, %v14963_v25  ;;  %v1939_v60 = vadd.f32 %v1915_v40, %v1887_v19  ;;  %v14964_v54 = vrot.slane %v8816_v51, 5  ;;  %v14970_v40 = vld [vmem:[#allocation162_spill] sm:$0xff]  ;;  %v14974_v14 = vld [vmem:[#allocation164_spill] sm:$0xff] }
 0x19d   : > { %v14965_v32 = vrot.slane %v8466_v57, 5  ;;  %v9097_v16 = vmul.f32 %v14856_v49, %v14967_v26  ;;  %v9101_v30 = vmul.f32 %v14859_v23, %v14968_v20  ;;  %v3181_v50 = vadd.f32 %v8910_v38, %v3044_v6  ;;  %v14975_v6 = vld [vmem:[#allocation213_spill] sm:$0xff] }
 0x19e   : > { %v1427_v36 = vadd.f32 %v1403_v47, %v1375_v5  ;;  %v1507_v22 = vmul.f32 %v14904_v42, %v14970_v40  ;;  %v736_v19 = vadd.f32 %v712_v0, %v684_v61  ;;  %v1991_v25 = vadd.f32 %v1967_v34, %v1939_v60  ;;  %v14977_v61 = vld [vmem:[#allocation166_spill] sm:$0xff]  ;;  %v14986_v60 = vld [vmem:[#allocation204_spill] sm:$0xff] }
 0x19f   : > { %v9093_v44 = vsel %vm2647_vm4, %v14965_v32, %v14964_v54  ;;  %14969 = vst [vmem:[#allocation279_spill] sm:$0xff] %v9101_v30  ;;  %v9108_v54 = vmul.f32 %v14757_v46, %v14971_v2  ;;  %v14972_v32 = vld [vmem:[#allocation159_spill] sm:$0xff]  ;;  %v1559_v20 = vmul.f32 %v14907_v4, %v14974_v14  ;;  %v3233_v30 = vadd.f32 %v8914_v29, %v3181_v50  ;;  %v14978_v14 = vld [vmem:[#allocation177_spill] sm:$0xff] }
 0x1a0   : > { %14966 = vst [vmem:[#allocation172_spill] sm:$0xff] %v9093_v44  ;;  %v9112_v26 = vmul.f32 %v14526_v12, %v14972_v32  ;;  %v1479_v38 = vadd.f32 %v1455_v58, %v1427_v36  ;;  %v788_v47 = vadd.f32 %v764_v45, %v736_v19  ;;  %v955_v5 = vmul.f32 %v14842_v13, %v14975_v6  ;;  %v14979_v58 = vld [vmem:[#allocation212_spill] sm:$0xff]  ;;  %v14980_v36 = vld [vmem:[#allocation126_spill] sm:$0xff] }
 0x1a1   : > { %v2043_v0 = vadd.f32 %v2019_v28, %v1991_v25  ;;  %v9121_v34 = vmul.f32 %v14528_v21, %v9093_v44  ;;  %v1611_v32 = vmul.f32 %v14909_v9, %v14977_v61  ;;  %v3285_v2 = vadd.f32 %v8918_v7, %v3233_v30  ;;  %v14981_v28 = vld [vmem:[#allocation108_spill] sm:$0xff]  ;;  %v14983_v25 = vld [vmem:[#allocation129_spill] sm:$0xff] }
 0x1a2   : > { %14973 = vst [vmem:[#allocation280_spill] sm:$0xff] %v9112_v26  ;;  %v1531_v40 = vadd.f32 %v1507_v22, %v1479_v38  ;;  %v927_v29 = vadd.f32 %v14978_v14, %v788_v47  ;;  %v1007_v45 = vmul.f32 %v14853_v27, %v14979_v58  ;;  %v9132_v19 = vmul.f32 %v14981_v28, %v14980_v36  ;;  %v14984_v6 = vld [vmem:[#allocation112_spill] sm:$0xff]  ;;  %v14988_v14 = vld [vmem:[#allocation214_spill] sm:$0xff]  ;;  %v14993_v36 = vld [vmem:[#allocation163_spill] sm:$0xff] }
 0x1a3   : > { %14976 = vst [vmem:[#allocation281_spill] sm:$0xff] %v9121_v34  ;;  %v2095_v50 = vadd.f32 %v2071_v63, %v2043_v0  ;;  %v9136_v44 = vmul.f32 %v14984_v6, %v14983_v25  ;;  %v1663_v61 = vmul.f32 %v14913_v52, %v14986_v60  ;;  %v14987_v34 = vld [vmem:[#allocation141_spill] sm:$0xff]  ;;  %v14989_v38 = vld [vmem:[#allocation36_spill] sm:$0xff]  ;;  %v14990_v0 = vrot.slane %v8816_v51, 6 }
 0x1a4   : > { %14982 = vst [vmem:[#allocation177_spill] sm:$0xff] %v9132_v19  ;;  %v3337_v7 = vadd.f32 %v14987_v34, %v3285_v2  ;;  %v1583_v30 = vadd.f32 %v1559_v20, %v1531_v40  ;;  %v979_v22 = vadd.f32 %v955_v5, %v927_v29  ;;  %v1059_v47 = vmul.f32 %v14989_v38, %v14988_v14  ;;  %v14996_v2 = vld [vmem:[#allocation168_spill] sm:$0xff]  ;;  %v14997_v20 = vld [vmem:[#allocation58_spill] sm:$0xff]  ;;  %v14998_v5 = vld [vmem:[#allocation79_spill] sm:$0xff] }
 0x1a5   : > { %14985 = vst [vmem:[#allocation282_spill] sm:$0xff] %v9136_v44  ;;  %v2147_v63 = vadd.f32 %v9021_v3, %v2095_v50  ;;  %v14991_v58 = vrot.slane %v8466_v57, 6  ;;  %v14994_v44 = vld [vmem:[#allocation113_spill] sm:$0xff]  ;;  %v1800_v40 = vmul.f32 %v14997_v20, %v14996_v2  ;;  %v15004_v38 = vld [vmem:[#allocation118_spill] sm:$0xff] }
 0x1a6   : > { %v9154_v60 = vmul.f32 %v14994_v44, %v14993_v36  ;;  %v3389_v34 = vadd.f32 %v14998_v5, %v3337_v7  ;;  %v1635_v29 = vadd.f32 %v1611_v32, %v1583_v30  ;;  %v1031_v14 = vadd.f32 %v1007_v45, %v979_v22  ;;  %v14999_v3 = vld [vmem:[#allocation153_spill] sm:$0xff]  ;;  %v15011_v5 = vld [vmem:[#allocation119_spill] sm:$0xff] }
 0x1a7   : > { %v9150_v25 = vsel %vm3096_vm5, %v14991_v58, %v14990_v0  ;;  %v1111_v50 = vmul.f32 %v14861_v56, %v14999_v3  ;;  %v2284_v57 = vadd.f32 %v9025_v8, %v2147_v63  ;;  %v15000_v19 = vld [vmem:[#allocation165_spill] sm:$0xff]  ;;  %v15010_v63 = vld [vmem:[#allocation167_spill] sm:$0xff]  ;;  %v15013_v3 = vld [vmem:[#allocation122_spill] sm:$0xff] }
 0x1a8   : > { %14992 = vst [vmem:[#allocation141_spill] sm:$0xff] %v9150_v25  ;;  %14995 = vst [vmem:[#allocation283_spill] sm:$0xff] %v9154_v60  ;;  %v9164_v58 = vmul.f32 %v15001_v1, %v15000_v19  ;;  %v15003_v0 = vld [vmem:[#allocation169_spill] sm:$0xff]  ;;  %v1687_v32 = vadd.f32 %v1663_v61, %v1635_v29  ;;  %v1083_v45 = vadd.f32 %v1059_v47, %v1031_v14  ;;  %v15017_v56 = vld [vmem:[#allocation94_spill] sm:$0xff] }
 0x1a9   : > { %v9168_v36 = vmul.f32 %v15004_v38, %v15003_v0  ;;  %v15006_v60 = vld [vmem:[#allocation149_spill] sm:$0xff]  ;;  %v2336_v8 = vadd.f32 %v9029_v18, %v2284_v57  ;;  %v9178_v19 = vmul.f32 %v15011_v5, %v15010_v63  ;;  %v9182_v0 = vmul.f32 %v15013_v3, %v9150_v25  ;;  %v15019_v47 = vld [vmem:[#allocation192_spill] sm:$0xff]  ;;  %v15020_v18 = vld [vmem:[#allocation174_spill] sm:$0xff] }
 0x1aa   : > { %15002 = vst [vmem:[#allocation168_spill] sm:$0xff] %v9164_v58  ;;  %v15007_v27 = vld [vmem:[#allocation61_spill] sm:$0xff]  ;;  %v15016_v58 = vld [vmem:[#allocation64_spill] sm:$0xff]  ;;  %v1824_v61 = vadd.f32 %v1800_v40, %v1687_v32  ;;  %v1135_v14 = vadd.f32 %v1111_v50, %v1083_v45  ;;  %v1956_v29 = vmul.f32 %v14929_v17, %v15020_v18  ;;  %v15021_v63 = vld [vmem:[#allocation175_spill] sm:$0xff] }
 0x1ab   : > { %15005 = vst [vmem:[#allocation79_spill] sm:$0xff] %v9168_v36  ;;  %v1852_v2 = vmul.f32 %v15007_v27, %v15006_v60  ;;  %v15008_v26 = vld [vmem:[#allocation277_spill] sm:$0xff]  ;;  %15014 = vst [vmem:[#allocation284_spill] sm:$0xff] %v9182_v0  ;;  %v15015_v36 = vld [vmem:[#allocation170_spill] sm:$0xff]  ;;  %v2388_v57 = vadd.f32 %v9044_v55, %v2336_v8 }
 0x1ac   : > { %v3441_v7 = vadd.f32 %v15008_v26, %v3389_v34  ;;  %v15009_v30 = vld [vmem:[#allocation217_spill] sm:$0xff]  ;;  %15012 = vst [vmem:[#allocation277_spill] sm:$0xff] %v9178_v19  ;;  %v1904_v60 = vmul.f32 %v15016_v58, %v15015_v36  ;;  %v1215_v34 = vmul.f32 %v14883_v43, %v15019_v47  ;;  %v15023_v0 = vld [vmem:[#allocation178_spill] sm:$0xff]  ;;  %v15025_v50 = vld [vmem:[#allocation19_spill] sm:$0xff] }
 0x1ad   : > { %v1163_v22 = vmul.f32 %v14875_v35, %v15009_v30  ;;  %v15022_v30 = vld [vmem:[#allocation68_spill] sm:$0xff]  ;;  %v15024_v19 = vld [vmem:[#allocation69_spill] sm:$0xff]  ;;  %v1352_v32 = vmul.f32 %v14889_v48, %v15025_v50  ;;  %v2440_v55 = vadd.f32 %v9048_v10, %v2388_v57  ;;  %v15027_v8 = vld [vmem:[#allocation71_spill] sm:$0xff] }
 0x1ae   : > { %v9187_v26 = vadd.f32 %v15017_v56, %v3441_v7  ;;  %v2008_v25 = vmul.f32 %v15022_v30, %v15021_v63  ;;  %v2060_v35 = vmul.f32 %v15024_v19, %v15023_v0  ;;  %v1876_v7 = vadd.f32 %v1852_v2, %v1824_v61  ;;  %v15026_v45 = vld [vmem:[#allocation209_spill] sm:$0xff]  ;;  %v15028_v36 = vld [vmem:[#allocation176_spill] sm:$0xff]  ;;  %v15029_v47 = vld [vmem:[#allocation74_spill] sm:$0xff] }
 0x1af   : > { %v1187_v40 = vadd.f32 %v1163_v22, %v1135_v14  ;;  %v2112_v18 = vmul.f32 %v15027_v8, %v15026_v45  ;;  %v2249_v63 = vmul.f32 %v15029_v47, %v15028_v36  ;;  %v15030_v43 = vld [vmem:[#allocation179_spill] sm:$0xff]  ;;  %v15032_v3 = vld [vmem:[#allocation180_spill] sm:$0xff]  ;;  %v15036_v57 = vld [vmem:[#allocation81_spill] sm:$0xff] }
 0x1b0   : > { %15018 = vst [vmem:[#allocation94_spill] sm:$0xff] %v9187_v26  ;;  %v3546_v56 = vsel %vm3503_vm6, %v9187_v26, 0.0  ;;  %v15031_v30 = vld [vmem:[#allocation75_spill] sm:$0xff]  ;;  %v1928_v19 = vadd.f32 %v1904_v60, %v1876_v7  ;;  %v15033_v26 = vld [vmem:[#allocation78_spill] sm:$0xff]  ;;  %v15034_v61 = vld [vmem:[#allocation220_spill] sm:$0xff] }
 0x1b1   : > { %3547 = vadd.xlane.f32.xlu0 %v3546_v56  ;;  %v2301_v0 = vmul.f32 %v15031_v30, %v15030_v43  ;;  %v2353_v2 = vmul.f32 %v15033_v26, %v15032_v3  ;;  %v1239_v22 = vadd.f32 %v1215_v34, %v1187_v40  ;;  %v1404_v14 = vmul.f32 %v14895_v59, %v15034_v61  ;;  %v15035_v10 = vld [vmem:[#allocation183_spill] sm:$0xff]  ;;  %v15037_v45 = vld [vmem:[#allocation182_spill] sm:$0xff]  ;;  %v15039_v36 = vld [vmem:[#allocation221_spill] sm:$0xff] }
 0x1b2   : > { %v2492_v56 = vadd.f32 %v9052_v11, %v2440_v55  ;;  %v2405_v50 = vmul.f32 %v15036_v57, %v15035_v10  ;;  %v15038_v48 = vld [vmem:[#allocation82_spill] sm:$0xff]  ;;  %v1456_v43 = vmul.f32 %v14902_v39, %v15039_v36  ;;  %v1980_v60 = vadd.f32 %v1956_v29, %v1928_v19  ;;  %v15040_v30 = vld [vmem:[#allocation12_spill] sm:$0xff]  ;;  %v15041_v3 = vld [vmem:[#allocation37_spill] sm:$0xff] }
 0x1b3   : > { %v9218_v8 = vmul.f32 %v15038_v48, %v15037_v45  ;;  %v1376_v7 = vadd.f32 %v1352_v32, %v1239_v22  ;;  %v456_v34 = vmul.f32 %v15041_v3, %v15040_v30  ;;  %v15042_v40 = vld [vmem:[#allocation16_spill] sm:$0xff]  ;;  %v15044_v55 = vld [vmem:[#allocation181_spill] sm:$0xff]  ;;  %v15046_v48 = vld [vmem:[#allocation227_spill] sm:$0xff] }
 0x1b4   : > { %v15043_v26 = vld [vmem:[#allocation40_spill] sm:$0xff]  ;;  %v2544_v11 = vadd.f32 %v9057_v53, %v2492_v56  ;;  %v9229_v10 = vmul.f32 %v14951_v41, %v15044_v55  ;;  %v1508_v19 = vmul.f32 %v14904_v42, %v15046_v48  ;;  %v2032_v29 = vadd.f32 %v2008_v25, %v1980_v60  ;;  %v15048_v56 = vld [vmem:[#allocation17_spill] sm:$0xff]  ;;  %v15049_v36 = vld [vmem:[#allocation114_spill] sm:$0xff] }
 0x1b5   : > { %v515_v61 = vmul.f32 %v15043_v26, %v15042_v40  ;;  %v15045_v59 = vld [vmem:[#allocation216_spill] sm:$0xff]  ;;  %v1428_v32 = vadd.f32 %v1404_v14, %v1376_v7  ;;  %v567_v26 = vmul.f32 %v15049_v36, %v15048_v56  ;;  %v15050_v3 = vld [vmem:[#allocation258_spill] sm:$0xff]  ;;  %v15051_v40 = vld [vmem:[#allocation187_spill] sm:$0xff] }
 0x1b6   : > { %v9233_v45 = vmul.f32 %v14953_v33, %v15045_v59  ;;  %v9240_v22 = vld [vmem:[%s13000_s2] ss:$0 sm:$0xff]  ;;  %v2596_v55 = vadd.f32 %v15050_v3, %v2544_v11  ;;  %v9248_v59 = vmul.f32 %v14956_v62, %v15051_v40  ;;  %v15052_v30 = vld [vmem:[#allocation186_spill] sm:$0xff]  ;;  %v15053_v14 = vld [vmem:[#allocation229_spill] sm:$0xff]  ;;  %v2084_v7 = vadd.f32 %v2060_v35, %v2032_v29 }
 0x1b7   : > { %15047 = vst [vmem:[#allocation19_spill] sm:$0xff] %v9240_v22  ;;  %v487_v53 = vadd.f32 %v9240_v22, %v456_v34  ;;  %v9252_v25 = vmul.f32 %v14639_v31, %v15052_v30  ;;  %v1560_v60 = vmul.f32 %v14907_v4, %v15053_v14  ;;  %v1480_v48 = vadd.f32 %v1456_v43, %v1428_v32  ;;  %v15054_v34 = vld [vmem:[#allocation18_spill] sm:$0xff]  ;;  %v15055_v22 = vld [vmem:[#allocation116_spill] sm:$0xff]  ;;  %v15057_v3 = vld [vmem:[#allocation189_spill] sm:$0xff] }
 0x1b8   : > { %v619_v39 = vmul.f32 %v15055_v22, %v15054_v34  ;;  %v15056_v36 = vld [vmem:[#allocation158_spill] sm:$0xff]  ;;  %v9261_v11 = vmul.f32 %v14856_v49, %v15057_v3  ;;  %v15058_v40 = vld [vmem:[#allocation191_spill] sm:$0xff]  ;;  %v2136_v14 = vadd.f32 %v2112_v18, %v2084_v7  ;;  %v15066_v7 = vld [vmem:[#allocation197_spill] sm:$0xff] }
 0x1b9   : > { %v539_v42 = vadd.f32 %v515_v61, %v487_v53  ;;  %v2733_v56 = vadd.f32 %v15056_v36, %v2596_v55  ;;  %v9265_v62 = vmul.f32 %v14859_v23, %v15058_v40  ;;  %v15059_v30 = vld [vmem:[#allocation230_spill] sm:$0xff]  ;;  %v1532_v35 = vadd.f32 %v1508_v19, %v1480_v48  ;;  %v15060_v61 = vld [vmem:[#allocation120_spill] sm:$0xff] }
 0x1ba   : > { %v1612_v31 = vmul.f32 %v14909_v9, %v15059_v30  ;;  %v671_v29 = vmul.f32 %v15060_v61, %v14809_v24  ;;  %v15061_v36 = vld [vmem:[#allocation190_spill] sm:$0xff]  ;;  %v15062_v53 = vld [vmem:[#allocation188_spill] sm:$0xff]  ;;  %v2273_v30 = vadd.f32 %v2249_v63, %v2136_v14  ;;  %v9291_v61 = vmul.f32 %v14981_v28, %v15066_v7  ;;  %v15072_v7 = vld [vmem:[#allocation239_spill] sm:$0xff] }
 0x1bb   : > { %v591_v43 = vadd.f32 %v567_v26, %v539_v42  ;;  %v2785_v32 = vadd.f32 %v9077_v15, %v2733_v56  ;;  %v9274_v55 = vmul.f32 %v14757_v46, %v15061_v36  ;;  %v9278_v3 = vmul.f32 %v14526_v12, %v15062_v53  ;;  %v15063_v40 = vld [vmem:[#allocation244_spill] sm:$0xff]  ;;  %v15064_v42 = vld [vmem:[#allocation121_spill] sm:$0xff]  ;;  %v15065_v15 = vld [vmem:[#allocation222_spill] sm:$0xff] }
 0x1bc   : > { %v1664_v22 = vmul.f32 %v14913_v52, %v15063_v40  ;;  %v1584_v18 = vadd.f32 %v1560_v60, %v1532_v35  ;;  %v723_v26 = vmul.f32 %v15064_v42, %v14818_v37  ;;  %v9287_v56 = vmul.f32 %v14528_v21, %v15065_v15  ;;  %v15067_v53 = vld [vmem:[#allocation234_spill] sm:$0xff]  ;;  %v15069_v35 = vld [vmem:[#allocation279_spill] sm:$0xff]  ;;  %v15071_v42 = vld [vmem:[#allocation196_spill] sm:$0xff] }
 0x1bd   : > { %v643_v48 = vadd.f32 %v619_v39, %v591_v43  ;;  %v2837_v19 = vadd.f32 %v9097_v16, %v2785_v32  ;;  %v1801_v36 = vmul.f32 %v14997_v20, %v15067_v53  ;;  %v2325_v40 = vadd.f32 %v2301_v0, %v2273_v30  ;;  %v15068_v39 = vld [vmem:[#allocation27_spill] sm:$0xff]  ;;  %v15073_v30 = vld [vmem:[#allocation152_spill] sm:$0xff] }
 0x1be   : > { %v1636_v63 = vadd.f32 %v1612_v31, %v1584_v18  ;;  %v775_v60 = vmul.f32 %v8816_v51, %v15068_v39  ;;  %v15070_v16 = vld [vmem:[#allocation199_spill] sm:$0xff]  ;;  %v9304_v15 = vmul.f32 %v14994_v44, %v15071_v42  ;;  %v1853_v37 = vmul.f32 %v15007_v27, %v15072_v7 }
 0x1bf   : > { %v695_v14 = vadd.f32 %v671_v29, %v643_v48  ;;  %v2889_v43 = vadd.f32 %v15069_v35, %v2837_v19  ;;  %v9300_v32 = vmul.f32 %v14984_v6, %v15070_v16  ;;  %v2377_v53 = vadd.f32 %v2353_v2, %v2325_v40  ;;  %v15074_v29 = vld [vmem:[#allocation30_spill] sm:$0xff]  ;;  %v15075_v19 = vld [vmem:[#allocation201_spill] sm:$0xff]  ;;  %v15078_v42 = vld [vmem:[#allocation243_spill] sm:$0xff] }
 0x1c0   : > { %v1688_v0 = vadd.f32 %v1664_v22, %v1636_v63  ;;  %v914_v18 = vmul.f32 %v15074_v29, %v15073_v30  ;;  %v9313_v35 = vmul.f32 %v15001_v1, %v15075_v19  ;;  %v15076_v16 = vld [vmem:[#allocation198_spill] sm:$0xff]  ;;  %v1905_v20 = vmul.f32 %v15016_v58, %v15078_v42  ;;  %v15079_v40 = vld [vmem:[#allocation155_spill] sm:$0xff]  ;;  %v15080_v63 = vld [vmem:[#allocation280_spill] sm:$0xff] }
 0x1c1   : > { %v747_v31 = vadd.f32 %v723_v26, %v695_v14  ;;  %v2941_v48 = vadd.f32 %v9108_v54, %v2889_v43  ;;  %v9317_v39 = vmul.f32 %v15004_v38, %v15076_v16  ;;  %v2429_v7 = vadd.f32 %v2405_v50, %v2377_v53  ;;  %v15081_v54 = vld [vmem:[#allocation202_spill] sm:$0xff]  ;;  %v15084_v16 = vld [vmem:[#allocation139_spill] sm:$0xff]  ;;  %v15087_v53 = vld [vmem:[#allocation33_spill] sm:$0xff] }
 0x1c2   : > { %v1825_v2 = vadd.f32 %v1801_v36, %v1688_v0  ;;  %v966_v26 = vmul.f32 %v14842_v13, %v15079_v40  ;;  %v9326_v43 = vmul.f32 %v15011_v5, %v15081_v54  ;;  %v15083_v19 = vld [vmem:[#allocation246_spill] sm:$0xff]  ;;  %v15092_v54 = vld [vmem:[#allocation245_spill] sm:$0xff] }
 0x1c3   : > { %15077 = vst [vmem:[#allocation176_spill] sm:$0xff] %v9317_v39  ;;  %v799_v22 = vadd.f32 %v775_v60, %v747_v31  ;;  %v2993_v14 = vadd.f32 %v15080_v63, %v2941_v48  ;;  %v1957_v30 = vmul.f32 %v14929_v17, %v15083_v19  ;;  %v9331_v39 = vunpack.c.h.bf16 %v15084_v16  ;;  %v15086_v60 = vld [vmem:[#allocation194_spill] sm:$0xff]  ;;  %v15088_v31 = vld [vmem:[#allocation281_spill] sm:$0xff]  ;;  %v15089_v48 = vld [vmem:[#allocation232_spill] sm:$0xff] }
 0x1c4   : > { %15082 = vst [vmem:[#allocation258_spill] sm:$0xff] %v9326_v43  ;;  %v2481_v42 = vadd.f32 %v9218_v8, %v2429_v7  ;;  %v1877_v50 = vadd.f32 %v1853_v37, %v1825_v2  ;;  %v1018_v0 = vmul.f32 %v15087_v53, %v15086_v60  ;;  %v15090_v63 = vld [vmem:[#allocation122_spill] sm:$0xff]  ;;  %v15093_v43 = vld [vmem:[#allocation68_spill] sm:$0xff]  ;;  %v15094_v37 = vld [vmem:[#allocation195_spill] sm:$0xff] }
 0x1c5   : > { %15085 = vst [vmem:[#allocation187_spill] sm:$0xff] %v9331_v39  ;;  %v938_v36 = vadd.f32 %v914_v18, %v799_v22  ;;  %v3045_v40 = vadd.f32 %v15088_v31, %v2993_v14  ;;  %v9339_v13 = vmul.f32 %v15090_v63, %v15089_v48  ;;  %v2009_v29 = vmul.f32 %v15093_v43, %v15092_v54  ;;  %v15095_v7 = vld [vmem:[#allocation36_spill] sm:$0xff]  ;;  %v15096_v2 = vld [vmem:[#allocation177_spill] sm:$0xff]  ;;  %v15099_v53 = vld [vmem:[#allocation262_spill] sm:$0xff] }
 0x1c6   : > { %v2533_v16 = vadd.f32 %v9229_v10, %v2481_v42  ;;  %v1929_v17 = vadd.f32 %v1905_v20, %v1877_v50  ;;  %v1070_v18 = vmul.f32 %v15095_v7, %v15094_v37  ;;  %v15097_v60 = vld [vmem:[#allocation77_spill] sm:$0xff]  ;;  %v15100_v48 = vld [vmem:[#allocation71_spill] sm:$0xff]  ;;  %v15102_v20 = vld [vmem:[#allocation200_spill] sm:$0xff] }
 0x1c7   : > { %15091 = vst [vmem:[#allocation158_spill] sm:$0xff] %v9339_v13  ;;  %v990_v8 = vadd.f32 %v966_v26, %v938_v36  ;;  %v3182_v22 = vadd.f32 %v15096_v2, %v3045_v40  ;;  %v15098_v14 = vld [vmem:[#allocation69_spill] sm:$0xff]  ;;  %v2113_v13 = vmul.f32 %v15100_v48, %v15099_v53  ;;  %v15103_v42 = vld [vmem:[#allocation39_spill] sm:$0xff]  ;;  %v15104_v50 = vld [vmem:[#allocation282_spill] sm:$0xff]  ;;  %v15109_v53 = vrot.slane %v9331_v39, 1 }
 0x1c8   : > { %v2061_v31 = vmul.f32 %v15098_v14, %v15097_v60  ;;  %v15101_v58 = vld [vmem:[#allocation249_spill] sm:$0xff]  ;;  %v2585_v19 = vadd.f32 %v9233_v45, %v2533_v16  ;;  %v1981_v43 = vadd.f32 %v1957_v30, %v1929_v17  ;;  %v1122_v26 = vmul.f32 %v15103_v42, %v15102_v20  ;;  %v15105_v37 = vld [vmem:[#allocation250_spill] sm:$0xff]  ;;  %v15106_v40 = vld [vmem:[#allocation75_spill] sm:$0xff] }
 0x1c9   : > { %v2250_v54 = vmul.f32 %v15029_v47, %v15101_v58  ;;  %v1042_v10 = vadd.f32 %v1018_v0, %v990_v8  ;;  %v3234_v36 = vadd.f32 %v15104_v50, %v3182_v22  ;;  %v2302_v2 = vmul.f32 %v15106_v40, %v15105_v37  ;;  %v15107_v7 = vld [vmem:[#allocation248_spill] sm:$0xff]  ;;  %v15108_v60 = vld [vmem:[#allocation78_spill] sm:$0xff]  ;;  %v15113_v16 = vld [vmem:[#allocation203_spill] sm:$0xff] }
 0x1ca   : > { %v2354_v14 = vmul.f32 %v15108_v60, %v15107_v7  ;;  %v15110_v48 = vrot.slane %v8816_v51, 1  ;;  %v2722_v17 = vadd.f32 %v9248_v59, %v2585_v19  ;;  %v2033_v30 = vadd.f32 %v2009_v29, %v1981_v43  ;;  %v15114_v8 = vld [vmem:[#allocation41_spill] sm:$0xff]  ;;  %v15115_v50 = vld [vmem:[#allocation283_spill] sm:$0xff]  ;;  %v15118_v40 = vld [vmem:[#allocation82_spill] sm:$0xff] }
 0x1cb   : > { %v1094_v0 = vadd.f32 %v1070_v18, %v1042_v10  ;;  %v1174_v22 = vmul.f32 %v15114_v8, %v15113_v16  ;;  %v3286_v37 = vadd.f32 %v15115_v50, %v3234_v36  ;;  %v15116_v20 = vld [vmem:[#allocation251_spill] sm:$0xff]  ;;  %v15121_v43 = vld [vmem:[#allocation168_spill] sm:$0xff]  ;;  %v15670_v58 = vld [vmem:[#allocation237_spill] sm:$0xff] }
 0x1cc   : > { %v9368_v45 = vsel %vm851_vm0, %v15110_v48, %v15109_v53  ;;  %v2406_v7 = vmul.f32 %v15036_v57, %v15116_v20  ;;  %v15117_v60 = vld [vmem:[#allocation35_spill] sm:$0xff]  ;;  %v2774_v53 = vadd.f32 %v9252_v25, %v2722_v17  ;;  %v2085_v48 = vadd.f32 %v2061_v31, %v2033_v30  ;;  %v15122_v10 = vld [vmem:[#allocation264_spill] sm:$0xff]  ;;  %v15124_v20 = vld [vmem:[#allocation90_spill] sm:$0xff] }
 0x1cd   : > { %15112 = vst [vmem:[#allocation197_spill] sm:$0xff] %v9368_v45  ;;  %v2458_v42 = vmul.f32 %v15118_v40, %v15117_v60  ;;  %v15119_v47 = vld [vmem:[#allocation247_spill] sm:$0xff]  ;;  %v1146_v59 = vadd.f32 %v1122_v26, %v1094_v0  ;;  %v3338_v18 = vadd.f32 %v15121_v43, %v3286_v37  ;;  %v2562_v36 = vmul.f32 %v14953_v33, %v15122_v10  ;;  %v15123_v50 = vld [vmem:[#allocation252_spill] sm:$0xff]  ;;  %v15128_v30 = vld [vmem:[#allocation45_spill] sm:$0xff] }
 0x1ce   : > { %v2510_v27 = vmul.f32 %v14951_v41, %v15119_v47  ;;  %v15120_v29 = vld [vmem:[#allocation43_spill] sm:$0xff]  ;;  %v9388_v16 = vmul.f32 %v15124_v20, %v15123_v50  ;;  %v15125_v60 = vld [vmem:[#allocation124_spill] sm:$0xff]  ;;  %v2826_v25 = vadd.f32 %v9261_v11, %v2774_v53  ;;  %v2137_v31 = vadd.f32 %v2113_v13, %v2085_v48  ;;  %v15131_v47 = vld [vmem:[#allocation254_spill] sm:$0xff] }
 0x1cf   : > { %v1226_v19 = vmul.f32 %v15120_v29, %v9368_v45  ;;  %v15126_v40 = vld [vmem:[#allocation95_spill] sm:$0xff]  ;;  %v1198_v26 = vadd.f32 %v1174_v22, %v1146_v59  ;;  %v15127_v17 = vld [vmem:[#allocation164_spill] sm:$0xff]  ;;  %v9404_v50 = vmul.f32 %v14859_v23, %v15131_v47  ;;  %v15132_v20 = vld [vmem:[#allocation253_spill] sm:$0xff] }
 0x1d0   : > { %v9392_v57 = vmul.f32 %v15126_v40, %v15125_v60  ;;  %v1363_v0 = vmul.f32 %v15128_v30, %v15127_v17  ;;  %v15129_v45 = vld [vmem:[#allocation79_spill] sm:$0xff]  ;;  %v9408_v60 = vmul.f32 %v14757_v46, %v15132_v20  ;;  %v2878_v13 = vadd.f32 %v9265_v62, %v2826_v25  ;;  %v15133_v53 = vld [vmem:[#allocation166_spill] sm:$0xff]  ;;  %v15136_v17 = vld [vmem:[#allocation224_spill] sm:$0xff] }
 0x1d1   : > { %v3390_v37 = vadd.f32 %v15129_v45, %v3338_v18  ;;  %v15130_v43 = vld [vmem:[#allocation255_spill] sm:$0xff]  ;;  %v2274_v11 = vadd.f32 %v2250_v54, %v2137_v31  ;;  %v1250_v22 = vadd.f32 %v1226_v19, %v1198_v26  ;;  %v15135_v45 = vld [vmem:[#allocation277_spill] sm:$0xff]  ;;  %v15138_v23 = vld [vmem:[#allocation48_spill] sm:$0xff] }
 0x1d2   : > { %v9400_v10 = vmul.f32 %v14856_v49, %v15130_v43  ;;  %v15134_v48 = vld [vmem:[#allocation47_spill] sm:$0xff]  ;;  %v9416_v43 = vmul.f32 %v14526_v12, %v15136_v17  ;;  %v15137_v49 = vld [vmem:[#allocation269_spill] sm:$0xff]  ;;  %v9424_v20 = vmul.f32 %v14981_v28, %v15138_v23  ;;  %v2930_v62 = vadd.f32 %v9274_v55, %v2878_v13  ;;  %v15139_v25 = vld [vmem:[#allocation204_spill] sm:$0xff] }
 0x1d3   : > { %v1415_v59 = vmul.f32 %v15134_v48, %v15133_v53  ;;  %v3442_v18 = vadd.f32 %v15135_v45, %v3390_v37  ;;  %v9420_v47 = vmul.f32 %v14528_v21, %v15137_v49  ;;  %v2326_v54 = vadd.f32 %v2302_v2, %v2274_v11  ;;  %v15140_v31 = vld [vmem:[#allocation49_spill] sm:$0xff]  ;;  %v15141_v37 = vld [vmem:[#allocation284_spill] sm:$0xff]  ;;  %v15146_v46 = vld [vmem:[#allocation102_spill] sm:$0xff] }
 0x1d4   : > { %v1387_v19 = vadd.f32 %v1363_v0, %v1250_v22  ;;  %v1467_v26 = vmul.f32 %v15140_v31, %v15139_v25  ;;  %v15143_v17 = vld [vmem:[#allocation12_spill] sm:$0xff]  ;;  %v2982_v23 = vadd.f32 %v9278_v3, %v2930_v62  ;;  %v15147_v2 = vld [vmem:[#allocation205_spill] sm:$0xff]  ;;  %v15148_v0 = vld [vmem:[#allocation51_spill] sm:$0xff] }
 0x1d5   : > { %v9430_v45 = vadd.f32 %v15141_v37, %v3442_v18  ;;  %v15144_v12 = vld [vmem:[#allocation32_spill] sm:$0xff]  ;;  %v2378_v28 = vadd.f32 %v2354_v14, %v2326_v54  ;;  %v1519_v13 = vmul.f32 %v15148_v0, %v15147_v2  ;;  %v15149_v22 = vld [vmem:[#allocation233_spill] sm:$0xff]  ;;  %v15150_v37 = vld [vmem:[#allocation19_spill] sm:$0xff] }
 0x1d6   : > { %v457_v49 = vmul.f32 %v15144_v12, %v15143_v17  ;;  %v15145_v21 = vld [vmem:[#allocation16_spill] sm:$0xff]  ;;  %v1439_v55 = vadd.f32 %v1415_v59, %v1387_v19  ;;  %v9444_v18 = vmul.f32 %v14984_v6, %v15149_v22  ;;  %v15151_v12 = vld [vmem:[#allocation17_spill] sm:$0xff]  ;;  %v3034_v3 = vadd.f32 %v9287_v56, %v2982_v23  ;;  %v15153_v62 = vld [vmem:[#allocation207_spill] sm:$0xff] }
 0x1d7   : > { %15142 = vst [vmem:[#allocation234_spill] sm:$0xff] %v9430_v45  ;;  %v516_v48 = vmul.f32 %v15146_v46, %v15145_v21  ;;  %v3549_v11 = vsel %vm3503_vm6, %v9430_v45, 0.0  ;;  %v15152_v25 = vld [vmem:[#allocation109_spill] sm:$0xff]  ;;  %v2430_v14 = vadd.f32 %v2406_v7, %v2378_v28  ;;  %v1571_v54 = vmul.f32 %v14907_v4, %v15153_v62  ;;  %v15154_v19 = vld [vmem:[#allocation238_spill] sm:$0xff] }
 0x1d8   : > { %v488_v53 = vadd.f32 %v15150_v37, %v457_v49  ;;  %v568_v31 = vmul.f32 %v15152_v25, %v15151_v12  ;;  %3550 = vadd.xlane.f32.xlu1 %v3549_v11  ;;  %v1491_v59 = vadd.f32 %v1467_v26, %v1439_v55  ;;  %v9454_v45 = vmul.f32 %v14994_v44, %v15154_v19  ;;  %v15158_v56 = vld [vmem:[#allocation142_spill] sm:$0xff]  ;;  %v15160_v25 = vld [vmem:[#allocation231_spill] sm:$0xff] }
 0x1d9   : > { %v15155_v22 = vrot.slane %v9331_v39, 2  ;;  %v15156_v46 = vrot.slane %v8816_v51, 2  ;;  %v620_v28 = vmul.f32 %v15158_v56, %v15054_v34  ;;  %v3171_v7 = vadd.f32 %v9291_v61, %v3034_v3  ;;  %v15159_v55 = vld [vmem:[#allocation206_spill] sm:$0xff]  ;;  %v15163_v3 = vld [vmem:[#allocation228_spill] sm:$0xff]  ;;  %v15164_v56 = vld [vmem:[#allocation23_spill] sm:$0xff] }
 0x1da   : > { %v540_v11 = vadd.f32 %v516_v48, %v488_v53  ;;  %v2482_v26 = vadd.f32 %v2458_v42, %v2430_v14  ;;  %v1543_v23 = vadd.f32 %v1519_v13, %v1491_v59  ;;  %v1623_v19 = vmul.f32 %v14909_v9, %v15159_v55  ;;  %v15161_v2 = vld [vmem:[#allocation50_spill] sm:$0xff]  ;;  %v15162_v53 = vld [vmem:[#allocation117_spill] sm:$0xff] }
 0x1db   : > { %v9462_v49 = vsel %vm1300_vm1, %v15156_v46, %v15155_v22  ;;  %v9471_v62 = vmul.f32 %v15001_v1, %v15160_v25  ;;  %v9475_v44 = vmul.f32 %v15004_v38, %v15161_v2  ;;  %v672_v48 = vmul.f32 %v15162_v53, %v14809_v24  ;;  %v15165_v55 = vld [vmem:[#allocation193_spill] sm:$0xff]  ;;  %v9515_v2 = vld [vmem:[%s5799_s15 + $0x90] sm:$0xff]  }
 0x1dc   : > { %15157 = vst [vmem:[#allocation279_spill] sm:$0xff] %v9462_v49  ;;  %v592_v46 = vadd.f32 %v568_v31, %v540_v11  ;;  %v3223_v22 = vadd.f32 %v9300_v32, %v3171_v7  ;;  %v2534_v61 = vadd.f32 %v2510_v27, %v2482_v26  ;;  %v1595_v42 = vadd.f32 %v1571_v54, %v1543_v23  ;;  %v15166_v27 = vld [vmem:[#allocation175_spill] sm:$0xff]  ;;  %v15167_v54 = vld [vmem:[#allocation58_spill] sm:$0xff]  ;;  %v15168_v26 = vld [vmem:[#allocation276_spill] sm:$0xff] }
 0x1dd   : > { %v1675_v13 = vmul.f32 %v14913_v52, %v9462_v49  ;;  %v9484_v14 = vmul.f32 %v15011_v5, %v15163_v3  ;;  %v724_v31 = vmul.f32 %v15165_v55, %v15164_v56  ;;  %v1812_v7 = vmul.f32 %v15167_v54, %v15166_v27  ;;  %v15169_v49 = vld [vmem:[#allocation28_spill] sm:$0xff]  ;;  %15178 = vst [vmem:[#allocation139_spill] sm:$0xff] %v9515_v2  ;;  %v15183_v38 = vld [vmem:[#allocation66_spill] sm:$0xff] }
 0x1de   : > { %v644_v25 = vadd.f32 %v620_v28, %v592_v46  ;;  %v3275_v11 = vadd.f32 %v9304_v15, %v3223_v22  ;;  %v2586_v53 = vadd.f32 %v2562_v36, %v2534_v61  ;;  %v1647_v32 = vadd.f32 %v1623_v19, %v1595_v42  ;;  %v15170_v28 = vld [vmem:[#allocation27_spill] sm:$0xff]  ;;  %v15171_v19 = vld [vmem:[#allocation178_spill] sm:$0xff]  ;;  %v15172_v22 = vld [vmem:[#allocation61_spill] sm:$0xff] }
 0x1df   : > { %v9494_v23 = vmul.f32 %v15090_v63, %v15168_v26  ;;  %v458_v3 = vmul.f32 %v15169_v49, %v15143_v17  ;;  %v776_v46 = vmul.f32 %v9331_v39, %v15170_v28  ;;  %v1864_v61 = vmul.f32 %v15172_v22, %v15171_v19  ;;  %v15182_v5 = vld [vmem:[#allocation208_spill] sm:$0xff]  ;;  %v15186_v49 = vld [vmem:[#allocation31_spill] sm:$0xff] }
 0x1e0   : > { %v696_v59 = vadd.f32 %v672_v48, %v644_v25  ;;  %v3327_v55 = vadd.f32 %v9313_v35, %v3275_v11  ;;  %v2723_v15 = vadd.f32 %v9388_v16, %v2586_v53  ;;  %v1699_v36 = vadd.f32 %v1675_v13, %v1647_v32  ;;  %v15176_v25 = vld [vmem:[#allocation209_spill] sm:$0xff]  ;;  %v15177_v48 = vld [vmem:[#allocation64_spill] sm:$0xff]  ;;  %v15180_v16 = vld [vmem:[#allocation30_spill] sm:$0xff] }
 0x1e1   : > { %v15173_v42 = vrot.slane %v9331_v39, 3  ;;  %v15174_v27 = vrot.slane %v8816_v51, 3  ;;  %v1916_v17 = vmul.f32 %v15177_v48, %v15176_v25  ;;  %v15179_v11 = vld [vmem:[#allocation153_spill] sm:$0xff]  ;;  %v15181_v13 = vld [vmem:[#allocation176_spill] sm:$0xff]  ;;  %v1968_v22 = vmul.f32 %v15183_v38, %v15182_v5 }
 0x1e2   : > { %v748_v35 = vadd.f32 %v724_v31, %v696_v59  ;;  %v915_v53 = vmul.f32 %v15180_v16, %v15179_v11  ;;  %v3379_v32 = vadd.f32 %v15181_v13, %v3327_v55  ;;  %v2775_v19 = vadd.f32 %v9392_v57, %v2723_v15  ;;  %v15185_v48 = vld [vmem:[#allocation217_spill] sm:$0xff]  ;;  %v15187_v31 = vld [vmem:[#allocation258_spill] sm:$0xff]  ;;  %v15190_v15 = vld [vmem:[#allocation68_spill] sm:$0xff] }
 0x1e3   : > { %v9510_v26 = vsel %vm1749_vm2, %v15174_v27, %v15173_v42  ;;  %v1836_v63 = vadd.f32 %v1812_v7, %v1699_v36  ;;  %v489_v27 = vadd.f32 %v15150_v37, %v458_v3  ;;  %v15184_v42 = vld [vmem:[#allocation103_spill] sm:$0xff]  ;;  %v967_v59 = vmul.f32 %v15186_v49, %v15185_v48  ;;  %v15189_v7 = vld [vmem:[#allocation210_spill] sm:$0xff]  ;;  %v15192_v3 = vld [vmem:[#allocation69_spill] sm:$0xff] }
 0x1e4   : > { %15175 = vst [vmem:[#allocation280_spill] sm:$0xff] %v9510_v26  ;;  %v517_v1 = vmul.f32 %v15184_v42, %v15145_v21  ;;  %v800_v25 = vadd.f32 %v776_v46, %v748_v35  ;;  %v3431_v54 = vadd.f32 %v15187_v31, %v3379_v32  ;;  %v2827_v11 = vadd.f32 %v9400_v10, %v2775_v19  ;;  %v15191_v13 = vld [vmem:[#allocation211_spill] sm:$0xff]  ;;  %v15193_v42 = vld [vmem:[#allocation192_spill] sm:$0xff]  ;;  %v15194_v46 = vld [vmem:[#allocation33_spill] sm:$0xff] }
 0x1e5   : > { %v1888_v55 = vadd.f32 %v1864_v61, %v1836_v63  ;;  %v9531_v57 = vunpack.c.l.bf16 %v9515_v2  ;;  %v2020_v36 = vmul.f32 %v15190_v15, %v15189_v7  ;;  %v2072_v5 = vmul.f32 %v15192_v3, %v15191_v13  ;;  %v15195_v16 = vld [vmem:[#allocation158_spill] sm:$0xff]  ;;  %v15197_v61 = vld [vmem:[#allocation104_spill] sm:$0xff]  ;;  %v15198_v2 = vld [vmem:[#allocation241_spill] sm:$0xff] }
 0x1e6   : > { %v939_v38 = vadd.f32 %v915_v53, %v800_v25  ;;  %v1019_v35 = vmul.f32 %v15194_v46, %v15193_v42  ;;  %v9540_v48 = vadd.f32 %v15195_v16, %v3431_v54  ;;  %v2879_v32 = vadd.f32 %v9404_v50, %v2827_v11  ;;  %v15199_v15 = vld [vmem:[#allocation36_spill] sm:$0xff]  ;;  %v15202_v11 = vld [vmem:[#allocation74_spill] sm:$0xff] }
 0x1e7   : > { %15188 = vst [vmem:[#allocation281_spill] sm:$0xff] %v9531_v57  ;;  %v1940_v10 = vadd.f32 %v1916_v17, %v1888_v55  ;;  %v541_v19 = vadd.f32 %v517_v1, %v489_v27  ;;  %v569_v31 = vmul.f32 %v15197_v61, %v15151_v12  ;;  %v1071_v13 = vmul.f32 %v15199_v15, %v15198_v2  ;;  %v15200_v17 = vld [vmem:[#allocation71_spill] sm:$0xff]  ;;  %v15201_v1 = vld [vmem:[#allocation182_spill] sm:$0xff] }
 0x1e8   : > { %15196 = vst [vmem:[#allocation177_spill] sm:$0xff] %v9540_v48  ;;  %v991_v7 = vadd.f32 %v967_v59, %v939_v38  ;;  %v3516_v25 = vsel %vm3503_vm6, %v9540_v48, 0.0  ;;  %v2931_v53 = vadd.f32 %v9408_v60, %v2879_v32  ;;  %v2124_v50 = vmul.f32 %v15200_v17, %v9510_v26  ;;  %v15203_v38 = vld [vmem:[#allocation65_spill] sm:$0xff]  ;;  %v15204_v59 = vld [vmem:[#allocation39_spill] sm:$0xff] }
 0x1e9   : > { %v1992_v54 = vadd.f32 %v1968_v22, %v1940_v10  ;;  %3517 = vadd.xlane.f32.xlu0 %v3516_v25  ;;  %v2261_v27 = vmul.f32 %v15202_v11, %v15201_v1  ;;  %v1123_v63 = vmul.f32 %v15204_v59, %v15203_v38  ;;  %v15205_v48 = vld [vmem:[#allocation181_spill] sm:$0xff]  ;;  %v15206_v15 = vld [vmem:[#allocation75_spill] sm:$0xff]  ;;  %v15207_v22 = vrot.slane %v9531_v57, 1  ;;  %v15211_v38 = vld [vmem:[#allocation62_spill] sm:$0xff] }
 0x1ea   : > { %v1043_v55 = vadd.f32 %v1019_v35, %v991_v7  ;;  %v2983_v2 = vadd.f32 %v9416_v43, %v2931_v53  ;;  %v2313_v60 = vmul.f32 %v15206_v15, %v15205_v48  ;;  %v15208_v32 = vrot.slane %v9331_v39, 1  ;;  %v15210_v7 = vld [vmem:[#allocation105_spill] sm:$0xff]  ;;  %v15220_v1 = vld [vmem:[#allocation82_spill] sm:$0xff] }
 0x1eb   : > { %v2044_v42 = vadd.f32 %v2020_v36, %v1992_v54  ;;  %v593_v25 = vadd.f32 %v569_v31, %v541_v19  ;;  %v621_v35 = vmul.f32 %v15210_v7, %v15054_v34  ;;  %v1175_v43 = vmul.f32 %v15114_v8, %v15211_v38  ;;  %v15216_v19 = vld [vmem:[#allocation78_spill] sm:$0xff]  ;;  %v15218_v7 = vld [vmem:[#allocation81_spill] sm:$0xff] }
 0x1ec   : > { %v9567_v10 = vsel %vm851_vm0, %v15208_v32, %v15207_v22  ;;  %v1095_v16 = vadd.f32 %v1071_v13, %v1043_v55  ;;  %v3035_v36 = vadd.f32 %v9420_v47, %v2983_v2  ;;  %v15212_v54 = vrot.slane %v9331_v39, 4  ;;  %v15215_v22 = vld [vmem:[#allocation216_spill] sm:$0xff]  ;;  %v15217_v32 = vld [vmem:[#allocation215_spill] sm:$0xff] }
 0x1ed   : > { %15209 = vst [vmem:[#allocation249_spill] sm:$0xff] %v9567_v10  ;;  %v2096_v53 = vadd.f32 %v2072_v5, %v2044_v42  ;;  %v15213_v26 = vrot.slane %v8816_v51, 4  ;;  %v2365_v31 = vmul.f32 %v15216_v19, %v15215_v22  ;;  %v2417_v13 = vmul.f32 %v15218_v7, %v15217_v32  ;;  %v15219_v42 = vld [vmem:[#allocation218_spill] sm:$0xff]  ;;  %v15223_v7 = vld [vmem:[#allocation229_spill] sm:$0xff] }
 0x1ee   : > { %v1147_v38 = vadd.f32 %v1123_v63, %v1095_v16  ;;  %v1227_v5 = vmul.f32 %v15120_v29, %v9567_v10  ;;  %v3172_v47 = vadd.f32 %v9424_v20, %v3035_v36  ;;  %v2469_v8 = vmul.f32 %v15220_v1, %v15219_v42  ;;  %v15222_v22 = vld [vmem:[#allocation110_spill] sm:$0xff] }
 0x1ef   : > { %v9580_v48 = vsel %vm2198_vm3, %v15213_v26, %v15212_v54  ;;  %v2148_v2 = vadd.f32 %v2124_v50, %v2096_v53  ;;  %v15221_v26 = vld [vmem:[#allocation14_spill] sm:$0xff]  ;;  %v645_v59 = vadd.f32 %v621_v35, %v593_v25  ;;  %v673_v46 = vmul.f32 %v15222_v22, %v14809_v24 }
 0x1f0   : > { %15214 = vst [vmem:[#allocation282_spill] sm:$0xff] %v9580_v48  ;;  %v2521_v54 = vmul.f32 %v14951_v41, %v15221_v26  ;;  %v1199_v32 = vadd.f32 %v1175_v43, %v1147_v38  ;;  %v1364_v63 = vmul.f32 %v15128_v30, %v15223_v7  ;;  %v3224_v16 = vadd.f32 %v9444_v18, %v3172_v47  ;;  %v15224_v50 = vld [vmem:[#allocation190_spill] sm:$0xff]  ;;  %v15229_v38 = vld [vmem:[#allocation188_spill] sm:$0xff]  ;;  %v15235_v30 = vld [vmem:[#allocation97_spill] sm:$0xff] }
 0x1f1   : > { %v2285_v55 = vadd.f32 %v2261_v27, %v2148_v2  ;;  %v2573_v20 = vmul.f32 %v14953_v33, %v9580_v48  ;;  %v15225_v36 = vld [vmem:[#allocation90_spill] sm:$0xff]  ;;  %v15226_v10 = vrot.slane %v9331_v39, 5  ;;  %v15227_v25 = vrot.slane %v8816_v51, 5  ;;  %v15231_v27 = vld [vmem:[#allocation47_spill] sm:$0xff]  ;;  %v15233_v26 = vld [vmem:[#allocation96_spill] sm:$0xff] }
 0x1f2   : > { %v2710_v53 = vmul.f32 %v15225_v36, %v15224_v50  ;;  %v2762_v43 = vmul.f32 %v15126_v40, %v15229_v38  ;;  %v1251_v22 = vadd.f32 %v1227_v5, %v1199_v32  ;;  %v15230_v18 = vld [vmem:[#allocation230_spill] sm:$0xff]  ;;  %v3276_v2 = vadd.f32 %v9454_v45, %v3224_v16  ;;  %v15234_v50 = vld [vmem:[#allocation223_spill] sm:$0xff]  ;;  %v15237_v32 = vld [vmem:[#allocation244_spill] sm:$0xff] }
 0x1f3   : > { %v9609_v35 = vsel %vm2647_vm4, %v15227_v25, %v15226_v10  ;;  %v1416_v47 = vmul.f32 %v15231_v27, %v15230_v18  ;;  %v2337_v7 = vadd.f32 %v2313_v60, %v2285_v55  ;;  %v15232_v48 = vld [vmem:[#allocation222_spill] sm:$0xff]  ;;  %v9622_v29 = vmul.f32 %v15235_v30, %v15234_v50  ;;  %v15236_v25 = vld [vmem:[#allocation240_spill] sm:$0xff]  ;;  %v15238_v5 = vld [vmem:[#allocation49_spill] sm:$0xff] }
 0x1f4   : > { %15228 = vst [vmem:[#allocation283_spill] sm:$0xff] %v9609_v35  ;;  %v9618_v42 = vmul.f32 %v15233_v26, %v15232_v48  ;;  %v697_v10 = vadd.f32 %v673_v46, %v645_v59  ;;  %v725_v36 = vmul.f32 %v15236_v25, %v15164_v56  ;;  %v1388_v38 = vadd.f32 %v1364_v63, %v1251_v22  ;;  %v15239_v60 = vld [vmem:[#allocation226_spill] sm:$0xff]  ;;  %v15241_v27 = vld [vmem:[#allocation225_spill] sm:$0xff]  ;;  %v15242_v50 = vld [vmem:[#allocation99_spill] sm:$0xff] }
 0x1f5   : > { %v1468_v40 = vmul.f32 %v15238_v5, %v15237_v32  ;;  %v3328_v18 = vadd.f32 %v9471_v62, %v3276_v2  ;;  %v2389_v45 = vadd.f32 %v2365_v31, %v2337_v7  ;;  %v15240_v55 = vld [vmem:[#allocation98_spill] sm:$0xff]  ;;  %v9636_v30 = vmul.f32 %v15242_v50, %v15241_v27  ;;  %v15243_v46 = vld [vmem:[#allocation100_spill] sm:$0xff] }
 0x1f6   : > { %v9631_v16 = vmul.f32 %v15240_v55, %v15239_v60  ;;  %v9640_v59 = vmul.f32 %v15243_v46, %v9609_v35  ;;  %v1440_v22 = vadd.f32 %v1416_v47, %v1388_v38  ;;  %v15244_v63 = vld [vmem:[#allocation80_spill] sm:$0xff]  ;;  %v15245_v2 = vld [vmem:[#allocation198_spill] sm:$0xff]  ;;  %v749_v60 = vadd.f32 %v725_v36, %v697_v10 }
 0x1f7   : > { %v1520_v25 = vmul.f32 %v15148_v0, %v15244_v63  ;;  %v3380_v62 = vadd.f32 %v9475_v44, %v3328_v18  ;;  %v2441_v7 = vadd.f32 %v2417_v13, %v2389_v45  ;;  %v15246_v32 = vld [vmem:[#allocation108_spill] sm:$0xff]  ;;  %v777_v27 = vmul.f32 %v9531_v57, %v15170_v28  ;;  %v15251_v45 = vld [vmem:[#allocation111_spill] sm:$0xff] }
 0x1f8   : > { %v9648_v48 = vmul.f32 %v15246_v32, %v15245_v2  ;;  %v1492_v5 = vadd.f32 %v1468_v40, %v1440_v22  ;;  %v15247_v35 = vld [vmem:[#allocation256_spill] sm:$0xff]  ;;  %v15248_v44 = vrot.slane %v9531_v57, 2  ;;  %v15249_v13 = vrot.slane %v9331_v39, 2 }
 0x1f9   : > { %v1572_v38 = vmul.f32 %v14907_v4, %v15247_v35  ;;  %v3432_v47 = vadd.f32 %v9484_v14, %v3380_v62  ;;  %v2493_v63 = vadd.f32 %v2469_v8, %v2441_v7  ;;  %v1624_v36 = vmul.f32 %v14909_v9, %v15251_v45  ;;  %v15252_v31 = vld [vmem:[#allocation60_spill] sm:$0xff]  ;;  %v15264_v4 = vld [vmem:[#allocation58_spill] sm:$0xff] }
 0x1fa   : > { %v9661_v18 = vsel %vm1300_vm1, %v15249_v13, %v15248_v44  ;;  %v1544_v10 = vadd.f32 %v1520_v25, %v1492_v5  ;;  %v477_v40 = vadd.f32 %v15150_v37, %v15252_v31  ;;  %v15253_v22 = vld [vmem:[#allocation20_spill] sm:$0xff]  ;;  %v15256_v44 = vrot.slane %v9331_v39, 6  ;;  %v15259_v5 = vld [vmem:[#allocation202_spill] sm:$0xff] }
 0x1fb   : > { %15250 = vst [vmem:[#allocation168_spill] sm:$0xff] %v9661_v18  ;;  %v505_v35 = vmul.f32 %v15253_v22, %v15145_v21  ;;  %v15254_v8 = vld [vmem:[#allocation24_spill] sm:$0xff]  ;;  %v9672_v62 = vadd.f32 %v9494_v23, %v3432_v47  ;;  %v2545_v7 = vadd.f32 %v2521_v54, %v2493_v63  ;;  %v15257_v13 = vrot.slane %v8816_v51, 6  ;;  %v15260_v23 = vld [vmem:[#allocation26_spill] sm:$0xff] }
 0x1fc   : > { %v557_v14 = vmul.f32 %v15254_v8, %v15151_v12  ;;  %v9684_v31 = vmul.f32 %v14984_v6, %v15259_v5  ;;  %v1596_v45 = vadd.f32 %v1572_v38, %v1544_v10  ;;  %v1676_v8 = vmul.f32 %v14913_v52, %v9661_v18  ;;  %v15261_v51 = vld [vmem:[#allocation46_spill] sm:$0xff]  ;;  %v15263_v5 = vld [vmem:[#allocation245_spill] sm:$0xff]  ;;  %v15265_v18 = vld [vmem:[#allocation28_spill] sm:$0xff] }
 0x1fd   : > { %15255 = vst [vmem:[#allocation252_spill] sm:$0xff] %v9672_v62  ;;  %v9680_v25 = vsel %vm3096_vm5, %v15257_v13, %v15256_v44  ;;  %v529_v22 = vadd.f32 %v505_v35, %v477_v40  ;;  %v609_v54 = vmul.f32 %v15260_v23, %v15054_v34  ;;  %v3519_v63 = vsel %vm3503_vm6, %v9672_v62, 0.0  ;;  %v15262_v44 = vld [vmem:[#allocation30_spill] sm:$0xff]  ;;  %v15266_v52 = vld [vmem:[#allocation232_spill] sm:$0xff]  ;;  %v15267_v23 = vld [vmem:[#allocation113_spill] sm:$0xff] }
 0x1fe   : > { %15258 = vst [vmem:[#allocation79_spill] sm:$0xff] %v9680_v25  ;;  %v2597_v47 = vadd.f32 %v2573_v20, %v2545_v7  ;;  %v801_v2 = vadd.f32 %v777_v27, %v749_v60  ;;  %v916_v13 = vmul.f32 %v15262_v44, %v15261_v51  ;;  %3520 = vadd.xlane.f32.xlu1 %v3519_v63  ;;  %v15268_v62 = vld [vmem:[#allocation236_spill] sm:$0xff]  ;;  %v15269_v20 = vld [vmem:[#allocation115_spill] sm:$0xff]  ;;  %v15276_v44 = vld [vmem:[#allocation262_spill] sm:$0xff] }
 0x1ff   : > { %v1648_v9 = vadd.f32 %v1624_v36, %v1596_v45  ;;  %v1813_v38 = vmul.f32 %v15264_v4, %v15263_v5  ;;  %v581_v10 = vadd.f32 %v557_v14, %v529_v22  ;;  %v661_v35 = vmul.f32 %v15265_v18, %v14809_v24  ;;  %v15270_v45 = vld [vmem:[#allocation77_spill] sm:$0xff]  ;;  %v15272_v22 = vld [vmem:[#allocation103_spill] sm:$0xff]  ;;  %v15277_v60 = vld [vmem:[#allocation64_spill] sm:$0xff] }
 0x200   : > { %v2734_v40 = vadd.f32 %v2710_v53, %v2597_v47  ;;  %v9700_v0 = vmul.f32 %v15267_v23, %v15266_v52  ;;  %v9704_v27 = vmul.f32 %v15269_v20, %v15268_v62  ;;  %v15271_v36 = vld [vmem:[#allocation61_spill] sm:$0xff]  ;;  %v713_v14 = vmul.f32 %v15272_v22, %v15164_v56  ;;  %v15273_v53 = vld [vmem:[#allocation235_spill] sm:$0xff]  ;;  %v15274_v47 = vld [vmem:[#allocation118_spill] sm:$0xff] }
 0x201   : > { %v1700_v7 = vadd.f32 %v1676_v8, %v1648_v9  ;;  %v1865_v63 = vmul.f32 %v15271_v36, %v15270_v45  ;;  %v633_v5 = vadd.f32 %v609_v54, %v581_v10  ;;  %v9713_v4 = vmul.f32 %v15274_v47, %v15273_v53  ;;  %v15275_v23 = vld [vmem:[#allocation123_spill] sm:$0xff]  ;;  %v15278_v45 = vld [vmem:[#allocation237_spill] sm:$0xff]  ;;  %v15288_v36 = vld [vmem:[#allocation68_spill] sm:$0xff] }
 0x202   : > { %v2786_v18 = vadd.f32 %v2762_v43, %v2734_v40  ;;  %v940_v52 = vadd.f32 %v916_v13, %v801_v2  ;;  %v968_v62 = vmul.f32 %v15186_v49, %v15275_v23  ;;  %v1917_v9 = vmul.f32 %v15277_v60, %v15276_v44  ;;  %v15279_v43 = vld [vmem:[#allocation119_spill] sm:$0xff]  ;;  %v15287_v60 = vld [vmem:[#allocation260_spill] sm:$0xff] }
 0x203   : > { %v1837_v20 = vadd.f32 %v1813_v38, %v1700_v7  ;;  %v685_v8 = vadd.f32 %v661_v35, %v633_v5  ;;  %v765_v54 = vmul.f32 %v15197_v61, %v15170_v28  ;;  %v9724_v40 = vmul.f32 %v15279_v43, %v15278_v45  ;;  %v15283_v5 = vld [vmem:[#allocation122_spill] sm:$0xff] }
 0x204   : > { %v2838_v10 = vadd.f32 %v9618_v42, %v2786_v18  ;;  %v15280_v53 = vrot.slane %v9531_v57, 3  ;;  %v15281_v2 = vrot.slane %v9331_v39, 3  ;;  %v9737_v35 = vmul.f32 %v15283_v5, %v9680_v25  ;;  %v15284_v42 = vld [vmem:[#allocation261_spill] sm:$0xff]  ;;  %v15285_v18 = vld [vmem:[#allocation66_spill] sm:$0xff] }
 0x205   : > { %v1889_v7 = vadd.f32 %v1865_v63, %v1837_v20  ;;  %v1969_v44 = vmul.f32 %v15285_v18, %v15284_v42  ;;  %v737_v45 = vadd.f32 %v713_v14, %v685_v8  ;;  %v9742_v22 = vadd.f32 %v968_v62, %v940_v52  ;;  %v15290_v20 = vld [vmem:[#allocation38_spill] sm:$0xff]  ;;  %v15294_v8 = vld [vmem:[#allocation35_spill] sm:$0xff] }
 0x206   : > { %v9732_v13 = vsel %vm1749_vm2, %v15281_v2, %v15280_v53  ;;  %v2890_v61 = vadd.f32 %v9622_v29, %v2838_v10  ;;  %v2021_v43 = vmul.f32 %v15288_v36, %v15287_v60  ;;  %v15289_v53 = vld [vmem:[#allocation184_spill] sm:$0xff]  ;;  %v956_v63 = vmul.f32 %v15186_v49, %v15290_v20  ;;  %v15295_v10 = vld [vmem:[#allocation247_spill] sm:$0xff]  ;;  %v15299_v60 = vld [vmem:[#allocation33_spill] sm:$0xff] }
 0x207   : > { %15282 = vst [vmem:[#allocation277_spill] sm:$0xff] %v9732_v13  ;;  %15286 = vst [vmem:[#allocation48_spill] sm:$0xff] %v9742_v22  ;;  %v2073_v2 = vmul.f32 %v15192_v3, %v15289_v53  ;;  %v1941_v38 = vadd.f32 %v1917_v9, %v1889_v7  ;;  %v2125_v25 = vmul.f32 %v15200_v17, %v9732_v13  ;;  %v15291_v29 = vrot.slane %v9531_v57, 4  ;;  %v15297_v53 = vld [vmem:[#allocation128_spill] sm:$0xff]  ;;  %v15300_v22 = vld [vmem:[#allocation266_spill] sm:$0xff] }
 0x208   : > { %v789_v5 = vadd.f32 %v765_v54, %v737_v45  ;;  %v2942_v14 = vadd.f32 %v9631_v16, %v2890_v61  ;;  %v15292_v52 = vrot.slane %v9331_v39, 4  ;;  %v2262_v9 = vmul.f32 %v15202_v11, %v15294_v8  ;;  %v15296_v54 = vld [vmem:[#allocation264_spill] sm:$0xff]  ;;  %v15298_v16 = vld [vmem:[#allocation42_spill] sm:$0xff]  ;;  %v15302_v17 = vld [vmem:[#allocation263_spill] sm:$0xff] }
 0x209   : > { %v2314_v7 = vmul.f32 %v15206_v15, %v15295_v10  ;;  %v1993_v45 = vadd.f32 %v1969_v44, %v1941_v38  ;;  %v2366_v13 = vmul.f32 %v15216_v19, %v15296_v54  ;;  %v1008_v42 = vmul.f32 %v15299_v60, %v15298_v16  ;;  %v15303_v11 = vld [vmem:[#allocation265_spill] sm:$0xff]  ;;  %v15305_v54 = vld [vmem:[#allocation36_spill] sm:$0xff] }
 0x20a   : > { %v9759_v62 = vsel %vm2198_vm3, %v15292_v52, %v15291_v29  ;;  %v928_v61 = vadd.f32 %v15297_v53, %v789_v5  ;;  %v2994_v20 = vadd.f32 %v9636_v30, %v2942_v14  ;;  %v15301_v29 = vld [vmem:[#allocation81_spill] sm:$0xff]  ;;  %v2470_v8 = vmul.f32 %v15220_v1, %v15302_v17  ;;  %v15304_v53 = vld [vmem:[#allocation44_spill] sm:$0xff]  ;;  %v15307_v1 = vld [vmem:[#allocation63_spill] sm:$0xff] }
 0x20b   : > { %15293 = vst [vmem:[#allocation284_spill] sm:$0xff] %v9759_v62  ;;  %v2418_v52 = vmul.f32 %v15301_v29, %v15300_v22  ;;  %v9777_v10 = vmul.f32 %v14951_v41, %v15303_v11  ;;  %v2045_v44 = vadd.f32 %v2021_v43, %v1993_v45  ;;  %v9781_v38 = vmul.f32 %v14953_v33, %v9759_v62  ;;  %v15306_v22 = vld [vmem:[#allocation39_spill] sm:$0xff]  ;;  %v15308_v45 = vld [vmem:[#allocation29_spill] sm:$0xff]  ;;  %v15312_v14 = vld [vmem:[#allocation224_spill] sm:$0xff] }
 0x20c   : > { %v980_v5 = vadd.f32 %v956_v63, %v928_v61  ;;  %v1060_v16 = vmul.f32 %v15305_v54, %v15304_v53  ;;  %v3046_v30 = vadd.f32 %v9640_v59, %v2994_v20  ;;  %v1112_v17 = vmul.f32 %v15306_v22, %v15261_v51  ;;  %v15309_v63 = vld [vmem:[#allocation34_spill] sm:$0xff]  ;;  %v15310_v33 = vld [vmem:[#allocation253_spill] sm:$0xff]  ;;  %v15313_v29 = vld [vmem:[#allocation95_spill] sm:$0xff] }
 0x20d   : > { %v478_v11 = vadd.f32 %v15150_v37, %v15307_v1  ;;  %v2097_v41 = vadd.f32 %v2073_v2, %v2045_v44  ;;  %v506_v62 = vmul.f32 %v15308_v45, %v15145_v21  ;;  %v558_v61 = vmul.f32 %v15309_v63, %v15151_v12  ;;  %v15311_v59 = vld [vmem:[#allocation90_spill] sm:$0xff]  ;;  %v15314_v1 = vld [vmem:[#allocation41_spill] sm:$0xff] }
 0x20e   : > { %v1032_v43 = vadd.f32 %v1008_v42, %v980_v5  ;;  %v3183_v53 = vadd.f32 %v9648_v48, %v3046_v30  ;;  %v9798_v20 = vmul.f32 %v15311_v59, %v15310_v33  ;;  %v9802_v51 = vmul.f32 %v15313_v29, %v15312_v14  ;;  %v15315_v45 = vld [vmem:[#allocation37_spill] sm:$0xff] }
 0x20f   : > { %v1164_v2 = vmul.f32 %v15314_v1, %v15275_v23  ;;  %v2149_v42 = vadd.f32 %v2125_v25, %v2097_v41  ;;  %v530_v5 = vadd.f32 %v506_v62, %v478_v11  ;;  %v610_v21 = vmul.f32 %v15315_v45, %v15054_v34  ;;  %v15319_v14 = vld [vmem:[#allocation269_spill] sm:$0xff]  ;;  %v15321_v25 = vld [vmem:[#allocation43_spill] sm:$0xff]  ;;  %v15323_v23 = vld [vmem:[#allocation268_spill] sm:$0xff] }
 0x210   : > { %v1084_v44 = vadd.f32 %v1060_v16, %v1032_v43  ;;  %v3235_v63 = vadd.f32 %v9684_v31, %v3183_v53  ;;  %v15316_v48 = vrot.slane %v9531_v57, 5  ;;  %v15317_v30 = vrot.slane %v9331_v39, 5  ;;  %v15320_v41 = vld [vmem:[#allocation125_spill] sm:$0xff]  ;;  %v15322_v31 = vld [vmem:[#allocation40_spill] sm:$0xff] }
 0x211   : > { %v9819_v59 = vmul.f32 %v15233_v26, %v15319_v14  ;;  %v1216_v11 = vmul.f32 %v15321_v25, %v15320_v41  ;;  %v2286_v62 = vadd.f32 %v2262_v9, %v2149_v42  ;;  %v582_v43 = vadd.f32 %v558_v61, %v530_v5  ;;  %v15324_v34 = vld [vmem:[#allocation97_spill] sm:$0xff]  ;;  %v15326_v14 = vld [vmem:[#allocation271_spill] sm:$0xff]  ;;  %v15327_v42 = vld [vmem:[#allocation114_spill] sm:$0xff] }
 0x212   : > { %v9815_v33 = vsel %vm2647_vm4, %v15317_v30, %v15316_v48  ;;  %v1136_v16 = vadd.f32 %v1112_v17, %v1084_v44  ;;  %v662_v53 = vmul.f32 %v15322_v31, %v14809_v24  ;;  %v3287_v45 = vadd.f32 %v9700_v0, %v3235_v63  ;;  %v15325_v48 = vld [vmem:[#allocation267_spill] sm:$0xff]  ;;  %v15334_v5 = vld [vmem:[#allocation49_spill] sm:$0xff] }
 0x213   : > { %15318 = vst [vmem:[#allocation176_spill] sm:$0xff] %v9815_v33  ;;  %v9828_v12 = vmul.f32 %v15324_v34, %v15323_v23  ;;  %v9832_v30 = vmul.f32 %v15240_v55, %v15325_v48  ;;  %v9836_v37 = vmul.f32 %v15242_v50, %v15326_v14  ;;  %v2338_v9 = vadd.f32 %v2314_v7, %v2286_v62  ;;  %v15328_v48 = vld [vmem:[#allocation52_spill] sm:$0xff]  ;;  %v15329_v23 = vld [vmem:[#allocation47_spill] sm:$0xff]  ;;  %v15331_v62 = vld [vmem:[#allocation50_spill] sm:$0xff] }
 0x214   : > { %v1188_v17 = vadd.f32 %v1164_v2, %v1136_v16  ;;  %v634_v61 = vadd.f32 %v610_v21, %v582_v43  ;;  %v714_v44 = vmul.f32 %v15327_v42, %v15164_v56  ;;  %v3339_v0 = vadd.f32 %v9704_v27, %v3287_v45  ;;  %v15330_v7 = vld [vmem:[#allocation116_spill] sm:$0xff]  ;;  %v15333_v43 = vld [vmem:[#allocation55_spill] sm:$0xff] }
 0x215   : > { %v9843_v63 = vmul.f32 %v15243_v46, %v9815_v33  ;;  %v1405_v24 = vmul.f32 %v15329_v23, %v15328_v48  ;;  %v2390_v55 = vadd.f32 %v2366_v13, %v2338_v9  ;;  %v766_v21 = vmul.f32 %v15330_v7, %v15170_v28  ;;  %v15332_v45 = vld [vmem:[#allocation228_spill] sm:$0xff]  ;;  %v15335_v13 = vld [vmem:[#allocation131_spill] sm:$0xff]  ;;  %v15342_v28 = vld [vmem:[#allocation113_spill] sm:$0xff] }
 0x216   : > { %v1240_v14 = vadd.f32 %v1216_v11, %v1188_v17  ;;  %v686_v50 = vadd.f32 %v662_v53, %v634_v61  ;;  %v3391_v2 = vadd.f32 %v9713_v4, %v3339_v0  ;;  %v9853_v27 = vmul.f32 %v15246_v32, %v15331_v62  ;;  %v15336_v9 = vld [vmem:[#allocation83_spill] sm:$0xff]  ;;  %v15337_v17 = vld [vmem:[#allocation30_spill] sm:$0xff]  ;;  %v15341_v32 = vld [vmem:[#allocation276_spill] sm:$0xff] }
 0x217   : > { %v9857_v16 = vmul.f32 %v14984_v6, %v15332_v45  ;;  %v1457_v33 = vmul.f32 %v15334_v5, %v15333_v43  ;;  %v2442_v48 = vadd.f32 %v2418_v52, %v2390_v55  ;;  %v905_v61 = vmul.f32 %v15337_v17, %v15336_v9  ;;  %v15343_v55 = vld [vmem:[#allocation57_spill] sm:$0xff]  ;;  %v15344_v52 = vld [vmem:[#allocation51_spill] sm:$0xff]  ;;  %v15345_v9 = vld [vmem:[#allocation150_spill] sm:$0xff] }
 0x218   : > { %v1377_v11 = vadd.f32 %v15335_v13, %v1240_v14  ;;  %v738_v53 = vadd.f32 %v714_v44, %v686_v50  ;;  %v3443_v4 = vadd.f32 %v9724_v40, %v3391_v2  ;;  %v15338_v0 = vrot.slane %v9531_v57, 6  ;;  %v15348_v17 = vld [vmem:[#allocation115_spill] sm:$0xff] }
 0x219   : > { %v15339_v62 = vrot.slane %v9331_v39, 6  ;;  %v9875_v43 = vmul.f32 %v15342_v28, %v15341_v32  ;;  %v1509_v50 = vmul.f32 %v15344_v52, %v15343_v55  ;;  %v2494_v14 = vadd.f32 %v2470_v8, %v2442_v48  ;;  %v15347_v39 = vld [vmem:[#allocation275_spill] sm:$0xff]  ;;  %v15353_v28 = vld [vmem:[#allocation53_spill] sm:$0xff] }
 0x21a   : > { %v1429_v44 = vadd.f32 %v1405_v24, %v1377_v11  ;;  %v790_v13 = vadd.f32 %v766_v21, %v738_v53  ;;  %v957_v40 = vmul.f32 %v15186_v49, %v15345_v9  ;;  %v9882_v2 = vadd.f32 %v9737_v35, %v3443_v4  ;;  %v15352_v56 = vld [vmem:[#allocation59_spill] sm:$0xff]  ;;  %v15355_v53 = vld [vmem:[#allocation274_spill] sm:$0xff] }
 0x21b   : > { %v9871_v45 = vsel %vm3096_vm5, %v15339_v62, %v15338_v0  ;;  %v9886_v62 = vmul.f32 %v15348_v17, %v15347_v39  ;;  %v15350_v0 = vld [vmem:[#allocation272_spill] sm:$0xff]  ;;  %v1561_v55 = vmul.f32 %v15353_v28, %v15352_v56  ;;  %v2546_v24 = vadd.f32 %v9777_v10, %v2494_v14  ;;  %v15354_v21 = vld [vmem:[#allocation151_spill] sm:$0xff] }
 0x21c   : > { %15340 = vst [vmem:[#allocation258_spill] sm:$0xff] %v9871_v45  ;;  %15346 = vst [vmem:[#allocation158_spill] sm:$0xff] %v9882_v2  ;;  %v9890_v32 = vmul.f32 %v15274_v47, %v15350_v0  ;;  %v1481_v8 = vadd.f32 %v1457_v33, %v1429_v44  ;;  %v929_v48 = vadd.f32 %v905_v61, %v790_v13  ;;  %v3552_v35 = vsel %vm3503_vm6, %v9882_v2, 0.0  ;;  %v15356_v4 = vld [vmem:[#allocation119_spill] sm:$0xff]  ;;  %v15358_v0 = vld [vmem:[#allocation122_spill] sm:$0xff] }
 0x21d   : > { %15349 = vst [vmem:[#allocation60_spill] sm:$0xff] %v9886_v62  ;;  %v1009_v11 = vmul.f32 %v15299_v60, %v15354_v21  ;;  %v9901_v9 = vmul.f32 %v15356_v4, %v15355_v53  ;;  %v9905_v39 = vmul.f32 %v15358_v0, %v9871_v45  ;;  %v15360_v49 = vld [vmem:[#allocation135_spill] sm:$0xff]  ;;  %v15361_v47 = vld [vmem:[#allocation54_spill] sm:$0xff]  ;;  %3553 = vadd.xlane.f32.xlu0 %v3552_v35  ;;  %v15362_v14 = vld [vmem:[#allocation152_spill] sm:$0xff] }
 0x21e   : > { %15351 = vst [vmem:[#allocation128_spill] sm:$0xff] %v9890_v32  ;;  %v1613_v17 = vmul.f32 %v15361_v47, %v15360_v49  ;;  %v2598_v33 = vadd.f32 %v9781_v38, %v2546_v24  ;;  %v1533_v10 = vadd.f32 %v1509_v50, %v1481_v8  ;;  %v981_v61 = vadd.f32 %v957_v40, %v929_v48  ;;  %v15363_v13 = vld [vmem:[#allocation138_spill] sm:$0xff]  ;;  %v15364_v2 = vld [vmem:[#allocation56_spill] sm:$0xff]  ;;  %v15365_v53 = vld [vmem:[#allocation67_spill] sm:$0xff] }
 0x21f   : > { %15357 = vst [vmem:[#allocation63_spill] sm:$0xff] %v9901_v9  ;;  %15359 = vst [vmem:[#allocation131_spill] sm:$0xff] %v9905_v39  ;;  %v1061_v44 = vmul.f32 %v15305_v54, %v15362_v14  ;;  %v1665_v21 = vmul.f32 %v15364_v2, %v15363_v13  ;;  %v15366_v4 = vld [vmem:[#allocation61_spill] sm:$0xff]  ;;  %v15367_v32 = vld [vmem:[#allocation70_spill] sm:$0xff] }
 0x220   : > { %v1854_v9 = vmul.f32 %v15366_v4, %v15365_v53  ;;  %v15368_v45 = vld [vmem:[#allocation64_spill] sm:$0xff]  ;;  %v15369_v39 = vld [vmem:[#allocation73_spill] sm:$0xff]  ;;  %v2735_v35 = vadd.f32 %v9798_v20, %v2598_v33  ;;  %v1585_v38 = vadd.f32 %v1561_v55, %v1533_v10  ;;  %v1033_v50 = vadd.f32 %v1009_v11, %v981_v61  ;;  %v15370_v40 = vld [vmem:[#allocation155_spill] sm:$0xff] }
 0x221   : > { %v1906_v0 = vmul.f32 %v15368_v45, %v15367_v32  ;;  %v1958_v62 = vmul.f32 %v15285_v18, %v15369_v39  ;;  %v1113_v24 = vmul.f32 %v15306_v22, %v15370_v40  ;;  %v15371_v8 = vld [vmem:[#allocation72_spill] sm:$0xff]  ;;  %v15372_v14 = vld [vmem:[#allocation145_spill] sm:$0xff]  ;;  %v15374_v4 = vld [vmem:[#allocation71_spill] sm:$0xff] }
 0x222   : > { %v2010_v48 = vmul.f32 %v15288_v36, %v15371_v8  ;;  %v2062_v13 = vmul.f32 %v15192_v3, %v15372_v14  ;;  %v15373_v53 = vld [vmem:[#allocation144_spill] sm:$0xff]  ;;  %v2787_v20 = vadd.f32 %v9802_v51, %v2735_v35  ;;  %v1637_v55 = vadd.f32 %v1613_v17, %v1585_v38  ;;  %v15376_v33 = vld [vmem:[#allocation194_spill] sm:$0xff]  ;;  %v15378_v14 = vld [vmem:[#allocation85_spill] sm:$0xff] }
 0x223   : > { %v9929_v49 = vmul.f32 %v15374_v4, %v15373_v53  ;;  %v15375_v32 = vld [vmem:[#allocation84_spill] sm:$0xff]  ;;  %v1085_v11 = vadd.f32 %v1061_v44, %v1033_v50  ;;  %v1165_v10 = vmul.f32 %v15314_v1, %v15376_v33  ;;  %v15377_v61 = vld [vmem:[#allocation86_spill] sm:$0xff]  ;;  %v15379_v40 = vld [vmem:[#allocation81_spill] sm:$0xff] }
 0x224   : > { %v9933_v39 = vmul.f32 %v15206_v15, %v15375_v32  ;;  %v9940_v8 = vmul.f32 %v15216_v19, %v15377_v61  ;;  %v9944_v3 = vmul.f32 %v15379_v40, %v15378_v14  ;;  %v15380_v53 = vld [vmem:[#allocation89_spill] sm:$0xff]  ;;  %v15381_v4 = vld [vmem:[#allocation82_spill] sm:$0xff]  ;;  %v15383_v32 = vld [vmem:[#allocation11_spill] sm:$0xff]  ;;  %v2839_v17 = vadd.f32 %v9819_v59, %v2787_v20 }
 0x225   : > { %v9948_v36 = vmul.f32 %v15381_v4, %v15380_v53  ;;  %v15384_v15 = vld [vmem:[#allocation87_spill] sm:$0xff]  ;;  %v1689_v44 = vadd.f32 %v1665_v21, %v1637_v55  ;;  %v1137_v35 = vadd.f32 %v1113_v24, %v1085_v11  ;;  %v15386_v61 = vld [vmem:[#allocation148_spill] sm:$0xff]  ;;  %v15388_v14 = vld [vmem:[#allocation93_spill] sm:$0xff] }
 0x226   : > { %v9952_v51 = vmul.f32 %v15384_v15, %v15383_v32  ;;  %v15385_v38 = vld [vmem:[#allocation195_spill] sm:$0xff]  ;;  %v15387_v33 = vld [vmem:[#allocation88_spill] sm:$0xff]  ;;  %v9963_v40 = vmul.f32 %v15313_v29, %v15388_v14  ;;  %v15391_v4 = vld [vmem:[#allocation45_spill] sm:$0xff]  ;;  %v2891_v59 = vadd.f32 %v9828_v12, %v2839_v17 }
 0x227   : > { %15382 = vst [vmem:[#allocation83_spill] sm:$0xff] %v9948_v36  ;;  %v1217_v50 = vmul.f32 %v15321_v25, %v15385_v38  ;;  %v9959_v19 = vmul.f32 %v15387_v33, %v15386_v61  ;;  %v15390_v53 = vld [vmem:[#allocation160_spill] sm:$0xff]  ;;  %v1189_v20 = vadd.f32 %v1165_v10, %v1137_v35  ;;  %v15394_v55 = vld [vmem:[#allocation139_spill] sm:$0xff]  ;;  %v15397_v14 = vld [vmem:[#allocation161_spill] sm:$0xff] }
 0x228   : > { %15389 = vst [vmem:[#allocation285_spill] sm:$0xff] %v9963_v40  ;;  %v1354_v36 = vmul.f32 %v15391_v4, %v15390_v53  ;;  %v15392_v32 = vld [vmem:[#allocation12_spill] sm:$0xff]  ;;  %v9972_v11 = vunpack.c.h.bf16 %v15394_v55  ;;  %v1406_v29 = vmul.f32 %v15329_v23, %v15397_v14  ;;  %v15398_v33 = vld [vmem:[#allocation19_spill] sm:$0xff]  ;;  %v2943_v12 = vadd.f32 %v9832_v30, %v2891_v59  ;;  %v15401_v55 = vld [vmem:[#allocation162_spill] sm:$0xff] }
 0x229   : > { %v459_v15 = vmul.f32 %v15322_v31, %v15392_v32  ;;  %v15393_v21 = vld [vmem:[#allocation132_spill] sm:$0xff]  ;;  %v15400_v35 = vld [vmem:[#allocation91_spill] sm:$0xff] }
 0x22a   : > { %v1826_v24 = vadd.f32 %v15393_v21, %v1689_v44  ;;  %15395 = vst [vmem:[#allocation160_spill] sm:$0xff] %v9972_v11  ;;  %v15396_v61 = vld [vmem:[#allocation92_spill] sm:$0xff]  ;;  %v1241_v44 = vadd.f32 %v1217_v50, %v1189_v20  ;;  %v9987_v21 = vmul.f32 %v15324_v34, %v15400_v35  ;;  %v15403_v50 = vld [vmem:[#allocation127_spill] sm:$0xff]  ;;  %v15404_v20 = vld [vmem:[#allocation17_spill] sm:$0xff] }
 0x22b   : > { %v9976_v38 = vmul.f32 %v15233_v26, %v15396_v61  ;;  %v490_v53 = vadd.f32 %v15398_v33, %v459_v15  ;;  %v15399_v40 = vld [vmem:[#allocation16_spill] sm:$0xff]  ;;  %v1458_v61 = vmul.f32 %v15334_v5, %v15401_v55  ;;  %v1020_v15 = vmul.f32 %v15299_v60, %v15320_v41  ;;  %v15406_v55 = vld [vmem:[#allocation130_spill] sm:$0xff] }
 0x22c   : > { %v518_v31 = vmul.f32 %v15327_v42, %v15399_v40  ;;  %v1878_v17 = vadd.f32 %v1854_v9, %v1826_v24  ;;  %v15402_v32 = vld [vmem:[#allocation164_spill] sm:$0xff]  ;;  %v2995_v33 = vadd.f32 %v9836_v37, %v2943_v12  ;;  %v1378_v9 = vadd.f32 %v1354_v36, %v1241_v44 }
 0x22d   : > { %v1510_v14 = vmul.f32 %v15344_v52, %v15402_v32  ;;  %v1072_v59 = vmul.f32 %v15305_v54, %v15403_v50  ;;  %v570_v10 = vmul.f32 %v15330_v7, %v15404_v20  ;;  %v15405_v42 = vld [vmem:[#allocation48_spill] sm:$0xff]  ;;  %v1124_v40 = vmul.f32 %v15306_v22, %v15406_v55  ;;  %v15416_v7 = vld [vmem:[#allocation18_spill] sm:$0xff] }
 0x22e   : > { %v1930_v30 = vadd.f32 %v1906_v0, %v1878_v17  ;;  %v542_v24 = vadd.f32 %v518_v31, %v490_v53  ;;  %v1044_v35 = vadd.f32 %v1020_v15, %v15405_v42  ;;  %v3047_v32 = vadd.f32 %v9843_v63, %v2995_v33  ;;  %v15410_v31 = vld [vmem:[#allocation101_spill] sm:$0xff]  ;;  %v15411_v53 = vld [vmem:[#allocation98_spill] sm:$0xff]  ;;  %v15413_v17 = vld [vmem:[#allocation99_spill] sm:$0xff] }
 0x22f   : > { %v1430_v41 = vadd.f32 %v1406_v29, %v1378_v9  ;;  %v15407_v37 = vrot.slane %v9972_v11, 1  ;;  %v15408_v36 = vrot.slane %v9531_v57, 1  ;;  %v10014_v12 = vmul.f32 %v15411_v53, %v15410_v31  ;;  %v15412_v42 = vld [vmem:[#allocation154_spill] sm:$0xff]  ;;  %v15414_v63 = vld [vmem:[#allocation273_spill] sm:$0xff]  ;;  %v15417_v55 = vld [vmem:[#allocation120_spill] sm:$0xff] }
 0x230   : > { %v1982_v34 = vadd.f32 %v1958_v62, %v1930_v30  ;;  %v10018_v44 = vmul.f32 %v15413_v17, %v15412_v42  ;;  %v1096_v15 = vadd.f32 %v1072_v59, %v1044_v35  ;;  %v1176_v29 = vmul.f32 %v15314_v1, %v15414_v63  ;;  %v15415_v9 = vld [vmem:[#allocation166_spill] sm:$0xff]  ;;  %v15418_v63 = vld [vmem:[#allocation204_spill] sm:$0xff] }
 0x231   : > { %v10010_v0 = vsel %vm851_vm0, %v15408_v36, %v15407_v37  ;;  %v3184_v62 = vadd.f32 %v9853_v27, %v3047_v32  ;;  %v1482_v30 = vadd.f32 %v1458_v61, %v1430_v41  ;;  %v1562_v37 = vmul.f32 %v15353_v28, %v15415_v9  ;;  %v15420_v27 = vld [vmem:[#allocation107_spill] sm:$0xff] }
 0x232   : > { %15409 = vst [vmem:[#allocation132_spill] sm:$0xff] %v10010_v0  ;;  %v2034_v33 = vadd.f32 %v2010_v48, %v1982_v34  ;;  %v594_v36 = vadd.f32 %v570_v10, %v542_v24  ;;  %v622_v50 = vmul.f32 %v15417_v55, %v15416_v7  ;;  %v1148_v20 = vadd.f32 %v1124_v40, %v1096_v15  ;;  %v15419_v34 = vld [vmem:[#allocation157_spill] sm:$0xff]  ;;  %v15426_v7 = vld [vmem:[#allocation134_spill] sm:$0xff] }
 0x233   : > { %v1228_v42 = vmul.f32 %v15321_v25, %v10010_v0  ;;  %v3236_v35 = vadd.f32 %v9857_v16, %v3184_v62  ;;  %v1534_v31 = vadd.f32 %v1510_v14, %v1482_v30  ;;  %v1614_v32 = vmul.f32 %v15361_v47, %v15418_v63  ;;  %v15422_v62 = vld [vmem:[#allocation21_spill] sm:$0xff]  ;;  %v15424_v0 = vld [vmem:[#allocation135_spill] sm:$0xff] }
 0x234   : > { %v2086_v59 = vadd.f32 %v2062_v13, %v2034_v33  ;;  %v10034_v41 = vmul.f32 %v15243_v46, %v15419_v34  ;;  %v10038_v48 = vmul.f32 %v14984_v6, %v15420_v27  ;;  %v1200_v61 = vadd.f32 %v1176_v29, %v1148_v20  ;;  %v15421_v13 = vld [vmem:[#allocation205_spill] sm:$0xff]  ;;  %v15425_v20 = vld [vmem:[#allocation60_spill] sm:$0xff] }
 0x235   : > { %v1365_v40 = vmul.f32 %v15391_v4, %v15352_v56  ;;  %v3288_v10 = vadd.f32 %v9875_v43, %v3236_v35  ;;  %v1586_v14 = vadd.f32 %v1562_v37, %v1534_v31  ;;  %v1666_v24 = vmul.f32 %v15364_v2, %v15421_v13  ;;  %v15423_v33 = vld [vmem:[#allocation121_spill] sm:$0xff]  ;;  %v15428_v35 = vld [vmem:[#allocation58_spill] sm:$0xff] }
 0x236   : > { %v2138_v16 = vadd.f32 %v9929_v49, %v2086_v59  ;;  %v646_v15 = vadd.f32 %v622_v50, %v594_v36  ;;  %v674_v30 = vmul.f32 %v15423_v33, %v15422_v62  ;;  %v1252_v55 = vadd.f32 %v1228_v42, %v1200_v61  ;;  %v15427_v43 = vld [vmem:[#allocation149_spill] sm:$0xff]  ;;  %v15429_v31 = vld [vmem:[#allocation106_spill] sm:$0xff] }
 0x237   : > { %v1417_v27 = vmul.f32 %v15329_v23, %v15424_v0  ;;  %v3340_v29 = vadd.f32 %v15425_v20, %v3288_v10  ;;  %v1638_v34 = vadd.f32 %v1614_v32, %v1586_v14  ;;  %v1803_v49 = vmul.f32 %v15428_v35, %v15427_v43  ;;  %v15430_v37 = vld [vmem:[#allocation113_spill] sm:$0xff]  ;;  %v15432_v50 = vld [vmem:[#allocation170_spill] sm:$0xff]  ;;  %v15435_v0 = vld [vmem:[#allocation128_spill] sm:$0xff] }
 0x238   : > { %v2275_v56 = vadd.f32 %v15426_v7, %v2138_v16  ;;  %v10056_v59 = vmul.f32 %v15430_v37, %v15429_v31  ;;  %v15433_v36 = vld [vmem:[#allocation61_spill] sm:$0xff]  ;;  %v1389_v33 = vadd.f32 %v1365_v40, %v1252_v55  ;;  %v15434_v42 = vld [vmem:[#allocation138_spill] sm:$0xff]  ;;  %v698_v16 = vadd.f32 %v674_v30, %v646_v15  ;;  %v15436_v14 = vld [vmem:[#allocation23_spill] sm:$0xff] }
 0x239   : > { %v1855_v13 = vmul.f32 %v15433_v36, %v15432_v50  ;;  %v1469_v61 = vmul.f32 %v15334_v5, %v15434_v42  ;;  %v3392_v62 = vadd.f32 %v15435_v0, %v3340_v29  ;;  %v1690_v7 = vadd.f32 %v1666_v24, %v1638_v34  ;;  %v15437_v20 = vld [vmem:[#allocation270_spill] sm:$0xff]  ;;  %v15439_v50 = vld [vmem:[#allocation63_spill] sm:$0xff] }
 0x23a   : > { %15431 = vst [vmem:[#allocation139_spill] sm:$0xff] %v10056_v59  ;;  %v2327_v10 = vadd.f32 %v9933_v39, %v2275_v56  ;;  %v726_v43 = vmul.f32 %v15437_v20, %v15436_v14  ;;  %v1441_v31 = vadd.f32 %v1417_v27, %v1389_v33  ;;  %v15438_v59 = vld [vmem:[#allocation137_spill] sm:$0xff]  ;;  %v15440_v5 = vld [vmem:[#allocation174_spill] sm:$0xff]  ;;  %v15442_v56 = vld [vmem:[#allocation115_spill] sm:$0xff] }
 0x23b   : > { %v1521_v23 = vmul.f32 %v15344_v52, %v15438_v59  ;;  %v3444_v55 = vadd.f32 %v15439_v50, %v3392_v62  ;;  %v1827_v42 = vadd.f32 %v1803_v49, %v1690_v7  ;;  %v1907_v0 = vmul.f32 %v15368_v45, %v15440_v5  ;;  %v15441_v39 = vld [vmem:[#allocation126_spill] sm:$0xff]  ;;  %v15444_v24 = vld [vmem:[#allocation175_spill] sm:$0xff]  ;;  %v15445_v27 = vld [vmem:[#allocation136_spill] sm:$0xff] }
 0x23c   : > { %v2379_v40 = vadd.f32 %v9940_v8, %v2327_v10  ;;  %v10075_v34 = vmul.f32 %v15442_v56, %v15441_v39  ;;  %v1959_v15 = vmul.f32 %v15285_v18, %v15444_v24  ;;  %v1493_v30 = vadd.f32 %v1469_v61, %v1441_v31  ;;  %v15446_v29 = vld [vmem:[#allocation131_spill] sm:$0xff]  ;;  %v15452_v5 = vld [vmem:[#allocation278_spill] sm:$0xff]  ;;  %v15455_v20 = vld [vmem:[#allocation68_spill] sm:$0xff] }
 0x23d   : > { %v1573_v33 = vmul.f32 %v15353_v28, %v15445_v27  ;;  %v10082_v32 = vadd.f32 %v15446_v29, %v3444_v55  ;;  %v1879_v62 = vadd.f32 %v1855_v13, %v1827_v42  ;;  %v15448_v49 = vrot.slane %v9972_v11, 2  ;;  %v15451_v24 = vld [vmem:[#allocation27_spill] sm:$0xff]  ;;  %v15454_v29 = vld [vmem:[#allocation178_spill] sm:$0xff]  ;;  %v15466_v59 = vld [vmem:[#allocation69_spill] sm:$0xff] }
 0x23e   : > { %15443 = vst [vmem:[#allocation19_spill] sm:$0xff] %v10075_v34  ;;  %v2431_v8 = vadd.f32 %v9944_v3, %v2379_v40  ;;  %v15449_v50 = vrot.slane %v9531_v57, 2  ;;  %v750_v7 = vadd.f32 %v726_v43, %v698_v16  ;;  %v778_v31 = vmul.f32 %v9972_v11, %v15451_v24  ;;  %v15453_v13 = vld [vmem:[#allocation83_spill] sm:$0xff] }
 0x23f   : > { %15447 = vst [vmem:[#allocation48_spill] sm:$0xff] %v10082_v32  ;;  %v1545_v61 = vadd.f32 %v1521_v23, %v1493_v30  ;;  %v1625_v55 = vmul.f32 %v15361_v47, %v15452_v5  ;;  %v3555_v3 = vsel %vm3503_vm6, %v10082_v32, 0.0  ;;  %v1931_v40 = vadd.f32 %v1907_v0, %v1879_v62  ;;  %v15459_v43 = vld [vmem:[#allocation163_spill] sm:$0xff]  ;;  %v15463_v0 = vld [vmem:[#allocation122_spill] sm:$0xff] }
 0x240   : > { %v10091_v10 = vsel %vm1300_vm1, %v15449_v50, %v15448_v49  ;;  %v2483_v42 = vadd.f32 %v15453_v13, %v2431_v8  ;;  %v2011_v27 = vmul.f32 %v15455_v20, %v15454_v29  ;;  %3556 = vadd.xlane.f32.xlu1 %v3555_v3  ;;  %v15456_v49 = vld [vmem:[#allocation129_spill] sm:$0xff]  ;;  %v15457_v50 = vld [vmem:[#allocation118_spill] sm:$0xff]  ;;  %v15460_v39 = vld [vmem:[#allocation119_spill] sm:$0xff]  ;;  %v802_v14 = vadd.f32 %v778_v31, %v750_v7 }
 0x241   : > { %15450 = vst [vmem:[#allocation60_spill] sm:$0xff] %v10091_v10  ;;  %v10104_v16 = vmul.f32 %v15457_v50, %v15456_v49  ;;  %v10108_v23 = vmul.f32 %v15460_v39, %v15459_v43  ;;  %v1597_v30 = vadd.f32 %v1573_v33, %v1545_v61  ;;  %v1677_v5 = vmul.f32 %v15364_v2, %v10091_v10  ;;  %v15462_v8 = vld [vmem:[#allocation165_spill] sm:$0xff]  ;;  %v15467_v49 = vld [vmem:[#allocation155_spill] sm:$0xff]  ;;  %v15468_v29 = vld [vmem:[#allocation30_spill] sm:$0xff] }
 0x242   : > { %v2535_v32 = vadd.f32 %v9952_v51, %v2483_v42  ;;  %v10115_v62 = vmul.f32 %v15463_v0, %v15462_v8  ;;  %v1983_v13 = vadd.f32 %v1959_v15, %v1931_v40  ;;  %v15465_v3 = vld [vmem:[#allocation209_spill] sm:$0xff]  ;;  %v917_v47 = vmul.f32 %v15468_v29, %v15467_v49  ;;  %v15469_v39 = vld [vmem:[#allocation72_spill] sm:$0xff]  ;;  %v15471_v10 = vld [vmem:[#allocation71_spill] sm:$0xff] }
 0x243   : > { %15458 = vst [vmem:[#allocation134_spill] sm:$0xff] %v10104_v16  ;;  %15461 = vst [vmem:[#allocation149_spill] sm:$0xff] %v10108_v23  ;;  %v2063_v24 = vmul.f32 %v15466_v59, %v15465_v3  ;;  %v1649_v43 = vadd.f32 %v1625_v55, %v1597_v30  ;;  %v1814_v33 = vmul.f32 %v15428_v35, %v15469_v39  ;;  %v15470_v42 = vld [vmem:[#allocation208_spill] sm:$0xff]  ;;  %v15472_v0 = vld [vmem:[#allocation179_spill] sm:$0xff] }
 0x244   : > { %15464 = vst [vmem:[#allocation128_spill] sm:$0xff] %v10115_v62  ;;  %v2587_v61 = vadd.f32 %v9959_v19, %v2535_v32  ;;  %v2035_v51 = vadd.f32 %v2011_v27, %v1983_v13  ;;  %v2115_v8 = vmul.f32 %v15471_v10, %v15470_v42  ;;  %v15473_v15 = vld [vmem:[#allocation74_spill] sm:$0xff]  ;;  %v15474_v2 = vld [vmem:[#allocation180_spill] sm:$0xff]  ;;  %v15475_v3 = vld [vmem:[#allocation75_spill] sm:$0xff] }
 0x245   : > { %v2252_v40 = vmul.f32 %v15473_v15, %v15472_v0  ;;  %v2304_v7 = vmul.f32 %v15475_v3, %v15474_v2  ;;  %v15476_v31 = vld [vmem:[#allocation183_spill] sm:$0xff]  ;;  %v15477_v62 = vld [vmem:[#allocation78_spill] sm:$0xff]  ;;  %v1701_v55 = vadd.f32 %v1677_v5, %v1649_v43  ;;  %v15478_v30 = vld [vmem:[#allocation145_spill] sm:$0xff]  ;;  %v941_v0 = vadd.f32 %v917_v47, %v802_v14 }
 0x246   : > { %v2356_v49 = vmul.f32 %v15477_v62, %v15476_v31  ;;  %v1866_v39 = vmul.f32 %v15433_v36, %v15478_v30  ;;  %v15479_v29 = vld [vmem:[#allocation140_spill] sm:$0xff]  ;;  %v2087_v32 = vadd.f32 %v2063_v24, %v2035_v51  ;;  %v15480_v27 = vld [vmem:[#allocation182_spill] sm:$0xff]  ;;  %v15481_v13 = vld [vmem:[#allocation81_spill] sm:$0xff] }
 0x247   : > { %v2724_v19 = vadd.f32 %v15479_v29, %v2587_v61  ;;  %v2408_v35 = vmul.f32 %v15481_v13, %v15480_v27  ;;  %v15482_v42 = vld [vmem:[#allocation181_spill] sm:$0xff]  ;;  %v15483_v23 = vld [vmem:[#allocation82_spill] sm:$0xff]  ;;  %v15485_v52 = vld [vmem:[#allocation31_spill] sm:$0xff]  ;;  %v1838_v34 = vadd.f32 %v1814_v33, %v1701_v55 }
 0x248   : > { %v2460_v28 = vmul.f32 %v15483_v23, %v15482_v42  ;;  %v15484_v16 = vld [vmem:[#allocation194_spill] sm:$0xff]  ;;  %v15486_v50 = vld [vmem:[#allocation144_spill] sm:$0xff]  ;;  %v15488_v31 = vld [vmem:[#allocation285_spill] sm:$0xff]  ;;  %v2139_v29 = vadd.f32 %v2115_v8, %v2087_v32 }
 0x249   : > { %v969_v2 = vmul.f32 %v15485_v52, %v15484_v16  ;;  %v1918_v5 = vmul.f32 %v15368_v45, %v15486_v50  ;;  %v10144_v43 = vld [vmem:[%s5799_s15 + $0x98] sm:$0xff]   ;;  %v2776_v30 = vadd.f32 %v15488_v31, %v2724_v19  ;;  %v15493_v14 = vld [vmem:[#allocation186_spill] sm:$0xff]  ;;  %v1890_v33 = vadd.f32 %v1866_v39, %v1838_v34  ;;  %v15496_v31 = vld [vmem:[#allocation189_spill] sm:$0xff] }
 0x24a   : > { %15487 = vst [vmem:[#allocation63_spill] sm:$0xff] %v10144_v43  ;;  %v15489_v24 = vld [vmem:[#allocation216_spill] sm:$0xff]  ;;  %v15490_v61 = vld [vmem:[#allocation87_spill] sm:$0xff]  ;;  %v15494_v23 = vld [vmem:[#allocation90_spill] sm:$0xff]  ;;  %v2276_v45 = vadd.f32 %v2252_v40, %v2139_v29  ;;  %v10162_v32 = vunpack.c.l.bf16 %v10144_v43  ;;  %v15501_v40 = vrot.slane %v9972_v11, 3 }
 0x24b   : > { %v2512_v51 = vmul.f32 %v15490_v61, %v15489_v24  ;;  %v15491_v36 = vld [vmem:[#allocation215_spill] sm:$0xff]  ;;  %v15492_v42 = vld [vmem:[#allocation88_spill] sm:$0xff]  ;;  %v2701_v16 = vmul.f32 %v15494_v23, %v15493_v14  ;;  %v2828_v52 = vadd.f32 %v9976_v38, %v2776_v30  ;;  %v993_v24 = vadd.f32 %v969_v2, %v941_v0  ;;  %v15500_v39 = vld [vmem:[#allocation146_spill] sm:$0xff] }
 0x24c   : > { %v2564_v47 = vmul.f32 %v15492_v42, %v15491_v36  ;;  %v15495_v55 = vld [vmem:[#allocation147_spill] sm:$0xff]  ;;  %15498 = vst [vmem:[#allocation131_spill] sm:$0xff] %v10162_v32  ;;  %v1942_v14 = vadd.f32 %v1918_v5, %v1890_v33  ;;  %v2022_v34 = vmul.f32 %v15455_v20, %v15500_v39  ;;  %v2328_v38 = vadd.f32 %v2304_v7, %v2276_v45  ;;  %v15504_v43 = vld [vmem:[#allocation76_spill] sm:$0xff]  ;;  %v15507_v7 = vld [vmem:[#allocation190_spill] sm:$0xff] }
 0x24d   : > { %v1970_v50 = vmul.f32 %v15285_v18, %v15495_v55  ;;  %v15497_v8 = vld [vmem:[#allocation95_spill] sm:$0xff]  ;;  %v2880_v55 = vadd.f32 %v9987_v21, %v2828_v52  ;;  %v15502_v30 = vrot.slane %v9531_v57, 3  ;;  %v2074_v2 = vmul.f32 %v15466_v59, %v15504_v43  ;;  %v15506_v33 = vld [vmem:[#allocation200_spill] sm:$0xff]  ;;  %v15508_v39 = vld [vmem:[#allocation97_spill] sm:$0xff] }
 0x24e   : > { %v10159_v19 = vmul.f32 %v15497_v8, %v15496_v31  ;;  %v15499_v27 = vld [vmem:[#allocation191_spill] sm:$0xff]  ;;  %v1073_v45 = vmul.f32 %v15305_v54, %v15506_v33  ;;  %v2380_v21 = vadd.f32 %v2356_v49, %v2328_v38  ;;  %v10189_v20 = vmul.f32 %v15508_v39, %v15507_v7  ;;  %v15511_v49 = vld [vmem:[#allocation222_spill] sm:$0xff] }
 0x24f   : > { %v10166_v36 = vmul.f32 %v15233_v26, %v15499_v27  ;;  %v10177_v29 = vsel %vm1749_vm2, %v15502_v30, %v15501_v40  ;;  %v1994_v27 = vadd.f32 %v1970_v50, %v1942_v14  ;;  %v15505_v0 = vld [vmem:[#allocation195_spill] sm:$0xff]  ;;  %v2932_v52 = vadd.f32 %v10014_v12, %v2880_v55  ;;  %v15509_v40 = vld [vmem:[#allocation188_spill] sm:$0xff] }
 0x250   : > { %15503 = vst [vmem:[#allocation83_spill] sm:$0xff] %v10177_v29  ;;  %v1021_v5 = vmul.f32 %v15299_v60, %v15505_v0  ;;  %v10193_v30 = vmul.f32 %v15411_v53, %v15509_v40  ;;  %v2126_v14 = vmul.f32 %v15471_v10, %v10177_v29  ;;  %v15510_v0 = vld [vmem:[#allocation203_spill] sm:$0xff]  ;;  %v2432_v12 = vadd.f32 %v2408_v35, %v2380_v21  ;;  %v15516_v29 = vld [vmem:[#allocation197_spill] sm:$0xff] }
 0x251   : > { %v2046_v50 = vadd.f32 %v2022_v34, %v1994_v27  ;;  %v1125_v43 = vmul.f32 %v15306_v22, %v15510_v0  ;;  %v2984_v33 = vadd.f32 %v10018_v44, %v2932_v52  ;;  %v10202_v55 = vmul.f32 %v15413_v17, %v15511_v49  ;;  %v15517_v21 = vld [vmem:[#allocation223_spill] sm:$0xff]  ;;  %v15519_v22 = vld [vmem:[#allocation108_spill] sm:$0xff] }
 0x252   : > { %v1045_v31 = vadd.f32 %v1021_v5, %v993_v24  ;;  %v15512_v38 = vrot.slane %v10162_v32, 1  ;;  %v15513_v7 = vrot.slane %v9972_v11, 1  ;;  %v15515_v24 = vld [vmem:[#allocation89_spill] sm:$0xff]  ;;  %v1177_v44 = vmul.f32 %v15314_v1, %v15516_v29  ;;  %v15518_v40 = vld [vmem:[#allocation199_spill] sm:$0xff] }
 0x253   : > { %v2098_v34 = vadd.f32 %v2074_v2, %v2046_v50  ;;  %v2263_v5 = vmul.f32 %v15473_v15, %v15515_v24  ;;  %v3036_v35 = vadd.f32 %v10034_v41, %v2984_v33  ;;  %v2484_v52 = vadd.f32 %v2460_v28, %v2432_v12  ;;  %v15520_v2 = vld [vmem:[#allocation11_spill] sm:$0xff]  ;;  %v15522_v28 = vld [vmem:[#allocation196_spill] sm:$0xff] }
 0x254   : > { %v10210_v27 = vsel %vm851_vm0, %v15513_v7, %v15512_v38  ;;  %v1097_v0 = vadd.f32 %v1073_v45, %v1045_v31  ;;  %v10219_v49 = vmul.f32 %v15243_v46, %v15517_v21  ;;  %v10223_v54 = vmul.f32 %v15519_v22, %v15518_v40  ;;  %v15521_v45 = vld [vmem:[#allocation143_spill] sm:$0xff]  ;;  %v15523_v40 = vld [vmem:[#allocation148_spill] sm:$0xff] }
 0x255   : > { %15514 = vst [vmem:[#allocation179_spill] sm:$0xff] %v10210_v27  ;;  %v2150_v7 = vadd.f32 %v2126_v14, %v2098_v34  ;;  %v2315_v50 = vmul.f32 %v15475_v3, %v15520_v2  ;;  %v1229_v31 = vmul.f32 %v15321_v25, %v10210_v27  ;;  %v3173_v29 = vadd.f32 %v15521_v45, %v3036_v35  ;;  %v15524_v2 = vld [vmem:[#allocation201_spill] sm:$0xff]  ;;  %v15525_v35 = vld [vmem:[#allocation198_spill] sm:$0xff]  ;;  %v15542_v1 = vld [vmem:[#allocation207_spill] sm:$0xff] }
 0x256   : > { %v1149_v38 = vadd.f32 %v1125_v43, %v1097_v0  ;;  %v2536_v41 = vadd.f32 %v2512_v51, %v2484_v52  ;;  %v10232_v33 = vmul.f32 %v14984_v6, %v15522_v28  ;;  %v2367_v14 = vmul.f32 %v15477_v62, %v15523_v40  ;;  %v15528_v28 = vld [vmem:[#allocation139_spill] sm:$0xff]  ;;  %v15536_v40 = vld [vmem:[#allocation205_spill] sm:$0xff] }
 0x257   : > { %v2287_v24 = vadd.f32 %v2263_v5, %v2150_v7  ;;  %v1366_v43 = vmul.f32 %v15391_v4, %v15415_v9  ;;  %v3225_v0 = vadd.f32 %v10038_v48, %v3173_v29  ;;  %v10242_v51 = vmul.f32 %v15430_v37, %v15524_v2  ;;  %v15526_v5 = vld [vmem:[#allocation10_spill] sm:$0xff] }
 0x258   : > { %v1201_v34 = vadd.f32 %v1177_v44, %v1149_v38  ;;  %v2588_v27 = vadd.f32 %v2564_v47, %v2536_v41  ;;  %v10246_v52 = vmul.f32 %v15442_v56, %v15525_v35  ;;  %v2419_v7 = vmul.f32 %v15481_v13, %v15526_v5  ;;  %v15527_v44 = vld [vmem:[#allocation47_spill] sm:$0xff]  ;;  %v15529_v47 = vld [vmem:[#allocation202_spill] sm:$0xff] }
 0x259   : > { %v2339_v45 = vadd.f32 %v2315_v50, %v2287_v24  ;;  %v1418_v38 = vmul.f32 %v15527_v44, %v15418_v63  ;;  %v3277_v9 = vadd.f32 %v15528_v28, %v3225_v0  ;;  %v15530_v29 = vld [vmem:[#allocation118_spill] sm:$0xff]  ;;  %v15531_v2 = vrot.slane %v9972_v11, 4  ;;  %v15537_v28 = vld [vmem:[#allocation49_spill] sm:$0xff] }
 0x25a   : > { %v1253_v12 = vadd.f32 %v1229_v31, %v1201_v34  ;;  %v2725_v48 = vadd.f32 %v2701_v16, %v2588_v27  ;;  %v10255_v41 = vmul.f32 %v15530_v29, %v15529_v47  ;;  %v15532_v35 = vrot.slane %v9531_v57, 4  ;;  %v15534_v31 = vld [vmem:[#allocation25_spill] sm:$0xff]  ;;  %v15535_v34 = vld [vmem:[#allocation82_spill] sm:$0xff]  ;;  %v15538_v27 = vld [vmem:[#allocation19_spill] sm:$0xff] }
 0x25b   : > { %v2391_v50 = vadd.f32 %v2367_v14, %v2339_v45  ;;  %v2471_v5 = vmul.f32 %v15535_v34, %v15534_v31  ;;  %v1470_v16 = vmul.f32 %v15537_v28, %v15536_v40  ;;  %v3329_v0 = vadd.f32 %v15538_v27, %v3277_v9  ;;  %v15539_v44 = vld [vmem:[#allocation257_spill] sm:$0xff]  ;;  %v15543_v31 = vld [vmem:[#allocation51_spill] sm:$0xff]  ;;  %v15546_v4 = vld [vmem:[#allocation206_spill] sm:$0xff] }
 0x25c   : > { %v10263_v24 = vsel %vm2198_vm3, %v15532_v35, %v15531_v2  ;;  %v1390_v63 = vadd.f32 %v1366_v43, %v1253_v12  ;;  %v2777_v47 = vadd.f32 %v10159_v19, %v2725_v48  ;;  %v2523_v21 = vmul.f32 %v15490_v61, %v15539_v44  ;;  %v15540_v2 = vld [vmem:[#allocation12_spill] sm:$0xff]  ;;  %v15541_v35 = vld [vmem:[#allocation102_spill] sm:$0xff]  ;;  %v15545_v27 = vld [vmem:[#allocation101_spill] sm:$0xff] }
 0x25d   : > { %15533 = vst [vmem:[#allocation140_spill] sm:$0xff] %v10263_v24  ;;  %v2443_v25 = vadd.f32 %v2419_v7, %v2391_v50  ;;  %v460_v14 = vmul.f32 %v15541_v35, %v15540_v2  ;;  %v1522_v12 = vmul.f32 %v15543_v31, %v15542_v1  ;;  %v15544_v43 = vld [vmem:[#allocation134_spill] sm:$0xff]  ;;  %v2575_v9 = vmul.f32 %v15492_v42, %v10263_v24  ;;  %v15547_v44 = vld [vmem:[#allocation53_spill] sm:$0xff]  ;;  %v15557_v19 = vld [vmem:[#allocation128_spill] sm:$0xff] }
 0x25e   : > { %v1442_v45 = vadd.f32 %v1418_v38, %v1390_v63  ;;  %v3381_v34 = vadd.f32 %v15544_v43, %v3329_v0  ;;  %v2829_v40 = vadd.f32 %v10166_v36, %v2777_v47  ;;  %v2712_v7 = vmul.f32 %v15494_v23, %v15545_v27  ;;  %v15548_v38 = vld [vmem:[#allocation149_spill] sm:$0xff]  ;;  %v15549_v0 = vld [vmem:[#allocation16_spill] sm:$0xff] }
 0x25f   : > { %v2495_v48 = vadd.f32 %v2471_v5, %v2443_v25  ;;  %v1574_v63 = vmul.f32 %v15547_v44, %v15546_v4  ;;  %v15550_v43 = vld [vmem:[#allocation109_spill] sm:$0xff]  ;;  %v15551_v47 = vrot.slane %v10162_v32, 2  ;;  %v15552_v24 = vrot.slane %v9972_v11, 2  ;;  %v15559_v44 = vld [vmem:[#allocation232_spill] sm:$0xff] }
 0x260   : > { %v1494_v50 = vadd.f32 %v1470_v16, %v1442_v45  ;;  %v3433_v28 = vadd.f32 %v15548_v38, %v3381_v34  ;;  %v2881_v1 = vadd.f32 %v10189_v20, %v2829_v40  ;;  %v519_v36 = vmul.f32 %v15550_v43, %v15549_v0  ;;  %v10302_v16 = vld [vmem:[%s13000_s2] ss:$0 sm:$0xff]  ;;  %v15555_v40 = vld [vmem:[#allocation279_spill] sm:$0xff]  ;;  %v15556_v45 = vld [vmem:[#allocation54_spill] sm:$0xff] }
 0x261   : > { %v10297_v25 = vsel %vm1300_vm1, %v15552_v24, %v15551_v47  ;;  %v2547_v5 = vadd.f32 %v2523_v21, %v2495_v48  ;;  %15554 = vst [vmem:[#allocation186_spill] sm:$0xff] %v10302_v16  ;;  %v491_v34 = vadd.f32 %v10302_v16, %v460_v14  ;;  %v1626_v38 = vmul.f32 %v15556_v45, %v15555_v40  ;;  %v15560_v24 = vld [vmem:[#allocation119_spill] sm:$0xff]  ;;  %v15561_v21 = vld [vmem:[#allocation154_spill] sm:$0xff]  ;;  %v15562_v2 = vld [vmem:[#allocation157_spill] sm:$0xff] }
 0x262   : > { %15553 = vst [vmem:[#allocation285_spill] sm:$0xff] %v10297_v25  ;;  %v1546_v20 = vadd.f32 %v1522_v12, %v1494_v50  ;;  %v10308_v4 = vadd.f32 %v15557_v19, %v3433_v28  ;;  %v2933_v27 = vadd.f32 %v10193_v30, %v2881_v1  ;;  %v10313_v47 = vmul.f32 %v15560_v24, %v15559_v44  ;;  %v15563_v50 = vld [vmem:[#allocation56_spill] sm:$0xff]  ;;  %v15570_v45 = vld [vmem:[#allocation58_spill] sm:$0xff] }
 0x263   : > { %v2764_v48 = vmul.f32 %v15497_v8, %v15561_v21  ;;  %v2599_v31 = vadd.f32 %v2575_v9, %v2547_v5  ;;  %v2816_v14 = vmul.f32 %v15233_v26, %v15562_v2  ;;  %v1678_v40 = vmul.f32 %v15563_v50, %v10297_v25  ;;  %v15567_v9 = vld [vmem:[#allocation17_spill] sm:$0xff]  ;;  %v15568_v5 = vld [vmem:[#allocation142_spill] sm:$0xff]  ;;  %v15573_v8 = vld [vmem:[#allocation156_spill] sm:$0xff] }
 0x264   : > { %15558 = vst [vmem:[#allocation199_spill] sm:$0xff] %v10308_v4  ;;  %v1598_v12 = vadd.f32 %v1574_v63, %v1546_v20  ;;  %v3522_v28 = vsel %vm3503_vm6, %v10308_v4, 0.0  ;;  %v2985_v1 = vadd.f32 %v10202_v55, %v2933_v27  ;;  %v15564_v30 = vrot.slane %v9972_v11, 5  ;;  %v15569_v50 = vld [vmem:[#allocation178_spill] sm:$0xff]  ;;  %v15571_v27 = vld [vmem:[#allocation236_spill] sm:$0xff] }
 0x265   : > { %v15565_v19 = vrot.slane %v9531_v57, 5  ;;  %v571_v2 = vmul.f32 %v15568_v5, %v15567_v9  ;;  %3523 = vadd.xlane.f32.xlu0 %v3522_v28  ;;  %v2736_v63 = vadd.f32 %v2712_v7, %v2599_v31  ;;  %v543_v20 = vadd.f32 %v519_v36, %v491_v34  ;;  %v15572_v44 = vld [vmem:[#allocation122_spill] sm:$0xff]  ;;  %v15575_v61 = vld [vmem:[#allocation172_spill] sm:$0xff]  ;;  %v15576_v36 = vld [vmem:[#allocation209_spill] sm:$0xff] }
 0x266   : > { %v1650_v25 = vadd.f32 %v1626_v38, %v1598_v12  ;;  %v1815_v4 = vmul.f32 %v15570_v45, %v15569_v50  ;;  %v3037_v55 = vadd.f32 %v10219_v49, %v2985_v1  ;;  %v3462_v26 = vmul.f32 %v15572_v44, %v15571_v27  ;;  %v15577_v34 = vld [vmem:[#allocation61_spill] sm:$0xff]  ;;  %v15578_v1 = vld [vmem:[#allocation18_spill] sm:$0xff]  ;;  %v15581_v27 = vld [vmem:[#allocation64_spill] sm:$0xff] }
 0x267   : > { %v10330_v21 = vsel %vm2647_vm4, %v15565_v19, %v15564_v30  ;;  %v2868_v23 = vmul.f32 %v15508_v39, %v15573_v8  ;;  %v15574_v30 = vld [vmem:[#allocation159_spill] sm:$0xff]  ;;  %v2788_v42 = vadd.f32 %v2764_v48, %v2736_v63  ;;  %v2972_v31 = vmul.f32 %v15413_v17, %v15575_v61  ;;  %v15579_v50 = vld [vmem:[#allocation117_spill] sm:$0xff]  ;;  %v15580_v63 = vld [vmem:[#allocation208_spill] sm:$0xff] }
 0x268   : > { %15566 = vst [vmem:[#allocation143_spill] sm:$0xff] %v10330_v21  ;;  %v2920_v19 = vmul.f32 %v15411_v53, %v15574_v30  ;;  %v1702_v7 = vadd.f32 %v1678_v40, %v1650_v25  ;;  %v1867_v38 = vmul.f32 %v15577_v34, %v15576_v36  ;;  %v3174_v12 = vadd.f32 %v10223_v54, %v3037_v55  ;;  %v15582_v36 = vld [vmem:[#allocation171_spill] sm:$0xff]  ;;  %v15588_v40 = vld [vmem:[#allocation32_spill] sm:$0xff] }
 0x269   : > { %v3024_v49 = vmul.f32 %v15243_v46, %v10330_v21  ;;  %v623_v8 = vmul.f32 %v15579_v50, %v15578_v1  ;;  %v2840_v45 = vadd.f32 %v2816_v14, %v2788_v42  ;;  %v595_v30 = vadd.f32 %v571_v2, %v543_v20  ;;  %v15583_v55 = vld [vmem:[#allocation15_spill] sm:$0xff]  ;;  %v15584_v46 = vld [vmem:[#allocation210_spill] sm:$0xff]  ;;  %v15586_v20 = vld [vmem:[#allocation21_spill] sm:$0xff] }
 0x26a   : > { %v1839_v48 = vadd.f32 %v1815_v4, %v1702_v7  ;;  %v1919_v61 = vmul.f32 %v15581_v27, %v15580_v63  ;;  %v3226_v25 = vadd.f32 %v10232_v33, %v3174_v12  ;;  %v479_v54 = vadd.f32 %v10302_v16, %v15582_v36  ;;  %v15585_v4 = vld [vmem:[#allocation22_spill] sm:$0xff]  ;;  %v15587_v33 = vld [vmem:[#allocation193_spill] sm:$0xff] }
 0x26b   : > { %v507_v21 = vmul.f32 %v15583_v55, %v15549_v0  ;;  %v2892_v28 = vadd.f32 %v2868_v23, %v2840_v45  ;;  %v1971_v42 = vmul.f32 %v15285_v18, %v15584_v46  ;;  %v559_v2 = vmul.f32 %v15585_v4, %v15567_v9  ;;  %v15589_v23 = vld [vmem:[#allocation211_spill] sm:$0xff]  ;;  %v15590_v45 = vld [vmem:[#allocation68_spill] sm:$0xff] }
 0x26c   : > { %v1891_v34 = vadd.f32 %v1867_v38, %v1839_v48  ;;  %v3278_v14 = vadd.f32 %v10242_v51, %v3226_v25  ;;  %v675_v7 = vmul.f32 %v15587_v33, %v15586_v20  ;;  %v611_v36 = vmul.f32 %v15588_v40, %v15578_v1 }
 0x26d   : > { %v531_v12 = vadd.f32 %v507_v21, %v479_v54  ;;  %v2944_v63 = vadd.f32 %v2920_v19, %v2892_v28  ;;  %v647_v50 = vadd.f32 %v623_v8, %v595_v30  ;;  %v2023_v38 = vmul.f32 %v15590_v45, %v15589_v23  ;;  %v15594_v8 = vld [vmem:[#allocation129_spill] sm:$0xff]  ;;  %v15596_v54 = vld [vmem:[#allocation163_spill] sm:$0xff] }
 0x26e   : > { %v1943_v55 = vadd.f32 %v1919_v61, %v1891_v34  ;;  %v3330_v48 = vadd.f32 %v10246_v52, %v3278_v14  ;;  %v15591_v46 = vrot.slane %v10162_v32, 3  ;;  %v15592_v4 = vrot.slane %v9972_v11, 3  ;;  %v15595_v34 = vld [vmem:[#allocation280_spill] sm:$0xff] }
 0x26f   : > { %v583_v21 = vadd.f32 %v559_v2, %v531_v12  ;;  %v663_v25 = vmul.f32 %v15541_v35, %v15586_v20  ;;  %v2996_v19 = vadd.f32 %v2972_v31, %v2944_v63  ;;  %v3161_v61 = vmul.f32 %v15519_v22, %v15594_v8  ;;  %v15598_v12 = vld [vmem:[#allocation187_spill] sm:$0xff] }
 0x270   : > { %v10379_v51 = vsel %vm1749_vm2, %v15592_v4, %v15591_v46  ;;  %v1995_v30 = vadd.f32 %v1971_v42, %v1943_v55  ;;  %v2075_v52 = vmul.f32 %v15466_v59, %v15595_v34  ;;  %v3382_v28 = vadd.f32 %v10255_v41, %v3330_v48  ;;  %v15597_v46 = vld [vmem:[#allocation23_spill] sm:$0xff] }
 0x271   : > { %15593 = vst [vmem:[#allocation139_spill] sm:$0xff] %v10379_v51  ;;  %v3213_v14 = vmul.f32 %v14984_v6, %v15596_v54  ;;  %v635_v23 = vadd.f32 %v611_v36, %v583_v21  ;;  %v715_v4 = vmul.f32 %v15550_v43, %v15597_v46  ;;  %v3048_v2 = vadd.f32 %v3024_v49, %v2996_v19  ;;  %v15599_v41 = vld [vmem:[#allocation27_spill] sm:$0xff]  ;;  %v15600_v36 = vld [vmem:[#allocation165_spill] sm:$0xff] }
 0x272   : > { %v727_v31 = vmul.f32 %v15598_v12, %v15597_v46  ;;  %v2047_v63 = vadd.f32 %v2023_v38, %v1995_v30  ;;  %v2127_v55 = vmul.f32 %v15471_v10, %v10379_v51  ;;  %v3434_v42 = vadd.f32 %v10313_v47, %v3382_v28  ;;  %v15601_v49 = vld [vmem:[#allocation181_spill] sm:$0xff]  ;;  %v15606_v28 = vld [vmem:[#allocation216_spill] sm:$0xff] }
 0x273   : > { %v699_v34 = vadd.f32 %v675_v7, %v647_v50  ;;  %v687_v33 = vadd.f32 %v663_v25, %v635_v23  ;;  %v767_v48 = vmul.f32 %v15568_v5, %v15599_v41  ;;  %v3185_v35 = vadd.f32 %v3161_v61, %v3048_v2  ;;  %v15603_v38 = vld [vmem:[#allocation169_spill] sm:$0xff]  ;;  %v15605_v50 = vld [vmem:[#allocation30_spill] sm:$0xff] }
 0x274   : > { %v3265_v21 = vmul.f32 %v15430_v37, %v15600_v36  ;;  %v2099_v43 = vadd.f32 %v2075_v52, %v2047_v63  ;;  %v2264_v19 = vmul.f32 %v15473_v15, %v15601_v49  ;;  %v10403_v12 = vadd.f32 %v3462_v26, %v3434_v42  ;;  %v15604_v47 = vld [vmem:[#allocation213_spill] sm:$0xff]  ;;  %v15607_v42 = vld [vmem:[#allocation212_spill] sm:$0xff]  ;;  %v15608_v49 = vld [vmem:[#allocation31_spill] sm:$0xff] }
 0x275   : > { %v3317_v30 = vmul.f32 %v15442_v56, %v15603_v38  ;;  %v739_v51 = vadd.f32 %v715_v4, %v687_v33  ;;  %v906_v7 = vmul.f32 %v15605_v50, %v15604_v47  ;;  %v3237_v23 = vadd.f32 %v3213_v14, %v3185_v35  ;;  %v15609_v4 = vld [vmem:[#allocation167_spill] sm:$0xff]  ;;  %v15619_v38 = vld [vmem:[#allocation36_spill] sm:$0xff]  ;;  %v15630_v54 = vld [vmem:[#allocation41_spill] sm:$0xff] }
 0x276   : > { %15602 = vst [vmem:[#allocation19_spill] sm:$0xff] %v10403_v12  ;;  %v779_v25 = vmul.f32 %v10162_v32, %v15599_v41  ;;  %v2151_v61 = vadd.f32 %v2127_v55, %v2099_v43  ;;  %v2316_v52 = vmul.f32 %v15475_v3, %v15606_v28  ;;  %v3525_v2 = vsel %vm3503_vm6, %v10403_v12, 0.0  ;;  %v15610_v47 = vld [vmem:[#allocation215_spill] sm:$0xff]  ;;  %v15616_v12 = vld [vmem:[#allocation218_spill] sm:$0xff]  ;;  %v15629_v36 = vld [vmem:[#allocation192_spill] sm:$0xff] }
 0x277   : > { %v751_v26 = vadd.f32 %v727_v31, %v699_v34  ;;  %v791_v63 = vadd.f32 %v767_v48, %v739_v51  ;;  %v958_v5 = vmul.f32 %v15608_v49, %v15607_v42  ;;  %3526 = vadd.xlane.f32.xlu1 %v3525_v2  ;;  %v3289_v33 = vadd.f32 %v3265_v21, %v3237_v23  ;;  %v15614_v48 = vld [vmem:[#allocation214_spill] sm:$0xff]  ;;  %v15615_v2 = vld [vmem:[#allocation141_spill] sm:$0xff] }
 0x278   : > { %v3369_v35 = vmul.f32 %v15530_v29, %v15609_v4  ;;  %v2288_v14 = vadd.f32 %v2264_v19, %v2151_v61  ;;  %v2368_v43 = vmul.f32 %v15477_v62, %v15610_v47  ;;  %v15611_v55 = vrot.slane %v9972_v11, 6  ;;  %v15617_v4 = vld [vmem:[#allocation217_spill] sm:$0xff] }
 0x279   : > { %v15612_v28 = vrot.slane %v9531_v57, 6  ;;  %v930_v31 = vadd.f32 %v906_v7, %v791_v63  ;;  %v1010_v21 = vmul.f32 %v15299_v60, %v15614_v48  ;;  %v3341_v23 = vadd.f32 %v3317_v30, %v3289_v33  ;;  %v15620_v33 = vld [vmem:[#allocation14_spill] sm:$0xff] }
 0x27a   : > { %v3421_v19 = vmul.f32 %v15560_v24, %v15615_v2  ;;  %v2340_v61 = vadd.f32 %v2316_v52, %v2288_v14  ;;  %v2420_v47 = vmul.f32 %v15481_v13, %v15616_v12  ;;  %v803_v42 = vadd.f32 %v779_v25, %v751_v26  ;;  %v15621_v48 = vld [vmem:[#allocation82_spill] sm:$0xff]  ;;  %v15625_v26 = vld [vmem:[#allocation39_spill] sm:$0xff] }
 0x27b   : > { %v10427_v34 = vsel %vm3096_vm5, %v15612_v28, %v15611_v55  ;;  %v918_v40 = vmul.f32 %v15605_v50, %v15617_v4  ;;  %v982_v28 = vadd.f32 %v958_v5, %v930_v31  ;;  %v15618_v55 = vld [vmem:[#allocation153_spill] sm:$0xff]  ;;  %v3393_v7 = vadd.f32 %v3369_v35, %v3341_v23  ;;  %v15626_v12 = vld [vmem:[#allocation282_spill] sm:$0xff] }
 0x27c   : > { %15613 = vst [vmem:[#allocation134_spill] sm:$0xff] %v10427_v34  ;;  %v1062_v51 = vmul.f32 %v15619_v38, %v15618_v55  ;;  %v3473_v63 = vmul.f32 %v15572_v44, %v10427_v34  ;;  %v2392_v30 = vadd.f32 %v2368_v43, %v2340_v61  ;;  %v2472_v2 = vmul.f32 %v15621_v48, %v15620_v33  ;;  %v15627_v55 = vld [vmem:[#allocation87_spill] sm:$0xff]  ;;  %v15637_v61 = vld [vmem:[#allocation12_spill] sm:$0xff] }
 0x27d   : > { %v15622_v52 = vrot.slane %v10162_v32, 4  ;;  %v15623_v14 = vrot.slane %v9972_v11, 4  ;;  %v1034_v5 = vadd.f32 %v1010_v21, %v982_v28  ;;  %v1114_v31 = vmul.f32 %v15625_v26, %v15617_v4  ;;  %v15632_v21 = vld [vmem:[#allocation88_spill] sm:$0xff] }
 0x27e   : > { %v3445_v35 = vadd.f32 %v3421_v19, %v3393_v7  ;;  %v2444_v23 = vadd.f32 %v2420_v47, %v2392_v30  ;;  %v2524_v43 = vmul.f32 %v15627_v55, %v15626_v12  ;;  %v10457_v33 = vadd.f32 %v918_v40, %v803_v42  ;;  %v15634_v19 = vld [vmem:[#allocation90_spill] sm:$0xff]  ;;  %v15635_v30 = vld [vmem:[#allocation241_spill] sm:$0xff]  ;;  %v15636_v12 = vld [vmem:[#allocation43_spill] sm:$0xff] }
 0x27f   : > { %v10450_v25 = vsel %vm2198_vm3, %v15623_v14, %v15622_v52  ;;  %v1086_v34 = vadd.f32 %v1062_v51, %v1034_v5  ;;  %v1166_v8 = vmul.f32 %v15630_v54, %v15629_v36  ;;  %v15633_v14 = vld [vmem:[#allocation188_spill] sm:$0xff]  ;;  %v1218_v4 = vmul.f32 %v15636_v12, %v15635_v30  ;;  %v15646_v30 = vld [vmem:[#allocation45_spill] sm:$0xff]  ;;  %v15648_v12 = vld [vmem:[#allocation223_spill] sm:$0xff] }
 0x280   : > { %15624 = vst [vmem:[#allocation149_spill] sm:$0xff] %v10450_v25  ;;  %15628 = vst [vmem:[#allocation128_spill] sm:$0xff] %v10457_v33  ;;  %v10461_v57 = vadd.f32 %v3473_v63, %v3445_v35  ;;  %v2496_v52 = vadd.f32 %v2472_v2, %v2444_v23  ;;  %v2576_v28 = vmul.f32 %v15632_v21, %v10450_v25  ;;  %v15638_v40 = vld [vmem:[#allocation20_spill] sm:$0xff]  ;;  %v15640_v35 = vrot.slane %v10162_v32, 5  ;;  %v15644_v25 = vld [vmem:[#allocation95_spill] sm:$0xff] }
 0x281   : > { %v2713_v47 = vmul.f32 %v15634_v19, %v15633_v14  ;;  %v1138_v7 = vadd.f32 %v1114_v31, %v1086_v34  ;;  %v449_v42 = vmul.f32 %v15638_v40, %v15637_v61  ;;  %v15639_v51 = vld [vmem:[#allocation24_spill] sm:$0xff]  ;;  %v15641_v23 = vrot.slane %v9972_v11, 5  ;;  %v15643_v31 = vld [vmem:[#allocation222_spill] sm:$0xff] }
 0x282   : > { %15631 = vst [vmem:[#allocation171_spill] sm:$0xff] %v10461_v57  ;;  %v508_v5 = vmul.f32 %v15639_v51, %v15549_v0  ;;  %v3558_v63 = vsel %vm3503_vm6, %v10461_v57, 0.0  ;;  %v2548_v2 = vadd.f32 %v2524_v43, %v2496_v52  ;;  %v2765_v14 = vmul.f32 %v15644_v25, %v15643_v31  ;;  %v15645_v33 = vld [vmem:[#allocation220_spill] sm:$0xff]  ;;  %v15647_v43 = vld [vmem:[#allocation26_spill] sm:$0xff] }
 0x283   : > { %v10481_v34 = vsel %vm2647_vm4, %v15641_v23, %v15640_v35  ;;  %3559 = vadd.xlane.f32.xlu0 %v3558_v63  ;;  %v1190_v40 = vadd.f32 %v1166_v8, %v1138_v7  ;;  %v1355_v51 = vmul.f32 %v15646_v30, %v15645_v33  ;;  %v480_v36 = vadd.f32 %v10302_v16, %v449_v42  ;;  %v15649_v0 = vld [vmem:[#allocation96_spill] sm:$0xff]  ;;  %v15650_v61 = vld [vmem:[#allocation226_spill] sm:$0xff]  ;;  %v15651_v63 = vld [vmem:[#allocation221_spill] sm:$0xff] }
 0x284   : > { %15642 = vst [vmem:[#allocation213_spill] sm:$0xff] %v10481_v34  ;;  %v560_v52 = vmul.f32 %v15647_v43, %v15567_v9  ;;  %v2600_v57 = vadd.f32 %v2576_v28, %v2548_v2  ;;  %v2817_v54 = vmul.f32 %v15649_v0, %v15648_v12  ;;  %v2869_v35 = vmul.f32 %v15508_v39, %v15650_v61  ;;  %v15652_v8 = vld [vmem:[#allocation47_spill] sm:$0xff]  ;;  %v15653_v33 = vld [vmem:[#allocation28_spill] sm:$0xff]  ;;  %v15654_v16 = vld [vmem:[#allocation225_spill] sm:$0xff] }
 0x285   : > { %v1242_v31 = vadd.f32 %v1218_v4, %v1190_v40  ;;  %v1407_v7 = vmul.f32 %v15652_v8, %v15651_v63  ;;  %v532_v25 = vadd.f32 %v508_v5, %v480_v36  ;;  %v612_v42 = vmul.f32 %v15653_v33, %v15578_v1  ;;  %v15655_v2 = vld [vmem:[#allocation283_spill] sm:$0xff]  ;;  %v15656_v12 = vld [vmem:[#allocation100_spill] sm:$0xff]  ;;  %v15658_v4 = vld [vmem:[#allocation49_spill] sm:$0xff] }
 0x286   : > { %v2737_v30 = vadd.f32 %v2713_v47, %v2600_v57  ;;  %v2921_v28 = vmul.f32 %v15411_v53, %v15654_v16  ;;  %v2973_v43 = vmul.f32 %v15413_v17, %v15655_v2  ;;  %v3025_v61 = vmul.f32 %v15656_v12, %v10481_v34  ;;  %v15657_v23 = vld [vmem:[#allocation227_spill] sm:$0xff]  ;;  %v15663_v2 = vld [vmem:[#allocation202_spill] sm:$0xff] }
 0x287   : > { %v1379_v39 = vadd.f32 %v1355_v51, %v1242_v31  ;;  %v1459_v40 = vmul.f32 %v15658_v4, %v15657_v23  ;;  %v584_v0 = vadd.f32 %v560_v52, %v532_v25  ;;  %v15659_v36 = vld [vmem:[#allocation103_spill] sm:$0xff]  ;;  %v15660_v57 = vrot.slane %v10162_v32, 6  ;;  %v15664_v31 = vld [vmem:[#allocation232_spill] sm:$0xff]  ;;  %v15665_v25 = vld [vmem:[#allocation229_spill] sm:$0xff] }
 0x288   : > { %v664_v5 = vmul.f32 %v15659_v36, %v15586_v20  ;;  %v2789_v63 = vadd.f32 %v2765_v14, %v2737_v30  ;;  %v15661_v47 = vrot.slane %v9972_v11, 6  ;;  %v3162_v34 = vmul.f32 %v15519_v22, %v15663_v2  ;;  %v15666_v52 = vld [vmem:[#allocation51_spill] sm:$0xff]  ;;  %v15667_v14 = vld [vmem:[#allocation104_spill] sm:$0xff] }
 0x289   : > { %v3214_v51 = vmul.f32 %v14984_v6, %v15664_v31  ;;  %v1431_v16 = vadd.f32 %v1407_v7, %v1379_v39  ;;  %v1511_v23 = vmul.f32 %v15666_v52, %v15665_v25  ;;  %v636_v12 = vadd.f32 %v612_v42, %v584_v0  ;;  %v15668_v11 = vld [vmem:[#allocation236_spill] sm:$0xff]  ;;  %v15671_v39 = vld [vmem:[#allocation230_spill] sm:$0xff]  ;;  %v15672_v7 = vld [vmem:[#allocation53_spill] sm:$0xff] }
 0x28a   : > { %v10515_v33 = vsel %vm3096_vm5, %v15661_v47, %v15660_v57  ;;  %v716_v30 = vmul.f32 %v15667_v14, %v15597_v46  ;;  %v2841_v17 = vadd.f32 %v2817_v54, %v2789_v63  ;;  %v3266_v53 = vmul.f32 %v15430_v37, %v15668_v11  ;;  %v15669_v57 = vld [vmem:[#allocation235_spill] sm:$0xff]  ;;  %v15673_v0 = vld [vmem:[#allocation105_spill] sm:$0xff]  ;;  %v15675_v11 = vld [vmem:[#allocation244_spill] sm:$0xff] }
 0x28b   : > { %15662 = vst [vmem:[#allocation20_spill] sm:$0xff] %v10515_v33  ;;  %v3318_v47 = vmul.f32 %v15442_v56, %v15669_v57  ;;  %v10531_v2 = vmul.f32 %v15530_v29, %v15670_v58  ;;  %v1483_v31 = vadd.f32 %v1459_v40, %v1431_v16  ;;  %v1563_v6 = vmul.f32 %v15672_v7, %v15671_v39  ;;  %v15674_v54 = vld [vmem:[#allocation79_spill] sm:$0xff]  ;;  %v15676_v58 = vld [vmem:[#allocation54_spill] sm:$0xff]  ;;  %v15677_v40 = vld [vmem:[#allocation80_spill] sm:$0xff] }
 0x28c   : > { %v688_v25 = vadd.f32 %v664_v5, %v636_v12  ;;  %v768_v42 = vmul.f32 %v15673_v0, %v15599_v41  ;;  %v2893_v22 = vadd.f32 %v2869_v35, %v2841_v17  ;;  %v10539_v63 = vmul.f32 %v15560_v24, %v15674_v54  ;;  %v15678_v56 = vld [vmem:[#allocation56_spill] sm:$0xff]  ;;  %v15679_v5 = vld [vmem:[#allocation38_spill] sm:$0xff]  ;;  %v15680_v35 = vld [vmem:[#allocation239_spill] sm:$0xff] }
 0x28d   : > { %v10543_v57 = vmul.f32 %v15572_v44, %v10515_v33  ;;  %v1615_v29 = vmul.f32 %v15676_v58, %v15675_v11  ;;  %v1535_v16 = vadd.f32 %v1511_v23, %v1483_v31  ;;  %v1667_v37 = vmul.f32 %v15678_v56, %v15677_v40  ;;  %v15681_v39 = vld [vmem:[#allocation58_spill] sm:$0xff]  ;;  %v15682_v24 = vld [vmem:[#allocation243_spill] sm:$0xff]  ;;  %v15683_v7 = vld [vmem:[#allocation61_spill] sm:$0xff] }
 0x28e   : > { %v740_v12 = vadd.f32 %v716_v30, %v688_v25  ;;  %v907_v41 = vmul.f32 %v15605_v50, %v15679_v5  ;;  %v2945_v17 = vadd.f32 %v2921_v28, %v2893_v22  ;;  %v1804_v54 = vmul.f32 %v15681_v39, %v15680_v35  ;;  %v15684_v33 = vld [vmem:[#allocation246_spill] sm:$0xff]  ;;  %v15685_v11 = vld [vmem:[#allocation245_spill] sm:$0xff] }
 0x28f   : > { %v1856_v46 = vmul.f32 %v15683_v7, %v15682_v24  ;;  %v1908_v44 = vmul.f32 %v15581_v27, %v15684_v33  ;;  %v1587_v52 = vadd.f32 %v1563_v6, %v1535_v16  ;;  %v1960_v23 = vmul.f32 %v15285_v18, %v15685_v11  ;;  %v15686_v40 = vld [vmem:[#allocation42_spill] sm:$0xff]  ;;  %v15687_v5 = vld [vmem:[#allocation77_spill] sm:$0xff] }
 0x290   : > { %v792_v31 = vadd.f32 %v768_v42, %v740_v12  ;;  %v959_v25 = vmul.f32 %v15608_v49, %v15686_v40  ;;  %v2997_v30 = vadd.f32 %v2973_v43, %v2945_v17  ;;  %v2012_v22 = vmul.f32 %v15590_v45, %v15687_v5  ;;  %v15688_v28 = vld [vmem:[#allocation262_spill] sm:$0xff]  ;;  %v15689_v50 = vld [vmem:[#allocation261_spill] sm:$0xff]  ;;  %v15691_v12 = vld [vmem:[#allocation44_spill] sm:$0xff] }
 0x291   : > { %v2064_v35 = vmul.f32 %v15466_v59, %v15688_v28  ;;  %v10567_v24 = vmul.f32 %v15471_v10, %v15689_v50  ;;  %v1639_v33 = vadd.f32 %v1615_v29, %v1587_v52  ;;  %v15690_v6 = vld [vmem:[#allocation250_spill] sm:$0xff]  ;;  %v1011_v40 = vmul.f32 %v15299_v60, %v15691_v12  ;;  %v15692_v17 = vld [vmem:[#allocation248_spill] sm:$0xff]  ;;  %v15693_v5 = vld [vmem:[#allocation251_spill] sm:$0xff] }
 0x292   : > { %v10571_v16 = vmul.f32 %v15473_v15, %v15690_v6  ;;  %v931_v42 = vadd.f32 %v907_v41, %v792_v31  ;;  %v3049_v43 = vadd.f32 %v3025_v61, %v2997_v30  ;;  %v10577_v11 = vmul.f32 %v15475_v3, %v15692_v17  ;;  %v15694_v50 = vld [vmem:[#allocation35_spill] sm:$0xff]  ;;  %v15696_v12 = vld [vmem:[#allocation46_spill] sm:$0xff]  ;;  %v15697_v17 = vld [vmem:[#allocation264_spill] sm:$0xff] }
 0x293   : > { %v10581_v28 = vmul.f32 %v15477_v62, %v15693_v5  ;;  %v10585_v29 = vmul.f32 %v15481_v13, %v15694_v50  ;;  %v1691_v52 = vadd.f32 %v1667_v37, %v1639_v33  ;;  %v15695_v6 = vld [vmem:[#allocation247_spill] sm:$0xff]  ;;  %v1063_v61 = vmul.f32 %v15619_v38, %v15696_v12  ;;  %v15698_v5 = vld [vmem:[#allocation266_spill] sm:$0xff]  ;;  %v15699_v50 = vld [vmem:[#allocation124_spill] sm:$0xff] }
 0x294   : > { %v10589_v41 = vmul.f32 %v15621_v48, %v15695_v6  ;;  %v983_v31 = vadd.f32 %v959_v25, %v931_v42  ;;  %v3186_v30 = vadd.f32 %v3162_v34, %v3049_v43  ;;  %v10595_v3 = vmul.f32 %v15627_v55, %v15697_v17  ;;  %v15701_v48 = vld [vmem:[#allocation123_spill] sm:$0xff]  ;;  %v15702_v42 = vld [vmem:[#allocation12_spill] sm:$0xff]  ;;  %v15706_v13 = vld [vmem:[#allocation125_spill] sm:$0xff] }
 0x295   : > { %v10599_v62 = vmul.f32 %v15632_v21, %v15698_v5  ;;  %v10603_v37 = vmul.f32 %v15634_v19, %v15699_v50  ;;  %v1828_v33 = vadd.f32 %v1804_v54, %v1691_v52  ;;  %v1115_v25 = vmul.f32 %v15625_v26, %v15701_v48  ;;  %v15703_v12 = vld [vmem:[#allocation255_spill] sm:$0xff]  ;;  %v15707_v5 = vld [vmem:[#allocation41_spill] sm:$0xff]  ;;  %v15708_v15 = vld [vmem:[#allocation16_spill] sm:$0xff] }
 0x296   : > { %v1035_v6 = vadd.f32 %v1011_v40, %v983_v31  ;;  %v461_v34 = vmul.f32 %v15659_v36, %v15702_v42  ;;  %v3238_v43 = vadd.f32 %v3214_v51, %v3186_v30  ;;  %v15704_v17 = vld [vmem:[#allocation95_spill] sm:$0xff]  ;;  %v1167_v21 = vmul.f32 %v15707_v5, %v15706_v13  ;;  %v15709_v40 = vld [vmem:[#allocation186_spill] sm:$0xff]  ;;  %v15711_v51 = vld [vmem:[#allocation96_spill] sm:$0xff] }
 0x297   : > { %15700 = vst [vmem:[#allocation24_spill] sm:$0xff] %v10603_v37  ;;  %v10611_v55 = vmul.f32 %v15704_v17, %v15703_v12  ;;  %v520_v50 = vmul.f32 %v15667_v14, %v15708_v15  ;;  %v1880_v19 = vadd.f32 %v1856_v46, %v1828_v33  ;;  %v572_v31 = vmul.f32 %v15673_v0, %v15567_v9  ;;  %v15710_v36 = vld [vmem:[#allocation254_spill] sm:$0xff]  ;;  %v15712_v12 = vld [vmem:[#allocation127_spill] sm:$0xff]  ;;  %v15715_v46 = vld [vmem:[#allocation52_spill] sm:$0xff] }
 0x298   : > { %v1087_v54 = vadd.f32 %v1063_v61, %v1035_v6  ;;  %v492_v52 = vadd.f32 %v15709_v40, %v461_v34  ;;  %v3290_v37 = vadd.f32 %v3266_v53, %v3238_v43  ;;  %v10622_v30 = vmul.f32 %v15711_v51, %v15710_v36  ;;  %v15713_v42 = vld [vmem:[#allocation43_spill] sm:$0xff]  ;;  %v15716_v6 = vld [vmem:[#allocation45_spill] sm:$0xff]  ;;  %v15717_v0 = vld [vmem:[#allocation110_spill] sm:$0xff] }
 0x299   : > { %15705 = vst [vmem:[#allocation220_spill] sm:$0xff] %v10611_v55  ;;  %v1219_v17 = vmul.f32 %v15713_v42, %v15712_v12  ;;  %v15714_v55 = vld [vmem:[#allocation63_spill] sm:$0xff]  ;;  %v1932_v59 = vadd.f32 %v1908_v44, %v1880_v19  ;;  %v1356_v61 = vmul.f32 %v15716_v6, %v15715_v46  ;;  %v624_v53 = vmul.f32 %v15717_v0, %v15578_v1  ;;  %v15718_v36 = vld [vmem:[#allocation192_spill] sm:$0xff]  ;;  %v15753_v1 = vld [vmem:[#allocation138_spill] sm:$0xff] }
 0x29a   : > { %v10627_v10 = vunpack.c.h.bf16 %v15714_v55  ;;  %v1139_v14 = vadd.f32 %v1115_v25, %v1087_v54  ;;  %v544_v33 = vadd.f32 %v520_v50, %v492_v52  ;;  %v3342_v34 = vadd.f32 %v3318_v47, %v3290_v37  ;;  %v15719_v55 = vld [vmem:[#allocation241_spill] sm:$0xff]  ;;  %v15722_v47 = vld [vmem:[#allocation128_spill] sm:$0xff] }
 0x29b   : > { %v970_v9 = vmul.f32 %v15608_v49, %v15718_v36  ;;  %v1984_v15 = vadd.f32 %v1960_v23, %v1932_v59  ;;  %v1022_v44 = vmul.f32 %v15299_v60, %v15719_v55  ;;  %v15720_v25 = vld [vmem:[#allocation253_spill] sm:$0xff]  ;;  %v15724_v36 = vld [vmem:[#allocation55_spill] sm:$0xff] }
 0x29c   : > { %v1191_v40 = vadd.f32 %v1167_v21, %v1139_v14  ;;  %v596_v51 = vadd.f32 %v572_v31, %v544_v33  ;;  %v3394_v19 = vadd.f32 %v10531_v2, %v3342_v34  ;;  %v15721_v54 = vld [vmem:[#allocation97_spill] sm:$0xff]  ;;  %v1408_v59 = vmul.f32 %v15652_v8, %v15724_v36  ;;  %v15725_v21 = vld [vmem:[#allocation240_spill] sm:$0xff]  ;;  %v15726_v33 = vld [vmem:[#allocation62_spill] sm:$0xff] }
 0x29d   : > { %v10641_v50 = vmul.f32 %v15721_v54, %v15720_v25  ;;  %v994_v37 = vadd.f32 %v970_v9, %v15722_v47  ;;  %v15723_v52 = vld [vmem:[#allocation65_spill] sm:$0xff]  ;;  %v2036_v0 = vadd.f32 %v2012_v22, %v1984_v15  ;;  %v676_v23 = vmul.f32 %v15725_v21, %v15586_v20  ;;  %v15733_v36 = vld [vmem:[#allocation224_spill] sm:$0xff] }
 0x29e   : > { %v1074_v46 = vmul.f32 %v15619_v38, %v15723_v52  ;;  %v1243_v43 = vadd.f32 %v1219_v17, %v1191_v40  ;;  %v3446_v31 = vadd.f32 %v10539_v63, %v3394_v19  ;;  %v648_v2 = vadd.f32 %v624_v53, %v596_v51  ;;  %v15727_v47 = vld [vmem:[#allocation57_spill] sm:$0xff]  ;;  %v15734_v51 = vld [vmem:[#allocation98_spill] sm:$0xff] }
 0x29f   : > { %v1046_v14 = vadd.f32 %v1022_v44, %v994_v37  ;;  %v1126_v34 = vmul.f32 %v15625_v26, %v15726_v33  ;;  %v2088_v25 = vadd.f32 %v2064_v35, %v2036_v0  ;;  %v1460_v52 = vmul.f32 %v15658_v4, %v15727_v47  ;;  %v15730_v17 = vld [vmem:[#allocation9_spill] sm:$0xff]  ;;  %v15736_v37 = vld [vmem:[#allocation59_spill] sm:$0xff] }
 0x2a0   : > { %v1380_v9 = vadd.f32 %v1356_v61, %v1243_v43  ;;  %v15728_v15 = vrot.slane %v10627_v10, 1  ;;  %v15729_v22 = vrot.slane %v10162_v32, 1  ;;  %v10664_v63 = vadd.f32 %v10543_v57, %v3446_v31  ;;  %v15735_v61 = vld [vmem:[#allocation249_spill] sm:$0xff]  ;;  %v15737_v0 = vld [vmem:[#allocation51_spill] sm:$0xff] }
 0x2a1   : > { %v10668_v53 = vmul.f32 %v15734_v51, %v15733_v36  ;;  %v1098_v35 = vadd.f32 %v1074_v46, %v1046_v14  ;;  %v1178_v43 = vmul.f32 %v15707_v5, %v15735_v61  ;;  %v2140_v44 = vadd.f32 %v10567_v24, %v2088_v25  ;;  %v15738_v47 = vld [vmem:[#allocation23_spill] sm:$0xff]  ;;  %v15740_v61 = vld [vmem:[#allocation269_spill] sm:$0xff] }
 0x2a2   : > { %v10661_v40 = vsel %vm851_vm0, %v15729_v22, %v15728_v15  ;;  %15732 = vst [vmem:[#allocation28_spill] sm:$0xff] %v10664_v63  ;;  %v1432_v19 = vadd.f32 %v1408_v59, %v1380_v9  ;;  %v1512_v21 = vmul.f32 %v15737_v0, %v15736_v37  ;;  %v15739_v15 = vld [vmem:[#allocation281_spill] sm:$0xff]  ;;  %v3561_v57 = vsel %vm3503_vm6, %v10664_v63, 0.0  ;;  %v15741_v24 = vld [vmem:[#allocation99_spill] sm:$0xff]  ;;  %v15750_v63 = vld [vmem:[#allocation238_spill] sm:$0xff] }
 0x2a3   : > { %15731 = vst [vmem:[#allocation26_spill] sm:$0xff] %v10661_v40  ;;  %v728_v22 = vmul.f32 %v15739_v15, %v15738_v47  ;;  %v700_v31 = vadd.f32 %v676_v23, %v648_v2  ;;  %v1150_v33 = vadd.f32 %v1126_v34, %v1098_v35  ;;  %v1230_v46 = vmul.f32 %v15713_v42, %v10661_v40  ;;  %v15742_v9 = vld [vmem:[#allocation135_spill] sm:$0xff]  ;;  %v15743_v37 = vld [vmem:[#allocation53_spill] sm:$0xff]  ;;  %v15744_v15 = vld [vmem:[#allocation268_spill] sm:$0xff] }
 0x2a4   : > { %3562 = vadd.xlane.f32.xlu1 %v3561_v57  ;;  %v2277_v14 = vadd.f32 %v10571_v16, %v2140_v44  ;;  %v10684_v25 = vmul.f32 %v15741_v24, %v15740_v61  ;;  %v1484_v59 = vadd.f32 %v1460_v52, %v1432_v19  ;;  %v1564_v55 = vmul.f32 %v15743_v37, %v15742_v9  ;;  %v15745_v47 = vld [vmem:[#allocation100_spill] sm:$0xff]  ;;  %v15746_v23 = vld [vmem:[#allocation233_spill] sm:$0xff]  ;;  %v15749_v57 = vld [vmem:[#allocation230_spill] sm:$0xff] }
 0x2a5   : > { %v10690_v20 = vmul.f32 %v15745_v47, %v15744_v15  ;;  %v15747_v2 = vld [vmem:[#allocation108_spill] sm:$0xff]  ;;  %v1202_v35 = vadd.f32 %v1178_v43, %v1150_v33  ;;  %v1367_v16 = vmul.f32 %v15716_v6, %v15749_v57  ;;  %v1616_v61 = vmul.f32 %v15676_v58, %v15753_v1  ;;  %v15754_v36 = vld [vmem:[#allocation27_spill] sm:$0xff] }
 0x2a6   : > { %v10694_v34 = vmul.f32 %v15747_v2, %v15746_v23  ;;  %v2329_v44 = vadd.f32 %v10577_v11, %v2277_v14  ;;  %v15751_v40 = vld [vmem:[#allocation112_spill] sm:$0xff]  ;;  %v1536_v19 = vadd.f32 %v1512_v21, %v1484_v59  ;;  %v752_v15 = vadd.f32 %v728_v22, %v700_v31  ;;  %v15756_v57 = vld [vmem:[#allocation231_spill] sm:$0xff]  ;;  %v15757_v11 = vld [vmem:[#allocation113_spill] sm:$0xff] }
 0x2a7   : > { %v10701_v52 = vmul.f32 %v15751_v40, %v15750_v63  ;;  %v780_v9 = vmul.f32 %v10627_v10, %v15754_v36  ;;  %v1254_v23 = vadd.f32 %v1230_v46, %v1202_v35  ;;  %v10712_v14 = vmul.f32 %v15757_v11, %v15756_v57  ;;  %v15760_v59 = vld [vmem:[#allocation50_spill] sm:$0xff]  ;;  %v15761_v1 = vld [vmem:[#allocation115_spill] sm:$0xff]  ;;  %v15763_v31 = vld [vmem:[#allocation228_spill] sm:$0xff] }
 0x2a8   : > { %15748 = vst [vmem:[#allocation103_spill] sm:$0xff] %v10694_v34  ;;  %v15755_v34 = vld [vmem:[#allocation244_spill] sm:$0xff]  ;;  %v2381_v43 = vadd.f32 %v10581_v28, %v2329_v44  ;;  %v1588_v63 = vadd.f32 %v1564_v55, %v1536_v19  ;;  %v10718_v22 = vmul.f32 %v15761_v1, %v15760_v59  ;;  %v15764_v36 = vld [vmem:[#allocation118_spill] sm:$0xff] }
 0x2a9   : > { %15752 = vst [vmem:[#allocation104_spill] sm:$0xff] %v10701_v52  ;;  %v1419_v33 = vmul.f32 %v15652_v8, %v15755_v34  ;;  %15758 = vst [vmem:[#allocation105_spill] sm:$0xff] %v10712_v14  ;;  %v15759_v52 = vld [vmem:[#allocation137_spill] sm:$0xff]  ;;  %v10722_v46 = vmul.f32 %v15764_v36, %v15763_v31  ;;  %v1391_v35 = vadd.f32 %v1367_v16, %v1254_v23  ;;  %v15766_v34 = vld [vmem:[#allocation80_spill] sm:$0xff] }
 0x2aa   : > { %v1668_v21 = vmul.f32 %v15678_v56, %v15759_v52  ;;  %15762 = vst [vmem:[#allocation38_spill] sm:$0xff] %v10718_v22  ;;  %v1471_v28 = vmul.f32 %v15658_v4, %v15766_v34  ;;  %v2433_v44 = vadd.f32 %v10585_v29, %v2381_v43  ;;  %v1640_v57 = vadd.f32 %v1616_v61, %v1588_v63  ;;  %v15767_v14 = vld [vmem:[#allocation67_spill] sm:$0xff]  ;;  %v15768_v59 = vld [vmem:[#allocation30_spill] sm:$0xff]  ;;  %v15769_v1 = vld [vmem:[#allocation256_spill] sm:$0xff] }
 0x2ab   : > { %15765 = vst [vmem:[#allocation239_spill] sm:$0xff] %v10722_v46  ;;  %v1805_v55 = vmul.f32 %v15681_v39, %v15767_v14  ;;  %v804_v52 = vadd.f32 %v780_v9, %v752_v15  ;;  %v919_v22 = vmul.f32 %v15768_v59, %v15701_v48  ;;  %v1443_v8 = vadd.f32 %v1419_v33, %v1391_v35  ;;  %v15770_v23 = vld [vmem:[#allocation276_spill] sm:$0xff]  ;;  %v15771_v34 = vld [vmem:[#allocation119_spill] sm:$0xff]  ;;  %v15773_v63 = vld [vmem:[#allocation70_spill] sm:$0xff] }
 0x2ac   : > { %v1523_v31 = vmul.f32 %v15737_v0, %v15769_v1  ;;  %v2485_v16 = vadd.f32 %v10589_v41, %v2433_v44  ;;  %v10737_v46 = vmul.f32 %v15771_v34, %v15770_v23  ;;  %v1692_v29 = vadd.f32 %v1668_v21, %v1640_v57  ;;  %v15774_v43 = vld [vmem:[#allocation275_spill] sm:$0xff]  ;;  %v15775_v14 = vld [vmem:[#allocation122_spill] sm:$0xff]  ;;  %v15777_v15 = vld [vmem:[#allocation73_spill] sm:$0xff] }
 0x2ad   : > { %v1857_v61 = vmul.f32 %v15683_v7, %v15773_v63  ;;  %v10743_v9 = vmul.f32 %v15775_v14, %v15774_v43  ;;  %v1909_v48 = vmul.f32 %v15581_v27, %v15777_v15  ;;  %v1495_v33 = vadd.f32 %v1471_v28, %v1443_v8  ;;  %v15778_v35 = vld [vmem:[#allocation111_spill] sm:$0xff]  ;;  %v15779_v1 = vld [vmem:[#allocation72_spill] sm:$0xff]  ;;  %v15786_v23 = vld [vmem:[#allocation69_spill] sm:$0xff] }
 0x2ae   : > { %15772 = vst [vmem:[#allocation42_spill] sm:$0xff] %v10737_v46  ;;  %v1575_v19 = vmul.f32 %v15743_v37, %v15778_v35  ;;  %v2537_v41 = vadd.f32 %v10595_v3, %v2485_v16  ;;  %v1829_v44 = vadd.f32 %v1805_v55, %v1692_v29  ;;  %v1961_v57 = vmul.f32 %v15285_v18, %v15779_v1  ;;  %v15783_v15 = vld [vmem:[#allocation168_spill] sm:$0xff]  ;;  %v15784_v1 = vld [vmem:[#allocation145_spill] sm:$0xff]  ;;  %v15787_v46 = vld [vmem:[#allocation147_spill] sm:$0xff] }
 0x2af   : > { %15776 = vst [vmem:[#allocation250_spill] sm:$0xff] %v10743_v9  ;;  %v15780_v21 = vrot.slane %v10627_v10, 2  ;;  %v15781_v63 = vrot.slane %v10162_v32, 2  ;;  %v943_v43 = vadd.f32 %v919_v22, %v804_v52  ;;  %v971_v8 = vmul.f32 %v15608_v49, %v15706_v13  ;;  %v15785_v35 = vld [vmem:[#allocation144_spill] sm:$0xff]  ;;  %v15790_v22 = vld [vmem:[#allocation74_spill] sm:$0xff]  ;;  %v15794_v49 = vld [vmem:[#allocation85_spill] sm:$0xff] }
 0x2b0   : > { %v1547_v28 = vadd.f32 %v1523_v31, %v1495_v33  ;;  %v1627_v3 = vmul.f32 %v15676_v58, %v15783_v15  ;;  %v2589_v55 = vadd.f32 %v10599_v62, %v2537_v41  ;;  %v1881_v16 = vadd.f32 %v1857_v61, %v1829_v44  ;;  %v15789_v52 = vld [vmem:[#allocation84_spill] sm:$0xff]  ;;  %v15792_v61 = vld [vmem:[#allocation86_spill] sm:$0xff]  ;;  %v15793_v41 = vld [vmem:[#allocation75_spill] sm:$0xff] }
 0x2b1   : > { %v10758_v59 = vsel %vm1300_vm1, %v15781_v63, %v15780_v21  ;;  %v2013_v29 = vmul.f32 %v15590_v45, %v15784_v1  ;;  %v2065_v9 = vmul.f32 %v15786_v23, %v15785_v35  ;;  %v15788_v21 = vld [vmem:[#allocation71_spill] sm:$0xff]  ;;  %v2254_v37 = vmul.f32 %v15790_v22, %v15789_v52  ;;  %v15791_v33 = vld [vmem:[#allocation24_spill] sm:$0xff]  ;;  %v15795_v1 = vld [vmem:[#allocation78_spill] sm:$0xff] }
 0x2b2   : > { %15782 = vst [vmem:[#allocation44_spill] sm:$0xff] %v10758_v59  ;;  %v2117_v63 = vmul.f32 %v15788_v21, %v15787_v46  ;;  %v1599_v13 = vadd.f32 %v1575_v19, %v1547_v28  ;;  %v1679_v31 = vmul.f32 %v15678_v56, %v10758_v59  ;;  %v2726_v15 = vadd.f32 %v15791_v33, %v2589_v55  ;;  %v15796_v52 = vld [vmem:[#allocation77_spill] sm:$0xff]  ;;  %v15797_v28 = vld [vmem:[#allocation220_spill] sm:$0xff]  ;;  %v15801_v14 = vld [vmem:[#allocation82_spill] sm:$0xff] }
 0x2b3   : > { %v1933_v62 = vadd.f32 %v1909_v48, %v1881_v16  ;;  %v2306_v44 = vmul.f32 %v15793_v41, %v15792_v61  ;;  %v2358_v35 = vmul.f32 %v15795_v1, %v15794_v49  ;;  %v995_v58 = vadd.f32 %v971_v8, %v943_v43  ;;  %v15798_v55 = vld [vmem:[#allocation89_spill] sm:$0xff]  ;;  %v15800_v16 = vld [vmem:[#allocation11_spill] sm:$0xff]  ;;  %v15802_v4 = vld [vmem:[#allocation148_spill] sm:$0xff] }
 0x2b4   : > { %v1023_v46 = vmul.f32 %v15299_v60, %v15712_v12  ;;  %v1651_v0 = vadd.f32 %v1627_v3, %v1599_v13  ;;  %v1816_v19 = vmul.f32 %v15681_v39, %v15796_v52  ;;  %v2778_v59 = vadd.f32 %v15797_v28, %v2726_v15  ;;  %v15799_v33 = vld [vmem:[#allocation81_spill] sm:$0xff]  ;;  %v15803_v49 = vld [vmem:[#allocation87_spill] sm:$0xff]  ;;  %v15804_v8 = vld [vmem:[#allocation10_spill] sm:$0xff] }
 0x2b5   : > { %v1985_v56 = vadd.f32 %v1961_v57, %v1933_v62  ;;  %v2410_v48 = vmul.f32 %v15799_v33, %v15798_v55  ;;  %v10789_v61 = vmul.f32 %v15801_v14, %v15800_v16  ;;  %v10793_v43 = vmul.f32 %v15803_v49, %v15802_v4  ;;  %v15805_v12 = vld [vmem:[#allocation88_spill] sm:$0xff]  ;;  %v15806_v52 = vld [vmem:[#allocation262_spill] sm:$0xff]  ;;  %v15808_v55 = vld [vmem:[#allocation93_spill] sm:$0xff] }
 0x2b6   : > { %v10797_v3 = vmul.f32 %v15805_v12, %v15804_v8  ;;  %v1703_v13 = vadd.f32 %v1679_v31, %v1651_v0  ;;  %v1868_v15 = vmul.f32 %v15683_v7, %v15806_v52  ;;  %v10802_v57 = vld [vmem:[%s5799_s15 + $0xa0] sm:$0xff]   ;;  %v2830_v62 = vadd.f32 %v10622_v30, %v2778_v59  ;;  %v15809_v60 = vld [vmem:[#allocation90_spill] sm:$0xff]  ;;  %v15811_v4 = vld [vmem:[#allocation95_spill] sm:$0xff] }
 0x2b7   : > { %15807 = vst [vmem:[#allocation46_spill] sm:$0xff] %v10802_v57  ;;  %v2037_v28 = vadd.f32 %v2013_v29, %v1985_v56  ;;  %v10807_v16 = vmul.f32 %v15809_v60, %v15808_v55  ;;  %v15810_v39 = vld [vmem:[#allocation92_spill] sm:$0xff]  ;;  %v1047_v14 = vadd.f32 %v1023_v46, %v995_v58  ;;  %v15812_v8 = vld [vmem:[#allocation130_spill] sm:$0xff]  ;;  %v15813_v12 = vld [vmem:[#allocation261_spill] sm:$0xff]  ;;  %v10820_v59 = vunpack.c.l.bf16 %v10802_v57 }
 0x2b8   : > { %v10811_v49 = vmul.f32 %v15811_v4, %v15810_v39  ;;  %v1075_v0 = vmul.f32 %v15619_v38, %v15812_v8  ;;  %v1840_v31 = vadd.f32 %v1816_v19, %v1703_v13  ;;  %v1920_v52 = vmul.f32 %v15581_v27, %v15813_v12  ;;  %v15814_v29 = vld [vmem:[#allocation91_spill] sm:$0xff]  ;;  %v15815_v55 = vld [vmem:[#allocation96_spill] sm:$0xff]  ;;  %v15816_v58 = vld [vmem:[#allocation101_spill] sm:$0xff] }
 0x2b9   : > { %v2882_v7 = vadd.f32 %v10641_v50, %v2830_v62  ;;  %v2089_v30 = vadd.f32 %v2065_v9, %v2037_v28  ;;  %v10824_v39 = vmul.f32 %v15815_v55, %v15814_v29  ;;  %v10828_v46 = vmul.f32 %v15721_v54, %v15816_v58  ;;  %v15817_v8 = vld [vmem:[#allocation260_spill] sm:$0xff]  ;;  %v15818_v62 = vld [vmem:[#allocation154_spill] sm:$0xff]  ;;  %v15819_v12 = vld [vmem:[#allocation157_spill] sm:$0xff] }
 0x2ba   : > { %v1892_v19 = vadd.f32 %v1868_v15, %v1840_v31  ;;  %v1972_v13 = vmul.f32 %v15285_v18, %v15817_v8  ;;  %v10835_v28 = vmul.f32 %v15734_v51, %v15818_v62  ;;  %v13819_v56 = vrot.slane %v10820_v59, 1  ;;  %v15820_v38 = vld [vmem:[#allocation184_spill] sm:$0xff]  ;;  %v15829_v62 = vld [vmem:[#allocation107_spill] sm:$0xff] }
 0x2bb   : > { %v2934_v50 = vadd.f32 %v10668_v53, %v2882_v7  ;;  %v2141_v9 = vadd.f32 %v2117_v63, %v2089_v30  ;;  %v10840_v29 = vmul.f32 %v15741_v24, %v15819_v12  ;;  %v1099_v57 = vadd.f32 %v1075_v0, %v1047_v14  ;;  %v15825_v0 = vld [vmem:[#allocation277_spill] sm:$0xff] }
 0x2bc   : > { %v1944_v58 = vadd.f32 %v1920_v52, %v1892_v19  ;;  %v2024_v15 = vmul.f32 %v15590_v45, %v15820_v38  ;;  %v15821_v7 = vrot.slane %v10627_v10, 3  ;;  %v15822_v53 = vrot.slane %v10162_v32, 3  ;;  %v15828_v38 = vld [vmem:[#allocation156_spill] sm:$0xff] }
 0x2bd   : > { %v2986_v31 = vadd.f32 %v10684_v25, %v2934_v50  ;;  %v2278_v8 = vadd.f32 %v2254_v37, %v2141_v9  ;;  %v15824_v30 = vrot.slane %v10627_v10, 1  ;;  %v2076_v25 = vmul.f32 %v15786_v23, %v15825_v0  ;;  %v15826_v37 = vld [vmem:[#allocation273_spill] sm:$0xff]  ;;  %v15827_v50 = vld [vmem:[#allocation132_spill] sm:$0xff]  ;;  %v15830_v0 = vld [vmem:[#allocation103_spill] sm:$0xff] }
 0x2be   : > { %v10851_v63 = vsel %vm1749_vm2, %v15822_v53, %v15821_v7  ;;  %v1996_v52 = vadd.f32 %v1972_v13, %v1944_v58  ;;  %v1127_v19 = vmul.f32 %v15625_v26, %v15826_v37  ;;  %v1179_v9 = vmul.f32 %v15707_v5, %v15827_v50 }
 0x2bf   : > { %15823 = vst [vmem:[#allocation124_spill] sm:$0xff] %v10851_v63  ;;  %v853_v14 = vsel %vm851_vm0, %v15824_v30, %v13819_v56  ;;  %v3038_v7 = vadd.f32 %v10690_v20, %v2986_v31  ;;  %v2330_v53 = vadd.f32 %v2306_v44, %v2278_v8  ;;  %v10868_v12 = vmul.f32 %v15745_v47, %v15828_v38  ;;  %v15831_v20 = vld [vmem:[#allocation106_spill] sm:$0xff]  ;;  %v15833_v38 = vld [vmem:[#allocation247_spill] sm:$0xff] }
 0x2c0   : > { %v10872_v30 = vmul.f32 %v15747_v2, %v15829_v62  ;;  %v2048_v13 = vadd.f32 %v2024_v15, %v1996_v52  ;;  %v2128_v58 = vmul.f32 %v15788_v21, %v10851_v63  ;;  %v1151_v56 = vadd.f32 %v1127_v19, %v1099_v57  ;;  %v15832_v8 = vld [vmem:[#allocation126_spill] sm:$0xff]  ;;  %v15834_v63 = vld [vmem:[#allocation135_spill] sm:$0xff] }
 0x2c1   : > { %v1231_v37 = vmul.f32 %v15713_v42, %v853_v14  ;;  %v3175_v50 = vadd.f32 %v15830_v0, %v3038_v7  ;;  %v2382_v5 = vadd.f32 %v2358_v35, %v2330_v53  ;;  %v10880_v44 = vmul.f32 %v15751_v40, %v15831_v20  ;;  %v15835_v14 = vld [vmem:[#allocation104_spill] sm:$0xff]  ;;  %v15836_v35 = vld [vmem:[#allocation129_spill] sm:$0xff]  ;;  %v15837_v7 = vld [vmem:[#allocation115_spill] sm:$0xff] }
 0x2c2   : > { %v10884_v31 = vmul.f32 %v15757_v11, %v15832_v8  ;;  %v2100_v62 = vadd.f32 %v2076_v25, %v2048_v13  ;;  %v2265_v15 = vmul.f32 %v15790_v22, %v15833_v38  ;;  %v1203_v52 = vadd.f32 %v1179_v9, %v1151_v56  ;;  %v15838_v20 = vld [vmem:[#allocation163_spill] sm:$0xff]  ;;  %v15839_v25 = vld [vmem:[#allocation264_spill] sm:$0xff]  ;;  %v15840_v56 = vld [vmem:[#allocation138_spill] sm:$0xff] }
 0x2c3   : > { %v1368_v57 = vmul.f32 %v15716_v6, %v15834_v63  ;;  %v3227_v19 = vadd.f32 %v15835_v14, %v3175_v50  ;;  %v2434_v0 = vadd.f32 %v2410_v48, %v2382_v5  ;;  %v10893_v53 = vmul.f32 %v15837_v7, %v15836_v35  ;;  %v15841_v9 = vld [vmem:[#allocation47_spill] sm:$0xff]  ;;  %v15842_v63 = vld [vmem:[#allocation105_spill] sm:$0xff] }
 0x2c4   : > { %v10897_v42 = vmul.f32 %v15764_v36, %v15838_v20  ;;  %v2152_v8 = vadd.f32 %v2128_v58, %v2100_v62  ;;  %v2317_v13 = vmul.f32 %v15793_v41, %v15839_v25  ;;  %v1255_v38 = vadd.f32 %v1231_v37, %v1203_v52  ;;  %v15843_v48 = vld [vmem:[#allocation165_spill] sm:$0xff]  ;;  %v15845_v20 = vld [vmem:[#allocation266_spill] sm:$0xff]  ;;  %v15852_v14 = vld [vmem:[#allocation263_spill] sm:$0xff] }
 0x2c5   : > { %v1420_v26 = vmul.f32 %v15841_v9, %v15840_v56  ;;  %v3279_v6 = vadd.f32 %v15842_v63, %v3227_v19  ;;  %v2486_v5 = vadd.f32 %v10789_v61, %v2434_v0  ;;  %v10907_v50 = vmul.f32 %v15771_v34, %v15843_v48  ;;  %v15846_v25 = vld [vmem:[#allocation137_spill] sm:$0xff]  ;;  %v15848_v36 = vld [vmem:[#allocation38_spill] sm:$0xff]  ;;  %v15855_v34 = vld [vmem:[#allocation239_spill] sm:$0xff] }
 0x2c6   : > { %v2289_v35 = vadd.f32 %v2265_v15, %v2152_v8  ;;  %v2369_v58 = vmul.f32 %v15795_v1, %v15845_v20  ;;  %v1392_v62 = vadd.f32 %v1368_v57, %v1255_v38  ;;  %v15847_v37 = vld [vmem:[#allocation49_spill] sm:$0xff]  ;;  %v15850_v61 = vld [vmem:[#allocation122_spill] sm:$0xff]  ;;  %v2421_v15 = vmul.f32 %v15799_v33, %v15852_v14  ;;  %v15853_v20 = vld [vmem:[#allocation136_spill] sm:$0xff] }
 0x2c7   : > { %15844 = vst [vmem:[#allocation123_spill] sm:$0xff] %v10907_v50  ;;  %v1472_v52 = vmul.f32 %v15847_v37, %v15846_v25  ;;  %v3331_v56 = vadd.f32 %v15848_v36, %v3279_v6  ;;  %v2538_v19 = vadd.f32 %v10793_v43, %v2486_v5  ;;  %v15849_v63 = vld [vmem:[#allocation169_spill] sm:$0xff]  ;;  %v15854_v38 = vld [vmem:[#allocation51_spill] sm:$0xff]  ;;  %v15856_v36 = vrot.slane %v10627_v10, 4 }
 0x2c8   : > { %v10918_v0 = vmul.f32 %v15850_v61, %v15849_v63  ;;  %v2341_v9 = vadd.f32 %v2317_v13, %v2289_v35  ;;  %v1444_v8 = vadd.f32 %v1420_v26, %v1392_v62  ;;  %v1524_v57 = vmul.f32 %v15854_v38, %v15853_v20  ;;  %v15859_v13 = vld [vmem:[#allocation12_spill] sm:$0xff]  ;;  %v15860_v35 = vld [vmem:[#allocation114_spill] sm:$0xff]  ;;  %v15861_v26 = vld [vmem:[#allocation265_spill] sm:$0xff] }
 0x2c9   : > { %v3383_v25 = vadd.f32 %v15855_v34, %v3331_v56  ;;  %v2590_v6 = vadd.f32 %v10797_v3, %v2538_v19  ;;  %v15857_v43 = vrot.slane %v10162_v32, 4  ;;  %v462_v48 = vmul.f32 %v15860_v35, %v15859_v13  ;;  %v15862_v62 = vld [vmem:[#allocation82_spill] sm:$0xff]  ;;  %v15864_v34 = vld [vmem:[#allocation53_spill] sm:$0xff]  ;;  %v15866_v61 = vld [vmem:[#allocation284_spill] sm:$0xff] }
 0x2ca   : > { %15851 = vst [vmem:[#allocation125_spill] sm:$0xff] %v10918_v0  ;;  %v2393_v14 = vadd.f32 %v2369_v58, %v2341_v9  ;;  %v2473_v63 = vmul.f32 %v15862_v62, %v15861_v26  ;;  %v1496_v20 = vadd.f32 %v1472_v52, %v1444_v8  ;;  %v15863_v38 = vld [vmem:[#allocation278_spill] sm:$0xff]  ;;  %v15867_v0 = vld [vmem:[#allocation87_spill] sm:$0xff]  ;;  %v15870_v26 = vld [vmem:[#allocation60_spill] sm:$0xff] }
 0x2cb   : > { %v10933_v5 = vsel %vm2198_vm3, %v15857_v43, %v15856_v36  ;;  %v1576_v56 = vmul.f32 %v15864_v34, %v15863_v38  ;;  %v15865_v3 = vld [vmem:[#allocation42_spill] sm:$0xff]  ;;  %v2727_v37 = vadd.f32 %v10807_v16, %v2590_v6  ;;  %v2525_v33 = vmul.f32 %v15867_v0, %v15866_v61  ;;  %v15875_v0 = vld [vmem:[#allocation16_spill] sm:$0xff] }
 0x2cc   : > { %15858 = vst [vmem:[#allocation127_spill] sm:$0xff] %v10933_v5  ;;  %v3435_v19 = vadd.f32 %v15865_v3, %v3383_v25  ;;  %v15868_v36 = vrot.slane %v10820_v59, 2  ;;  %v15869_v43 = vrot.slane %v10627_v10, 2  ;;  %v2445_v58 = vadd.f32 %v2421_v15, %v2393_v14  ;;  %v15871_v38 = vld [vmem:[#allocation54_spill] sm:$0xff]  ;;  %v15876_v62 = vld [vmem:[#allocation116_spill] sm:$0xff] }
 0x2cd   : > { %v1548_v8 = vadd.f32 %v1524_v57, %v1496_v20  ;;  %v1628_v34 = vmul.f32 %v15871_v38, %v15870_v26  ;;  %v15872_v25 = vld [vmem:[#allocation250_spill] sm:$0xff]  ;;  %v2779_v16 = vadd.f32 %v10811_v49, %v2727_v37  ;;  %v521_v50 = vmul.f32 %v15876_v62, %v15875_v0  ;;  %v15880_v37 = vld [vmem:[#allocation269_spill] sm:$0xff] }
 0x2ce   : > { %v1302_v9 = vsel %vm1300_vm1, %v15869_v43, %v15868_v36  ;;  %v10955_v3 = vadd.f32 %v15872_v25, %v3435_v19  ;;  %v15874_v6 = vld [vmem:[#allocation186_spill] sm:$0xff]  ;;  %v2497_v1 = vadd.f32 %v2473_v63, %v2445_v58  ;;  %v15877_v36 = vld [vmem:[#allocation88_spill] sm:$0xff] }
 0x2cf   : > { %v493_v61 = vadd.f32 %v15874_v6, %v462_v48  ;;  %v2577_v14 = vmul.f32 %v15877_v36, %v10933_v5  ;;  %v1600_v15 = vadd.f32 %v1576_v56, %v1548_v8  ;;  %v15878_v43 = vld [vmem:[#allocation56_spill] sm:$0xff]  ;;  %v2831_v20 = vadd.f32 %v10824_v39, %v2779_v16  ;;  %v15882_v56 = vld [vmem:[#allocation145_spill] sm:$0xff]  ;;  %v15883_v8 = vld [vmem:[#allocation58_spill] sm:$0xff] }
 0x2d0   : > { %15873 = vst [vmem:[#allocation63_spill] sm:$0xff] %v10955_v3  ;;  %v1680_v57 = vmul.f32 %v15878_v43, %v1302_v9  ;;  %v3528_v26 = vsel %vm3503_vm6, %v10955_v3, 0.0  ;;  %v15879_v19 = vld [vmem:[#allocation224_spill] sm:$0xff]  ;;  %v2766_v48 = vmul.f32 %v15811_v4, %v15880_v37  ;;  %v2549_v25 = vadd.f32 %v2525_v33, %v2497_v1  ;;  %v15892_v43 = vld [vmem:[#allocation271_spill] sm:$0xff] }
 0x2d1   : > { %v2714_v49 = vmul.f32 %v15809_v60, %v15879_v19  ;;  %3529 = vadd.xlane.f32.xlu0 %v3528_v26  ;;  %v15881_v63 = vld [vmem:[#allocation268_spill] sm:$0xff]  ;;  %v1652_v52 = vadd.f32 %v1628_v34, %v1600_v15  ;;  %v1817_v9 = vmul.f32 %v15883_v8, %v15882_v56  ;;  %v2883_v5 = vadd.f32 %v10828_v46, %v2831_v20  ;;  %v15887_v26 = vld [vmem:[#allocation17_spill] sm:$0xff] }
 0x2d2   : > { %v2818_v58 = vmul.f32 %v15815_v55, %v15881_v63  ;;  %v15884_v3 = vrot.slane %v10627_v10, 5  ;;  %v15885_v39 = vrot.slane %v10162_v32, 5  ;;  %v545_v37 = vadd.f32 %v521_v50, %v493_v61  ;;  %v15888_v1 = vld [vmem:[#allocation120_spill] sm:$0xff]  ;;  %v15889_v63 = vld [vmem:[#allocation267_spill] sm:$0xff]  ;;  %v15891_v8 = vld [vmem:[#allocation61_spill] sm:$0xff] }
 0x2d3   : > { %v573_v33 = vmul.f32 %v15888_v1, %v15887_v26  ;;  %v2601_v19 = vadd.f32 %v2577_v14, %v2549_v25  ;;  %v2870_v34 = vmul.f32 %v15721_v54, %v15889_v63  ;;  %v1704_v15 = vadd.f32 %v1680_v57, %v1652_v52  ;;  %v15890_v56 = vld [vmem:[#allocation144_spill] sm:$0xff] }
 0x2d4   : > { %v10982_v16 = vsel %vm2647_vm4, %v15885_v39, %v15884_v3  ;;  %v1869_v46 = vmul.f32 %v15891_v8, %v15890_v56  ;;  %v2935_v20 = vadd.f32 %v10835_v28, %v2883_v5  ;;  %v2922_v38 = vmul.f32 %v15734_v51, %v15892_v43  ;;  %v15893_v55 = vld [vmem:[#allocation176_spill] sm:$0xff]  ;;  %v15894_v39 = vld [vmem:[#allocation147_spill] sm:$0xff]  ;;  %v15895_v56 = vld [vmem:[#allocation18_spill] sm:$0xff] }
 0x2d5   : > { %15886 = vst [vmem:[#allocation52_spill] sm:$0xff] %v10982_v16  ;;  %v2974_v3 = vmul.f32 %v15741_v24, %v15893_v55  ;;  %v2738_v61 = vadd.f32 %v2714_v49, %v2601_v19  ;;  %v3026_v14 = vmul.f32 %v15745_v47, %v10982_v16  ;;  %v1841_v25 = vadd.f32 %v1817_v9, %v1704_v15  ;;  %v15896_v43 = vld [vmem:[#allocation121_spill] sm:$0xff]  ;;  %v15897_v55 = vld [vmem:[#allocation228_spill] sm:$0xff]  ;;  %v15898_v49 = vld [vmem:[#allocation146_spill] sm:$0xff] }
 0x2d6   : > { %v1921_v52 = vmul.f32 %v15581_v27, %v15894_v39  ;;  %v2987_v57 = vadd.f32 %v10840_v29, %v2935_v20  ;;  %v597_v5 = vadd.f32 %v573_v33, %v545_v37  ;;  %v625_v63 = vmul.f32 %v15896_v43, %v15895_v56  ;;  %v15899_v15 = vld [vmem:[#allocation276_spill] sm:$0xff]  ;;  %v15907_v27 = vld [vmem:[#allocation83_spill] sm:$0xff] }
 0x2d7   : > { %v2790_v8 = vadd.f32 %v2766_v48, %v2738_v61  ;;  %v3163_v50 = vmul.f32 %v15747_v2, %v15897_v55  ;;  %v1893_v19 = vadd.f32 %v1869_v46, %v1841_v25  ;;  %v1973_v16 = vmul.f32 %v15285_v18, %v15898_v49  ;;  %v15902_v48 = vld [vmem:[#allocation76_spill] sm:$0xff]  ;;  %v15903_v61 = vld [vmem:[#allocation29_spill] sm:$0xff]  ;;  %v15906_v55 = vld [vmem:[#allocation270_spill] sm:$0xff] }
 0x2d8   : > { %v3039_v9 = vadd.f32 %v10868_v12, %v2987_v57  ;;  %v3215_v39 = vmul.f32 %v15751_v40, %v15899_v15  ;;  %v15900_v29 = vrot.slane %v10820_v59, 3  ;;  %v15901_v37 = vrot.slane %v10627_v10, 3  ;;  %v15904_v12 = vld [vmem:[#allocation34_spill] sm:$0xff]  ;;  %v15905_v15 = vld [vmem:[#allocation21_spill] sm:$0xff] }
 0x2d9   : > { %v2025_v33 = vmul.f32 %v15590_v45, %v15902_v48  ;;  %v2842_v20 = vadd.f32 %v2818_v58, %v2790_v8  ;;  %v1945_v46 = vadd.f32 %v1921_v52, %v1893_v19  ;;  %v450_v25 = vmul.f32 %v15903_v61, %v15859_v13  ;;  %v15908_v8 = vld [vmem:[#allocation37_spill] sm:$0xff]  ;;  %v15909_v48 = vld [vmem:[#allocation275_spill] sm:$0xff] }
 0x2da   : > { %v1751_v43 = vsel %vm1749_vm2, %v15901_v37, %v15900_v29  ;;  %v509_v57 = vmul.f32 %v15904_v12, %v15875_v0  ;;  %v3176_v49 = vadd.f32 %v10872_v30, %v3039_v9  ;;  %v649_v28 = vadd.f32 %v625_v63, %v597_v5  ;;  %v15910_v30 = vld [vmem:[#allocation272_spill] sm:$0xff]  ;;  %v15914_v12 = vld [vmem:[#allocation11_spill] sm:$0xff] }
 0x2db   : > { %v677_v18 = vmul.f32 %v15906_v55, %v15905_v15  ;;  %v2077_v29 = vmul.f32 %v15786_v23, %v15907_v27  ;;  %v2894_v37 = vadd.f32 %v2870_v34, %v2842_v20  ;;  %v1997_v40 = vadd.f32 %v1973_v16, %v1945_v46  ;;  %v15911_v16 = vld [vmem:[#allocation40_spill] sm:$0xff]  ;;  %v15912_v46 = vld [vmem:[#allocation23_spill] sm:$0xff] }
 0x2dc   : > { %v481_v58 = vadd.f32 %v15874_v6, %v450_v25  ;;  %v561_v52 = vmul.f32 %v15908_v8, %v15887_v26  ;;  %v3228_v19 = vadd.f32 %v10880_v44, %v3176_v49  ;;  %v3267_v61 = vmul.f32 %v15757_v11, %v15909_v48  ;;  %v15913_v25 = vld [vmem:[#allocation160_spill] sm:$0xff] }
 0x2dd   : > { %v3319_v63 = vmul.f32 %v15837_v7, %v15910_v30  ;;  %v2129_v55 = vmul.f32 %v15788_v21, %v1751_v43  ;;  %v2946_v5 = vadd.f32 %v2922_v38, %v2894_v37  ;;  %v2049_v9 = vadd.f32 %v2025_v33, %v1997_v40 }
 0x2de   : > { %v533_v27 = vadd.f32 %v509_v57, %v481_v58  ;;  %v613_v34 = vmul.f32 %v15911_v16, %v15895_v56  ;;  %v3280_v6 = vadd.f32 %v10884_v31, %v3228_v19  ;;  %v701_v20 = vadd.f32 %v677_v18, %v649_v28  ;;  %v15918_v31 = vld [vmem:[#allocation27_spill] sm:$0xff]  ;;  %v15919_v57 = vld [vmem:[#allocation148_spill] sm:$0xff] }
 0x2df   : > { %v729_v44 = vmul.f32 %v15913_v25, %v15912_v46  ;;  %v2266_v49 = vmul.f32 %v15790_v22, %v15914_v12  ;;  %v2998_v8 = vadd.f32 %v2974_v3, %v2946_v5  ;;  %v2101_v48 = vadd.f32 %v2077_v29, %v2049_v9  ;;  %v15920_v5 = vld [vmem:[#allocation10_spill] sm:$0xff] }
 0x2e0   : > { %v585_v30 = vadd.f32 %v561_v52, %v533_v27  ;;  %v665_v38 = vmul.f32 %v15860_v35, %v15905_v15  ;;  %v3332_v40 = vadd.f32 %v10893_v53, %v3280_v6  ;;  %v15915_v43 = vrot.slane %v10627_v10, 6  ;;  %v15921_v9 = vld [vmem:[#allocation78_spill] sm:$0xff] }
 0x2e1   : > { %v15916_v33 = vrot.slane %v10162_v32, 6  ;;  %v781_v28 = vmul.f32 %v10820_v59, %v15918_v31  ;;  %v2318_v3 = vmul.f32 %v15793_v41, %v15919_v57  ;;  %v3050_v29 = vadd.f32 %v3026_v14, %v2998_v8  ;;  %v15922_v14 = vld [vmem:[#allocation123_spill] sm:$0xff]  ;;  %v15926_v8 = vld [vmem:[#allocation30_spill] sm:$0xff] }
 0x2e2   : > { %v2153_v37 = vadd.f32 %v2129_v55, %v2101_v48  ;;  %v637_v58 = vadd.f32 %v613_v34, %v585_v30  ;;  %v717_v53 = vmul.f32 %v15876_v62, %v15912_v46  ;;  %v3384_v35 = vadd.f32 %v10897_v42, %v3332_v40  ;;  %v15923_v30 = vld [vmem:[#allocation274_spill] sm:$0xff] }
 0x2e3   : > { %v11053_v18 = vsel %vm3096_vm5, %v15916_v33, %v15915_v43  ;;  %v753_v52 = vadd.f32 %v729_v44, %v701_v20  ;;  %v13836_v19 = vrot.slane %v10820_v59, 4  ;;  %v2370_v27 = vmul.f32 %v15921_v9, %v15920_v5  ;;  %v15924_v55 = vld [vmem:[#allocation118_spill] sm:$0xff]  ;;  %v15927_v20 = vld [vmem:[#allocation25_spill] sm:$0xff] }
 0x2e4   : > { %15917 = vst [vmem:[#allocation110_spill] sm:$0xff] %v11053_v18  ;;  %v3187_v16 = vadd.f32 %v3163_v50, %v3050_v29  ;;  %v2290_v6 = vadd.f32 %v2266_v49, %v2153_v37  ;;  %v689_v25 = vadd.f32 %v665_v38, %v637_v58  ;;  %v769_v12 = vmul.f32 %v15888_v1, %v15918_v31  ;;  %v15925_v62 = vld [vmem:[#allocation194_spill] sm:$0xff]  ;;  %v15928_v44 = vld [vmem:[#allocation81_spill] sm:$0xff] }
 0x2e5   : > { %v3436_v48 = vadd.f32 %v15922_v14, %v3384_v35  ;;  %v3371_v34 = vmul.f32 %v15924_v55, %v15923_v30  ;;  %v920_v42 = vmul.f32 %v15926_v8, %v15925_v62  ;;  %v2422_v40 = vmul.f32 %v15928_v44, %v15927_v20  ;;  %v15929_v50 = vld [vmem:[#allocation150_spill] sm:$0xff]  ;;  %v15930_v38 = vld [vmem:[#allocation125_spill] sm:$0xff] }
 0x2e6   : > { %v3239_v43 = vadd.f32 %v3215_v39, %v3187_v16  ;;  %v2342_v33 = vadd.f32 %v2318_v3, %v2290_v6  ;;  %v741_v57 = vadd.f32 %v717_v53, %v689_v25  ;;  %v908_v49 = vmul.f32 %v15926_v8, %v15929_v50  ;;  %v15933_v35 = vld [vmem:[#allocation257_spill] sm:$0xff]  ;;  %v15934_v5 = vld [vmem:[#allocation82_spill] sm:$0xff]  ;;  %v15935_v16 = vld [vmem:[#allocation151_spill] sm:$0xff] }
 0x2e7   : > { %v11077_v29 = vadd.f32 %v15930_v38, %v3436_v48  ;;  %v805_v1 = vadd.f32 %v781_v28, %v753_v52  ;;  %v15932_v37 = vrot.slane %v10627_v10, 4  ;;  %v2474_v14 = vmul.f32 %v15934_v5, %v15933_v35  ;;  %v15936_v6 = vld [vmem:[#allocation31_spill] sm:$0xff]  ;;  %v15937_v28 = vld [vmem:[#allocation258_spill] sm:$0xff]  ;;  %v15939_v50 = vld [vmem:[#allocation140_spill] sm:$0xff] }
 0x2e8   : > { %v3291_v39 = vadd.f32 %v3267_v61, %v3239_v43  ;;  %v2394_v3 = vadd.f32 %v2370_v27, %v2342_v33  ;;  %v793_v53 = vadd.f32 %v769_v12, %v741_v57  ;;  %v960_v25 = vmul.f32 %v15936_v6, %v15935_v16  ;;  %v15938_v52 = vld [vmem:[#allocation119_spill] sm:$0xff]  ;;  %v15941_v35 = vld [vmem:[#allocation152_spill] sm:$0xff]  ;;  %v15942_v61 = vld [vmem:[#allocation33_spill] sm:$0xff] }
 0x2e9   : > { %15931 = vst [vmem:[#allocation128_spill] sm:$0xff] %v11077_v29  ;;  %v2200_v58 = vsel %vm2198_vm3, %v15932_v37, %v13836_v19  ;;  %v3531_v48 = vsel %vm3503_vm6, %v11077_v29, 0.0  ;;  %v3423_v20 = vmul.f32 %v15938_v52, %v15937_v28  ;;  %v15940_v38 = vld [vmem:[#allocation87_spill] sm:$0xff]  ;;  %v1012_v27 = vmul.f32 %v15942_v61, %v15941_v35  ;;  %v15943_v12 = vld [vmem:[#allocation122_spill] sm:$0xff] }
 0x2ea   : > { %v2526_v30 = vmul.f32 %v15940_v38, %v15939_v50  ;;  %3532 = vadd.xlane.f32.xlu1 %v3531_v48  ;;  %v3343_v37 = vadd.f32 %v3319_v63, %v3291_v39  ;;  %v2446_v19 = vadd.f32 %v2422_v40, %v2394_v3  ;;  %v932_v32 = vadd.f32 %v908_v49, %v793_v53  ;;  %v15944_v57 = vld [vmem:[#allocation195_spill] sm:$0xff]  ;;  %v15946_v48 = vld [vmem:[#allocation36_spill] sm:$0xff]  ;;  %v15947_v40 = vld [vmem:[#allocation154_spill] sm:$0xff] }
 0x2eb   : > { %v3475_v43 = vmul.f32 %v15943_v12, %v11053_v18  ;;  %v944_v33 = vadd.f32 %v920_v42, %v805_v1  ;;  %v972_v16 = vmul.f32 %v15936_v6, %v15944_v57  ;;  %v2578_v29 = vmul.f32 %v15877_v36, %v2200_v58  ;;  %v15945_v50 = vld [vmem:[#allocation155_spill] sm:$0xff]  ;;  %v15949_v18 = vld [vmem:[#allocation200_spill] sm:$0xff]  ;;  %v15950_v58 = vld [vmem:[#allocation157_spill] sm:$0xff] }
 0x2ec   : > { %v3395_v28 = vadd.f32 %v3371_v34, %v3343_v37  ;;  %v2498_v5 = vadd.f32 %v2474_v14, %v2446_v19  ;;  %v984_v44 = vadd.f32 %v960_v25, %v932_v32  ;;  %v1064_v63 = vmul.f32 %v15946_v48, %v15945_v50  ;;  %v15948_v35 = vld [vmem:[#allocation39_spill] sm:$0xff]  ;;  %v15952_v25 = vld [vmem:[#allocation41_spill] sm:$0xff] }
 0x2ed   : > { %v2715_v49 = vmul.f32 %v15809_v60, %v15947_v40  ;;  %v1116_v42 = vmul.f32 %v15948_v35, %v15925_v62  ;;  %v996_v1 = vadd.f32 %v972_v16, %v944_v33  ;;  %v1024_v38 = vmul.f32 %v15942_v61, %v15949_v18  ;;  %v15955_v62 = vld [vmem:[#allocation15_spill] sm:$0xff] }
 0x2ee   : > { %v3447_v39 = vadd.f32 %v3423_v20, %v3395_v28  ;;  %v2550_v3 = vadd.f32 %v2526_v30, %v2498_v5  ;;  %v1036_v53 = vadd.f32 %v1012_v27, %v984_v44  ;;  %v2767_v19 = vmul.f32 %v15811_v4, %v15950_v58  ;;  %v15953_v44 = vld [vmem:[#allocation156_spill] sm:$0xff]  ;;  %v15956_v27 = vld [vmem:[#allocation22_spill] sm:$0xff]  ;;  %v15957_v50 = vld [vmem:[#allocation43_spill] sm:$0xff] }
 0x2ef   : > { %v1168_v37 = vmul.f32 %v15952_v25, %v15944_v57  ;;  %v13843_v30 = vrot.slane %v10820_v59, 5  ;;  %v15954_v5 = vld [vmem:[#allocation96_spill] sm:$0xff]  ;;  %v451_v20 = vmul.f32 %v15955_v62, %v15859_v13  ;;  %v510_v33 = vmul.f32 %v15956_v27, %v15875_v0  ;;  %v15958_v57 = vld [vmem:[#allocation203_spill] sm:$0xff] }
 0x2f0   : > { %v11112_v32 = vadd.f32 %v3475_v43, %v3447_v39  ;;  %v2602_v34 = vadd.f32 %v2578_v29, %v2550_v3  ;;  %v1088_v14 = vadd.f32 %v1064_v63, %v1036_v53  ;;  %v2819_v28 = vmul.f32 %v15954_v5, %v15953_v44  ;;  %v11132_v39 = vld [vmem:[%s13000_s2] ss:$0 sm:$0xff]  ;;  %v15970_v5 = vld [vmem:[#allocation143_spill] sm:$0xff] }
 0x2f1   : > { %v1220_v63 = vmul.f32 %v15957_v50, %v15949_v18  ;;  %v1076_v40 = vmul.f32 %v15946_v48, %v15958_v57  ;;  %v482_v3 = vadd.f32 %v11132_v39, %v451_v20  ;;  %v15959_v53 = vld [vmem:[#allocation32_spill] sm:$0xff]  ;;  %v15961_v18 = vld [vmem:[#allocation161_spill] sm:$0xff]  ;;  %v1048_v27 = vadd.f32 %v1024_v38, %v996_v1  ;;  %v15968_v38 = vld [vmem:[#allocation26_spill] sm:$0xff] }
 0x2f2   : > { %15951 = vst [vmem:[#allocation55_spill] sm:$0xff] %v11112_v32  ;;  %v3564_v43 = vsel %vm3503_vm6, %v11112_v32, 0.0  ;;  %v2739_v16 = vadd.f32 %v2715_v49, %v2602_v34  ;;  %v1140_v29 = vadd.f32 %v1116_v42, %v1088_v14  ;;  %v562_v58 = vmul.f32 %v15959_v53, %v15887_v26  ;;  %v15960_v49 = vld [vmem:[#allocation159_spill] sm:$0xff]  ;;  %v15962_v14 = vld [vmem:[#allocation45_spill] sm:$0xff]  ;;  %v15964_v32 = vld [vmem:[#allocation102_spill] sm:$0xff] }
 0x2f3   : > { %3565 = vadd.xlane.f32.xlu0 %v3564_v43  ;;  %v2871_v42 = vmul.f32 %v15721_v54, %v15960_v49  ;;  %v1357_v62 = vmul.f32 %v15962_v14, %v15961_v18  ;;  %v15963_v43 = vrot.slane %v10627_v10, 5  ;;  %v534_v20 = vadd.f32 %v510_v33, %v482_v3  ;;  %v15967_v54 = vld [vmem:[#allocation47_spill] sm:$0xff]  ;;  %v15971_v33 = vld [vmem:[#allocation109_spill] sm:$0xff] }
 0x2f4   : > { %v2791_v44 = vadd.f32 %v2767_v19, %v2739_v16  ;;  %v1192_v34 = vadd.f32 %v1168_v37, %v1140_v29  ;;  %v614_v53 = vmul.f32 %v15964_v32, %v15895_v56  ;;  %v15965_v16 = vld [vmem:[#allocation172_spill] sm:$0xff]  ;;  %v15966_v29 = vld [vmem:[#allocation162_spill] sm:$0xff]  ;;  %v11155_v1 = vmul.f32 %v15952_v25, %v15968_v38 }
 0x2f5   : > { %v2649_v57 = vsel %vm2647_vm4, %v15963_v43, %v13843_v30  ;;  %v2923_v49 = vmul.f32 %v15734_v51, %v15965_v16  ;;  %v1409_v18 = vmul.f32 %v15967_v54, %v15966_v29  ;;  %v2975_v4 = vmul.f32 %v15741_v24, %v15970_v5  ;;  %v15972_v16 = vld [vmem:[#allocation164_spill] sm:$0xff]  ;;  %v15974_v51 = vld [vmem:[#allocation142_spill] sm:$0xff] }
 0x2f6   : > { %v2843_v19 = vadd.f32 %v2819_v28, %v2791_v44  ;;  %v1244_v37 = vadd.f32 %v1220_v63, %v1192_v34  ;;  %15969 = vst [vmem:[#allocation240_spill] sm:$0xff] %v11155_v1  ;;  %v586_v43 = vadd.f32 %v562_v58, %v534_v20  ;;  %v666_v3 = vmul.f32 %v15971_v33, %v15905_v15  ;;  %v15973_v63 = vld [vmem:[#allocation49_spill] sm:$0xff]  ;;  %v15975_v58 = vld [vmem:[#allocation163_spill] sm:$0xff] }
 0x2f7   : > { %v1461_v34 = vmul.f32 %v15973_v63, %v15972_v16  ;;  %v11164_v30 = vadd.f32 %v1076_v40, %v1048_v27  ;;  %v3027_v29 = vmul.f32 %v15745_v47, %v2649_v57  ;;  %v718_v1 = vmul.f32 %v15974_v51, %v15912_v46  ;;  %v15980_v16 = vld [vmem:[#allocation169_spill] sm:$0xff]  ;;  %v15989_v47 = vld [vmem:[#allocation134_spill] sm:$0xff] }
 0x2f8   : > { %v2895_v32 = vadd.f32 %v2871_v42, %v2843_v19  ;;  %v1381_v44 = vadd.f32 %v1357_v62, %v1244_v37  ;;  %v638_v38 = vadd.f32 %v614_v53, %v586_v43  ;;  %v3164_v20 = vmul.f32 %v15747_v2, %v15975_v58  ;;  %v15976_v42 = vld [vmem:[#allocation166_spill] sm:$0xff]  ;;  %v15977_v19 = vld [vmem:[#allocation51_spill] sm:$0xff]  ;;  %v15978_v62 = vld [vmem:[#allocation165_spill] sm:$0xff] }
 0x2f9   : > { %v1513_v28 = vmul.f32 %v15977_v19, %v15976_v42  ;;  %v15979_v37 = vld [vmem:[#allocation112_spill] sm:$0xff]  ;;  %v3268_v40 = vmul.f32 %v15757_v11, %v15980_v16  ;;  %v15981_v57 = vld [vmem:[#allocation117_spill] sm:$0xff] }
 0x2fa   : > { %v2947_v5 = vadd.f32 %v2923_v49, %v2895_v32  ;;  %v1433_v24 = vadd.f32 %v1409_v18, %v1381_v44  ;;  %v3216_v60 = vmul.f32 %v15979_v37, %v15978_v62  ;;  %v690_v27 = vadd.f32 %v666_v3, %v638_v38  ;;  %v15984_v58 = vld [vmem:[#allocation204_spill] sm:$0xff]  ;;  %v15985_v42 = vld [vmem:[#allocation53_spill] sm:$0xff]  ;;  %v15986_v62 = vld [vmem:[#allocation167_spill] sm:$0xff] }
 0x2fb   : > { %v770_v53 = vmul.f32 %v15981_v57, %v15918_v31  ;;  %v15982_v49 = vrot.slane %v10820_v59, 6  ;;  %v15983_v32 = vrot.slane %v10627_v10, 6  ;;  %v1565_v2 = vmul.f32 %v15985_v42, %v15984_v58  ;;  %v15987_v16 = vld [vmem:[#allocation141_spill] sm:$0xff]  ;;  %v15988_v11 = vld [vmem:[#allocation212_spill] sm:$0xff]  ;;  %v15992_v42 = vld [vmem:[#allocation207_spill] sm:$0xff] }
 0x2fc   : > { %v2999_v43 = vadd.f32 %v2975_v4, %v2947_v5  ;;  %v1485_v44 = vadd.f32 %v1461_v34, %v1433_v24  ;;  %v3320_v37 = vmul.f32 %v15837_v7, %v15986_v62  ;;  %v3372_v3 = vmul.f32 %v15924_v55, %v15987_v16  ;;  %v15991_v24 = vld [vmem:[#allocation54_spill] sm:$0xff]  ;;  %v15993_v19 = vld [vmem:[#allocation56_spill] sm:$0xff] }
 0x2fd   : > { %v3098_v18 = vsel %vm3096_vm5, %v15983_v32, %v15982_v49  ;;  %v742_v38 = vadd.f32 %v718_v1, %v690_v27  ;;  %v909_v4 = vmul.f32 %v15926_v8, %v15988_v11  ;;  %v3424_v10 = vmul.f32 %v15938_v52, %v15989_v47  ;;  %v15990_v49 = vld [vmem:[#allocation205_spill] sm:$0xff]  ;;  %v15994_v58 = vld [vmem:[#allocation214_spill] sm:$0xff]  ;;  %v16000_v52 = vld [vmem:[#allocation64_spill] sm:$0xff] }
 0x2fe   : > { %v3051_v5 = vadd.f32 %v3027_v29, %v2999_v43  ;;  %v1537_v36 = vadd.f32 %v1513_v28, %v1485_v44  ;;  %v1617_v34 = vmul.f32 %v15991_v24, %v15990_v49  ;;  %v3476_v32 = vmul.f32 %v15943_v12, %v3098_v18  ;;  %v15995_v11 = vld [vmem:[#allocation170_spill] sm:$0xff]  ;;  %v15998_v47 = vld [vmem:[#allocation61_spill] sm:$0xff]  ;;  %v15999_v44 = vld [vmem:[#allocation175_spill] sm:$0xff] }
 0x2ff   : > { %v1669_v62 = vmul.f32 %v15993_v19, %v15992_v42  ;;  %v794_v7 = vadd.f32 %v770_v53, %v742_v38  ;;  %v961_v1 = vmul.f32 %v15936_v6, %v15994_v58  ;;  %v15996_v29 = vld [vmem:[#allocation58_spill] sm:$0xff]  ;;  %v1910_v24 = vmul.f32 %v16000_v52, %v15999_v44  ;;  %v16003_v19 = vld [vmem:[#allocation153_spill] sm:$0xff] }
 0x300   : > { %v3188_v27 = vadd.f32 %v3164_v20, %v3051_v5  ;;  %v1589_v16 = vadd.f32 %v1565_v2, %v1537_v36  ;;  %v1806_v43 = vmul.f32 %v15996_v29, %v15995_v11  ;;  %v15997_v55 = vld [vmem:[#allocation174_spill] sm:$0xff]  ;;  %v1013_v53 = vmul.f32 %v15942_v61, %v16003_v19  ;;  %v16004_v20 = vld [vmem:[#allocation209_spill] sm:$0xff]  ;;  %v16005_v36 = vld [vmem:[#allocation208_spill] sm:$0xff] }
 0x301   : > { %v1858_v28 = vmul.f32 %v15998_v47, %v15997_v55  ;;  %v16001_v49 = vld [vmem:[#allocation178_spill] sm:$0xff]  ;;  %v933_v8 = vadd.f32 %v909_v4, %v794_v7  ;;  %v2014_v2 = vmul.f32 %v15590_v45, %v16004_v20  ;;  %v2066_v5 = vmul.f32 %v15786_v23, %v16005_v36  ;;  %v16007_v47 = vld [vmem:[#allocation180_spill] sm:$0xff]  ;;  %v16008_v7 = vld [vmem:[#allocation217_spill] sm:$0xff] }
 0x302   : > { %v16002_v18 = vld [vmem:[#allocation66_spill] sm:$0xff]  ;;  %v3240_v38 = vadd.f32 %v3216_v60, %v3188_v27  ;;  %v1641_v58 = vadd.f32 %v1617_v34, %v1589_v16  ;;  %v11220_v44 = vmul.f32 %v15790_v22, %v16007_v47  ;;  %v1065_v4 = vmul.f32 %v15946_v48, %v16008_v7  ;;  %v16009_v34 = vld [vmem:[#allocation183_spill] sm:$0xff]  ;;  %v16012_v47 = vld [vmem:[#allocation181_spill] sm:$0xff] }
 0x303   : > { %v1962_v12 = vmul.f32 %v16002_v18, %v16001_v49  ;;  %v16006_v11 = vld [vmem:[#allocation210_spill] sm:$0xff]  ;;  %v985_v49 = vadd.f32 %v961_v1, %v933_v8  ;;  %v11226_v27 = vmul.f32 %v15793_v41, %v16009_v34  ;;  %v463_v8 = vmul.f32 %v15971_v33, %v15859_v13 }
 0x304   : > { %v2118_v55 = vmul.f32 %v15788_v21, %v16006_v11  ;;  %v3292_v19 = vadd.f32 %v3268_v40, %v3240_v38  ;;  %v1693_v60 = vadd.f32 %v1669_v62, %v1641_v58  ;;  %v16010_v16 = vld [vmem:[#allocation182_spill] sm:$0xff]  ;;  %v16011_v21 = vld [vmem:[#allocation192_spill] sm:$0xff]  ;;  %v522_v1 = vmul.f32 %v15974_v51, %v15875_v0  ;;  %v16013_v38 = vld [vmem:[#allocation81_spill] sm:$0xff] }
 0x305   : > { %v11230_v23 = vmul.f32 %v15921_v9, %v16010_v16  ;;  %v1037_v45 = vadd.f32 %v1013_v53, %v985_v49  ;;  %v1117_v11 = vmul.f32 %v15948_v35, %v16011_v21  ;;  %v11240_v58 = vmul.f32 %v16013_v38, %v16012_v47  ;;  %v16014_v7 = vld [vmem:[#allocation46_spill] sm:$0xff]  ;;  %v16015_v53 = vld [vmem:[#allocation241_spill] sm:$0xff] }
 0x306   : > { %v3344_v40 = vadd.f32 %v3320_v37, %v3292_v19  ;;  %v1830_v62 = vadd.f32 %v1806_v43, %v1693_v60  ;;  %v11243_v34 = vunpack.c.h.bf16 %v16014_v7  ;;  %v1169_v49 = vmul.f32 %v15952_v25, %v16015_v53  ;;  %v16016_v0 = vld [vmem:[#allocation65_spill] sm:$0xff] }
 0x307   : > { %v1089_v16 = vadd.f32 %v1065_v4, %v1037_v45  ;;  %v494_v9 = vadd.f32 %v11132_v39, %v463_v8  ;;  %v574_v13 = vmul.f32 %v15981_v57, %v15887_v26  ;;  %v1221_v37 = vmul.f32 %v15957_v50, %v16016_v0  ;;  %v16017_v60 = vld [vmem:[#allocation221_spill] sm:$0xff]  ;;  %v16019_v8 = vld [vmem:[#allocation227_spill] sm:$0xff] }
 0x308   : > { %v3396_v33 = vadd.f32 %v3372_v3, %v3344_v40  ;;  %v1882_v51 = vadd.f32 %v1858_v28, %v1830_v62  ;;  %v848_v43 = vrot.slane %v11243_v34, 1  ;;  %v1358_v47 = vmul.f32 %v15962_v14, %v16017_v60  ;;  %v16018_v4 = vld [vmem:[#allocation193_spill] sm:$0xff]  ;;  %v16021_v40 = vld [vmem:[#allocation187_spill] sm:$0xff] }
 0x309   : > { %v1141_v19 = vadd.f32 %v1117_v11, %v1089_v16  ;;  %v546_v45 = vadd.f32 %v522_v1, %v494_v9  ;;  %v626_v7 = vmul.f32 %v16018_v4, %v15895_v56  ;;  %v1410_v26 = vmul.f32 %v15967_v54, %v16019_v8  ;;  %v16022_v1 = vld [vmem:[#allocation197_spill] sm:$0xff]  ;;  %v16024_v62 = vld [vmem:[#allocation131_spill] sm:$0xff]  ;;  %v16029_v8 = vld [vmem:[#allocation82_spill] sm:$0xff] }
 0x30a   : > { %v3448_v38 = vadd.f32 %v3424_v10, %v3396_v33  ;;  %v1934_v39 = vadd.f32 %v1910_v24, %v1882_v51  ;;  %v16020_v57 = vrot.slane %v10820_v59, 1  ;;  %v678_v9 = vmul.f32 %v16021_v40, %v15905_v15  ;;  %v16025_v33 = vld [vmem:[#allocation179_spill] sm:$0xff] }
 0x30b   : > { %v1193_v28 = vadd.f32 %v1169_v49, %v1141_v19  ;;  %v598_v11 = vadd.f32 %v574_v13, %v546_v45  ;;  %v1128_v56 = vmul.f32 %v15948_v35, %v16022_v1  ;;  %v730_v16 = vmul.f32 %v16024_v62, %v15912_v46  ;;  %v16026_v45 = vld [vmem:[#allocation229_spill] sm:$0xff]  ;;  %v16034_v62 = vld [vmem:[#allocation215_spill] sm:$0xff] }
 0x30c   : > { %v852_v3 = vsel %vm851_vm0, %v16020_v57, %v848_v43  ;;  %v11269_v10 = vadd.f32 %v3476_v32, %v3448_v38  ;;  %v1986_v24 = vadd.f32 %v1962_v12, %v1934_v39  ;;  %v1180_v51 = vmul.f32 %v15952_v25, %v16025_v33  ;;  %v16028_v39 = vld [vmem:[#allocation216_spill] sm:$0xff]  ;;  %v16035_v33 = vld [vmem:[#allocation87_spill] sm:$0xff] }
 0x30d   : > { %v1245_v60 = vadd.f32 %v1221_v37, %v1193_v28  ;;  %v650_v4 = vadd.f32 %v626_v7, %v598_v11  ;;  %v1152_v49 = vadd.f32 %v1128_v56, %v11164_v30  ;;  %v1232_v13 = vmul.f32 %v15957_v50, %v852_v3  ;;  %v16027_v37 = vld [vmem:[#allocation204_spill] sm:$0xff]  ;;  %v16030_v3 = vld [vmem:[#allocation230_spill] sm:$0xff]  ;;  %v16031_v28 = vld [vmem:[#allocation51_spill] sm:$0xff] }
 0x30e   : > { %16023 = vst [vmem:[#allocation57_spill] sm:$0xff] %v11269_v10  ;;  %v3567_v15 = vsel %vm3503_vm6, %v11269_v10, 0.0  ;;  %v2038_v19 = vadd.f32 %v2014_v2, %v1986_v24  ;;  %v1462_v32 = vmul.f32 %v15973_v63, %v16026_v45  ;;  %v782_v12 = vmul.f32 %v11243_v34, %v15918_v31  ;;  %v16032_v11 = vld [vmem:[#allocation30_spill] sm:$0xff]  ;;  %v16033_v24 = vld [vmem:[#allocation205_spill] sm:$0xff] }
 0x30f   : > { %3568 = vadd.xlane.f32.xlu1 %v3567_v15  ;;  %v1382_v46 = vadd.f32 %v1358_v47, %v1245_v60  ;;  %v702_v38 = vadd.f32 %v678_v9, %v650_v4  ;;  %v1204_v25 = vadd.f32 %v1180_v51, %v1152_v49  ;;  %v1369_v7 = vmul.f32 %v15962_v14, %v16027_v37  ;;  %v16037_v60 = vld [vmem:[#allocation53_spill] sm:$0xff] }
 0x310   : > { %v2090_v30 = vadd.f32 %v2066_v5, %v2038_v19  ;;  %v2463_v57 = vmul.f32 %v16029_v8, %v16028_v39  ;;  %v1514_v2 = vmul.f32 %v16031_v28, %v16030_v3  ;;  %v921_v40 = vmul.f32 %v16032_v11, %v16011_v21  ;;  %v16036_v5 = vld [vmem:[#allocation244_spill] sm:$0xff]  ;;  %v16044_v11 = vld [vmem:[#allocation62_spill] sm:$0xff] }
 0x311   : > { %v1434_v1 = vadd.f32 %v1410_v26, %v1382_v46  ;;  %v754_v56 = vadd.f32 %v730_v16, %v702_v38  ;;  %v1256_v31 = vadd.f32 %v1232_v13, %v1204_v25  ;;  %v1421_v47 = vmul.f32 %v15967_v54, %v16033_v24  ;;  %v16038_v16 = vld [vmem:[#allocation80_spill] sm:$0xff]  ;;  %v16039_v13 = vld [vmem:[#allocation54_spill] sm:$0xff]  ;;  %v16046_v24 = vld [vmem:[#allocation13_spill] sm:$0xff] }
 0x312   : > { %v2142_v9 = vadd.f32 %v2118_v55, %v2090_v30  ;;  %v2515_v51 = vmul.f32 %v16035_v33, %v16034_v62  ;;  %v1566_v4 = vmul.f32 %v16037_v60, %v16036_v5  ;;  %v973_v49 = vmul.f32 %v15936_v6, %v16015_v53  ;;  %v16040_v6 = vld [vmem:[#allocation206_spill] sm:$0xff] }
 0x313   : > { %v1486_v15 = vadd.f32 %v1462_v32, %v1434_v1  ;;  %v806_v19 = vadd.f32 %v782_v12, %v754_v56  ;;  %v1393_v45 = vadd.f32 %v1369_v7, %v1256_v31  ;;  %v1473_v21 = vmul.f32 %v15973_v63, %v15992_v42  ;;  %v16041_v12 = vld [vmem:[#allocation256_spill] sm:$0xff] }
 0x314   : > { %v2279_v26 = vadd.f32 %v11220_v44, %v2142_v9  ;;  %v1618_v55 = vmul.f32 %v16039_v13, %v16038_v16  ;;  %v1025_v46 = vmul.f32 %v15942_v61, %v16016_v0  ;;  %v13860_v38 = vrot.slane %v11243_v34, 2  ;;  %v16042_v42 = vld [vmem:[#allocation56_spill] sm:$0xff]  ;;  %v16043_v44 = vld [vmem:[#allocation243_spill] sm:$0xff]  ;;  %v16048_v9 = vld [vmem:[#allocation249_spill] sm:$0xff] }
 0x315   : > { %v1538_v25 = vadd.f32 %v1514_v2, %v1486_v15  ;;  %v945_v37 = vadd.f32 %v921_v40, %v806_v19  ;;  %v1445_v30 = vadd.f32 %v1421_v47, %v1393_v45  ;;  %v1525_v53 = vmul.f32 %v16031_v28, %v16040_v6  ;;  %v16045_v2 = vld [vmem:[#allocation279_spill] sm:$0xff]  ;;  %v16050_v45 = vld [vmem:[#allocation285_spill] sm:$0xff] }
 0x316   : > { %v2331_v32 = vadd.f32 %v11226_v27, %v2279_v26  ;;  %v1670_v7 = vmul.f32 %v16042_v42, %v16041_v12  ;;  %v1807_v3 = vmul.f32 %v15996_v29, %v16043_v44  ;;  %v1077_v1 = vmul.f32 %v15946_v48, %v16044_v11  ;;  %v16056_v44 = vld [vmem:[#allocation61_spill] sm:$0xff] }
 0x317   : > { %v1590_v61 = vadd.f32 %v1566_v4, %v1538_v25  ;;  %v997_v0 = vadd.f32 %v973_v49, %v945_v37  ;;  %v1497_v56 = vadd.f32 %v1473_v21, %v1445_v30  ;;  %v1577_v40 = vmul.f32 %v16037_v60, %v16045_v2  ;;  %v16051_v25 = vld [vmem:[#allocation218_spill] sm:$0xff]  ;;  %v16053_v30 = vld [vmem:[#allocation189_spill] sm:$0xff] }
 0x318   : > { %v2383_v31 = vadd.f32 %v11230_v23, %v2331_v32  ;;  %v16047_v47 = vrot.slane %v16046_v24, 1  ;;  %v1129_v15 = vmul.f32 %v15948_v35, %v16048_v9  ;;  %v16049_v48 = vrot.slane %v10820_v59, 2  ;;  %v16054_v35 = vld [vmem:[#allocation90_spill] sm:$0xff] }
 0x319   : > { %v1642_v49 = vadd.f32 %v1618_v55, %v1590_v61  ;;  %v1049_v19 = vadd.f32 %v1025_v46, %v997_v0  ;;  %v1549_v23 = vadd.f32 %v1525_v53, %v1497_v56  ;;  %v1629_v21 = vmul.f32 %v16039_v13, %v16050_v45  ;;  %v16055_v32 = vld [vmem:[#allocation246_spill] sm:$0xff]  ;;  %v16057_v53 = vld [vmem:[#allocation191_spill] sm:$0xff]  ;;  %v16059_v56 = vld [vmem:[#allocation245_spill] sm:$0xff] }
 0x31a   : > { %v893_v27 = vsel %vm851_vm0, %v848_v43, %v16047_v47  ;;  %v1301_v4 = vsel %vm1300_vm1, %v16049_v48, %v13860_v38  ;;  %v2435_v26 = vadd.f32 %v11240_v58, %v2383_v31  ;;  %v16052_v43 = vld [vmem:[#allocation88_spill] sm:$0xff]  ;;  %v2704_v6 = vmul.f32 %v16054_v35, %v16053_v30  ;;  %v16058_v61 = vld [vmem:[#allocation95_spill] sm:$0xff] }
 0x31b   : > { %v2567_v37 = vmul.f32 %v16052_v43, %v16051_v25  ;;  %v1859_v11 = vmul.f32 %v16056_v44, %v16055_v32  ;;  %v1694_v2 = vadd.f32 %v1670_v7, %v1642_v49  ;;  %v1101_v47 = vadd.f32 %v1077_v1, %v1049_v19  ;;  %v16060_v1 = vld [vmem:[#allocation190_spill] sm:$0xff] }
 0x31c   : > { %v1601_v9 = vadd.f32 %v1577_v40, %v1549_v23  ;;  %v1681_v55 = vmul.f32 %v16042_v42, %v1301_v4  ;;  %v2487_v46 = vadd.f32 %v2463_v57, %v2435_v26  ;;  %v2756_v0 = vmul.f32 %v16058_v61, %v16057_v53  ;;  %v16061_v40 = vld [vmem:[#allocation96_spill] sm:$0xff]  ;;  %v16063_v57 = vld [vmem:[#allocation97_spill] sm:$0xff] }
 0x31d   : > { %v1911_v58 = vmul.f32 %v16000_v52, %v16059_v56  ;;  %v1233_v31 = vmul.f32 %v15957_v50, %v893_v27  ;;  %v1831_v48 = vadd.f32 %v1807_v3, %v1694_v2  ;;  %v1153_v45 = vadd.f32 %v1129_v15, %v1101_v47  ;;  %v16062_v4 = vld [vmem:[#allocation188_spill] sm:$0xff]  ;;  %v16064_v23 = vld [vmem:[#allocation77_spill] sm:$0xff]  ;;  %v16066_v15 = vld [vmem:[#allocation222_spill] sm:$0xff] }
 0x31e   : > { %v1653_v30 = vadd.f32 %v1629_v21, %v1601_v9  ;;  %v1818_v32 = vmul.f32 %v15996_v29, %v16004_v20  ;;  %v2539_v7 = vadd.f32 %v2515_v51, %v2487_v46  ;;  %v2808_v49 = vmul.f32 %v16061_v40, %v16060_v1  ;;  %v16065_v56 = vld [vmem:[#allocation240_spill] sm:$0xff]  ;;  %v16067_v20 = vld [vmem:[#allocation98_spill] sm:$0xff] }
 0x31f   : > { %v2860_v19 = vmul.f32 %v16063_v57, %v16062_v4  ;;  %v1963_v26 = vmul.f32 %v16002_v18, %v16064_v23  ;;  %v1883_v53 = vadd.f32 %v1859_v11, %v1831_v48  ;;  %v1205_v38 = vadd.f32 %v16065_v56, %v1153_v45  ;;  %v16068_v21 = vld [vmem:[#allocation262_spill] sm:$0xff]  ;;  %v16069_v2 = vld [vmem:[#allocation68_spill] sm:$0xff]  ;;  %v16071_v45 = vld [vmem:[#allocation223_spill] sm:$0xff] }
 0x320   : > { %v1705_v50 = vadd.f32 %v1681_v55, %v1653_v30  ;;  %v1870_v3 = vmul.f32 %v16056_v44, %v16005_v36  ;;  %v2591_v27 = vadd.f32 %v2567_v37, %v2539_v7  ;;  %v2912_v51 = vmul.f32 %v16067_v20, %v16066_v15  ;;  %v16070_v11 = vld [vmem:[#allocation210_spill] sm:$0xff]  ;;  %v16072_v30 = vld [vmem:[#allocation99_spill] sm:$0xff]  ;;  %v16074_v7 = vld [vmem:[#allocation100_spill] sm:$0xff] }
 0x321   : > { %v2015_v47 = vmul.f32 %v16069_v2, %v16068_v21  ;;  %v1370_v9 = vmul.f32 %v15962_v14, %v16036_v5  ;;  %v1935_v46 = vadd.f32 %v1911_v58, %v1883_v53  ;;  %v1257_v1 = vadd.f32 %v1233_v31, %v1205_v38  ;;  %v16073_v37 = vld [vmem:[#allocation226_spill] sm:$0xff]  ;;  %v16075_v20 = vld [vmem:[#allocation261_spill] sm:$0xff]  ;;  %v16077_v5 = vld [vmem:[#allocation211_spill] sm:$0xff] }
 0x322   : > { %v1842_v4 = vadd.f32 %v1818_v32, %v1705_v50  ;;  %v1922_v48 = vmul.f32 %v16000_v52, %v16070_v11  ;;  %v2728_v55 = vadd.f32 %v2704_v6, %v2591_v27  ;;  %v2964_v36 = vmul.f32 %v16072_v30, %v16071_v45  ;;  %v16076_v57 = vld [vmem:[#allocation69_spill] sm:$0xff]  ;;  %v16078_v31 = vld [vmem:[#allocation196_spill] sm:$0xff] }
 0x323   : > { %v3016_v23 = vmul.f32 %v16074_v7, %v16073_v37  ;;  %v1987_v10 = vadd.f32 %v1963_v26, %v1935_v46  ;;  %v2067_v15 = vmul.f32 %v16076_v57, %v16075_v20  ;;  %v1974_v38 = vmul.f32 %v16002_v18, %v16077_v5  ;;  %v16079_v32 = vld [vmem:[#allocation108_spill] sm:$0xff]  ;;  %v16080_v53 = vld [vmem:[#allocation201_spill] sm:$0xff]  ;;  %v16083_v37 = vld [vmem:[#allocation71_spill] sm:$0xff] }
 0x324   : > { %v1894_v14 = vadd.f32 %v1870_v3, %v1842_v4  ;;  %v2780_v58 = vadd.f32 %v2756_v0, %v2728_v55  ;;  %v3153_v6 = vmul.f32 %v16079_v32, %v16078_v31  ;;  %v16081_v50 = vld [vmem:[#allocation112_spill] sm:$0xff]  ;;  %v1394_v11 = vadd.f32 %v1370_v9, %v1257_v1  ;;  %v16089_v31 = vld [vmem:[#allocation198_spill] sm:$0xff] }
 0x325   : > { %v3205_v27 = vmul.f32 %v16081_v50, %v16080_v53  ;;  %v2039_v30 = vadd.f32 %v2015_v47, %v1987_v10  ;;  %v16082_v7 = vld [vmem:[#allocation260_spill] sm:$0xff]  ;;  %v16085_v4 = vrot.slane %v11243_v34, 3  ;;  %v16086_v0 = vrot.slane %v10820_v59, 3  ;;  %v16090_v53 = vld [vmem:[#allocation113_spill] sm:$0xff] }
 0x326   : > { %v2119_v56 = vmul.f32 %v16083_v37, %v16082_v7  ;;  %v1946_v26 = vadd.f32 %v1922_v48, %v1894_v14  ;;  %v16084_v46 = vld [vmem:[#allocation280_spill] sm:$0xff]  ;;  %v2832_v3 = vadd.f32 %v2808_v49, %v2780_v58  ;;  %v1422_v5 = vmul.f32 %v15967_v54, %v16038_v16  ;;  %v16088_v14 = vld [vmem:[#allocation139_spill] sm:$0xff] }
 0x327   : > { %v2026_v45 = vmul.f32 %v16069_v2, %v16084_v46  ;;  %v1750_v55 = vsel %vm1749_vm2, %v16086_v0, %v16085_v4  ;;  %v1474_v10 = vmul.f32 %v15973_v63, %v16041_v12  ;;  %v2091_v47 = vadd.f32 %v2067_v15, %v2039_v30  ;;  %v16087_v9 = vld [vmem:[#allocation248_spill] sm:$0xff]  ;;  %v16091_v4 = vld [vmem:[#allocation111_spill] sm:$0xff] }
 0x328   : > { %v2256_v1 = vmul.f32 %v15790_v22, %v16087_v9  ;;  %v1998_v48 = vadd.f32 %v1974_v38, %v1946_v26  ;;  %v2078_v49 = vmul.f32 %v16076_v57, %v16088_v14  ;;  %v2884_v58 = vadd.f32 %v2860_v19, %v2832_v3  ;;  %v16092_v16 = vld [vmem:[#allocation251_spill] sm:$0xff]  ;;  %v16094_v26 = vld [vmem:[#allocation78_spill] sm:$0xff]  ;;  %v16095_v19 = vld [vmem:[#allocation168_spill] sm:$0xff] }
 0x329   : > { %v3257_v46 = vmul.f32 %v16090_v53, %v16089_v31  ;;  %v1446_v50 = vadd.f32 %v1422_v5, %v1394_v11  ;;  %v1526_v0 = vmul.f32 %v16031_v28, %v16091_v4  ;;  %v2143_v54 = vadd.f32 %v2119_v56, %v2091_v47  ;;  %v16093_v38 = vld [vmem:[#allocation35_spill] sm:$0xff] }
 0x32a   : > { %v2308_v63 = vmul.f32 %v15793_v41, %v16092_v16  ;;  %v2050_v12 = vadd.f32 %v2026_v45, %v1998_v48  ;;  %v2130_v15 = vmul.f32 %v16083_v37, %v1750_v55  ;;  %v2936_v30 = vadd.f32 %v2912_v51, %v2884_v58  ;;  %v16098_v55 = vld [vmem:[#allocation202_spill] sm:$0xff]  ;;  %v16099_v47 = vld [vmem:[#allocation115_spill] sm:$0xff]  ;;  %v16102_v58 = vld [vmem:[#allocation81_spill] sm:$0xff] }
 0x32b   : > { %v2360_v9 = vmul.f32 %v16094_v26, %v16093_v38  ;;  %v1498_v14 = vadd.f32 %v1474_v10, %v1446_v50  ;;  %v1578_v3 = vmul.f32 %v16037_v60, %v16095_v19  ;;  %v2280_v31 = vadd.f32 %v2256_v1, %v2143_v54  ;;  %v16100_v10 = vld [vmem:[#allocation44_spill] sm:$0xff]  ;;  %v16104_v38 = vld [vmem:[#allocation118_spill] sm:$0xff] }
 0x32c   : > { %v2102_v11 = vadd.f32 %v2078_v49, %v2050_v12  ;;  %v2267_v28 = vmul.f32 %v15790_v22, %v16028_v39  ;;  %v16096_v56 = vrot.slane %v16046_v24, 2  ;;  %v16097_v5 = vrot.slane %v11243_v34, 2  ;;  %v16101_v49 = vld [vmem:[#allocation247_spill] sm:$0xff]  ;;  %v16103_v12 = vld [vmem:[#allocation232_spill] sm:$0xff] }
 0x32d   : > { %v2988_v51 = vadd.f32 %v2964_v36, %v2936_v30  ;;  %v3309_v48 = vmul.f32 %v16099_v47, %v16098_v55  ;;  %v1550_v50 = vadd.f32 %v1526_v0, %v1498_v14  ;;  %v1630_v60 = vmul.f32 %v16039_v13, %v16100_v10  ;;  %v16105_v0 = vld [vmem:[#allocation264_spill] sm:$0xff]  ;;  %v16109_v55 = vld [vmem:[#allocation119_spill] sm:$0xff] }
 0x32e   : > { %v1342_v45 = vsel %vm1300_vm1, %v16097_v5, %v16096_v56  ;;  %v2332_v1 = vadd.f32 %v2308_v63, %v2280_v31  ;;  %v2412_v4 = vmul.f32 %v16102_v58, %v16101_v49  ;;  %v2154_v39 = vadd.f32 %v2130_v15, %v2102_v11  ;;  %v16106_v5 = vld [vmem:[#allocation266_spill] sm:$0xff] }
 0x32f   : > { %v2319_v54 = vmul.f32 %v15793_v41, %v16034_v62  ;;  %v3040_v16 = vadd.f32 %v3016_v23, %v2988_v51  ;;  %v3361_v19 = vmul.f32 %v16104_v38, %v16103_v12  ;;  %v1602_v36 = vadd.f32 %v1578_v3, %v1550_v50 }
 0x330   : > { %v1682_v30 = vmul.f32 %v16042_v42, %v1342_v45  ;;  %v2384_v56 = vadd.f32 %v2360_v9, %v2332_v1  ;;  %v2464_v14 = vmul.f32 %v16029_v8, %v16105_v0  ;;  %v2291_v13 = vadd.f32 %v2267_v28, %v2154_v39  ;;  %v16107_v9 = vld [vmem:[#allocation14_spill] sm:$0xff]  ;;  %v16108_v28 = vld [vmem:[#allocation236_spill] sm:$0xff] }
 0x331   : > { %v2371_v63 = vmul.f32 %v16094_v26, %v16051_v25  ;;  %v3177_v31 = vadd.f32 %v3153_v6, %v3040_v16  ;;  %v2197_v15 = vrot.slane %v11243_v34, 4  ;;  %v1654_v11 = vadd.f32 %v1630_v60, %v1602_v36  ;;  %v16110_v60 = vld [vmem:[#allocation263_spill] sm:$0xff]  ;;  %v16111_v1 = vld [vmem:[#allocation282_spill] sm:$0xff] }
 0x332   : > { %v1819_v62 = vmul.f32 %v15996_v29, %v16068_v21  ;;  %v2436_v23 = vadd.f32 %v2412_v4, %v2384_v56  ;;  %v2516_v3 = vmul.f32 %v16035_v33, %v16106_v5  ;;  %v2343_v42 = vadd.f32 %v2319_v54, %v2291_v13  ;;  %v16113_v16 = vld [vmem:[#allocation255_spill] sm:$0xff]  ;;  %v16114_v56 = vld [vmem:[#allocation149_spill] sm:$0xff] }
 0x333   : > { %v2423_v45 = vmul.f32 %v16102_v58, %v16107_v9  ;;  %v3229_v51 = vadd.f32 %v3205_v27, %v3177_v31  ;;  %v3413_v50 = vmul.f32 %v16109_v55, %v16108_v28  ;;  %v1706_v25 = vadd.f32 %v1682_v30, %v1654_v11  ;;  %v16115_v13 = vld [vmem:[#allocation235_spill] sm:$0xff]  ;;  %v16118_v9 = vld [vmem:[#allocation254_spill] sm:$0xff] }
 0x334   : > { %v1871_v6 = vmul.f32 %v16056_v44, %v16075_v20  ;;  %v2488_v10 = vadd.f32 %v2464_v14, %v2436_v23  ;;  %v2568_v29 = vmul.f32 %v16052_v43, %v16110_v60  ;;  %v2395_v21 = vadd.f32 %v2371_v63, %v2343_v42  ;;  %v16116_v63 = vld [vmem:[#allocation122_spill] sm:$0xff]  ;;  %v16117_v23 = vld [vmem:[#allocation184_spill] sm:$0xff] }
 0x335   : > { %v2475_v49 = vmul.f32 %v16029_v8, %v16111_v1  ;;  %v3281_v4 = vadd.f32 %v3257_v46, %v3229_v51  ;;  %v16112_v27 = vrot.slane %v10820_v59, 4  ;;  %v1843_v54 = vadd.f32 %v1819_v62, %v1706_v25 }
 0x336   : > { %v1923_v44 = vmul.f32 %v16000_v52, %v16082_v7  ;;  %v2540_v20 = vadd.f32 %v2516_v3, %v2488_v10  ;;  %v2705_v36 = vmul.f32 %v16054_v35, %v16113_v16  ;;  %v2447_v30 = vadd.f32 %v2423_v45, %v2395_v21  ;;  %v16119_v45 = vld [vmem:[#allocation253_spill] sm:$0xff]  ;;  %v16125_v16 = vld [vmem:[#allocation224_spill] sm:$0xff] }
 0x337   : > { %v2199_v39 = vsel %vm2198_vm3, %v16112_v27, %v2197_v15  ;;  %v2527_v14 = vmul.f32 %v16035_v33, %v16114_v56  ;;  %v3333_v46 = vadd.f32 %v3309_v48, %v3281_v4  ;;  %v3465_v31 = vmul.f32 %v16116_v63, %v16115_v13  ;;  %v16120_v48 = vld [vmem:[#allocation277_spill] sm:$0xff]  ;;  %v16121_v4 = vld [vmem:[#allocation222_spill] sm:$0xff]  ;;  %v16127_v56 = vld [vmem:[#allocation223_spill] sm:$0xff] }
 0x338   : > { %v1895_v11 = vadd.f32 %v1871_v6, %v1843_v54  ;;  %v1975_v42 = vmul.f32 %v16002_v18, %v16117_v23  ;;  %v2592_v62 = vadd.f32 %v2568_v29, %v2540_v20  ;;  %v2757_v52 = vmul.f32 %v16058_v61, %v16118_v9  ;;  %v16124_v54 = vld [vmem:[#allocation124_spill] sm:$0xff]  ;;  %v16129_v9 = vld [vmem:[#allocation98_spill] sm:$0xff] }
 0x339   : > { %v2499_v7 = vadd.f32 %v2475_v49, %v2447_v30  ;;  %v2579_v3 = vmul.f32 %v16052_v43, %v2199_v39  ;;  %v3385_v51 = vadd.f32 %v3361_v19, %v3333_v46  ;;  %v2809_v25 = vmul.f32 %v16061_v40, %v16119_v45 }
 0x33a   : > { %v1947_v10 = vadd.f32 %v1923_v44, %v1895_v11  ;;  %v2027_v21 = vmul.f32 %v16069_v2, %v16120_v48  ;;  %v2729_v1 = vadd.f32 %v2705_v36, %v2592_v62  ;;  %v2716_v18 = vmul.f32 %v16054_v35, %v16121_v4  ;;  %v16126_v2 = vld [vmem:[#allocation97_spill] sm:$0xff]  ;;  %v11487_v62 = vpop.xlane.xlu0 %3505  ;;  %v16131_v48 = vld [vmem:[#allocation268_spill] sm:$0xff] }
 0x33b   : > { %v2551_v6 = vadd.f32 %v2527_v14, %v2499_v7  ;;  %v16122_v29 = vrot.slane %v16046_v24, 3  ;;  %v16123_v27 = vrot.slane %v11243_v34, 3  ;;  %v3437_v19 = vadd.f32 %v3413_v50, %v3385_v51 }
 0x33c   : > { %v1999_v39 = vadd.f32 %v1975_v42, %v1947_v10  ;;  %v2079_v44 = vmul.f32 %v16076_v57, %v16124_v54  ;;  %v2781_v20 = vadd.f32 %v2757_v52, %v2729_v1  ;;  %v2861_v36 = vmul.f32 %v16126_v2, %v16125_v16  ;;  %v16128_v42 = vld [vmem:[#allocation269_spill] sm:$0xff]  ;;  %v16130_v52 = vld [vmem:[#allocation226_spill] sm:$0xff] }
 0x33d   : > { %v1791_v49 = vsel %vm1749_vm2, %v16123_v27, %v16122_v29  ;;  %v2603_v30 = vadd.f32 %v2579_v3, %v2551_v6  ;;  %v2768_v14 = vmul.f32 %v16058_v61, %v16127_v56  ;;  %v11484_v46 = vadd.f32 %v3465_v31, %v3437_v19  ;;  %v16133_v6 = vld [vmem:[#allocation225_spill] sm:$0xff]  ;;  %v16135_v19 = vld [vmem:[#allocation100_spill] sm:$0xff] }
 0x33e   : > { %v2051_v11 = vadd.f32 %v2027_v21, %v1999_v39  ;;  %v2131_v23 = vmul.f32 %v16083_v37, %v1791_v49  ;;  %v2833_v50 = vadd.f32 %v2809_v25, %v2781_v20  ;;  %v2913_v7 = vmul.f32 %v16129_v9, %v16128_v42  ;;  %v16132_v25 = vld [vmem:[#allocation99_spill] sm:$0xff] }
 0x33f   : > { %v2740_v57 = vadd.f32 %v2716_v18, %v2603_v30  ;;  %v2820_v51 = vmul.f32 %v16061_v40, %v16130_v52  ;;  %v3534_v3 = vsel %vm3503_vm6, %v11484_v46, 0.0  ;;  %v2646_v45 = vrot.slane %v11243_v34, 5  ;;  %v16134_v49 = vld [vmem:[#allocation267_spill] sm:$0xff]  ;;  %v16138_v30 = vld [vmem:[#allocation238_spill] sm:$0xff] }
 0x340   : > { %v2103_v31 = vadd.f32 %v2079_v44, %v2051_v11  ;;  %v2268_v10 = vmul.f32 %v15790_v22, %v16105_v0  ;;  %3535 = vadd.xlane.f32.xlu0 %v3534_v3  ;;  %v2885_v37 = vadd.f32 %v2861_v36, %v2833_v50  ;;  %v2965_v21 = vmul.f32 %v16132_v25, %v16131_v48  ;;  %v16136_v44 = vld [vmem:[#allocation283_spill] sm:$0xff]  ;;  %v16139_v11 = vld [vmem:[#allocation213_spill] sm:$0xff]  ;;  %v16142_v3 = vld [vmem:[#allocation112_spill] sm:$0xff] }
 0x341   : > { %v2792_v1 = vadd.f32 %v2768_v14, %v2740_v57  ;;  %v2872_v4 = vmul.f32 %v16126_v2, %v16133_v6  ;;  %v2320_v29 = vmul.f32 %v15793_v41, %v16106_v5  ;;  %v3017_v39 = vmul.f32 %v16135_v19, %v16134_v49  ;;  %v11516_v41 = vpop.xlane.xlu0 %3508 }
 0x342   : > { %v2155_v18 = vadd.f32 %v2131_v23, %v2103_v31  ;;  %v2937_v27 = vadd.f32 %v2913_v7, %v2885_v37  ;;  %v2924_v22 = vmul.f32 %v16129_v9, %v16136_v44  ;;  %v16137_v0 = vrot.slane %v10820_v59, 5  ;;  %v16140_v7 = vld [vmem:[#allocation265_spill] sm:$0xff] }
 0x343   : > { %v2844_v54 = vadd.f32 %v2820_v51, %v2792_v1  ;;  %v2372_v36 = vmul.f32 %v16094_v26, %v16110_v60  ;;  %v3154_v56 = vmul.f32 %v16079_v32, %v16138_v30  ;;  %v2976_v23 = vmul.f32 %v16132_v25, %v16139_v11  ;;  %v16141_v51 = vld [vmem:[#allocation231_spill] sm:$0xff]  ;;  %v16143_v60 = vld [vmem:[#allocation50_spill] sm:$0xff]  ;;  %v16144_v1 = vld [vmem:[#allocation284_spill] sm:$0xff] }
 0x344   : > { %v2648_v20 = vsel %vm2647_vm4, %v16137_v0, %v2646_v45  ;;  %v2292_v16 = vadd.f32 %v2268_v10, %v2155_v18  ;;  %v2989_v5 = vadd.f32 %v2965_v21, %v2937_v27  ;;  %v2424_v57 = vmul.f32 %v16102_v58, %v16140_v7 }
 0x345   : > { %v2896_v14 = vadd.f32 %v2872_v4, %v2844_v54  ;;  %v3206_v31 = vmul.f32 %v16142_v3, %v16141_v51  ;;  %v3028_v26 = vmul.f32 %v16135_v19, %v2648_v20  ;;  %v3258_v37 = vmul.f32 %v16090_v53, %v16143_v60  ;;  %v16146_v54 = vld [vmem:[#allocation127_spill] sm:$0xff]  ;;  %v16147_v20 = vld [vmem:[#allocation228_spill] sm:$0xff]  ;;  %v16150_v51 = vld [vmem:[#allocation237_spill] sm:$0xff] }
 0x346   : > { %v2344_v50 = vadd.f32 %v2320_v29, %v2292_v16  ;;  %v3041_v52 = vadd.f32 %v3017_v39, %v2989_v5  ;;  %v2476_v6 = vmul.f32 %v16029_v8, %v16144_v1  ;;  %v3165_v29 = vmul.f32 %v16079_v32, %v16103_v12  ;;  %v16153_v1 = vld [vmem:[#allocation79_spill] sm:$0xff] }
 0x347   : > { %v2948_v10 = vadd.f32 %v2924_v22, %v2896_v14  ;;  %v16145_v58 = vrot.slane %v16046_v24, 4  ;;  %v2528_v44 = vmul.f32 %v16035_v33, %v16146_v54  ;;  %v3512_v22 = vpop.xlane.xlu0 %3511  ;;  %v3310_v8 = vmul.f32 %v16099_v47, %v16147_v20 }
 0x348   : > { %v2396_v21 = vadd.f32 %v2372_v36, %v2344_v50  ;;  %v3178_v4 = vadd.f32 %v3154_v56, %v3041_v52  ;;  %v3217_v12 = vmul.f32 %v16142_v3, %v16108_v28  ;;  %v3095_v36 = vrot.slane %v11243_v34, 6 }
 0x349   : > { %v3000_v18 = vadd.f32 %v2976_v23, %v2948_v10  ;;  %v2240_v27 = vsel %vm2198_vm3, %v2197_v15, %v16145_v58  ;;  %v16148_v15 = vld [vmem:[#allocation276_spill] sm:$0xff]  ;;  %v3269_v33 = vmul.f32 %v16090_v53, %v16115_v13  ;;  %v2717_v50 = vmul.f32 %v16054_v35, %v16128_v42 }
 0x34a   : > { %v2448_v39 = vadd.f32 %v2424_v57, %v2396_v21  ;;  %v3230_v0 = vadd.f32 %v3206_v31, %v3178_v4  ;;  %v2580_v30 = vmul.f32 %v16052_v43, %v2240_v27  ;;  %v3362_v14 = vmul.f32 %v16104_v38, %v16148_v15  ;;  %v16149_v57 = vld [vmem:[#allocation275_spill] sm:$0xff]  ;;  %v16151_v31 = vld [vmem:[#allocation272_spill] sm:$0xff] }
 0x34b   : > { %v3052_v16 = vadd.f32 %v3028_v26, %v3000_v18  ;;  %v3414_v28 = vmul.f32 %v16109_v55, %v16149_v57  ;;  %v3321_v43 = vmul.f32 %v16099_v47, %v16150_v51  ;;  %v3466_v10 = vmul.f32 %v16116_v63, %v16151_v31  ;;  %v3548_v42 = vpop.xlane.xlu0 %3547  ;;  %v3542_v18 = vpop.xlane.xlu1 %3541 }
 0x34c   : > { %v2500_v5 = vadd.f32 %v2476_v6, %v2448_v39  ;;  %v3282_v56 = vadd.f32 %v3258_v37, %v3230_v0  ;;  %v16152_v26 = vrot.slane %v10820_v59, 6  ;;  %v2769_v35 = vmul.f32 %v16058_v61, %v16131_v48  ;;  %v16154_v39 = vld [vmem:[#allocation20_spill] sm:$0xff] }
 0x34d   : > { %v3189_v11 = vadd.f32 %v3165_v29, %v3052_v16  ;;  %v3373_v6 = vmul.f32 %v16104_v38, %v16153_v1  ;;  %v3577_v4 = vmul.f32 0.25, %v11487_v62  ;;  %v2821_v59 = vmul.f32 %v16061_v40, %v16134_v49  ;;  %v16156_v62 = vld [vmem:[#allocation133_spill] sm:$0xff]  ;;  %v16157_v40 = vld [vmem:[#allocation176_spill] sm:$0xff] }
 0x34e   : > { %v2552_v23 = vadd.f32 %v2528_v44, %v2500_v5  ;;  %v3334_v7 = vadd.f32 %v3310_v8, %v3282_v56  ;;  %v3097_v13 = vsel %vm3096_vm5, %v16152_v26, %v3095_v36  ;;  %v3425_v54 = vmul.f32 %v16109_v55, %v16154_v39  ;;  %v16155_v44 = vld [vmem:[#allocation271_spill] sm:$0xff] }
 0x34f   : > { %v3241_v52 = vadd.f32 %v3217_v12, %v3189_v11  ;;  %v3477_v61 = vmul.f32 %v16116_v63, %v3097_v13  ;;  %v2873_v0 = vmul.f32 %v16126_v2, %v16155_v44  ;;  %v11580_v16 = vsub.f32 %v16156_v62, %v3577_v4  ;;  %v16166_v62 = vld [vmem:[#allocation177_spill] sm:$0xff] }
 0x350   : > { %v2604_v60 = vadd.f32 %v2580_v30, %v2552_v23  ;;  %v3386_v37 = vadd.f32 %v3362_v14, %v3334_v7  ;;  %v3589_v12 = vmul.f32 0.25, %v3542_v18  ;;  %v2925_v49 = vmul.f32 %v16129_v9, %v16157_v40  ;;  %v3518_v30 = vpop.xlane.xlu0 %3517  ;;  %v16160_v9 = vld [vmem:[#allocation185_spill] sm:$0xff] }
 0x351   : > { %v3293_v21 = vadd.f32 %v3269_v33, %v3241_v52  ;;  %v16158_v11 = vrot.slane %v16046_v24, 5  ;;  %v3545_v33 = vpop.xlane.xlu1 %3544  ;;  %v3625_v51 = vmul.f32 %v11580_v16, %v11580_v16  ;;  %v3218_v4 = vmul.f32 %v16142_v3, %v16149_v57 }
 0x352   : > { %v2741_v29 = vadd.f32 %v2717_v50, %v2604_v60  ;;  %v3438_v58 = vadd.f32 %v3414_v28, %v3386_v37  ;;  %v16159_v50 = vld [vmem:[#allocation52_spill] sm:$0xff]  ;;  %v11597_v52 = vsub.f32 %v16160_v9, %v3589_v12  ;;  %v16161_v37 = vld [vmem:[#allocation259_spill] sm:$0xff]  ;;  %v16164_v57 = vrot.slane %v16046_v24, 6 }
 0x353   : > { %v3345_v27 = vadd.f32 %v3321_v43, %v3293_v21  ;;  %v2689_v2 = vsel %vm2647_vm4, %v2646_v45, %v16158_v11  ;;  %v2977_v7 = vmul.f32 %v16132_v25, %v16159_v50  ;;  %v3579_v43 = vmul.f32 0.25, %v3512_v22 }
 0x354   : > { %v2793_v48 = vadd.f32 %v2769_v35, %v2741_v29  ;;  %v11577_v20 = vadd.f32 %v3466_v10, %v3438_v58  ;;  %v3029_v26 = vmul.f32 %v16135_v19, %v2689_v2  ;;  %v3166_v25 = vmul.f32 %v16079_v32, %v16148_v15  ;;  %v3554_v60 = vpop.xlane.xlu0 %3553  ;;  %v16162_v15 = vld [vmem:[#allocation94_spill] sm:$0xff] }
 0x355   : > { %v3397_v8 = vadd.f32 %v3373_v6, %v3345_v27  ;;  %v3649_v35 = vsel %vm3503_vm6, %v3625_v51, 0.0  ;;  %v11608_v21 = vsub.f32 %v16161_v37, %v3579_v43  ;;  %v3515_v1 = vpop.xlane.xlu1 %3514  ;;  %v3637_v22 = vmul.f32 %v11597_v52, %v11597_v52  ;;  %v16169_v2 = vld [vmem:[#allocation158_spill] sm:$0xff] }
 0x356   : > { %v2845_v5 = vadd.f32 %v2821_v59, %v2793_v48  ;;  %v3537_v56 = vsel %vm3503_vm6, %v11577_v20, 0.0  ;;  %v3591_v6 = vmul.f32 0.25, %v3548_v42  ;;  %v3270_v29 = vmul.f32 %v16090_v53, %v16151_v31  ;;  %v16163_v42 = vld [vmem:[#allocation274_spill] sm:$0xff] }
 0x357   : > { %v3449_v14 = vadd.f32 %v3425_v54, %v3397_v8  ;;  %3538 = vadd.xlane.f32.xlu1 %v3537_v56  ;;  %v3685_v32 = vsel %vm3503_vm6, %v3637_v22, 0.0  ;;  %v3627_v58 = vmul.f32 %v11608_v21, %v11608_v21  ;;  %v3581_v27 = vmul.f32 0.25, %v3518_v30  ;;  %v16165_v48 = vld [vmem:[#allocation258_spill] sm:$0xff] }
 0x358   : > { %v2897_v23 = vadd.f32 %v2873_v0, %v2845_v5  ;;  %v11618_v59 = vsub.f32 %v16162_v15, %v3591_v6  ;;  %v3322_v54 = vmul.f32 %v16099_v47, %v16163_v42  ;;  %v3138_v53 = vsel %vm3096_vm5, %v3095_v36, %v16164_v57  ;;  %v16167_v5 = vld [vmem:[#allocation110_spill] sm:$0xff] }
 0x359   : > { %v11594_v28 = vadd.f32 %v3477_v61, %v3449_v14  ;;  %v3524_v61 = vpop.xlane.xlu0 %3523  ;;  %v3551_v3 = vpop.xlane.xlu1 %3550  ;;  %v3374_v44 = vmul.f32 %v16104_v38, %v16165_v48  ;;  %v3578_v0 = vmul.f32 0.25, %v11516_v41  ;;  %v3655_v8 = vsel %vm3503_vm6, %v3627_v58, 0.0  ;;  %v16168_v38 = vld [vmem:[#allocation219_spill] sm:$0xff] }
 0x35a   : > { %v2949_v10 = vadd.f32 %v2925_v49, %v2897_v23  ;;  %v11635_v47 = vsub.f32 %v16166_v62, %v3581_v27  ;;  %v3639_v24 = vmul.f32 %v11618_v59, %v11618_v59  ;;  %v3593_v12 = vmul.f32 0.25, %v3554_v60  ;;  %v16174_v27 = vld [vmem:[#allocation234_spill] sm:$0xff] }
 0x35b   : > { %v3570_v45 = vsel %vm3503_vm6, %v11594_v28, 0.0  ;;  %v3426_v36 = vmul.f32 %v16109_v55, %v16167_v5  ;;  %v3478_v49 = vmul.f32 %v16116_v63, %v3138_v53  ;;  %v11643_v30 = vsub.f32 %v16168_v38, %v3578_v0  ;;  %v16170_v63 = vld [vmem:[#allocation242_spill] sm:$0xff]  ;;  %v16175_v53 = vld [vmem:[#allocation63_spill] sm:$0xff] }
 0x35c   : > { %3571 = vadd.xlane.f32.xlu0 %v3570_v45  ;;  %v3001_v13 = vadd.f32 %v2977_v7, %v2949_v10  ;;  %v3590_v41 = vmul.f32 0.25, %v3545_v33  ;;  %v3691_v11 = vsel %vm3503_vm6, %v3639_v24, 0.0  ;;  %v11647_v23 = vsub.f32 %v16169_v2, %v3593_v12  ;;  %v16178_v2 = vld [vmem:[#allocation19_spill] sm:$0xff] }
 0x35d   : > { %v3560_v56 = vpop.xlane.xlu0 %3559  ;;  %v3521_v14 = vpop.xlane.xlu1 %3520  ;;  %v3629_v50 = vmul.f32 %v11635_v47, %v11635_v47  ;;  %v3583_v7 = vmul.f32 0.25, %v3524_v61  ;;  %v3580_v43 = vmul.f32 0.25, %v3515_v1  ;;  %v3626_v33 = vmul.f32 %v11643_v30, %v11643_v30  ;;  %v16172_v1 = vld [vmem:[#allocation173_spill] sm:$0xff] }
 0x35e   : > { %v3053_v19 = vadd.f32 %v3029_v26, %v3001_v13  ;;  %v11654_v51 = vsub.f32 %v16170_v63, %v3590_v41  ;;  %v16171_v26 = vld [vmem:[#allocation199_spill] sm:$0xff]  ;;  %v3641_v13 = vmul.f32 %v11647_v23, %v11647_v23 }
 0x35f   : > { %v3661_v10 = vsel %vm3503_vm6, %v3629_v50, 0.0  ;;  %v11660_v45 = vsub.f32 %v16171_v26, %v3583_v7  ;;  %v11667_v22 = vsub.f32 %v16172_v1, %v3580_v43  ;;  %v3652_v6 = vsel %vm3503_vm6, %v3626_v33, 0.0  ;;  %v16179_v33 = vld [vmem:[#allocation55_spill] sm:$0xff] }
 0x360   : > { %v3190_v18 = vadd.f32 %v3166_v25, %v3053_v19  ;;  %3650 = vadd.xlane.f32.xlu0 %v3649_v35  ;;  %v3595_v25 = vmul.f32 0.25, %v3560_v56  ;;  %v3592_v19 = vmul.f32 0.25, %v3551_v3 }
 0x361   : > { %v3530_v35 = vpop.xlane.xlu0 %3529  ;;  %v3557_v37 = vpop.xlane.xlu1 %3556  ;;  %v3631_v15 = vmul.f32 %v11660_v45, %v11660_v45  ;;  %v3628_v61 = vmul.f32 %v11667_v22, %v11667_v22 }
 0x362   : > { %v3242_v39 = vadd.f32 %v3218_v4, %v3190_v18  ;;  %v3638_v4 = vmul.f32 %v11654_v51, %v11654_v51  ;;  %v3697_v18 = vsel %vm3503_vm6, %v3641_v13, 0.0  ;;  %v3585_v58 = vmul.f32 0.25, %v3530_v35  ;;  %v16180_v13 = vld [vmem:[#allocation28_spill] sm:$0xff] }
 0x363   : > { %v3667_v57 = vsel %vm3503_vm6, %v3631_v15, 0.0  ;;  %v3594_v62 = vmul.f32 0.25, %v3557_v37 }
 0x364   : > { %v3294_v31 = vadd.f32 %v3270_v29, %v3242_v39  ;;  %3686 = vadd.xlane.f32.xlu0 %v3685_v32  ;;  %v16173_v29 = vld [vmem:[#allocation171_spill] sm:$0xff]  ;;  %v11679_v39 = vsub.f32 %v16174_v27, %v3592_v19  ;;  %v3688_v42 = vsel %vm3503_vm6, %v3638_v4, 0.0 }
 0x365   : > { %v11674_v32 = vsub.f32 %v16173_v29, %v3595_v25  ;;  %v3527_v3 = vpop.xlane.xlu1 %3526 }
 0x366   : > { %v3346_v34 = vadd.f32 %v3322_v54, %v3294_v31  ;;  %v3582_v54 = vmul.f32 0.25, %v3521_v14  ;;  %v11686_v31 = vsub.f32 %v16175_v53, %v3585_v58  ;;  %v3640_v24 = vmul.f32 %v11679_v39, %v11679_v39 }
 0x367   : > { %v3643_v48 = vmul.f32 %v11674_v32, %v11674_v32  ;;  %v3584_v38 = vmul.f32 0.25, %v3527_v3  ;;  %v3891_v3 = vld [vmem:[%s13003_s5] sm:$0x3] }
 0x368   : > { %v3398_v40 = vadd.f32 %v3374_v44, %v3346_v34  ;;  %3656 = vadd.xlane.f32.xlu0 %v3655_v8  ;;  %v16176_v44 = vld [vmem:[#allocation252_spill] sm:$0xff]  ;;  %v3658_v8 = vsel %vm3503_vm6, %v3628_v61, 0.0  ;;  %v3633_v34 = vmul.f32 %v11686_v31, %v11686_v31  ;;  %5348 = vmatprep.subr.msk.bf16.mxu0 %vm3935_vm7, %v3891_v3 }
 0x369   : > { %v11691_v0 = vsub.f32 %v16176_v44, %v3582_v54  ;;  %v3703_v12 = vsel %vm3503_vm6, %v3643_v48, 0.0  ;;  %v3563_v5 = vpop.xlane.xlu1 %3562  ;;  %v11707_v50 = vsub.f32 %v16178_v2, %v3584_v38  ;;  %v16182_v54 = vld [vmem:[#allocation57_spill] sm:$0xff]  ;;  %5349 = vmatprep.subr.msk.bf16.mxu1 %vm3935_vm7, %v3891_v3 }
 0x36a   : > { %v3450_v55 = vadd.f32 %v3426_v36, %v3398_v40  ;;  %v16177_v36 = vld [vmem:[#allocation48_spill] sm:$0xff]  ;;  %v3673_v56 = vsel %vm3503_vm6, %v3633_v34, 0.0 }
 0x36b   : > { %v11700_v40 = vsub.f32 %v16177_v36, %v3594_v62  ;;  %v3630_v41 = vmul.f32 %v11691_v0, %v11691_v0  ;;  %v3632_v37 = vmul.f32 %v11707_v50, %v11707_v50 }
 0x36c   : > { %v11651_v9 = vadd.f32 %v3478_v49, %v3450_v55  ;;  %3692 = vadd.xlane.f32.xlu0 %v3691_v11  ;;  %v3694_v49 = vsel %vm3503_vm6, %v3640_v24, 0.0  ;;  %v3596_v55 = vmul.f32 0.25, %v3563_v5 }
 0x36d   : > { %v3664_v7 = vsel %vm3503_vm6, %v3630_v41, 0.0  ;;  %v3642_v63 = vmul.f32 %v11700_v40, %v11700_v40  ;;  %v3670_v4 = vsel %vm3503_vm6, %v3632_v37, 0.0 }
 0x36e   : > { %v3573_v60 = vsel %vm3503_vm6, %v11651_v9, 0.0  ;;  %v11718_v25 = vsub.f32 %v16180_v13, %v3596_v55 }
 0x36f   : > { %3574 = vadd.xlane.f32.xlu1 %v3573_v60  ;;  %v3700_v60 = vsel %vm3503_vm6, %v3642_v63, 0.0 }
 0x370   : > { %3662 = vadd.xlane.f32.xlu0 %v3661_v10 }
 0x373   : > { %3653 = vadd.xlane.f32.xlu1 %v3652_v6  ;;  %v3533_v43 = vpop.xlane.xlu1 %3532  ;;  %v16181_v6 = vld [vmem:[#allocation128_spill] sm:$0xff] }
 0x374   : > { %3698 = vadd.xlane.f32.xlu0 %v3697_v18  ;;  %v3586_v35 = vmul.f32 0.25, %v3533_v43  ;;  %v3644_v18 = vmul.f32 %v11718_v25, %v11718_v25 }
 0x376   : > { %v11725_v19 = vsub.f32 %v16181_v6, %v3586_v35  ;;  %v3706_v29 = vsel %vm3503_vm6, %v3644_v18, 0.0 }
 0x377   : > { %3689 = vadd.xlane.f32.xlu1 %v3688_v42 }
 0x378   : > { %3668 = vadd.xlane.f32.xlu0 %v3667_v57  ;;  %v3634_v15 = vmul.f32 %v11725_v19, %v11725_v19  ;;  %v3937_v57 = vsel %vm3935_vm7, %v3891_v3, 0 }
 0x379   : > { %5321 = vmatpush3.bf16.msra.mxu0 %v3937_v57  ;;  %5347 = vmatpush3.bf16.msra.mxu1 %v3937_v57 }
 0x37a   : > { %v3676_v58 = vsel %vm3503_vm6, %v3634_v15, 0.0 }
 0x37b   : > { %3659 = vadd.xlane.f32.xlu1 %v3658_v8 }
 0x37c   : > { %3704 = vadd.xlane.f32.xlu0 %v3703_v12  ;;  %v3566_v14 = vpop.xlane.xlu0 %3565 }
 0x37d   : > { %v3597_v11 = vmul.f32 0.25, %v3566_v14 }
 0x37f   : > { %3695 = vadd.xlane.f32.xlu1 %v3694_v49  ;;  %v11713_v10 = vsub.f32 %v16179_v33, %v3597_v11 }
 0x380   : > { %3674 = vadd.xlane.f32.xlu0 %v3673_v56 }
 0x381   : > { %v3645_v26 = vmul.f32 %v11713_v10, %v11713_v10 }
 0x383   : > { %3665 = vadd.xlane.f32.xlu1 %v3664_v7  ;;  %v3709_v1 = vsel %vm3503_vm6, %v3645_v26, 0.0 }
 0x384   : > { %3710 = vadd.xlane.f32.xlu0 %v3709_v1 }
 0x387   : > { %3701 = vadd.xlane.f32.xlu1 %v3700_v60 }
 0x38b   : > { %3671 = vadd.xlane.f32.xlu1 %v3670_v4 }
 0x38f   : > { %3707 = vadd.xlane.f32.xlu1 %v3706_v29 }
 0x393   : > { %3677 = vadd.xlane.f32.xlu1 %v3676_v58 }
 0x398   : > { %v3569_v27 = vpop.xlane.xlu1 %3568 }
 0x399   : > { %v3598_v42 = vmul.f32 0.25, %v3569_v27 }
 0x39b   : > { %v11735_v61 = vsub.f32 %v16182_v54, %v3598_v42 }
 0x39d   : > { %v3646_v53 = vmul.f32 %v11735_v61, %v11735_v61 }
 0x39f   : > { %v3712_v48 = vsel %vm3503_vm6, %v3646_v53, 0.0 }
 0x3a0   : > { %3713 = vadd.xlane.f32.xlu1 %v3712_v48 }
 0x3c9   : > { %v3536_v44 = vpop.xlane.xlu0 %3535 }
 0x3ca   : > { %v3587_v8 = vmul.f32 0.25, %v3536_v44 }
 0x3cc   : > { %v11745_v62 = vsub.f32 %v11484_v46, %v3587_v8 }
 0x3ce   : > { %v3635_v24 = vmul.f32 %v11745_v62, %v11745_v62 }
 0x3d0   : > { %v3679_v12 = vsel %vm3503_vm6, %v3635_v24, 0.0 }
 0x3d1   : > { %3680 = vadd.xlane.f32.xlu0 %v3679_v12 }
 0x3e0   : > { %v3539_v34 = vpop.xlane.xlu1 %3538 }
 0x3e1   : > { %v3588_v5 = vmul.f32 0.25, %v3539_v34 }
 0x3e3   : > { %v11751_v36 = vsub.f32 %v11577_v20, %v3588_v5 }
 0x3e5   : > { %v3572_v49 = vpop.xlane.xlu0 %3571  ;;  %v3636_v41 = vmul.f32 %v11751_v36, %v11751_v36 }
 0x3e6   : > { %v3599_v38 = vmul.f32 0.25, %v3572_v49 }
 0x3e7   : > { %v3682_v46 = vsel %vm3503_vm6, %v3636_v41, 0.0 }
 0x3e8   : > { %v11756_v56 = vsub.f32 %v11594_v28, %v3599_v38  ;;  %3683 = vadd.xlane.f32.xlu1 %v3682_v46 }
 0x3e9   : > { %v3651_v14 = vpop.xlane.xlu0 %3650 }
 0x3ea   : > { %v3647_v11 = vmul.f32 %v11756_v56, %v11756_v56  ;;  %v3721_v7 = vmul.f32 0.25, %v3651_v14  ;;  %v11772_v14 = vld [vmem:[%s13001_s3] ss:$0 sm:$0xff] }
 0x3ec   : > { %v3715_v2 = vsel %vm3503_vm6, %v3647_v11, 0.0  ;;  %v3745_v63 = vadd.f32 1e-06, %v3721_v7 }
 0x3ed   : > { %3716 = vadd.xlane.f32.xlu0 %v3715_v2  ;;  %v3687_v20 = vpop.xlane.xlu0 %3686 }
 0x3ee   : > { %v3733_v33 = vmul.f32 0.25, %v3687_v20  ;;  %5472 = vrsqrt.f32 %v3745_v63 }
 0x3f0   : > { %v3757_v60 = vadd.f32 1e-06, %v3733_v33 }
 0x3f1   : > { %v3657_v55 = vpop.xlane.xlu0 %3656 }
 0x3f2   : > { %v3723_v35 = vmul.f32 0.25, %v3657_v55  ;;  %5474 = vrsqrt.f32 %v3757_v60 }
 0x3f4   : > { %v3747_v18 = vadd.f32 1e-06, %v3723_v35 }
 0x3f5   : > { %v3693_v43 = vpop.xlane.xlu0 %3692 }
 0x3f6   : > { %v3735_v29 = vmul.f32 0.25, %v3693_v43 }
 0x3f8   : > { %v3575_v26 = vpop.xlane.xlu1 %3574  ;;  %v3759_v3 = vadd.f32 1e-06, %v3735_v29 }
 0x3f9   : > { %v3600_v13 = vmul.f32 0.25, %v3575_v26  ;;  %v3663_v28 = vpop.xlane.xlu0 %3662 }
 0x3fb   : > { %v11763_v37 = vsub.f32 %v11651_v9, %v3600_v13  ;;  %v3725_v9 = vmul.f32 0.25, %v3663_v28  ;;  %v5473_v8 = vpop.eup %5472 }
 0x3fc   : > { %v3654_v1 = vpop.xlane.xlu1 %3653  ;;  %v3793_v38 = vmul.f32 %v5473_v8, %v11580_v16  ;;  %v11778_v16 = vld [vmem:[%s13002_s4] ss:$0 sm:$0xff] }
 0x3fd   : > { %v3648_v6 = vmul.f32 %v11763_v37, %v11763_v37  ;;  %v3722_v4 = vmul.f32 0.25, %v3654_v1  ;;  %v3699_v15 = vpop.xlane.xlu0 %3698  ;;  %v3749_v24 = vadd.f32 1e-06, %v3725_v9 }
 0x3fe   : > { %v3737_v34 = vmul.f32 0.25, %v3699_v15  ;;  %v3824_v63 = vmul.f32 %v11772_v14, %v3793_v38 }
 0x3ff   : > { %v3718_v58 = vsel %vm3503_vm6, %v3648_v6, 0.0  ;;  %v3746_v27 = vadd.f32 1e-06, %v3722_v4  ;;  %v5475_v11 = vpop.eup %5474 }
 0x400   : > { %3719 = vadd.xlane.f32.xlu1 %v3718_v58  ;;  %v3690_v42 = vpop.xlane.xlu1 %3689  ;;  %v3761_v20 = vadd.f32 1e-06, %v3737_v34  ;;  %v3805_v13 = vmul.f32 %v5475_v11, %v11597_v52  ;;  %v3855_v29 = vadd.f32 %v11778_v16, %v3824_v63 }
 0x401   : > { %5476 = vrsqrt.f32 %v3746_v27  ;;  %v3734_v54 = vmul.f32 0.25, %v3690_v42  ;;  %v3669_v48 = vpop.xlane.xlu0 %3668 }
 0x402   : > { %5478 = vrsqrt.f32 %v3747_v18  ;;  %v3727_v41 = vmul.f32 0.25, %v3669_v48  ;;  %v3836_v27 = vmul.f32 %v11772_v14, %v3805_v13 }
 0x403   : > { %v3758_v57 = vadd.f32 1e-06, %v3734_v54 }
 0x404   : > { %v3660_v53 = vpop.xlane.xlu1 %3659  ;;  %v3751_v33 = vadd.f32 1e-06, %v3727_v41 }
 0x405   : > { %5480 = vrsqrt.f32 %v3758_v57  ;;  %v3724_v44 = vmul.f32 0.25, %v3660_v53  ;;  %v3705_v46 = vpop.xlane.xlu0 %3704 }
 0x406   : > { %5482 = vrsqrt.f32 %v3759_v3  ;;  %v3739_v26 = vmul.f32 0.25, %v3705_v46 }
 0x407   : > { %v3748_v12 = vadd.f32 1e-06, %v3724_v44 }
 0x408   : > { %v3696_v5 = vpop.xlane.xlu1 %3695  ;;  %v3763_v58 = vadd.f32 1e-06, %v3739_v26 }
 0x409   : > { %5484 = vrsqrt.f32 %v3748_v12  ;;  %v3736_v49 = vmul.f32 0.25, %v3696_v5  ;;  %v3675_v6 = vpop.xlane.xlu0 %3674 }
 0x40a   : > { %5486 = vrsqrt.f32 %v3749_v24  ;;  %v3867_v24 = vadd.f32 %v11778_v16, %v3836_v27 }
 0x40b   : > { %v3760_v2 = vadd.f32 1e-06, %v3736_v49 }
 0x40c   : > { %v3666_v7 = vpop.xlane.xlu1 %3665 }
 0x40d   : > { %5488 = vrsqrt.f32 %v3760_v2  ;;  %v3726_v55 = vmul.f32 0.25, %v3666_v7 }
 0x40e   : > { %v5477_v43 = vpop.eup %5476  ;;  %5490 = vrsqrt.f32 %v3761_v20 }
 0x40f   : > { %v5479_v28 = vpop.eup %5478  ;;  %v3750_v60 = vadd.f32 1e-06, %v3726_v55  ;;  %v3794_v35 = vmul.f32 %v5477_v43, %v11643_v30  ;;  %v3729_v30 = vmul.f32 0.25, %v3675_v6 }
 0x410   : > { %v3702_v1 = vpop.xlane.xlu1 %3701  ;;  %v3795_v52 = vmul.f32 %v5479_v28, %v11608_v21 }
 0x411   : > { %5492 = vrsqrt.f32 %v3750_v60  ;;  %v3738_v4 = vmul.f32 0.25, %v3702_v1  ;;  %v3825_v18 = vmul.f32 %v11772_v14, %v3794_v35  ;;  %v3753_v49 = vadd.f32 1e-06, %v3729_v30 }
 0x412   : > { %v5481_v15 = vpop.eup %5480  ;;  %5494 = vrsqrt.f32 %v3751_v33  ;;  %v3826_v12 = vmul.f32 %v11772_v14, %v3795_v52 }
 0x413   : > { %v5483_v42 = vpop.eup %5482  ;;  %v3762_v54 = vadd.f32 1e-06, %v3738_v4  ;;  %v3856_v3 = vadd.f32 %v11778_v16, %v3825_v18  ;;  %v3806_v9 = vmul.f32 %v5481_v15, %v11654_v51  ;;  %v3711_v18 = vpop.xlane.xlu0 %3710 }
 0x414   : > { %v3672_v57 = vpop.xlane.xlu1 %3671  ;;  %v3807_v21 = vmul.f32 %v5483_v42, %v11618_v59  ;;  %v3857_v7 = vadd.f32 %v11778_v16, %v3826_v12  ;;  %v3741_v42 = vmul.f32 0.25, %v3711_v18 }
 0x415   : > { %5496 = vrsqrt.f32 %v3762_v54  ;;  %v3728_v53 = vmul.f32 0.25, %v3672_v57  ;;  %v3879_v48 = vpack.c.bf16 %v3856_v3, %v3855_v29  ;;  %v3837_v44 = vmul.f32 %v11772_v14, %v3806_v9 }
 0x416   : > { %v5485_v8 = vpop.eup %5484  ;;  %5498 = vrsqrt.f32 %v3763_v58  ;;  %v3838_v59 = vmul.f32 %v11772_v14, %v3807_v21 }
 0x417   : > { %v5487_v34 = vpop.eup %5486  ;;  %v3752_v5 = vadd.f32 1e-06, %v3728_v53  ;;  %5322 = vmatprep.mubr.msk.bf16.mxu0 %vm3503_vm6, %v3879_v48  ;;  %v3868_v51 = vadd.f32 %v11778_v16, %v3837_v44  ;;  %v3796_v38 = vmul.f32 %v5485_v8, %v11667_v22  ;;  %v3765_v44 = vadd.f32 1e-06, %v3741_v42 }
 0x418   : > { %v3708_v41 = vpop.xlane.xlu1 %3707  ;;  %v3797_v55 = vmul.f32 %v5487_v34, %v11635_v47  ;;  %v3869_v1 = vadd.f32 %v11778_v16, %v3838_v59 }
 0x419   : > { %5500 = vrsqrt.f32 %v3752_v5  ;;  %v3740_v46 = vmul.f32 0.25, %v3708_v41  ;;  %v3885_v11 = vpack.c.bf16 %v3868_v51, %v3867_v24  ;;  %v3827_v2 = vmul.f32 %v11772_v14, %v3796_v38 }
 0x41a   : > { %v5489_v20 = vpop.eup %5488  ;;  %5502 = vrsqrt.f32 %v3753_v49  ;;  %v3828_v47 = vmul.f32 %v11772_v14, %v3797_v55 }
 0x41b   : > { %v3764_v63 = vadd.f32 1e-06, %v3740_v46  ;;  %5334 = vmatprep.mubr.msk.bf16.mxu1 %vm3503_vm6, %v3885_v11  ;;  %v3858_v43 = vadd.f32 %v11778_v16, %v3827_v2  ;;  %v3808_v22 = vmul.f32 %v5489_v20, %v11679_v39  ;;  %v5491_v33 = vpop.eup %5490 }
 0x41c   : > { %v3678_v26 = vpop.xlane.xlu1 %3677  ;;  %v3809_v15 = vmul.f32 %v5491_v33, %v11647_v23  ;;  %v3859_v30 = vadd.f32 %v11778_v16, %v3828_v47 }
 0x41d   : > { %5504 = vrsqrt.f32 %v3764_v63  ;;  %v3730_v13 = vmul.f32 0.25, %v3678_v26  ;;  %v3880_v28 = vpack.c.bf16 %v3858_v43, %v3857_v7  ;;  %v3839_v60 = vmul.f32 %v11772_v14, %v3808_v22 }
 0x41e   : > { %v5493_v35 = vpop.eup %5492 }
 0x41f   : > { %v5495_v6 = vpop.eup %5494  ;;  %v3754_v4 = vadd.f32 1e-06, %v3730_v13  ;;  %5323 = vmatmul.mubr.msk.bf16.vlgmr.msra.gmra.mxu0 %vm3503_vm6, %v3880_v28  ;;  %v3870_v29 = vadd.f32 %v11778_v16, %v3839_v60  ;;  %v3798_v39 = vmul.f32 %v5493_v35, %v11691_v0  ;;  %v3840_v0 = vmul.f32 %v11772_v14, %v3809_v15 }
 0x420   : > { %v3799_v54 = vmul.f32 %v5495_v6, %v11660_v45 }
 0x421   : > { %5506 = vrsqrt.f32 %v3754_v4  ;;  %v3886_v58 = vpack.c.bf16 %v3870_v29, %v3869_v1  ;;  %v3829_v27 = vmul.f32 %v11772_v14, %v3798_v39  ;;  %v3871_v45 = vadd.f32 %v11778_v16, %v3840_v0 }
 0x422   : > { %v5497_v52 = vpop.eup %5496  ;;  %v3830_v8 = vmul.f32 %v11772_v14, %v3799_v54  ;;  %5508 = vrsqrt.f32 %v3765_v44 }
 0x423   : > { %v5499_v3 = vpop.eup %5498  ;;  %5335 = vmatmul.mubr.msk.bf16.vlgmr.msra.gmra.mxu1 %vm3503_vm6, %v3886_v58  ;;  %v3860_v9 = vadd.f32 %v11778_v16, %v3829_v27  ;;  %v3810_v57 = vmul.f32 %v5497_v52, %v11700_v40 }
 0x424   : > { %v3811_v21 = vmul.f32 %v5499_v3, %v11674_v32  ;;  %v3861_v51 = vadd.f32 %v11778_v16, %v3830_v8 }
 0x425   : > { %v3881_v23 = vpack.c.bf16 %v3860_v9, %v3859_v30  ;;  %v3841_v53 = vmul.f32 %v11772_v14, %v3810_v57 }
 0x426   : > { %v5501_v48 = vpop.eup %5500  ;;  %v3842_v11 = vmul.f32 %v11772_v14, %v3811_v21 }
 0x427   : > { %5326 = vmatprep.mubr.msk.bf16.mxu0 %vm3503_vm6, %v3881_v23  ;;  %v3872_v24 = vadd.f32 %v11778_v16, %v3841_v53  ;;  %v3800_v12 = vmul.f32 %v5501_v48, %v11707_v50  ;;  %v5503_v40 = vpop.eup %5502 }
 0x428   : > { %v3801_v50 = vmul.f32 %v5503_v40, %v11686_v31  ;;  %v3873_v55 = vadd.f32 %v11778_v16, %v3842_v11  ;;  %v4284_v11 = vadd.s32 8, %v15730_v17 }
 0x429   : > { %v3887_v34 = vpack.c.bf16 %v3872_v24, %v3871_v45  ;;  %v3831_v5 = vmul.f32 %v11772_v14, %v3800_v12  ;;  %v3714_v38 = vpop.xlane.xlu1 %3713 }
 0x42a   : > { %v5505_v49 = vpop.eup %5504  ;;  %v3742_v32 = vmul.f32 0.25, %v3714_v38 }
 0x42b   : > { %5338 = vmatprep.mubr.msk.bf16.mxu1 %vm3503_vm6, %v3887_v34  ;;  %v3862_v41 = vadd.f32 %v11778_v16, %v3831_v5  ;;  %v3812_v46 = vmul.f32 %v5505_v49, %v11718_v25  ;;  %v3832_v25 = vmul.f32 %v11772_v14, %v3801_v50 }
 0x42c   : > { %v3766_v59 = vadd.f32 1e-06, %v3742_v32 }
 0x42d   : > { %v3882_v2 = vpack.c.bf16 %v3862_v41, %v3861_v51  ;;  %v3843_v20 = vmul.f32 %v11772_v14, %v3812_v46  ;;  %v3863_v33 = vadd.f32 %v11778_v16, %v3832_v25  ;;  %v4285_v51 = vadd.s32 16, %v15730_v17 }
 0x42e   : > { %v5507_v7 = vpop.eup %5506  ;;  %5510 = vrsqrt.f32 %v3766_v59 }
 0x42f   : > { %5327 = vmatmul.mubr.msk.bf16.gmra.mxu0 %vm3503_vm6, %v3882_v2  ;;  %v3874_v63 = vadd.f32 %v11778_v16, %v3843_v20  ;;  %v3802_v43 = vmul.f32 %v5507_v7, %v11725_v19  ;;  %v5509_v28 = vpop.eup %5508  ;;  %v11863_v38 = vmul.u32.u64.low 2863311531, %v4285_v51  ;;  %v11864_v41 = vmul.u32.u64.high 2863311531, %v4285_v51, %v11863_v38 }
 0x430   : > { %v3813_v60 = vmul.f32 %v5509_v28, %v11713_v10  ;;  %v4295_v2 = vadd.s32 96, %v15730_v17  ;;  %v4298_v7 = vadd.s32 120, %v15730_v17 }
 0x431   : > { %v3888_v22 = vpack.c.bf16 %v3874_v63, %v3873_v55  ;;  %v3833_v31 = vmul.f32 %v11772_v14, %v3802_v43  ;;  %v11884_v63 = vadd.s32 104, %v15730_v17 }
 0x432   : > { %v3844_v1 = vmul.f32 %v11772_v14, %v3813_v60  ;;  %v11886_v43 = vmul.u32.u64.low 2863311531, %v4284_v11  ;;  %v11887_v25 = vmul.u32.u64.high 2863311531, %v4284_v11, %v11886_v43 }
 0x433   : > { %5339 = vmatmul.mubr.msk.bf16.gmra.mxu1 %vm3503_vm6, %v3888_v22  ;;  %v3864_v26 = vadd.f32 %v11778_v16, %v3833_v31  ;;  %v11890_v22 = vadd.s32 48, %v15730_v17 }
 0x434   : > { %v3875_v6 = vadd.f32 %v11778_v16, %v3844_v1 }
 0x435   : > { %v3883_v13 = vpack.c.bf16 %v3864_v26, %v3863_v33  ;;  %v11892_v33 = vmul.u32.u64.low 2863311531, %v4295_v2  ;;  %v11893_v26 = vmul.u32.u64.high 2863311531, %v4295_v2, %v11892_v33 }
 0x437   : > { %5330 = vmatprep.mubr.msk.bf16.mxu0 %vm3503_vm6, %v3883_v13  ;;  %v11896_v13 = vadd.s32 32, %v15730_v17 }
 0x43b   : > { %v5511_v35 = vpop.eup %5510 }
 0x43c   : > { %v3814_v19 = vmul.f32 %v5511_v35, %v11735_v61  ;;  %v11898_v60 = vmul.u32.u64.low 2863311531, %v4298_v7  ;;  %v11899_v35 = vmul.u32.u64.high 2863311531, %v4298_v7, %v11898_v60 }
 0x43e   : > { %v3845_v47 = vmul.f32 %v11772_v14, %v3814_v19  ;;  %v11902_v19 = vadd.s32 56, %v15730_v17 }
 0x440   : > { %v3876_v4 = vadd.f32 %v11778_v16, %v3845_v47  ;;  %v11905_v1 = vmul.u32.u64.low 2863311531, %v11884_v63  ;;  %v11906_v47 = vmul.u32.u64.high 2863311531, %v11884_v63, %v11905_v1 }
 0x442   : > { %v3889_v18 = vpack.c.bf16 %v3876_v4, %v3875_v6  ;;  %v11909_v6 = vmul.u32.u64.low 2863311531, %v11890_v22  ;;  %v11910_v4 = vmul.u32.u64.high 2863311531, %v11890_v22, %v11909_v6 }
 0x444   : > { %5342 = vmatprep.mubr.msk.bf16.mxu1 %vm3503_vm6, %v3889_v18 }
 0x45a   : > { %v3681_v29 = vpop.xlane.xlu0 %3680 }
 0x45b   : > { %v3731_v39 = vmul.f32 0.25, %v3681_v29 }
 0x45d   : > { %v3755_v15 = vadd.f32 1e-06, %v3731_v39 }
 0x45f   : > { %5512 = vrsqrt.f32 %v3755_v15  ;;  %v11916_v39 = vmul.u32.u64.low 2863311531, %v11896_v13  ;;  %v11917_v15 = vmul.u32.u64.high 2863311531, %v11896_v13, %v11916_v39 }
 0x46c   : > { %v5513_v52 = vpop.eup %5512 }
 0x46d   : > { %v3803_v54 = vmul.f32 %v5513_v52, %v11745_v62  ;;  %v4324_v52 = vshrl.u32 %v11887_v25, 4 }
 0x46f   : > { %v3834_v57 = vmul.f32 %v11772_v14, %v3803_v54  ;;  %v4445_v54 = vshrl.u32 %v11893_v26, 4 }
 0x471   : > { %v3684_v58 = vpop.xlane.xlu1 %3683  ;;  %v3865_v53 = vadd.f32 %v11778_v16, %v3834_v57  ;;  %v11936_v57 = vadd.s32 144, %v15730_v17 }
 0x472   : > { %v3732_v10 = vmul.f32 0.25, %v3684_v58 }
 0x474   : > { %v3756_v27 = vadd.f32 1e-06, %v3732_v10 }
 0x476   : > { %5514 = vrsqrt.f32 %v3756_v27  ;;  %v3717_v61 = vpop.xlane.xlu0 %3716  ;;  %v11923_v10 = vmul.u32.u64.low 2863311531, %v11902_v19  ;;  %v11924_v27 = vmul.u32.u64.high 2863311531, %v11902_v19, %v11923_v10 }
 0x477   : > { %v3743_v42 = vmul.f32 0.25, %v3717_v61 }
 0x479   : > { %v3767_v30 = vadd.f32 1e-06, %v3743_v42 }
 0x47b   : > { %5516 = vrsqrt.f32 %v3767_v30 }
 0x483   : > { %v5515_v3 = vpop.eup %5514 }
 0x484   : > { %v3804_v9 = vmul.f32 %v5515_v3, %v11751_v36  ;;  %v4478_v3 = vshrl.u32 %v11899_v35, 4  ;;  %v12057_v35 = vld [vmem:[%s13004_s6] ss:$0 sm:$0xff] }
 0x486   : > { %v3835_v0 = vmul.f32 %v11772_v14, %v3804_v9  ;;  %v4456_v9 = vshrl.u32 %v11906_v47, 4 }
 0x488   : > { %v3866_v48 = vadd.f32 %v11778_v16, %v3835_v0  ;;  %v5517_v62 = vpop.eup %5516 }
 0x489   : > { %v3720_v23 = vpop.xlane.xlu1 %3719  ;;  %v3815_v24 = vmul.f32 %v5517_v62, %v11756_v56  ;;  %v11867_v56 = vmul.u32.u64.low 2863311531, %v15730_v17  ;;  %v11868_v46 = vmul.u32.u64.high 2863311531, %v15730_v17, %v11867_v56  ;;  %v4446_v62 = vmul.u32 24, %v4445_v54 }
 0x48a   : > { %v3744_v44 = vmul.f32 0.25, %v3720_v23  ;;  %v3884_v8 = vpack.c.bf16 %v3866_v48, %v3865_v53  ;;  %v4325_v48 = vmul.u32 24, %v4324_v52  ;;  %v12093_v52 = vadd.s32 152, %v15730_v17 }
 0x48b   : > { %v3846_v21 = vmul.f32 %v11772_v14, %v3815_v24  ;;  %v4313_v20 = vshrl.u32 %v11868_v46, 4  ;;  %v4357_v24 = vshrl.u32 %v11917_v15, 4  ;;  %v11978_v46 = vsub.s32 %v4295_v2, %v4446_v62 }
 0x48c   : > { %v3768_v45 = vadd.f32 1e-06, %v3744_v44  ;;  %5331 = vmatmul.mubr.msk.bf16.gmra.mxu0 %vm3503_vm6, %v3884_v8  ;;  %v4379_v44 = vshrl.u32 %v11910_v4, 4  ;;  %16201 = vst [vmem:[#allocation59_spill] sm:$0xff] %v12093_v52 }
 0x48d   : > { %v3877_v34 = vadd.f32 %v11778_v16, %v3846_v21  ;;  %v4314_v28 = vmul.u32 24, %v4313_v20  ;;  %v11958_v21 = vadd.s32 40, %v15730_v17  ;;  %vm4583_vm5 = vcmp.ne.s32.totalorder %v11978_v46, 0 }
 0x48e   : > { %5518 = vrsqrt.f32 %v3768_v45  ;;  %v4380_v56 = vmul.u32 24, %v4379_v44  ;;  %v12035_v33 = vadd.s32 24, %v11978_v46 }
 0x48f   : > { %v11920_v58 = vsub.s32 %v15730_v17, %v4314_v28 }
 0x491   : > { %vm4571_vm10 = vcmp.ne.s32.totalorder %v11920_v58, 0  ;;  %vm4595_vm11 = vcmp.lt.s32.totalorder %v11920_v58, 0  ;;  %v11946_v53 = vadd.s32 24, %v11920_v58 }
 0x492   : > { %vm11949_vm13 = vmand %vm4595_vm11, %vm4571_vm10 }
 0x49b   : > { %v5519_v36 = vpop.eup %5518 }
 0x49c   : > { %v3816_v12 = vmul.f32 %v5519_v36, %v11763_v37  ;;  %v4286_v37 = vadd.s32 24, %v15730_v17  ;;  %v4479_v36 = vmul.u32 24, %v4478_v3 }
 0x49e   : > { %v3847_v40 = vmul.f32 %v11772_v14, %v3816_v12  ;;  %v4297_v14 = vadd.s32 112, %v15730_v17  ;;  %v11874_v50 = vmul.u32.u64.low 2863311531, %v4286_v37  ;;  %v11875_v32 = vmul.u32.u64.high 2863311531, %v4286_v37, %v11874_v50 }
 0x49f   : > { %v4390_v12 = vshrl.u32 %v11924_v27, 4 }
 0x4a0   : > { %v3878_v5 = vadd.f32 %v11778_v16, %v3847_v40  ;;  %v4335_v16 = vshrl.u32 %v11864_v41, 4  ;;  %v11880_v59 = vmul.u32.u64.low 2863311531, %v4297_v14  ;;  %v11881_v55 = vmul.u32.u64.high 2863311531, %v4297_v14, %v11880_v59 }
 0x4a1   : > { %v4346_v29 = vshrl.u32 %v11875_v32, 4  ;;  %v11974_v41 = vsub.s32 %v4284_v11, %v4325_v48  ;;  %v11983_v50 = vmul.u32.u64.low 2863311531, %v11958_v21  ;;  %v11984_v32 = vmul.u32.u64.high 2863311531, %v11958_v21, %v11983_v50 }
 0x4a2   : > { %v3890_v49 = vpack.c.bf16 %v3878_v5, %v3877_v34  ;;  %v4336_v31 = vmul.u32 24, %v4335_v16  ;;  %v4467_v61 = vshrl.u32 %v11881_v55, 4  ;;  %v4457_v34 = vmul.u32 24, %v4456_v9 }
 0x4a3   : > { %v4347_v42 = vmul.u32 24, %v4346_v29  ;;  %v4391_v16 = vmul.u32 24, %v4390_v12  ;;  %vm4572_vm2 = vcmp.ne.s32.totalorder %v11974_v41, 0  ;;  %vm4596_vm3 = vcmp.lt.s32.totalorder %v11974_v41, 0 }
 0x4a4   : > { %5343 = vmatmul.mubr.msk.bf16.gmra.mxu1 %vm3503_vm6, %v3890_v49  ;;  %v11912_v18 = vsub.s32 %v4285_v51, %v4336_v31  ;;  %v4468_v30 = vmul.u32 24, %v4467_v61  ;;  %v11963_v5 = vmul.u32.u64.low 2863311531, %v11936_v57  ;;  %v11964_v49 = vmul.u32.u64.high 2863311531, %v11936_v57, %v11963_v5  ;;  %vm12030_vm10 = vmand %vm4596_vm3, %vm4572_vm2 }
 0x4a5   : > { %v11953_v45 = vsub.s32 %v4286_v37, %v4347_v42  ;;  %v4358_v37 = vmul.u32 24, %v4357_v24  ;;  %v11992_v11 = vsub.s32 %v11884_v63, %v4457_v34  ;;  %vm4607_vm6 = vcmp.lt.s32.totalorder %v11978_v46, 0 }
 0x4a6   : > { %vm4573_vm8 = vcmp.ne.s32.totalorder %v11912_v18, 0  ;;  %vm4597_vm9 = vcmp.lt.s32.totalorder %v11912_v18, 0  ;;  %v11943_v23 = vadd.s32 24, %v11912_v18  ;;  %v11960_v40 = vsub.s32 %v4297_v14, %v4468_v30 }
 0x4a7   : > { %vm11938_vm12 = vmand %vm4597_vm9, %vm4573_vm8  ;;  %vm4574_vm14 = vcmp.ne.s32.totalorder %v11953_v45, 0  ;;  %vm4598_vm15 = vcmp.lt.s32.totalorder %v11953_v45, 0  ;;  %v11980_v14 = vsub.s32 %v4298_v7, %v4479_v36  ;;  %v11987_v20 = vadd.s32 24, %v11953_v45 }
 0x4a8   : > { %vm4585_vm0 = vcmp.ne.s32.totalorder %v11960_v40, 0  ;;  %vm4609_vm1 = vcmp.lt.s32.totalorder %v11960_v40, 0  ;;  %v11995_v2 = vadd.s32 24, %v11960_v40  ;;  %v12000_v7 = vsub.s32 %v11890_v22, %v4380_v56  ;;  %vm12006_vm4 = vmand %vm4598_vm15, %vm4574_vm14 }
 0x4a9   : > { %v12013_v55 = vsub.s32 %v11896_v13, %v4358_v37  ;;  %v12016_v63 = vadd.s32 128, %v15730_v17  ;;  %vm12018_vm7 = vmand %vm4609_vm1, %vm4585_vm0  ;;  %v12023_v25 = vadd.s32 24, %v11974_v41  ;;  %vm4586_vm8 = vcmp.ne.s32.totalorder %v11980_v14, 0 }
 0x4aa   : > { %vm4610_vm9 = vcmp.lt.s32.totalorder %v11980_v14, 0  ;;  %v12028_v22 = vsub.s32 %v11902_v19, %v4391_v16  ;;  %vm4584_vm11 = vcmp.ne.s32.totalorder %v11992_v11, 0  ;;  %vm4608_vm14 = vcmp.lt.s32.totalorder %v11992_v11, 0  ;;  %vm12042_vm15 = vmand %vm4607_vm6, %vm4583_vm5 }
 0x4ab   : > { %v4511_v26 = vshrl.u32 %v11964_v49, 4  ;;  %v12047_v28 = vadd.s32 24, %v11980_v14  ;;  %v12050_v60 = vadd.s32 24, %v11992_v11  ;;  %vm4577_vm0 = vcmp.ne.s32.totalorder %v12000_v7, 0  ;;  %vm12061_vm2 = vmand %vm4610_vm9, %vm4586_vm8 }
 0x4ac   : > { %vm4601_vm1 = vcmp.lt.s32.totalorder %v12000_v7, 0  ;;  %vm4575_vm3 = vcmp.ne.s32.totalorder %v12013_v55, 0  ;;  %v12068_v1 = vmul.u32.u64.low 2863311531, %v12016_v63  ;;  %v12069_v47 = vmul.u32.u64.high 2863311531, %v12016_v63, %v12068_v1  ;;  %vm12071_vm6 = vmand %vm4608_vm14, %vm4584_vm11 }
 0x4ad   : > { %v12076_v4 = vadd.s32 24, %v12000_v7  ;;  %vm4578_vm8 = vcmp.ne.s32.totalorder %v12028_v22, 0  ;;  %vm4602_vm9 = vcmp.lt.s32.totalorder %v12028_v22, 0  ;;  %v4368_v29 = vshrl.u32 %v11984_v32, 4  ;;  %vm12085_vm5 = vmand %vm4601_vm1, %vm4577_vm0 }
 0x4ae   : > { %v12090_v27 = vadd.s32 24, %v12013_v55  ;;  %v4512_v61 = vmul.u32 24, %v4511_v26  ;;  %vm16202_vm11 = vcmp.lt.s32.totalorder %v12013_v55, 0  ;;  %v12115_v9 = vadd.s32 24, %v12028_v22  ;;  %vm12133_vm0 = vmand %vm4602_vm9, %vm4578_vm8 }
 0x4af   : > { %vm12110_vm14 = vmand %vm16202_vm11, %vm4575_vm3  ;;  %v12138_v12 = vadd.s32 136, %v15730_v17  ;;  %v4369_v56 = vmul.u32 24, %v4368_v29  ;;  %v12156_v26 = vmul.u32.u64.low 2863311531, %v12093_v52  ;;  %v12157_v1 = vmul.u32.u64.high 2863311531, %v12093_v52, %v12156_v26 }
 0x4b0   : > { %v12153_v32 = vsub.s32 %v11936_v57, %v4512_v61  ;;  %v4489_v24 = vshrl.u32 %v12069_v47, 4  ;;  %vm4883_vm11 = vcmask 125952  }
 0x4b1   : > { %16207 = vst [vmem:[#allocation281_spill] sm:$0xff] %v12138_v12  ;;  %16208 = vst [vmem:[#allocation233_spill] sm:$0xff] %v12157_v1  ;;  %v12181_v49 = vsub.s32 %v11958_v21, %v4369_v56 }
 0x4b2   : > { %vm4589_vm1 = vcmp.ne.s32.totalorder %v12153_v32, 0  ;;  %vm4613_vm3 = vcmp.lt.s32.totalorder %v12153_v32, 0  ;;  %v12210_v17 = vmul.u32 24, %v4489_v24 }
 0x4b3   : > { %vm12225_vm8 = vmand %vm4613_vm3, %vm4589_vm1  ;;  %vm4600_vm3 = vcmp.lt.s32.totalorder %v12181_v49, 0 }
 0x4b4   : > { %v12481_v30 = vsub.s32 %v12016_v63, %v12210_v17 }
 0x4df   : > { %v5324_v39 = vpop.f32.mrf.mxu0 }
 0x4e0   : > { %v12096_v42 = vadd.f32 %v5324_v39, %v12057_v35 }
 0x4e1   : > { %v3973_v48 = vpop.f32.mrf.mxu0 }
 0x4e2   : > { %v4094_v34 = vmul.f32 0.044715, %v12096_v42  ;;  %v12142_v5 = vadd.f32 %v12057_v35, %v3973_v48 }
 0x4e3   : > { %v5325_v37 = vpop.f32.mrf.mxu0  ;;  %v5336_v16 = vpop.f32.mrf.mxu1 }
 0x4e4   : > { %v4118_v39 = vmul.f32 %v4094_v34, %v12096_v42  ;;  %v4092_v48 = vmul.f32 0.044715, %v12142_v5  ;;  %v12162_v29 = vadd.f32 %v5325_v37, %v12057_v35  ;;  %v12169_v50 = vadd.f32 %v5336_v16, %v12057_v35 }
 0x4e5   : > { %v3976_v57 = vpop.f32.mrf.mxu0  ;;  %v4021_v61 = vpop.f32.mrf.mxu1  ;;  %v12173_v26 = vmul.u32.u64.low 2863311531, %v12138_v12  ;;  %v12174_v34 = vmul.u32.u64.high 2863311531, %v12138_v12, %v12173_v26 }
 0x4e6   : > { %v4142_v37 = vmul.f32 %v4118_v39, %v12096_v42  ;;  %v4116_v62 = vmul.f32 %v4092_v48, %v12142_v5  ;;  %v4095_v44 = vmul.f32 0.044715, %v12162_v29  ;;  %v4106_v16 = vmul.f32 0.044715, %v12169_v50 }
 0x4e7   : > { %16209 = vst [vmem:[#allocation67_spill] sm:$0xff] %v12174_v34  ;;  %v12185_v3 = vadd.f32 %v12057_v35, %v3976_v57  ;;  %v12188_v47 = vadd.f32 %v12057_v35, %v4021_v61  ;;  %v5337_v54 = vpop.f32.mrf.mxu1  ;;  %v12201_v61 = vadd.s32 24, %v12153_v32  ;;  %v12298_v8 = vmul.f32 0.5, %v12169_v50 }
 0x4e8   : > { %v4166_v39 = vadd.f32 %v4142_v37, %v12096_v42  ;;  %v4140_v48 = vmul.f32 %v4116_v62, %v12142_v5  ;;  %v4119_v26 = vmul.f32 %v4095_v44, %v12162_v29  ;;  %v12195_v21 = vadd.f32 %v5337_v54, %v12057_v35 }
 0x4e9   : > { %v4130_v56 = vmul.f32 %v4106_v16, %v12169_v50  ;;  %v4093_v57 = vmul.f32 0.044715, %v12185_v3  ;;  %v4104_v62 = vmul.f32 0.044715, %v12188_v47  ;;  %v4024_v44 = vpop.f32.mrf.mxu1  ;;  %v12333_v59 = vmul.f32 0.5, %v12188_v47 }
 0x4ea   : > { %v4190_v15 = vmul.f32 0.7978846, %v4166_v39  ;;  %v4164_v38 = vadd.f32 %v4140_v48, %v12142_v5  ;;  %v4143_v37 = vmul.f32 %v4119_v26, %v12162_v29  ;;  %v4107_v51 = vmul.f32 0.044715, %v12195_v21 }
 0x4eb   : > { %v4154_v54 = vmul.f32 %v4130_v56, %v12169_v50  ;;  %v4117_v16 = vmul.f32 %v4093_v57, %v12185_v3  ;;  %v4128_v48 = vmul.f32 %v4104_v62, %v12188_v47  ;;  %v12218_v56 = vadd.f32 %v12057_v35, %v4024_v44 }
 0x4ec   : > { %5520 = vtanh.f32 %v4190_v15  ;;  %v4188_v12 = vmul.f32 0.7978846, %v4164_v38  ;;  %v4167_v39 = vadd.f32 %v4143_v37, %v12162_v29  ;;  %v4131_v34 = vmul.f32 %v4107_v51, %v12195_v21 }
 0x4ed   : > { %v4178_v26 = vadd.f32 %v4154_v54, %v12169_v50  ;;  %v4141_v52 = vmul.f32 %v4117_v16, %v12185_v3  ;;  %v4152_v24 = vmul.f32 %v4128_v48, %v12188_v47  ;;  %v12230_v15 = vadd.s32 24, %v12181_v49 }
 0x4ee   : > { %5522 = vtanh.f32 %v4188_v12  ;;  %v4191_v57 = vmul.f32 0.7978846, %v4167_v39  ;;  %v4155_v37 = vmul.f32 %v4131_v34, %v12195_v21  ;;  %v4105_v16 = vmul.f32 0.044715, %v12218_v56  ;;  %v16248_v63 = vld [vmem:[#allocation67_spill] sm:$0xff] }
 0x4ef   : > { %v4202_v51 = vmul.f32 0.7978846, %v4178_v26  ;;  %v4165_v12 = vadd.f32 %v4141_v52, %v12185_v3  ;;  %v5328_v62 = vpop.f32.mrf.mxu0  ;;  %v4176_v54 = vadd.f32 %v4152_v24, %v12188_v47  ;;  %v4685_v34 = vsel %vm12225_vm8, %v12201_v61, %v12153_v32  ;;  %v16251_v61 = vld [vmem:[#allocation233_spill] sm:$0xff] }
 0x4f0   : > { %5524 = vtanh.f32 %v4191_v57  ;;  %v12244_v39 = vadd.f32 %v5328_v62, %v12057_v35  ;;  %v4179_v52 = vadd.f32 %v4155_v37, %v12195_v21  ;;  %v4070_v57 = vmul.f32 0.5, %v12096_v42 }
 0x4f1   : > { %5526 = vtanh.f32 %v4202_v51  ;;  %v4189_v48 = vmul.f32 0.7978846, %v4165_v12  ;;  %v3989_v26 = vpop.f32.mrf.mxu0  ;;  %v4200_v44 = vmul.f32 0.7978846, %v4176_v54  ;;  %v4129_v24 = vmul.f32 %v4105_v16, %v12218_v56 }
 0x4f2   : > { %v4098_v1 = vmul.f32 0.044715, %v12244_v39  ;;  %v16213_v51 = vsel %vm11938_vm12, %v11943_v23, %v11912_v18  ;;  %v12270_v42 = vmul.f32 0.5, %v12142_v5  ;;  %v4203_v37 = vmul.f32 0.7978846, %v4179_v52 }
 0x4f3   : > { %vm12265_vm9 = vcmp.lt.s32.totalorder %v16213_v51, 16  ;;  %5528 = vtanh.f32 %v4189_v48  ;;  %v12273_v62 = vadd.f32 %v12057_v35, %v3989_v26  ;;  %v5329_v54 = vpop.f32.mrf.mxu0  ;;  %v5340_v16 = vpop.f32.mrf.mxu1  ;;  %v4153_v0 = vmul.f32 %v4129_v24, %v12218_v56 }
 0x4f4   : > { %5530 = vtanh.f32 %v4200_v44  ;;  %v4122_v18 = vmul.f32 %v4098_v1, %v12244_v39  ;;  %v12279_v23 = vadd.f32 %v5329_v54, %v12057_v35  ;;  %v16216_v5 = vsel %vm11949_vm13, %v11946_v53, %v11920_v58 }
 0x4f5   : > { %vm12286_vm12 = vcmp.lt.s32.totalorder %v16216_v5, 16  ;;  %v12291_v52 = vmul.f32 0.5, %v12162_v29  ;;  %5532 = vtanh.f32 %v4203_v37  ;;  %v4096_v44 = vmul.f32 0.044715, %v12273_v62  ;;  %v3992_v26 = vpop.f32.mrf.mxu0  ;;  %v4037_v29 = vpop.f32.mrf.mxu1 }
 0x4f6   : > { %v12295_v1 = vadd.f32 %v5340_v16, %v12057_v35  ;;  %v4177_v58 = vadd.f32 %v4153_v0, %v12218_v56  ;;  %v4146_v53 = vmul.f32 %v4122_v18, %v12244_v39  ;;  %v4099_v24 = vmul.f32 0.044715, %v12279_v23 }
 0x4f7   : > { %v16219_v51 = vsel %vm12006_vm4, %v11987_v20, %v11953_v45  ;;  %v12313_v54 = vmul.f32 0.5, %v12185_v3  ;;  %v4120_v50 = vmul.f32 %v4096_v44, %v12273_v62  ;;  %v12318_v0 = vadd.f32 %v12057_v35, %v3992_v26 }
 0x4f8   : > { %vm12308_vm13 = vcmp.lt.s32.totalorder %v16219_v51, 16  ;;  %v4110_v16 = vmul.f32 0.044715, %v12295_v1  ;;  %v16222_v45 = vsel %vm12018_vm7, %v11995_v2, %v11960_v40  ;;  %v4201_v3 = vmul.f32 0.7978846, %v4177_v58 }
 0x4f9   : > { %vm12328_vm4 = vcmp.lt.s32.totalorder %v16222_v45, 16  ;;  %v4170_v18 = vadd.f32 %v4146_v53, %v12244_v39  ;;  %v4123_v5 = vmul.f32 %v4099_v24, %v12279_v23  ;;  %v5521_v44 = vpop.eup %5520  ;;  %v4144_v26 = vmul.f32 %v4120_v50, %v12273_v62 }
 0x4fa   : > { %v4134_v43 = vmul.f32 %v4110_v16, %v12295_v1  ;;  %v4097_v40 = vmul.f32 0.044715, %v12318_v0  ;;  %v12341_v2 = vadd.f32 %v12057_v35, %v4037_v29  ;;  %v4238_v51 = vadd.f32 1.0, %v5521_v44 }
 0x4fb   : > { %v16225_v47 = vsel %vm12030_vm10, %v12023_v25, %v11974_v41  ;;  %5534 = vtanh.f32 %v4201_v3  ;;  %v4194_v53 = vmul.f32 0.7978846, %v4170_v18  ;;  %v4147_v24 = vmul.f32 %v4123_v5, %v12279_v23  ;;  %v5523_v50 = vpop.eup %5522 }
 0x4fc   : > { %vm12348_vm7 = vcmp.lt.s32.totalorder %v16225_v47, 16  ;;  %v16228_v29 = vsel %vm12042_vm15, %v12035_v33, %v11978_v46  ;;  %v4083_v41 = vmul.f32 0.5, %v12195_v21  ;;  %v4168_v25 = vadd.f32 %v4144_v26, %v12273_v62 }
 0x4fd   : > { %vm12359_vm1 = vcmp.lt.s32.totalorder %v16228_v29, 16  ;;  %v4158_v16 = vmul.f32 %v4134_v43, %v12295_v1  ;;  %v4121_v45 = vmul.f32 %v4097_v40, %v12318_v0  ;;  %vm4576_vm10 = vcmp.ne.s32.totalorder %v12181_v49, 0  ;;  %v5525_v18 = vpop.eup %5524 }
 0x4fe   : > { %v4262_v13 = vmul.f32 %v4238_v51, %v4070_v57  ;;  %v4236_v3 = vadd.f32 1.0, %v5523_v50  ;;  %v16231_v46 = vsel %vm12061_vm2, %v12047_v28, %v11980_v14  ;;  %5536 = vtanh.f32 %v4194_v53  ;;  %v5527_v43 = vpop.eup %5526  ;;  %v5341_v51 = vpop.f32.mrf.mxu1 }
 0x4ff   : > { %vm12374_vm15 = vcmp.lt.s32.totalorder %v16231_v46, 16  ;;  %v4171_v21 = vadd.f32 %v4147_v24, %v12279_v23  ;;  %v4192_v5 = vmul.f32 0.7978846, %v4168_v25  ;;  %v4182_v44 = vadd.f32 %v4158_v16, %v12295_v1 }
 0x500   : > { %v4145_v26 = vmul.f32 %v4121_v45, %v12318_v0  ;;  %v4108_v57 = vmul.f32 0.044715, %v12341_v2  ;;  %v12389_v14 = vsel %vm12265_vm9, %v4262_v13, 0.0  ;;  %v4260_v28 = vmul.f32 %v4236_v3, %v12270_v42  ;;  %v5529_v50 = vpop.eup %5528  ;;  %vm12474_vm9 = vmand %vm4600_vm3, %vm4576_vm10 }
 0x501   : > { %v4239_v19 = vadd.f32 1.0, %v5525_v18  ;;  %v4195_v40 = vmul.f32 0.7978846, %v4171_v21  ;;  %v5181_v47 = vpack.c.bf16 %v12389_v14, %v12389_v14  ;;  %v4250_v53 = vadd.f32 1.0, %v5527_v43  ;;  %v5531_v25 = vpop.eup %5530 }
 0x502   : > { %5538 = vtanh.f32 %v4192_v5  ;;  %v4206_v24 = vmul.f32 0.7978846, %v4182_v44  ;;  %v12396_v29 = vsel %vm12286_vm12, %v4260_v28, 0.0  ;;  %v4169_v42 = vadd.f32 %v4145_v26, %v12318_v0  ;;  %v5533_v3 = vpop.eup %5532  ;;  %v4040_v5 = vpop.f32.mrf.mxu1 }
 0x503   : > { %v4263_v12 = vmul.f32 %v4239_v19, %v12291_v52  ;;  %5540 = vtanh.f32 %v4195_v40  ;;  %4886 = vst.msk [vmem:[%s12385_s24 + $0x8] sm:$0xf] %vm4883_vm11, %v5181_v47  ;;  %v5179_v16 = vpack.c.bf16 %v12396_v29, %v12396_v29  ;;  %v4274_v45 = vmul.f32 %v4250_v53, %v12298_v8  ;;  %v16255_v47 = vld [vmem:[#allocation59_spill] sm:$0xff] }
 0x504   : > { %v4237_v13 = vadd.f32 1.0, %v5529_v50  ;;  %v16234_v48 = vsel %vm12071_vm6, %v12050_v60, %v11992_v11  ;;  %5542 = vtanh.f32 %v4206_v24  ;;  %v4248_v21 = vadd.f32 1.0, %v5531_v25 }
 0x505   : > { %vm12410_vm2 = vcmp.lt.s32.totalorder %v16234_v48, 16  ;;  %v12416_v46 = vsel %vm12308_vm13, %v4263_v12, 0.0  ;;  %v4193_v18 = vmul.f32 0.7978846, %v4169_v42  ;;  %v4132_v8 = vmul.f32 %v4108_v57, %v12341_v2  ;;  %4884 = vst.msk [vmem:[%s12385_s24] sm:$0xf] %vm4883_vm11, %v5179_v16 }
 0x506   : > { %v5182_v11 = vpack.c.bf16 %v12416_v46, %v12416_v46  ;;  %v12425_v60 = vsel %vm12328_vm4, %v4274_v45, 0.0  ;;  %v4261_v6 = vmul.f32 %v4237_v13, %v12313_v54  ;;  %v4251_v37 = vadd.f32 1.0, %v5533_v3 }
 0x507   : > { %v16237_v44 = vsel %vm12085_vm5, %v12076_v4, %v12000_v7  ;;  %v5193_v57 = vpack.c.bf16 %v12425_v60, %v12425_v60  ;;  %v4272_v43 = vmul.f32 %v4248_v21, %v12333_v59  ;;  %5544 = vtanh.f32 %v4193_v18 }
 0x508   : > { %vm12433_vm6 = vcmp.lt.s32.totalorder %v16237_v44, 16  ;;  %v4156_v20 = vmul.f32 %v4132_v8, %v12341_v2  ;;  %4887 = vst.msk [vmem:[%s12385_s24 + $0xc] sm:$0xf] %vm4883_vm11, %v5182_v11  ;;  %v12445_v10 = vsel %vm12348_vm7, %v4261_v6, 0.0  ;;  %v4275_v54 = vmul.f32 %v4251_v37, %v4083_v41 }
 0x509   : > { %v12448_v7 = vadd.f32 %v5341_v51, %v12057_v35  ;;  %v12451_v4 = vadd.f32 %v12057_v35, %v4040_v5  ;;  %4898 = vst.msk [vmem:[%s12385_s24 + $0x38] sm:$0xf] %vm4883_vm11, %v5193_v57  ;;  %v5180_v59 = vpack.c.bf16 %v12445_v10, %v12445_v10  ;;  %v12459_v28 = vsel %vm12359_vm1, %v4272_v43, 0.0 }
 0x50a   : > { %v16240_v58 = vsel %vm12110_vm14, %v12090_v27, %v12013_v55  ;;  %v4180_v31 = vadd.f32 %v4156_v20, %v12341_v2  ;;  %v5535_v55 = vpop.eup %5534  ;;  %v5191_v27 = vpack.c.bf16 %v12459_v28, %v12459_v28  ;;  %v12487_v40 = vsel %vm12374_vm15, %v4275_v54, 0.0 }
 0x50b   : > { %vm12466_vm5 = vcmp.lt.s32.totalorder %v16240_v58, 16  ;;  %v16245_v51 = vsel %vm12133_vm0, %v12115_v9, %v12028_v22  ;;  %v4111_v17 = vmul.f32 0.044715, %v12448_v7  ;;  %v4500_v53 = vshrl.u32 %v16248_v63, 4  ;;  %4885 = vst.msk [vmem:[%s12385_s24 + $0x4] sm:$0xf] %vm4883_vm11, %v5180_v59  ;;  %v5537_v12 = vpop.eup %5536 }
 0x50c   : > { %vm12494_vm14 = vcmp.lt.s32.totalorder %v16245_v51, 16  ;;  %v5194_v33 = vpack.c.bf16 %v12487_v40, %v12487_v40  ;;  %v4081_v24 = vmul.f32 0.5, %v12218_v56  ;;  %v4249_v50 = vadd.f32 1.0, %v5535_v55  ;;  %4896 = vst.msk [vmem:[%s12385_s24 + $0x30] sm:$0xf] %vm4883_vm11, %v5191_v27 }
 0x50d   : > { %v4204_v36 = vmul.f32 0.7978846, %v4180_v31  ;;  %vm12512_vm0 = vcmp.lt.s32.totalorder %v4685_v34, 16  ;;  %v4672_v9 = vsel %vm12474_vm9, %v12230_v15, %v12181_v49  ;;  %v4135_v56 = vmul.f32 %v4111_v17, %v12448_v7 }
 0x50e   : > { %v4109_v42 = vmul.f32 0.044715, %v12451_v4  ;;  %4899 = vst.msk [vmem:[%s12385_s24 + $0x3c] sm:$0xf] %vm4883_vm11, %v5194_v33  ;;  %v4273_v25 = vmul.f32 %v4249_v50, %v4081_v24  ;;  %v4074_v38 = vmul.f32 0.5, %v12244_v39  ;;  %v4242_v16 = vadd.f32 1.0, %v5537_v12 }
 0x50f   : > { %5546 = vtanh.f32 %v4204_v36  ;;  %vm4587_vm8 = vcmp.ne.s32.totalorder %v12481_v30, 0  ;;  %v4159_v32 = vmul.f32 %v4135_v56, %v12448_v7  ;;  %v16252_v34 = vshrl.u32 %v16251_v61, 4  ;;  %v5539_v15 = vpop.eup %5538  ;;  %v16256_v12 = vld [vmem:[#allocation281_spill] sm:$0xff] }
 0x510   : > { %v4133_v49 = vmul.f32 %v4109_v42, %v12451_v4  ;;  %v12532_v13 = vsel %vm12410_vm2, %v4273_v25, 0.0  ;;  %v4266_v48 = vmul.f32 %v4242_v16, %v4074_v38  ;;  %v4072_v39 = vmul.f32 0.5, %v12273_v62  ;;  %v5541_v3 = vpop.eup %5540 }
 0x511   : > { %v4523_v45 = vmul.u32 24, %v16252_v34  ;;  %vm4611_vm12 = vcmp.lt.s32.totalorder %v12481_v30, 0  ;;  %v5192_v21 = vpack.c.bf16 %v12532_v13, %v12532_v13  ;;  %v4240_v18 = vadd.f32 1.0, %v5539_v15  ;;  %v5543_v11 = vpop.eup %5542 }
 0x512   : > { %v4183_v8 = vadd.f32 %v4159_v32, %v12448_v7  ;;  %v4157_v5 = vmul.f32 %v4133_v49, %v12451_v4  ;;  %v12542_v52 = vsel %vm12433_vm6, %v4266_v48, 0.0  ;;  %v4075_v6 = vmul.f32 0.5, %v12279_v23  ;;  %vm12575_vm4 = vmand %vm4611_vm12, %vm4587_vm8 }
 0x513   : > { %v4243_v62 = vadd.f32 1.0, %v5541_v3  ;;  %v4086_v37 = vmul.f32 0.5, %v12295_v1  ;;  %4897 = vst.msk [vmem:[%s12385_s24 + $0x34] sm:$0xf] %vm4883_vm11, %v5192_v21  ;;  %v5185_v44 = vpack.c.bf16 %v12542_v52, %v12542_v52  ;;  %v4264_v57 = vmul.f32 %v4240_v18, %v4072_v39 }
 0x514   : > { %v4254_v43 = vadd.f32 1.0, %v5543_v11  ;;  %v4207_v20 = vmul.f32 0.7978846, %v4183_v8  ;;  %v4659_v59 = vadd.s32 24, %v12481_v30  ;;  %v4181_v26 = vadd.f32 %v4157_v5, %v12451_v4  ;;  %v5545_v19 = vpop.eup %5544 }
 0x515   : > { %v4267_v54 = vmul.f32 %v4243_v62, %v4075_v6  ;;  %v4501_v58 = vmul.u32 24, %v4500_v53  ;;  %4890 = vst.msk [vmem:[%s12385_s24 + $0x18] sm:$0xf] %vm4883_vm11, %v5185_v44  ;;  %v12556_v23 = vsel %vm12466_vm5, %v4264_v57, 0.0  ;;  %v4073_v31 = vmul.f32 0.5, %v12318_v0  ;;  %v16257_v6 = vld [vmem:[#allocation9_spill] sm:$0xff] }
 0x516   : > { %v4278_v1 = vmul.f32 %v4254_v43, %v4086_v37  ;;  %5548 = vtanh.f32 %v4207_v20  ;;  %v5183_v55 = vpack.c.bf16 %v12556_v23, %v12556_v23  ;;  %v4241_v51 = vadd.f32 1.0, %v5545_v19 }
 0x517   : > { %v12563_v27 = vsel %vm12494_vm14, %v4267_v54, 0.0  ;;  %v4205_v17 = vmul.f32 0.7978846, %v4181_v26  ;;  %vm4696_vm13 = vcmp.lt.s32.totalorder %v4672_v9, 16  ;;  %v4524_v53 = vsub.s32 %v16255_v47, %v4523_v45 }
 0x518   : > { %v5186_v41 = vpack.c.bf16 %v12563_v27, %v12563_v27  ;;  %v12569_v63 = vsel %vm12512_vm0, %v4278_v1, 0.0  ;;  %4888 = vst.msk [vmem:[%s12385_s24 + $0x10] sm:$0xf] %vm4883_vm11, %v5183_v55  ;;  %v4265_v24 = vmul.f32 %v4241_v51, %v4073_v31  ;;  %v4683_v36 = vsel %vm12575_vm4, %v4659_v59, %v12481_v30 }
 0x519   : > { %v5197_v33 = vpack.c.bf16 %v12569_v63, %v12569_v63  ;;  %5550 = vtanh.f32 %v4205_v17  ;;  %v4502_v22 = vsub.s32 %v16256_v12, %v4501_v58  ;;  %vm4590_vm7 = vcmp.ne.s32.totalorder %v4524_v53, 0 }
 0x51a   : > { %4891 = vst.msk [vmem:[%s12385_s24 + $0x1c] sm:$0xf] %vm4883_vm11, %v5186_v41  ;;  %v12588_v50 = vsel %vm4696_vm13, %v4265_v24, 0.0  ;;  %vm4614_vm1 = vcmp.lt.s32.totalorder %v4524_v53, 0  ;;  %v4084_v42 = vmul.f32 0.5, %v12341_v2  ;;  %vm4707_vm10 = vcmp.lt.s32.totalorder %v4683_v36, 16 }
 0x51b   : > { %4902 = vst.msk [vmem:[%s12385_s24 + $0x48] sm:$0xf] %vm4883_vm11, %v5197_v33  ;;  %v5184_v56 = vpack.c.bf16 %v12588_v50, %v12588_v50  ;;  %v4662_v38 = vadd.s32 24, %v4524_v53  ;;  %vm4638_vm3 = vmand %vm4614_vm1, %vm4590_vm7  ;;  %vm4588_vm15 = vcmp.ne.s32.totalorder %v4502_v22, 0  ;;  %vm4612_vm2 = vcmp.lt.s32.totalorder %v4502_v22, 0 }
 0x51c   : > { %v5547_v9 = vpop.eup %5546  ;;  %v4660_v32 = vadd.s32 24, %v4502_v22  ;;  %vm4636_vm6 = vmand %vm4612_vm2, %vm4588_vm15  ;;  %v4087_v2 = vmul.f32 0.5, %v12448_v7  ;;  %v4085_v3 = vmul.f32 0.5, %v12451_v4  ;;  %v4293_v62 = vadd.s32 80, %v16257_v6 }
 0x51d   : > { %v4252_v25 = vadd.f32 1.0, %v5547_v9  ;;  %4889 = vst.msk [vmem:[%s12385_s24 + $0x14] sm:$0xf] %vm4883_vm11, %v5184_v56  ;;  %v4686_v34 = vsel %vm4638_vm3, %v4662_v38, %v4524_v53  ;;  %v4291_v44 = vadd.s32 64, %v16257_v6  ;;  %v4294_v57 = vadd.s32 88, %v16257_v6 }
 0x51e   : > { %vm4710_vm5 = vcmp.lt.s32.totalorder %v4686_v34, 16  ;;  %v4684_v15 = vsel %vm4636_vm6, %v4660_v32, %v4502_v22  ;;  %v12620_v4 = vmul.u32.u64.low 2863311531, %v4293_v62  ;;  %v12621_v37 = vmul.u32.u64.high 2863311531, %v4293_v62, %v12620_v4 }
 0x51f   : > { %v4276_v16 = vmul.f32 %v4252_v25, %v4084_v42  ;;  %vm4708_vm9 = vcmp.lt.s32.totalorder %v4684_v15, 16  ;;  %v12625_v43 = vmul.u32.u64.low 2863311531, %v4291_v44  ;;  %v12626_v20 = vmul.u32.u64.high 2863311531, %v4291_v44, %v12625_v43 }
 0x520   : > { %v12628_v54 = vmul.u32.u64.low 2863311531, %v4294_v57  ;;  %v12629_v59 = vmul.u32.u64.high 2863311531, %v4294_v57, %v12628_v54  ;;  %v4423_v26 = vshrl.u32 %v12621_v37, 4  ;;  %v12633_v58 = vadd.s32 72, %v16257_v6 }
 0x521   : > { %v12599_v30 = vsel %vm4707_vm10, %v4276_v16, 0.0  ;;  %v4401_v51 = vshrl.u32 %v12626_v20, 4  ;;  %v12659_v32 = vadd.s32 176, %v16257_v6 }
 0x522   : > { %v5195_v61 = vpack.c.bf16 %v12599_v30, %v12599_v30  ;;  %v4424_v31 = vmul.u32 24, %v4423_v26  ;;  %v12644_v0 = vmul.u32.u64.low 2863311531, %v12633_v58  ;;  %v12645_v47 = vmul.u32.u64.high 2863311531, %v12633_v58, %v12644_v0 }
 0x523   : > { %v5549_v45 = vpop.eup %5548  ;;  %v4434_v33 = vshrl.u32 %v12629_v59, 4  ;;  %v4402_v9 = vmul.u32 24, %v4401_v51 }
 0x524   : > { %4900 = vst.msk [vmem:[%s12385_s24 + $0x40] sm:$0xf] %vm4883_vm11, %v5195_v61  ;;  %v4255_v49 = vadd.f32 1.0, %v5549_v45  ;;  %v12653_v22 = vsub.s32 %v4293_v62, %v4424_v31 }
 0x525   : > { %v4435_v16 = vmul.u32 24, %v4434_v33 }
 0x526   : > { %v5551_v48 = vpop.eup %5550  ;;  %v4279_v39 = vmul.f32 %v4255_v49, %v4087_v2  ;;  %vm4581_vm14 = vcmp.ne.s32.totalorder %v12653_v22, 0  ;;  %v4403_v49 = vsub.s32 %v4291_v44, %v4402_v9  ;;  %vm4605_vm0 = vcmp.lt.s32.totalorder %v12653_v22, 0 }
 0x527   : > { %v4253_v21 = vadd.f32 1.0, %v5551_v48  ;;  %v12670_v48 = vadd.s32 160, %v16257_v6  ;;  %vm12693_vm7 = vmand %vm4605_vm0, %vm4581_vm14 }
 0x528   : > { %v12607_v18 = vsel %vm4710_vm5, %v4279_v39, 0.0  ;;  %vm4579_vm8 = vcmp.ne.s32.totalorder %v4403_v49, 0  ;;  %vm4603_vm12 = vcmp.lt.s32.totalorder %v4403_v49, 0 }
 0x529   : > { %v5198_v8 = vpack.c.bf16 %v12607_v18, %v12607_v18  ;;  %v4277_v5 = vmul.f32 %v4253_v21, %v4085_v3  ;;  %v12684_v20 = vmul.u32.u64.low 2863311531, %v12670_v48  ;;  %v12685_v54 = vmul.u32.u64.high 2863311531, %v12670_v48, %v12684_v20  ;;  %vm12698_vm1 = vmand %vm4603_vm12, %vm4579_vm8 }
 0x52b   : > { %4903 = vst.msk [vmem:[%s12385_s24 + $0x4c] sm:$0xf] %vm4883_vm11, %v5198_v8  ;;  %v12613_v11 = vsel %vm4708_vm9, %v4277_v5, 0.0  ;;  %v4412_v8 = vshrl.u32 %v12645_v47, 4  ;;  %v4436_v5 = vsub.s32 %v4294_v57, %v4435_v16  ;;  %v4533_v16 = vshrl.u32 %v12685_v54, 4 }
 0x52c   : > { %v5196_v7 = vpack.c.bf16 %v12613_v11, %v12613_v11 }
 0x52d   : > { %v4413_v59 = vmul.u32 24, %v4412_v8  ;;  %vm4582_vm13 = vcmp.ne.s32.totalorder %v4436_v5, 0  ;;  %vm4606_vm4 = vcmp.lt.s32.totalorder %v4436_v5, 0  ;;  %v4654_v0 = vadd.s32 24, %v4436_v5 }
 0x52e   : > { %4901 = vst.msk [vmem:[%s12385_s24 + $0x44] sm:$0xf] %vm4883_vm11, %v5196_v7  ;;  %v12676_v7 = vmul.u32.u64.low 2863311531, %v12659_v32  ;;  %v12677_v62 = vmul.u32.u64.high 2863311531, %v12659_v32, %v12676_v7  ;;  %vm12702_vm10 = vmand %vm4606_vm4, %vm4582_vm13 }
 0x52f   : > { %v12707_v33 = vsub.s32 %v12633_v58, %v4413_v59 }
 0x531   : > { %vm4580_vm3 = vcmp.ne.s32.totalorder %v12707_v33, 0  ;;  %vm4604_vm15 = vcmp.lt.s32.totalorder %v12707_v33, 0 }
 0x532   : > { %vm12744_vm9 = vmand %vm4604_vm15, %vm4580_vm3 }
 0x54c   : > { %v5332_v19 = vpop.f32.mrf.mxu0 }
 0x54d   : > { %v12636_v1 = vadd.f32 %v5332_v19, %v12057_v35  ;;  %v12689_v19 = vadd.s32 184, %v16257_v6 }
 0x54e   : > { %v4005_v55 = vpop.f32.mrf.mxu0 }
 0x54f   : > { %v4102_v17 = vmul.f32 0.044715, %v12636_v1  ;;  %v12641_v41 = vadd.f32 %v12057_v35, %v4005_v55  ;;  %v4653_v55 = vadd.s32 24, %v12653_v22  ;;  %v4078_v7 = vmul.f32 0.5, %v12636_v1 }
 0x550   : > { %v5333_v53 = vpop.f32.mrf.mxu0 }
 0x551   : > { %v4126_v24 = vmul.f32 %v4102_v17, %v12636_v1  ;;  %v4100_v36 = vmul.f32 0.044715, %v12641_v41  ;;  %v12651_v12 = vadd.f32 %v5333_v53, %v12057_v35  ;;  %v4651_v17 = vadd.s32 24, %v4403_v49 }
 0x552   : > { %v4008_v56 = vpop.f32.mrf.mxu0  ;;  %v4677_v9 = vsel %vm12693_vm7, %v4653_v55, %v12653_v22  ;;  %v4076_v31 = vmul.f32 0.5, %v12641_v41 }
 0x553   : > { %v4150_v42 = vmul.f32 %v4126_v24, %v12636_v1  ;;  %v4124_v25 = vmul.f32 %v4100_v36, %v12641_v41  ;;  %v4103_v38 = vmul.f32 0.044715, %v12651_v12  ;;  %v12662_v61 = vadd.f32 %v12057_v35, %v4008_v56 }
 0x554   : > { %v12710_v24 = vmul.u32.u64.low 2863311531, %v12689_v19  ;;  %v12711_v36 = vmul.u32.u64.high 2863311531, %v12689_v19, %v12710_v24  ;;  %v4675_v56 = vsel %vm12698_vm1, %v4651_v17, %v4403_v49  ;;  %vm12730_vm2 = vcmp.lt.s32.totalorder %v4677_v9, 16 }
 0x555   : > { %v4174_v34 = vadd.f32 %v4150_v42, %v12636_v1  ;;  %v4148_v45 = vmul.f32 %v4124_v25, %v12641_v41  ;;  %v4127_v2 = vmul.f32 %v4103_v38, %v12651_v12  ;;  %v4101_v15 = vmul.f32 0.044715, %v12662_v61 }
 0x556   : > { %v4678_v42 = vsel %vm12702_vm10, %v4654_v0, %v4436_v5  ;;  %v12721_v25 = vadd.s32 168, %v16257_v6  ;;  %v4555_v38 = vshrl.u32 %v12677_v62, 4  ;;  %vm12734_vm6 = vcmp.lt.s32.totalorder %v4675_v56, 16 }
 0x557   : > { %v4198_v39 = vmul.f32 0.7978846, %v4174_v34  ;;  %v4172_v3 = vadd.f32 %v4148_v45, %v12641_v41  ;;  %v4151_v21 = vmul.f32 %v4127_v2, %v12651_v12  ;;  %v4125_v4 = vmul.f32 %v4101_v15, %v12662_v61 }
 0x558   : > { %vm12738_vm5 = vcmp.lt.s32.totalorder %v4678_v42, 16  ;;  %v4652_v2 = vadd.s32 24, %v12707_v33  ;;  %v12752_v8 = vmul.u32.u64.low 2863311531, %v12721_v25  ;;  %v12753_v5 = vmul.u32.u64.high 2863311531, %v12721_v25, %v12752_v8 }
 0x559   : > { %5552 = vtanh.f32 %v4198_v39  ;;  %v4196_v37 = vmul.f32 0.7978846, %v4172_v3  ;;  %v4175_v44 = vadd.f32 %v4151_v21, %v12651_v12  ;;  %v4149_v43 = vmul.f32 %v4125_v4, %v12662_v61 }
 0x55a   : > { %v4556_v4 = vmul.u32 24, %v4555_v38  ;;  %v4566_v59 = vshrl.u32 %v12711_v36, 4  ;;  %v4676_v1 = vsel %vm12744_vm9, %v4652_v2, %v12707_v33  ;;  %v4079_v0 = vmul.f32 0.5, %v12651_v12 }
 0x55b   : > { %5554 = vtanh.f32 %v4196_v37  ;;  %v4199_v57 = vmul.f32 0.7978846, %v4175_v44  ;;  %v4173_v26 = vadd.f32 %v4149_v43, %v12662_v61  ;;  %v4534_v37 = vmul.u32 24, %v4533_v16 }
 0x55c   : > { %v4077_v2 = vmul.f32 0.5, %v12662_v61  ;;  %vm4700_vm14 = vcmp.lt.s32.totalorder %v4676_v1, 16  ;;  %v4567_v1 = vmul.u32 24, %v4566_v59 }
 0x55d   : > { %5556 = vtanh.f32 %v4199_v57  ;;  %v4197_v47 = vmul.f32 0.7978846, %v4173_v26 }
 0x55f   : > { %5558 = vtanh.f32 %v4197_v47 }
 0x564   : > { %v5344_v58 = vpop.f32.mrf.mxu1 }
 0x565   : > { %v12728_v22 = vadd.f32 %v5344_v58, %v12057_v35 }
 0x566   : > { %v4053_v49 = vpop.f32.mrf.mxu1  ;;  %v5553_v15 = vpop.eup %5552 }
 0x567   : > { %v4114_v39 = vmul.f32 0.044715, %v12728_v22  ;;  %v12749_v21 = vadd.f32 %v12057_v35, %v4053_v49  ;;  %v4246_v62 = vadd.f32 1.0, %v5553_v15 }
 0x568   : > { %v5345_v44 = vpop.f32.mrf.mxu1  ;;  %v5555_v43 = vpop.eup %5554 }
 0x569   : > { %v4138_v20 = vmul.f32 %v4114_v39, %v12728_v22  ;;  %v4112_v54 = vmul.f32 0.044715, %v12749_v21  ;;  %v12759_v57 = vadd.f32 %v5345_v44, %v12057_v35  ;;  %v4270_v26 = vmul.f32 %v4246_v62, %v4078_v7 }
 0x56a   : > { %v4244_v55 = vadd.f32 1.0, %v5555_v43  ;;  %v4056_v51 = vpop.f32.mrf.mxu1  ;;  %v5557_v17 = vpop.eup %5556 }
 0x56b   : > { %v4162_v47 = vmul.f32 %v4138_v20, %v12728_v22  ;;  %v4136_v53 = vmul.f32 %v4112_v54, %v12749_v21  ;;  %v4115_v24 = vmul.f32 0.044715, %v12759_v57  ;;  %v12772_v36 = vsel %vm12730_vm2, %v4270_v26, 0.0 }
 0x56c   : > { %v4268_v41 = vmul.f32 %v4244_v55, %v4076_v31  ;;  %v4247_v9 = vadd.f32 1.0, %v5557_v17  ;;  %v12775_v56 = vadd.f32 %v12057_v35, %v4056_v51  ;;  %v5189_v33 = vpack.c.bf16 %v12772_v36, %v12772_v36  ;;  %v5559_v38 = vpop.eup %5558 }
 0x56d   : > { %v4186_v12 = vadd.f32 %v4162_v47, %v12728_v22  ;;  %v4160_v42 = vmul.f32 %v4136_v53, %v12749_v21  ;;  %v4139_v58 = vmul.f32 %v4115_v24, %v12759_v57  ;;  %v4245_v39 = vadd.f32 1.0, %v5559_v38 }
 0x56e   : > { %v12784_v16 = vsel %vm12734_vm6, %v4268_v41, 0.0  ;;  %v4271_v34 = vmul.f32 %v4247_v9, %v4079_v0  ;;  %v4113_v35 = vmul.f32 0.044715, %v12775_v56  ;;  %4894 = vst.msk [vmem:[%s12385_s24 + $0x28] sm:$0xf] %vm4883_vm11, %v5189_v33  ;;  %v4544_v20 = vshrl.u32 %v12753_v5, 4 }
 0x56f   : > { %v5187_v49 = vpack.c.bf16 %v12784_v16, %v12784_v16  ;;  %v4210_v15 = vmul.f32 0.7978846, %v4186_v12  ;;  %v4184_v3 = vadd.f32 %v4160_v42, %v12749_v21  ;;  %v4163_v8 = vmul.f32 %v4139_v58, %v12759_v57 }
 0x570   : > { %v12795_v45 = vsel %vm12738_vm5, %v4271_v34, 0.0  ;;  %v4137_v61 = vmul.f32 %v4113_v35, %v12775_v56  ;;  %v4269_v62 = vmul.f32 %v4245_v39, %v4077_v2  ;;  %v4557_v54 = vsub.s32 %v12659_v32, %v4556_v4 }
 0x571   : > { %4892 = vst.msk [vmem:[%s12385_s24 + $0x20] sm:$0xf] %vm4883_vm11, %v5187_v49  ;;  %v5190_v7 = vpack.c.bf16 %v12795_v45, %v12795_v45  ;;  %5560 = vtanh.f32 %v4210_v15  ;;  %v4208_v44 = vmul.f32 0.7978846, %v4184_v3  ;;  %v4187_v43 = vadd.f32 %v4163_v8, %v12759_v57 }
 0x572   : > { %v4161_v6 = vmul.f32 %v4137_v61, %v12775_v56  ;;  %v12809_v26 = vsel %vm4700_vm14, %v4269_v62, 0.0  ;;  %v4535_v17 = vsub.s32 %v12670_v48, %v4534_v37  ;;  %v4545_v0 = vmul.u32 24, %v4544_v20 }
 0x573   : > { %4895 = vst.msk [vmem:[%s12385_s24 + $0x2c] sm:$0xf] %vm4883_vm11, %v5190_v7  ;;  %5562 = vtanh.f32 %v4208_v44  ;;  %v5188_v31 = vpack.c.bf16 %v12809_v26, %v12809_v26  ;;  %v4211_v55 = vmul.f32 0.7978846, %v4187_v43  ;;  %vm4593_vm0 = vcmp.ne.s32.totalorder %v4557_v54, 0 }
 0x574   : > { %v4185_v51 = vadd.f32 %v4161_v6, %v12775_v56  ;;  %vm4617_vm8 = vcmp.lt.s32.totalorder %v4557_v54, 0  ;;  %v4568_v32 = vsub.s32 %v12689_v19, %v4567_v1  ;;  %v4665_v4 = vadd.s32 24, %v4557_v54 }
 0x575   : > { %4893 = vst.msk [vmem:[%s12385_s24 + $0x24] sm:$0xf] %vm4883_vm11, %v5188_v31  ;;  %5564 = vtanh.f32 %v4211_v55  ;;  %vm4591_vm12 = vcmp.ne.s32.totalorder %v4535_v17, 0  ;;  %vm4615_vm13 = vcmp.lt.s32.totalorder %v4535_v17, 0  ;;  %vm12818_vm4 = vmand %vm4617_vm8, %vm4593_vm0  ;;  %v4546_v59 = vsub.s32 %v12721_v25, %v4545_v0 }
 0x576   : > { %v4209_v5 = vmul.f32 0.7978846, %v4185_v51  ;;  %v4663_v48 = vadd.s32 24, %v4535_v17  ;;  %vm12823_vm7 = vmand %vm4615_vm13, %vm4591_vm12  ;;  %vm4594_vm1 = vcmp.ne.s32.totalorder %v4568_v32, 0  ;;  %vm4618_vm10 = vcmp.lt.s32.totalorder %v4568_v32, 0 }
 0x577   : > { %v4689_v19 = vsel %vm12818_vm4, %v4665_v4, %v4557_v54  ;;  %v4666_v24 = vadd.s32 24, %v4568_v32  ;;  %vm4592_vm3 = vcmp.ne.s32.totalorder %v4546_v59, 0  ;;  %vm4616_vm15 = vcmp.lt.s32.totalorder %v4546_v59, 0  ;;  %vm12832_vm2 = vmand %vm4618_vm10, %vm4594_vm1 }
 0x578   : > { %5566 = vtanh.f32 %v4209_v5  ;;  %v4090_v41 = vmul.f32 0.5, %v12728_v22  ;;  %v4687_v25 = vsel %vm12823_vm7, %v4663_v48, %v4535_v17  ;;  %vm4713_vm6 = vcmp.lt.s32.totalorder %v4689_v19, 16  ;;  %vm12837_vm5 = vmand %vm4616_vm15, %vm4592_vm3 }
 0x579   : > { %v4664_v42 = vadd.s32 24, %v4546_v59  ;;  %v4088_v38 = vmul.f32 0.5, %v12749_v21  ;;  %vm4711_vm9 = vcmp.lt.s32.totalorder %v4687_v25, 16  ;;  %v4690_v22 = vsel %vm12832_vm2, %v4666_v24, %v4568_v32 }
 0x57a   : > { %v4091_v3 = vmul.f32 0.5, %v12759_v57  ;;  %vm4714_vm14 = vcmp.lt.s32.totalorder %v4690_v22, 16  ;;  %v4089_v43 = vmul.f32 0.5, %v12775_v56 }
 0x57b   : > { %v4688_v8 = vsel %vm12837_vm5, %v4664_v42, %v4546_v59 }
 0x57c   : > { %vm4712_vm0 = vcmp.lt.s32.totalorder %v4688_v8, 16 }
 0x57e   : > { %v5561_v53 = vpop.eup %5560 }
 0x57f   : > { %v4258_v9 = vadd.f32 1.0, %v5561_v53 }
 0x580   : > { %v5563_v12 = vpop.eup %5562 }
 0x581   : > { %v4282_v58 = vmul.f32 %v4258_v9, %v4090_v41  ;;  %v4256_v34 = vadd.f32 1.0, %v5563_v12 }
 0x582   : > { %v5565_v35 = vpop.eup %5564 }
 0x583   : > { %v12843_v49 = vsel %vm4713_vm6, %v4282_v58, 0.0  ;;  %v4280_v15 = vmul.f32 %v4256_v34, %v4088_v38  ;;  %v4259_v21 = vadd.f32 1.0, %v5565_v35 }
 0x584   : > { %v5201_v39 = vpack.c.bf16 %v12843_v49, %v12843_v49 }
 0x585   : > { %v5567_v61 = vpop.eup %5566  ;;  %v12850_v7 = vsel %vm4711_vm9, %v4280_v15, 0.0  ;;  %v4283_v44 = vmul.f32 %v4259_v21, %v4091_v3 }
 0x586   : > { %4906 = vst.msk [vmem:[%s12385_s24 + $0x58] sm:$0xf] %vm4883_vm11, %v5201_v39  ;;  %v5199_v62 = vpack.c.bf16 %v12850_v7, %v12850_v7  ;;  %v4257_v57 = vadd.f32 1.0, %v5567_v61 }
 0x587   : > { %v12859_v6 = vsel %vm4714_vm14, %v4283_v44, 0.0 }
 0x588   : > { %4904 = vst.msk [vmem:[%s12385_s24 + $0x50] sm:$0xf] %vm4883_vm11, %v5199_v62  ;;  %v4281_v20 = vmul.f32 %v4257_v57, %v4089_v43  ;;  %v5202_v54 = vpack.c.bf16 %v12859_v6, %v12859_v6 }
 0x589   : > { %4911 = sbr.rel (%p5175_p0) target bundleno = 1424 (0x590), region = 52 }
 0x58a   : > { %v12863_v31 = vsel %vm4712_vm0, %v4281_v20, 0.0  ;;  %4907 = vst.msk [vmem:[%s12385_s24 + $0x5c] sm:$0xf] %vm4883_vm11, %v5202_v54 }
 0x58b   : > { %v5200_v55 = vpack.c.bf16 %v12863_v31, %v12863_v31 }
 0x58d   : > { %4905 = vst.msk [vmem:[%s12385_s24 + $0x54] sm:$0xf] %vm4883_vm11, %v5200_v55 }
 0x58e   : > { %vm4912_vm8 = vcmask 122880   ;;  %v5666_v56 = vmov 0.0  }
 0x58f   : > { %4913 = vst.msk [vmem:[%s12873_s13] sm:$0x1] %vm4912_vm8, %v5666_v56 }
 0x590 PF: > { %v4915_v1 = vmul.f32 %v12396_v29, %v12396_v29  ;;  %v4916_v51 = vmul.f32 %v12445_v10, %v12445_v10  ;;  %v4917_v17 = vmul.f32 %v12389_v14, %v12389_v14  ;;  %v4918_v5 = vmul.f32 %v12416_v46, %v12416_v46  ;;  %s5176_s30 = sshll.u32 %s5652_s9, 4  ;;  %s5022_s14 = sshll.u32 %s12873_s13, 4  ;;  %s5023_s14 = int_to_ptr.vmem [resolvable:$true] %s5022_s14 }
 0x591   : > { %vm4939_vm11 = vcmask 130048   ;;  %v4919_v0 = vmul.f32 %v12556_v23, %v12556_v23  ;;  %v4920_v10 = vmul.f32 %v12588_v50, %v12588_v50  ;;  %v4921_v46 = vmul.f32 %v12542_v52, %v12542_v52  ;;  %s5020_s16 = scalar_lea.hbm %s13006_s8, %s5176_s30  ;;  %s5006_s15 = scalar_lea.sflag [#allocation3], %s322_s26 }
 0x592   : > { %v4940_v32 = vsel %vm4939_vm11, %v4915_v1, 0.0  ;;  %v4941_v4 = vsel %vm4939_vm11, %v4916_v51, 0.0  ;;  %v4943_v47 = vsel %vm4939_vm11, %v4917_v17, 0.0  ;;  %v4945_v59 = vsel %vm4939_vm11, %v4918_v5, 0.0  ;;  %s5572_s25 = scalar_lea.vmem %s5023_s14, 16  ;;  %s5667_s23 = smov [#allocation2]  }
 0x593   : > { %v4942_v29 = vadd.f32 %v4941_v4, %v4940_v32  ;;  %v4947_v48 = vsel %vm4939_vm11, %v4919_v0, 0.0  ;;  %v4922_v23 = vmul.f32 %v12563_v27, %v12563_v27  ;;  %v4949_v19 = vsel %vm4939_vm11, %v4920_v10, 0.0  ;;  %p5573_p1 = scmp.ne.s32.totalorder %s5023_s14, %s5572_s25  ;;  %s5576_s19 = sshll.u32 %s5667_s23, 4  ;;  %s5577_s19 = int_to_ptr.vmem [resolvable:$false] %s5576_s19 }
 0x594   : > { %v4923_v24 = vmul.f32 %v12784_v16, %v12784_v16  ;;  %v4951_v50 = vsel %vm4939_vm11, %v4921_v46, 0.0  ;;  %v4924_v9 = vmul.f32 %v12809_v26, %v12809_v26  ;;  %v4925_v33 = vmul.f32 %v12772_v36, %v12772_v36  ;;  %s5578_s9 = scalar_lea.vmem %s5577_s19, 32  ;;  %p5579_p5 = scmp.lt.s32.totalorder %s5023_s14, %s5577_s19 }
 0x595   : > { %v4944_v14 = vadd.f32 %v4943_v47, %v4942_v29  ;;  %v4953_v52 = vsel %vm4939_vm11, %v4922_v23, 0.0  ;;  %v4926_v42 = vmul.f32 %v12795_v45, %v12795_v45  ;;  %v4927_v38 = vmul.f32 %v12459_v28, %v12459_v28  ;;  %p5574_p2 = pnand %p5573_p1, %p5762_p3  ;;  %p5580_p6 = scmp.lt.s32.totalorder %s5578_s9, %s5572_s25 }
 0x596   : > { %v4955_v27 = vsel %vm4939_vm11, %v4923_v24, 0.0  ;;  %v4957_v16 = vsel %vm4939_vm11, %v4924_v9, 0.0  ;;  %v4959_v26 = vsel %vm4939_vm11, %v4925_v33, 0.0  ;;  %v4928_v2 = vmul.f32 %v12532_v13, %v12532_v13 }
 0x597   : > { %v4946_v37 = vadd.f32 %v4945_v59, %v4944_v14  ;;  %v4961_v36 = vsel %vm4939_vm11, %v4926_v42, 0.0  ;;  %v4929_v35 = vmul.f32 %v12425_v60, %v12425_v60  ;;  %v4963_v45 = vsel %vm4939_vm11, %v4927_v38, 0.0  ;;  %p5575_p4 = pneg %p5574_p2  ;;  %p5581_p7 = por %p5580_p6, %p5579_p5 }
 0x598   : > { %v4930_v39 = vmul.f32 %v12487_v40, %v12487_v40  ;;  %v4965_v28 = vsel %vm4939_vm11, %v4928_v2, 0.0  ;;  %v4931_v21 = vmul.f32 %v12599_v30, %v12599_v30  ;;  %v4932_v61 = vmul.f32 %v12613_v11, %v12613_v11 }
 0x599   : > { %v4948_v53 = vadd.f32 %v4947_v48, %v4946_v37  ;;  %v4967_v13 = vsel %vm4939_vm11, %v4929_v35, 0.0  ;;  %v4933_v44 = vmul.f32 %v12569_v63, %v12569_v63  ;;  %v4934_v57 = vmul.f32 %v12607_v18, %v12607_v18  ;;  %v4914_v48 = vld [vmem:[%s12873_s13] sm:$0x1]  ;;  %p5582_p8 = pnand %p5581_p7, %p5575_p4 }
 0x59a   : > { %v4969_v60 = vsel %vm4939_vm11, %v4930_v39, 0.0  ;;  %v4971_v40 = vsel %vm4939_vm11, %v4931_v21, 0.0  ;;  %v4973_v30 = vsel %vm4939_vm11, %v4932_v61, 0.0  ;;  %v4935_v54 = vmul.f32 %v12850_v7, %v12850_v7 }
 0x59b   : > { %v4950_v41 = vadd.f32 %v4949_v19, %v4948_v53  ;;  %v4975_v11 = vsel %vm4939_vm11, %v4933_v44, 0.0  ;;  %v4936_v56 = vmul.f32 %v12863_v31, %v12863_v31  ;;  %v4977_v63 = vsel %vm4939_vm11, %v4934_v57, 0.0 }
 0x59c   : > { %v4937_v51 = vmul.f32 %v12843_v49, %v12843_v49  ;;  %v4979_v18 = vsel %vm4939_vm11, %v4935_v54, 0.0  ;;  %v4938_v7 = vmul.f32 %v12859_v6, %v12859_v6  ;;  %vm4994_vm12 = vcmask 122880  }
 0x59d   : > { %v4952_v25 = vadd.f32 %v4951_v50, %v4950_v41  ;;  %v4981_v5 = vsel %vm4939_vm11, %v4936_v56, 0.0 }
 0x59e   : > { %v4983_v31 = vsel %vm4939_vm11, %v4937_v51, 0.0  ;;  %v4985_v4 = vsel %vm4939_vm11, %v4938_v7, 0.0 }
 0x59f   : > { %v4954_v12 = vadd.f32 %v4953_v52, %v4952_v25 }
 0x5a1   : > { %v4956_v58 = vadd.f32 %v4955_v27, %v4954_v12 }
 0x5a3   : > { %v4958_v34 = vadd.f32 %v4957_v16, %v4956_v58 }
 0x5a5   : > { %v4960_v22 = vadd.f32 %v4959_v26, %v4958_v34 }
 0x5a7   : > { %v4962_v15 = vadd.f32 %v4961_v36, %v4960_v22 }
 0x5a9   : > { %v4964_v3 = vadd.f32 %v4963_v45, %v4962_v15 }
 0x5ab   : > { %v4966_v8 = vadd.f32 %v4965_v28, %v4964_v3 }
 0x5ad   : > { %v4968_v62 = vadd.f32 %v4967_v13, %v4966_v8 }
 0x5af   : > { %v4970_v43 = vadd.f32 %v4969_v60, %v4968_v62 }
 0x5b1   : > { %v4972_v20 = vadd.f32 %v4971_v40, %v4970_v43 }
 0x5b3   : > { %v4974_v55 = vadd.f32 %v4973_v30, %v4972_v20 }
 0x5b5   : > { %v4976_v1 = vadd.f32 %v4975_v11, %v4974_v55 }
 0x5b7   : > { %v4978_v17 = vadd.f32 %v4977_v63, %v4976_v1 }
 0x5b9   : > { %v4980_v0 = vadd.f32 %v4979_v18, %v4978_v17 }
 0x5bb   : > { %v4982_v32 = vadd.f32 %v4981_v5, %v4980_v0 }
 0x5bd   : > { %v4984_v47 = vadd.f32 %v4983_v31, %v4982_v32 }
 0x5bf   : > { %v4986_v49 = vadd.f32 %v4985_v4, %v4984_v47 }
 0x5c1   : > { %v4987_v29 = vrot.slane %v4986_v49, 4 }
 0x5c3   : > { %v4988_v10 = vadd.f32 %v4987_v29, %v4986_v49 }
 0x5c5   : > { %v4989_v59 = vrot.slane %v4988_v10, 2 }
 0x5c7   : > { %v4990_v14 = vadd.f32 %v4989_v59, %v4988_v10 }
 0x5c9   : > { %v4991_v46 = vrot.slane %v4990_v14, 1 }
 0x5cb   : > { %v4992_v6 = vadd.f32 %v4991_v46, %v4990_v14 }
 0x5cd   : > { %v4993_v37 = vadd.f32 %v4992_v6, %v4914_v48 }
 0x5cf   : > { %4995 = vst.msk [vmem:[%s12873_s13] sm:$0x1] %vm4994_vm12, %v4993_v37 }
 0x5d0   : > { %5585 = shalt.err (!%p5582_p8)
}
 0x5d1   : > { %s5586_s20 = scalar_lea.hbm %s5020_s16, 16  ;;  %s5590_s24 = scalar_lea.hbm %s13006_s8, 32 }
 0x5d2   : > { %p5587_p10 = scmp.ne.s32.totalorder %s5020_s16, %s5586_s20  ;;  %p5591_p13 = scmp.lt.s32.totalorder %s5020_s16, %s13006_s8 }
 0x5d3   : > { %p5592_p0 = scmp.lt.s32.totalorder %s5590_s24, %s5586_s20 }
 0x5d4   : > { %p5588_p11 = pnand %p5587_p10, %p5762_p3 }
 0x5d5   : > { %p5593_p1 = por %p5592_p0, %p5591_p13 }
 0x5d6   : > { %p5589_p12 = pneg %p5588_p11 }
 0x5d8   : > { %p5594_p2 = pnand %p5593_p1, %p5589_p12 }
 0x5da   : > { %5597 = shalt.err (!%p5594_p2)
}
 0x5db   : > { %5400 = dma.vmem_to_hbm [thread:$0]  (%p5762_p3), %s5023_s14, 16, %s5020_s16, %s5006_s15  }
 0x5dc PF: > { %p5406_p4 = scmp.ge.s32.totalorder %s5664_s12, 2  ;;  %s5046_s10 = sand.u32 1, %s5636_s27  }
 0x5dd   : > { %s5047_s11 = scalar_lea.sflag [#allocation3], %s5046_s10 }
 0x5de   : > { %p5403_p5 = pnand %p5406_p4, %p5772_p9 }
 0x5e0   : > { %p5404_p6 = pneg %p5403_p5 }
 0x5e2   : > { %5631 = dma.done.wait (%p5404_p6), %s5047_s11, 16  }
 0x5e3   : > { %5633 = vsyncadd (%p5404_p6), %s5047_s11, 4294967280  ;;  %s22_s12 = sadd.s32 1, %s5664_s12   ;;  %s16280_s30 = sld [smem:[#allocation5_spill]] }
 0x5e4   : > { %p19_p7 = scmp.ge.s32.totalorder %s22_s12, 6   ;;  %s16281_s9 = sld [smem:[#allocation6_spill]] }
 0x5e5   : > { %s16282_s10 = sld [smem:[#allocation7_spill]]  ;;  %s16284_s27 = smov %s5640_s28 }
 0x5e6   : > { %s16283_s11 = sld [smem:[#allocation8_spill]]  ;;  %s16285_s28 = smov %s5644_s29 }
 0x5e7   : > { %s16286_s29 = smov %s5780_s21  ;;  %21 = sbr.rel (!%p19_p7) target bundleno = 5 (0x5), region = 100 }
 0x5ec   :  { %5051 = vsyncpa [#allocation3], 1 }
 0x5ed   :  { %5053 = vsyncpa [#allocation3 + $0x1], 1 }

</bundles_post_ra>
